<compile_context>
chip_gen: v7x
topology: tpu7x:2x2x1
jax: 0.10.0
libtpu: 0.0.40
codegen_flags: <defaults>
</compile_context>

<pallas_src>
import functools

import jax
import jax.numpy as jnp
from jax.experimental import pallas as pl
from jax.experimental.pallas import tpu as pltpu

EPS = 1e-5    # nn.BatchNorm2d default eps
LPAD = 8      # left halo width along W (sublane axis) -> interior stores are 8-aligned
LANE = 128    # channel padding target (lane width / MXU N)


def _round_up(n, m):
    return (n + m - 1) // m * m


def _pick_band_size(B, H, W, target_pixels=2048):
    """Largest divisor of B whose band has <= target_pixels pixels (>=1)."""
    bb = max(1, min(B, target_pixels // max(1, H * W)))
    while B % bb:
        bb -= 1
    return bb


def _vmem_limit_bytes(band_b, H, W, Cin, Cimm_p, Cout_p, Fin, act_bytes):
    """Rough per-band VMEM footprint (scratches + double-buffered blocks + live temps)."""
    ws = W + LPAD + 1
    pads = band_b * (H + 2) * ws * (Cin + Cimm_p) * act_bytes          # halo scratches
    io_blocks = 2 * band_b * H * W * (Cin + Cout_p) * 4                # 2x-buffered x / a2
    live = band_b * H * W * (Cimm_p + 2 * Cout_p) * 4                  # f32 conv/film temps
    weights = (9 * Cin * Cimm_p + 9 * Cimm_p * Cout_p
               + 2 * (Fin + 1) * Cout_p) * act_bytes
    est = pads + io_blocks + live + weights
    return int(min(100 * 2 ** 20, max(8 * 2 ** 20, 2 * est)))


def _write_halo_and_interior(pad_ref, interior, H, W):
    """Zero only the halo cells the 3x3 taps read, then write the interior.

    Interior lives at rows 1..H, cols LPAD..LPAD+W-1 (sublane-aligned store).
    Cols 0..LPAD-2 are never read and stay uninitialized.
    """
    Bb = pad_ref.shape[0]
    C = pad_ref.shape[3]
    dt = pad_ref.dtype
    zrow = jnp.zeros((Bb, 1, W + 2, C), dt)
    pad_ref[:, 0:1, LPAD - 1:LPAD + W + 1, :] = zrow                    # top halo row
    pad_ref[:, H + 1:H + 2, LPAD - 1:LPAD + W + 1, :] = zrow            # bottom halo row
    zcol = jnp.zeros((Bb, H, 1, C), dt)
    pad_ref[:, 1:H + 1, LPAD - 1:LPAD, :] = zcol                        # left halo col
    pad_ref[:, 1:H + 1, LPAD + W:LPAD + W + 1, :] = zcol                # right halo col
    pad_ref[:, 1:H + 1, LPAD:LPAD + W, :] = interior.astype(dt)


def _conv3x3(pad_ref, w_ref, H, W):
    """3x3 'same' conv as 9 accumulating MXU dots; returns (Bb*H*W, Cout) f32.

    pad_ref: (Bb, H+2, W+LPAD+1, Cin) halo-padded activations (bf16 or f32).
    w_ref  : (9, Cin, Cout) tap-major weights (same dtype as pad_ref).
    """
    Bb = pad_ref.shape[0]
    Cin = pad_ref.shape[3]
    acc = None
    for t in range(9):
        dy, dx = divmod(t, 3)
        sl = pad_ref[:, dy:dy + H, LPAD - 1 + dx:LPAD - 1 + dx + W, :]
        lhs = sl.reshape(Bb * H * W, Cin)
        contrib = jnp.dot(lhs, w_ref[t], preferred_element_type=jnp.float32)
        acc = contrib if acc is None else acc + contrib
    return acc


# ------------------------- kernel A: conv1 + BN1 partial sums -------------------------
def _conv1_stats_kernel(x_ref, w1_ref, pstats_ref, xpad_ref):
    Bb, H, W, _ = x_ref.shape
    _write_halo_and_interior(xpad_ref, x_ref[...], H, W)
    h = _conv3x3(xpad_ref, w1_ref, H, W)                      # (Bb*H*W, Cimm_p) f32
    pstats_ref[:, 0:1, :] = jnp.sum(h, axis=0)[None, None, :]
    pstats_ref[:, 1:2, :] = jnp.sum(h * h, axis=0)[None, None, :]


# --------------- kernel B: conv1 -> BN1+relu -> conv2 -> FiLM (+ BN2 partials) --------
def _film_main_kernel(x_ref, y_ref, stats1_ref, w1_ref, w2_ref, b2_ref, wfb_ref,
                      a2_ref, pstats2_ref, xpad_ref, h1pad_ref):
    Bb, H, W, _ = x_ref.shape
    Cimm = w1_ref.shape[2]
    Cout = w2_ref.shape[2]
    HW = H * W

    # conv1 (recomputed; conv1 is cheap relative to conv2 / an h1 HBM round trip)
    _write_halo_and_interior(xpad_ref, x_ref[...], H, W)
    a1 = _conv3x3(xpad_ref, w1_ref, H, W)                     # (Bb*HW, Cimm) f32
    # BN1 with precomputed batch stats + relu.  conv1 bias is dropped: a per-channel
    # constant is cancelled exactly by the mean subtraction (identity affine).
    h1 = jnp.maximum((a1 - stats1_ref[0:1, :]) * stats1_ref[1:2, :], 0.0)

    # h1 stays resident in VMEM (cast once to the matmul dtype), halo-padded for conv2.
    _write_halo_and_interior(h1pad_ref, h1.reshape(Bb, H, W, Cimm), H, W)
    a2 = _conv3x3(h1pad_ref, w2_ref, H, W) + b2_ref[...]      # (Bb*HW, Cout) f32

    # FiLM: gamma|beta from ONE fused (Bb, Fin) @ (Fin, 2*Cout) matmul.
    row0 = pl.multiple_of(pl.program_id(0) * Bb, Bb)
    y_band = y_ref[pl.ds(row0, Bb), :]
    gb = jnp.dot(y_band, wfb_ref[...], preferred_element_type=jnp.float32)  # (Bb, 2*Cout)
    film = a2.reshape(Bb, HW, Cout) * gb[:, None, :Cout] + gb[:, None, Cout:]

    a2_ref[...] = film                                        # raw FiLM acts -> HBM
    f2 = film.reshape(Bb * HW, Cout)
    pstats2_ref[:, 0:1, :] = jnp.sum(f2, axis=0)[None, None, :]
    pstats2_ref[:, 1:2, :] = jnp.sum(f2 * f2, axis=0)[None, None, :]


# ------------------------------ kernel C: BN2 + relu ----------------------------------
def _bn2_relu_kernel(a2_ref, stats2_ref, out_ref):
    mean2 = stats2_ref[0:1, :][None]                          # (1, 1, Cout)
    inv2 = stats2_ref[1:2, :][None]
    out_ref[...] = jnp.maximum((a2_ref[...] - mean2) * inv2, 0.0)


def _finalize_stats(partials, npix):
    """partials: (nb, 2, C) per-band [sum, sum_sq] -> (2, C) [mean, invstd]."""
    s = jnp.sum(partials, axis=0)
    mean = s[0] / npix
    # NOTE: single-sweep E[x^2]-E[x]^2 (f32, clamped); can deviate from PyTorch's
    # two-pass batch variance for pathological large-mean/low-variance channels.
    var = jnp.maximum(s[1] / npix - mean * mean, 0.0)
    return jnp.stack([mean, jax.lax.rsqrt(var + EPS)], axis=0)


@functools.partial(jax.jit, static_argnames=("use_bf16_matmul", "band_b"))
def expert_controller_film(x_nchw, y, params, use_bf16_matmul=True, band_b=None):
    """Forward pass of ExpertControllerFiLM.  x is NCHW (PyTorch layout)."""
    x = jnp.transpose(x_nchw, (0, 2, 3, 1)).astype(jnp.float32)     # NCHW -> NHWC
    B, H, W, Cin = x.shape
    Fin = y.shape[1]
    w1, w2, b2 = params["w1"], params["w2"], params["b2"]           # (9,Cin,Cimm), (9,Cimm,Cout), (1,Cout)
    wf, bf = params["wf"], params["bf"]                             # (Fin, Cout) each
    Cimm, Cout = w1.shape[2], w2.shape[2]
    Cimm_p, Cout_p = _round_up(Cimm, LANE), _round_up(Cout, LANE)
    mm_dtype = jnp.bfloat16 if use_bf16_matmul else jnp.float32

    # Weight prep: pad channels to 128 multiples (lane-dense, full MXU N); pre-cast to
    # the MXU operand dtype in the wrapper (halves the weight DMA when bf16).
    w1p = jnp.pad(w1, ((0, 0), (0, 0), (0, Cimm_p - Cimm))).astype(mm_dtype)
    # params["b1"] is intentionally unused: BN1's mean subtraction cancels it exactly.
    w2p = jnp.pad(w2, ((0, 0), (0, Cimm_p - Cimm), (0, Cout_p - Cout))).astype(mm_dtype)
    b2p = jnp.pad(b2, ((0, 0), (0, Cout_p - Cout)))                               # f32
    wfb = jnp.concatenate([jnp.pad(wf, ((0, 0), (0, Cout_p - Cout))),
                           jnp.pad(bf, ((0, 0), (0, Cout_p - Cout)))],
                          axis=1).astype(mm_dtype)                                # (Fin, 2*Cout_p)
    y_p = y.astype(mm_dtype)

    if band_b is None:
        band_b = _pick_band_size(B, H, W)
    nb = B // band_b
    HW = H * W
    npix = float(B * HW)
    Ws = W + LPAD + 1
    act_bytes = 2 if use_bf16_matmul else 4
    vlim = _vmem_limit_bytes(band_b, H, W, Cin, Cimm_p, Cout_p, Fin, act_bytes)
    cparams = pltpu.CompilerParams(dimension_semantics=("parallel",),
                                   vmem_limit_bytes=vlim)

    # -------- call A: per-band conv1 + BN1 partial sums --------
    partial1 = pl.pallas_call(
        _conv1_stats_kernel,
        out_shape=jax.ShapeDtypeStruct((nb, 2, Cimm_p), jnp.float32),
        grid=(nb,),
        in_specs=[
            pl.BlockSpec((band_b, H, W, Cin), lambda i: (i, 0, 0, 0)),
            pl.BlockSpec(w1p.shape, lambda i: (0, 0, 0)),
        ],
        out_specs=pl.BlockSpec((1, 2, Cimm_p), lambda i: (i, 0, 0)),
        scratch_shapes=[pltpu.VMEM((band_b, H + 2, Ws, Cin), mm_dtype)],
        compiler_params=cparams,
    )(x, w1p)
    stats1 = _finalize_stats(partial1, npix)                  # (2, Cimm_p): mean, invstd

    # -------- call B: conv1 -> BN1+relu -> conv2 -> FiLM; BN2 partial sums --------
    a2, partial2 = pl.pallas_call(
        _film_main_kernel,
        out_shape=(jax.ShapeDtypeStruct((B, HW, Cout_p), jnp.float32),
                   jax.ShapeDtypeStruct((nb, 2, Cout_p), jnp.float32)),
        grid=(nb,),
        in_specs=[
            pl.BlockSpec((band_b, H, W, Cin), lambda i: (i, 0, 0, 0)),   # x band
            pl.BlockSpec(y_p.shape, lambda i: (0, 0)),                   # y (tiny, full)
            pl.BlockSpec((2, Cimm_p), lambda i: (0, 0)),                 # BN1 stats
            pl.BlockSpec(w1p.shape, lambda i: (0, 0, 0)),
            pl.BlockSpec(w2p.shape, lambda i: (0, 0, 0)),
            pl.BlockSpec((1, Cout_p), lambda i: (0, 0)),                 # conv2 bias
            pl.BlockSpec(wfb.shape, lambda i: (0, 0)),                   # fused FiLM weights
        ],
        out_specs=(pl.BlockSpec((band_b, HW, Cout_p), lambda i: (i, 0, 0)),
                   pl.BlockSpec((1, 2, Cout_p), lambda i: (i, 0, 0))),
        scratch_shapes=[pltpu.VMEM((band_b, H + 2, Ws, Cin), mm_dtype),      # xpad halo
                        pltpu.VMEM((band_b, H + 2, Ws, Cimm_p), mm_dtype)],  # h1pad halo
        compiler_params=cparams,
    )(x, y_p, stats1, w1p, w2p, b2p, wfb)
    stats2 = _finalize_stats(partial2, npix)                  # (2, Cout_p)

    # -------- call C: BN2 normalize + relu --------
    out3 = pl.pallas_call(
        _bn2_relu_kernel,
        out_shape=jax.ShapeDtypeStruct((B, HW, Cout_p), jnp.float32),
        grid=(nb,),
        in_specs=[pl.BlockSpec((band_b, HW, Cout_p), lambda i: (i, 0, 0)),
                  pl.BlockSpec((2, Cout_p), lambda i: (0, 0))],
        out_specs=pl.BlockSpec((band_b, HW, Cout_p), lambda i: (i, 0, 0)),
        compiler_params=cparams,
    )(a2, stats2)

    out = out3.reshape(B, H, W, Cout_p)[..., :Cout]           # crop padded channels
    return jnp.transpose(out, (0, 3, 1, 2))                   # NHWC -> NCHW


def init_params(key, in_features, out_features, in_channels, imm_channels):
    ks = jax.random.split(key, 6)
    # Conv2d keeps PyTorch default init: U(-1/sqrt(fan_in), 1/sqrt(fan_in)), fan_in = Cin*9.
    k1 = 1.0 / float(in_channels * 9) ** 0.5
    w1 = jax.random.uniform(ks[0], (3, 3, in_channels, imm_channels), jnp.float32, -k1, k1)
    b1 = jax.random.uniform(ks[1], (1, imm_channels), jnp.float32, -k1, k1)
    k2 = 1.0 / float(imm_channels * 9) ** 0.5
    w2 = jax.random.uniform(ks[2], (3, 3, imm_channels, out_features), jnp.float32, -k2, k2)
    b2 = jax.random.uniform(ks[3], (1, out_features), jnp.float32, -k2, k2)
    # Linear layers (initialize_parameters): N(0,1) rows, unit-L2-normalized; bias = 0.
    wf = jax.random.normal(ks[4], (out_features, in_features), jnp.float32)
    wf = wf / jnp.sqrt(jnp.sum(wf ** 2, axis=1, keepdims=True))
    bf = jax.random.normal(ks[5], (out_features, in_features), jnp.float32)
    bf = bf / jnp.sqrt(jnp.sum(bf ** 2, axis=1, keepdims=True))
    return {
        "w1": w1.reshape(9, in_channels, imm_channels),   # (tap, Cin, Cimm), tap-major
        "b1": b1,                                         # used only by the reference
        "w2": w2.reshape(9, imm_channels, out_features),  # (tap, Cimm, Cout)
        "b2": b2,
        "wf": wf.T,   # (Fin, Cout) so gamma = y @ wf
        "bf": bf.T,
        # BN affine is identity at init (gamma=1, beta=0) -> folded out.
    }


def _reference_forward(x_nchw, y, params):
    """Pure-JAX f32 reference of the PyTorch module (training-mode BN, eps=1e-5)."""
    x = jnp.transpose(x_nchw, (0, 2, 3, 1)).astype(jnp.float32)

    def conv(h, w):   # w: (9, Ci, Co) tap-major -> (3,3,Ci,Co) HWIO
        k = w.reshape(3, 3, w.shape[1], w.shape[2])
        return jax.lax.conv_general_dilated(
            h, k, window_strides=(1, 1), padding="SAME",
            dimension_numbers=("NHWC", "HWIO", "NHWC"))

    def bn(h):
        m = jnp.mean(h, axis=(0, 1, 2), keepdims=True)
        v = jnp.mean((h - m) ** 2, axis=(0, 1, 2), keepdims=True)
        return (h - m) / jnp.sqrt(v + EPS)

    h = jax.nn.relu(bn(conv(x, params["w1"]) + params["b1"][0]))
    h = conv(h, params["w2"]) + params["b2"][0]
    gamma = y @ params["wf"]
    beta = y @ params["bf"]
    h = h * gamma[:, None, None, :] + beta[:, None, None, :]
    h = jax.nn.relu(bn(h))
    return jnp.transpose(h, (0, 3, 1, 2))


if __name__ == "__main__":
    B, Cin, H, W = 2, 4, 16, 16
    Fin, Cimm, Cout = 32, 16, 16

    key = jax.random.PRNGKey(0)
    kx, ky, kp = jax.random.split(key, 3)
    x = jax.random.normal(kx, (B, Cin, H, W), jnp.float32)   # NCHW, PyTorch convention
    y = jax.random.normal(ky, (B, Fin), jnp.float32)
    params = init_params(kp, Fin, Cout, Cin, Cimm)

    ref = _reference_forward(x, y, params)

    # f32 MXU path: tight check against the pure-JAX reference (band_b=1 -> 2 bands,
    # exercising the multi-band partial-stat accumulation).
    out_f32 = expert_controller_film(x, y, params, use_bf16_matmul=False, band_b=1)
    jax.block_until_ready(out_f32)
    assert out_f32.shape == (B, Cout, H, W)
    err32 = float(jnp.max(jnp.abs(out_f32 - ref)))
    assert err32 < 5e-3, f"f32 path mismatch vs reference: {err32}"

    # Default path: bf16 MXU operands with f32 accumulation.
    out = expert_controller_film(x, y, params, band_b=1)
    jax.block_until_ready(out)
    assert out.shape == (B, Cout, H, W)
    assert bool(jnp.all(jnp.isfinite(out)))
    errbf = float(jnp.max(jnp.abs(out - ref)))
    assert errbf < 0.5, f"bf16 path diverged from reference: {errbf}"

    print("KERNEL_OK")
</pallas_src>

<mosaic_0001>
module attributes {stable_mosaic.version = 11 : i64} {
  func.func @_conv1_stats_kernel(%arg0: i32, %arg1: memref<1x16x16x4xf32, #tpu.memory_space<vmem>>, %arg2: memref<9x4x128xf32, #tpu.memory_space<vmem>>, %arg3: memref<1x2x128xf32, #tpu.memory_space<vmem>>, %arg4: memref<1x18x25x4xf32, #tpu.memory_space<vmem>>) attributes {dimension_semantics = [#tpu.dimension_semantics<parallel>], iteration_bounds = array<i64: 2>, scalar_prefetch = 0 : i64, scratch_operands = 1 : i64, tpu.core_type = #tpu.core_type<tc>, window_params = [{transform_indices = @transform_0, window_bounds = array<i64: 1, 16, 16, 4>}, {pipeline_mode = #tpu.pipeline_mode<synchronous>, transform_indices = @transform_1, window_bounds = array<i64: 9, 4, 128>}, {transform_indices = @transform_2, window_bounds = array<i64: 1, 2, 128>}]} {
    %c0 = arith.constant 0 : index
    %c0_0 = arith.constant 0 : index
    %c0_1 = arith.constant 0 : index
    %c0_2 = arith.constant 0 : index
    %0 = vector.load %arg1[%c0, %c0_0, %c0_1, %c0_2] : memref<1x16x16x4xf32, #tpu.memory_space<vmem>>, vector<1x16x16x4xf32>
    %cst = arith.constant 0.000000e+00 : f32
    %1 = vector.broadcast %cst : f32 to vector<1x1x18x4xf32>
    %c0_3 = arith.constant 0 : index
    %c0_4 = arith.constant 0 : index
    %c7 = arith.constant 7 : index
    %c0_5 = arith.constant 0 : index
    %2 = vector.load %arg4[%c0_3, %c0_4, %c7, %c0_5] : memref<1x18x25x4xf32, #tpu.memory_space<vmem>>, vector<1x1x18x4xf32>
    tpu.vector_store %arg4[%c0_3, %c0_4, %c7, %c0_5], %1 {strides = array<i32>} : memref<1x18x25x4xf32, #tpu.memory_space<vmem>>, vector<1x1x18x4xf32>,
    %c0_6 = arith.constant 0 : index
    %c17 = arith.constant 17 : index
    %c7_7 = arith.constant 7 : index
    %c0_8 = arith.constant 0 : index
    %3 = vector.load %arg4[%c0_6, %c17, %c7_7, %c0_8] : memref<1x18x25x4xf32, #tpu.memory_space<vmem>>, vector<1x1x18x4xf32>
    tpu.vector_store %arg4[%c0_6, %c17, %c7_7, %c0_8], %1 {strides = array<i32>} : memref<1x18x25x4xf32, #tpu.memory_space<vmem>>, vector<1x1x18x4xf32>,
    %cst_9 = arith.constant 0.000000e+00 : f32
    %4 = vector.broadcast %cst_9 : f32 to vector<1x16x1x4xf32>
    %c0_10 = arith.constant 0 : index
    %c1 = arith.constant 1 : index
    %c7_11 = arith.constant 7 : index
    %c0_12 = arith.constant 0 : index
    %5 = vector.load %arg4[%c0_10, %c1, %c7_11, %c0_12] : memref<1x18x25x4xf32, #tpu.memory_space<vmem>>, vector<1x16x1x4xf32>
    tpu.vector_store %arg4[%c0_10, %c1, %c7_11, %c0_12], %4 {strides = array<i32>} : memref<1x18x25x4xf32, #tpu.memory_space<vmem>>, vector<1x16x1x4xf32>,
    %c0_13 = arith.constant 0 : index
    %c1_14 = arith.constant 1 : index
    %c24 = arith.constant 24 : index
    %c0_15 = arith.constant 0 : index
    %6 = vector.load %arg4[%c0_13, %c1_14, %c24, %c0_15] : memref<1x18x25x4xf32, #tpu.memory_space<vmem>>, vector<1x16x1x4xf32>
    tpu.vector_store %arg4[%c0_13, %c1_14, %c24, %c0_15], %4 {strides = array<i32>} : memref<1x18x25x4xf32, #tpu.memory_space<vmem>>, vector<1x16x1x4xf32>,
    %c0_16 = arith.constant 0 : index
    %c1_17 = arith.constant 1 : index
    %c8 = arith.constant 8 : index
    %c0_18 = arith.constant 0 : index
    %7 = vector.load %arg4[%c0_16, %c1_17, %c8, %c0_18] : memref<1x18x25x4xf32, #tpu.memory_space<vmem>>, vector<1x16x16x4xf32>
    tpu.vector_store %arg4[%c0_16, %c1_17, %c8, %c0_18], %0 {strides = array<i32>} : memref<1x18x25x4xf32, #tpu.memory_space<vmem>>, vector<1x16x16x4xf32>,
    %c0_19 = arith.constant 0 : index
    %c0_20 = arith.constant 0 : index
    %c7_21 = arith.constant 7 : index
    %c0_22 = arith.constant 0 : index
    %8 = vector.load %arg4[%c0_19, %c0_20, %c7_21, %c0_22] : memref<1x18x25x4xf32, #tpu.memory_space<vmem>>, vector<1x16x16x4xf32>
    %9 = vector.shape_cast %8 : vector<1x16x16x4xf32> to vector<256x4xf32>
    %c0_23 = arith.constant 0 : index
    %c0_24 = arith.constant 0 : index
    %c0_25 = arith.constant 0 : index
    %10 = vector.load %arg2[%c0_23, %c0_24, %c0_25] : memref<9x4x128xf32, #tpu.memory_space<vmem>>, vector<1x4x128xf32>
    %11 = vector.shape_cast %10 : vector<1x4x128xf32> to vector<4x128xf32>
    %cst_26 = arith.constant dense<0.000000e+00> : vector<256x128xf32>
    %12 = tpu.matmul %9, %11, %cst_26 {dimension_numbers = #tpu.dot_dimension_numbers<[1], [0], [0], [1], [0, 0, 1, 1], [], []>} : vector<256x4xf32>, vector<4x128xf32>, vector<256x128xf32> -> vector<256x128xf32>
    %c0_27 = arith.constant 0 : index
    %c0_28 = arith.constant 0 : index
    %c8_29 = arith.constant 8 : index
    %c0_30 = arith.constant 0 : index
    %13 = vector.load %arg4[%c0_27, %c0_28, %c8_29, %c0_30] : memref<1x18x25x4xf32, #tpu.memory_space<vmem>>, vector<1x16x16x4xf32>
    %14 = vector.shape_cast %13 : vector<1x16x16x4xf32> to vector<256x4xf32>
    %c1_31 = arith.constant 1 : index
    %c0_32 = arith.constant 0 : index
    %c0_33 = arith.constant 0 : index
    %15 = vector.load %arg2[%c1_31, %c0_32, %c0_33] : memref<9x4x128xf32, #tpu.memory_space<vmem>>, vector<1x4x128xf32>
    %16 = vector.shape_cast %15 : vector<1x4x128xf32> to vector<4x128xf32>
    %cst_34 = arith.constant dense<0.000000e+00> : vector<256x128xf32>
    %17 = tpu.matmul %14, %16, %cst_34 {dimension_numbers = #tpu.dot_dimension_numbers<[1], [0], [0], [1], [0, 0, 1, 1], [], []>} : vector<256x4xf32>, vector<4x128xf32>, vector<256x128xf32> -> vector<256x128xf32>
    %18 = arith.addf %12, %17 : vector<256x128xf32>
    %c0_35 = arith.constant 0 : index
    %c0_36 = arith.constant 0 : index
    %c9 = arith.constant 9 : index
    %c0_37 = arith.constant 0 : index
    %19 = vector.load %arg4[%c0_35, %c0_36, %c9, %c0_37] : memref<1x18x25x4xf32, #tpu.memory_space<vmem>>, vector<1x16x16x4xf32>
    %20 = vector.shape_cast %19 : vector<1x16x16x4xf32> to vector<256x4xf32>
    %c2 = arith.constant 2 : index
    %c0_38 = arith.constant 0 : index
    %c0_39 = arith.constant 0 : index
    %21 = vector.load %arg2[%c2, %c0_38, %c0_39] : memref<9x4x128xf32, #tpu.memory_space<vmem>>, vector<1x4x128xf32>
    %22 = vector.shape_cast %21 : vector<1x4x128xf32> to vector<4x128xf32>
    %cst_40 = arith.constant dense<0.000000e+00> : vector<256x128xf32>
    %23 = tpu.matmul %20, %22, %cst_40 {dimension_numbers = #tpu.dot_dimension_numbers<[1], [0], [0], [1], [0, 0, 1, 1], [], []>} : vector<256x4xf32>, vector<4x128xf32>, vector<256x128xf32> -> vector<256x128xf32>
    %24 = arith.addf %18, %23 : vector<256x128xf32>
    %c0_41 = arith.constant 0 : index
    %c1_42 = arith.constant 1 : index
    %c7_43 = arith.constant 7 : index
    %c0_44 = arith.constant 0 : index
    %25 = vector.load %arg4[%c0_41, %c1_42, %c7_43, %c0_44] : memref<1x18x25x4xf32, #tpu.memory_space<vmem>>, vector<1x16x16x4xf32>
    %26 = vector.shape_cast %25 : vector<1x16x16x4xf32> to vector<256x4xf32>
    %c3 = arith.constant 3 : index
    %c0_45 = arith.constant 0 : index
    %c0_46 = arith.constant 0 : index
    %27 = vector.load %arg2[%c3, %c0_45, %c0_46] : memref<9x4x128xf32, #tpu.memory_space<vmem>>, vector<1x4x128xf32>
    %28 = vector.shape_cast %27 : vector<1x4x128xf32> to vector<4x128xf32>
    %cst_47 = arith.constant dense<0.000000e+00> : vector<256x128xf32>
    %29 = tpu.matmul %26, %28, %cst_47 {dimension_numbers = #tpu.dot_dimension_numbers<[1], [0], [0], [1], [0, 0, 1, 1], [], []>} : vector<256x4xf32>, vector<4x128xf32>, vector<256x128xf32> -> vector<256x128xf32>
    %30 = arith.addf %24, %29 : vector<256x128xf32>
    %c0_48 = arith.constant 0 : index
    %c1_49 = arith.constant 1 : index
    %c8_50 = arith.constant 8 : index
    %c0_51 = arith.constant 0 : index
    %31 = vector.load %arg4[%c0_48, %c1_49, %c8_50, %c0_51] : memref<1x18x25x4xf32, #tpu.memory_space<vmem>>, vector<1x16x16x4xf32>
    %32 = vector.shape_cast %31 : vector<1x16x16x4xf32> to vector<256x4xf32>
    %c4 = arith.constant 4 : index
    %c0_52 = arith.constant 0 : index
    %c0_53 = arith.constant 0 : index
    %33 = vector.load %arg2[%c4, %c0_52, %c0_53] : memref<9x4x128xf32, #tpu.memory_space<vmem>>, vector<1x4x128xf32>
    %34 = vector.shape_cast %33 : vector<1x4x128xf32> to vector<4x128xf32>
    %cst_54 = arith.constant dense<0.000000e+00> : vector<256x128xf32>
    %35 = tpu.matmul %32, %34, %cst_54 {dimension_numbers = #tpu.dot_dimension_numbers<[1], [0], [0], [1], [0, 0, 1, 1], [], []>} : vector<256x4xf32>, vector<4x128xf32>, vector<256x128xf32> -> vector<256x128xf32>
    %36 = arith.addf %30, %35 : vector<256x128xf32>
    %c0_55 = arith.constant 0 : index
    %c1_56 = arith.constant 1 : index
    %c9_57 = arith.constant 9 : index
    %c0_58 = arith.constant 0 : index
    %37 = vector.load %arg4[%c0_55, %c1_56, %c9_57, %c0_58] : memref<1x18x25x4xf32, #tpu.memory_space<vmem>>, vector<1x16x16x4xf32>
    %38 = vector.shape_cast %37 : vector<1x16x16x4xf32> to vector<256x4xf32>
    %c5 = arith.constant 5 : index
    %c0_59 = arith.constant 0 : index
    %c0_60 = arith.constant 0 : index
    %39 = vector.load %arg2[%c5, %c0_59, %c0_60] : memref<9x4x128xf32, #tpu.memory_space<vmem>>, vector<1x4x128xf32>
    %40 = vector.shape_cast %39 : vector<1x4x128xf32> to vector<4x128xf32>
    %cst_61 = arith.constant dense<0.000000e+00> : vector<256x128xf32>
    %41 = tpu.matmul %38, %40, %cst_61 {dimension_numbers = #tpu.dot_dimension_numbers<[1], [0], [0], [1], [0, 0, 1, 1], [], []>} : vector<256x4xf32>, vector<4x128xf32>, vector<256x128xf32> -> vector<256x128xf32>
    %42 = arith.addf %36, %41 : vector<256x128xf32>
    %c0_62 = arith.constant 0 : index
    %c2_63 = arith.constant 2 : index
    %c7_64 = arith.constant 7 : index
    %c0_65 = arith.constant 0 : index
    %43 = vector.load %arg4[%c0_62, %c2_63, %c7_64, %c0_65] : memref<1x18x25x4xf32, #tpu.memory_space<vmem>>, vector<1x16x16x4xf32>
    %44 = vector.shape_cast %43 : vector<1x16x16x4xf32> to vector<256x4xf32>
    %c6 = arith.constant 6 : index
    %c0_66 = arith.constant 0 : index
    %c0_67 = arith.constant 0 : index
    %45 = vector.load %arg2[%c6, %c0_66, %c0_67] : memref<9x4x128xf32, #tpu.memory_space<vmem>>, vector<1x4x128xf32>
    %46 = vector.shape_cast %45 : vector<1x4x128xf32> to vector<4x128xf32>
    %cst_68 = arith.constant dense<0.000000e+00> : vector<256x128xf32>
    %47 = tpu.matmul %44, %46, %cst_68 {dimension_numbers = #tpu.dot_dimension_numbers<[1], [0], [0], [1], [0, 0, 1, 1], [], []>} : vector<256x4xf32>, vector<4x128xf32>, vector<256x128xf32> -> vector<256x128xf32>
    %48 = arith.addf %42, %47 : vector<256x128xf32>
    %c0_69 = arith.constant 0 : index
    %c2_70 = arith.constant 2 : index
    %c8_71 = arith.constant 8 : index
    %c0_72 = arith.constant 0 : index
    %49 = vector.load %arg4[%c0_69, %c2_70, %c8_71, %c0_72] : memref<1x18x25x4xf32, #tpu.memory_space<vmem>>, vector<1x16x16x4xf32>
    %50 = vector.shape_cast %49 : vector<1x16x16x4xf32> to vector<256x4xf32>
    %c7_73 = arith.constant 7 : index
    %c0_74 = arith.constant 0 : index
    %c0_75 = arith.constant 0 : index
    %51 = vector.load %arg2[%c7_73, %c0_74, %c0_75] : memref<9x4x128xf32, #tpu.memory_space<vmem>>, vector<1x4x128xf32>
    %52 = vector.shape_cast %51 : vector<1x4x128xf32> to vector<4x128xf32>
    %cst_76 = arith.constant dense<0.000000e+00> : vector<256x128xf32>
    %53 = tpu.matmul %50, %52, %cst_76 {dimension_numbers = #tpu.dot_dimension_numbers<[1], [0], [0], [1], [0, 0, 1, 1], [], []>} : vector<256x4xf32>, vector<4x128xf32>, vector<256x128xf32> -> vector<256x128xf32>
    %54 = arith.addf %48, %53 : vector<256x128xf32>
    %c0_77 = arith.constant 0 : index
    %c2_78 = arith.constant 2 : index
    %c9_79 = arith.constant 9 : index
    %c0_80 = arith.constant 0 : index
    %55 = vector.load %arg4[%c0_77, %c2_78, %c9_79, %c0_80] : memref<1x18x25x4xf32, #tpu.memory_space<vmem>>, vector<1x16x16x4xf32>
    %56 = vector.shape_cast %55 : vector<1x16x16x4xf32> to vector<256x4xf32>
    %c8_81 = arith.constant 8 : index
    %c0_82 = arith.constant 0 : index
    %c0_83 = arith.constant 0 : index
    %57 = vector.load %arg2[%c8_81, %c0_82, %c0_83] : memref<9x4x128xf32, #tpu.memory_space<vmem>>, vector<1x4x128xf32>
    %58 = vector.shape_cast %57 : vector<1x4x128xf32> to vector<4x128xf32>
    %cst_84 = arith.constant dense<0.000000e+00> : vector<256x128xf32>
    %59 = tpu.matmul %56, %58, %cst_84 {dimension_numbers = #tpu.dot_dimension_numbers<[1], [0], [0], [1], [0, 0, 1, 1], [], []>} : vector<256x4xf32>, vector<4x128xf32>, vector<256x128xf32> -> vector<256x128xf32>
    %60 = arith.addf %54, %59 : vector<256x128xf32>
    %cst_85 = arith.constant dense<0.000000e+00> : vector<128xf32>
    %61 = vector.multi_reduction <add>, %60, %cst_85 [0] : vector<256x128xf32> to vector<128xf32>
    %62 = vector.shape_cast %61 : vector<128xf32> to vector<1x1x128xf32>
    %c0_86 = arith.constant 0 : index
    %c0_87 = arith.constant 0 : index
    %c0_88 = arith.constant 0 : index
    %63 = vector.load %arg3[%c0_86, %c0_87, %c0_88] : memref<1x2x128xf32, #tpu.memory_space<vmem>>, vector<1x1x128xf32>
    tpu.vector_store %arg3[%c0_86, %c0_87, %c0_88], %62 {strides = array<i32>} : memref<1x2x128xf32, #tpu.memory_space<vmem>>, vector<1x1x128xf32>,
    %64 = arith.mulf %60, %60 : vector<256x128xf32>
    %cst_89 = arith.constant dense<0.000000e+00> : vector<128xf32>
    %65 = vector.multi_reduction <add>, %64, %cst_89 [0] : vector<256x128xf32> to vector<128xf32>
    %66 = vector.shape_cast %65 : vector<128xf32> to vector<1x1x128xf32>
    %c0_90 = arith.constant 0 : index
    %c1_91 = arith.constant 1 : index
    %c0_92 = arith.constant 0 : index
    %67 = vector.load %arg3[%c0_90, %c1_91, %c0_92] : memref<1x2x128xf32, #tpu.memory_space<vmem>>, vector<1x1x128xf32>
    tpu.vector_store %arg3[%c0_90, %c1_91, %c0_92], %66 {strides = array<i32>} : memref<1x2x128xf32, #tpu.memory_space<vmem>>, vector<1x1x128xf32>,
    return
  }
  func.func @transform_0(%arg0: i32) -> (i32, i32, i32, i32) {
    %c0_i32 = arith.constant 0 : i32
    %c0_i32_0 = arith.constant 0 : i32
    %c0_i32_1 = arith.constant 0 : i32
    %c0_i32_2 = arith.constant 0 : i32
    return %arg0, %c0_i32, %c0_i32_0, %c0_i32_1 : i32, i32, i32, i32
  }
  func.func @transform_1(%arg0: i32) -> (i32, i32, i32) {
    %c0_i32 = arith.constant 0 : i32
    %c0_i32_0 = arith.constant 0 : i32
    %c0_i32_1 = arith.constant 0 : i32
    %c0_i32_2 = arith.constant 0 : i32
    return %c0_i32, %c0_i32_0, %c0_i32_1 : i32, i32, i32
  }
  func.func @transform_2(%arg0: i32) -> (i32, i32, i32) {
    %c0_i32 = arith.constant 0 : i32
    %c0_i32_0 = arith.constant 0 : i32
    %c0_i32_1 = arith.constant 0 : i32
    return %arg0, %c0_i32, %c0_i32_0 : i32, i32, i32
  }
}

module attributes {stable_mosaic.version = 11 : i64} {
  func.func @_bn2_relu_kernel(%arg0: i32, %arg1: memref<1x256x128xf32, #tpu.memory_space<vmem>>, %arg2: memref<2x128xf32, #tpu.memory_space<vmem>>, %arg3: memref<1x256x128xf32, #tpu.memory_space<vmem>>) attributes {dimension_semantics = [#tpu.dimension_semantics<parallel>], iteration_bounds = array<i64: 2>, scalar_prefetch = 0 : i64, scratch_operands = 0 : i64, tpu.core_type = #tpu.core_type<tc>, window_params = [{transform_indices = @transform_0, window_bounds = array<i64: 1, 256, 128>}, {pipeline_mode = #tpu.pipeline_mode<synchronous>, transform_indices = @transform_1, window_bounds = array<i64: 2, 128>}, {transform_indices = @transform_2, window_bounds = array<i64: 1, 256, 128>}]} {
    %c0 = arith.constant 0 : index
    %c0_0 = arith.constant 0 : index
    %0 = vector.load %arg2[%c0, %c0_0] : memref<2x128xf32, #tpu.memory_space<vmem>>, vector<1x128xf32>
    %1 = vector.shape_cast %0 : vector<1x128xf32> to vector<1x1x128xf32>
    %c1 = arith.constant 1 : index
    %c0_1 = arith.constant 0 : index
    %2 = vector.load %arg2[%c1, %c0_1] : memref<2x128xf32, #tpu.memory_space<vmem>>, vector<1x128xf32>
    %3 = vector.shape_cast %2 : vector<1x128xf32> to vector<1x1x128xf32>
    %c0_2 = arith.constant 0 : index
    %c0_3 = arith.constant 0 : index
    %c0_4 = arith.constant 0 : index
    %4 = vector.load %arg1[%c0_2, %c0_3, %c0_4] : memref<1x256x128xf32, #tpu.memory_space<vmem>>, vector<1x256x128xf32>
    %5 = vector.broadcast %1 : vector<1x1x128xf32> to vector<1x256x128xf32>
    %6 = arith.subf %4, %5 : vector<1x256x128xf32>
    %7 = vector.broadcast %3 : vector<1x1x128xf32> to vector<1x256x128xf32>
    %8 = arith.mulf %6, %7 : vector<1x256x128xf32>
    %cst = arith.constant 0.000000e+00 : f32
    %9 = vector.broadcast %cst : f32 to vector<1x256x128xf32>
    %10 = arith.maximumf %8, %9 : vector<1x256x128xf32>
    %c0_5 = arith.constant 0 : index
    %c0_6 = arith.constant 0 : index
    %c0_7 = arith.constant 0 : index
    %11 = vector.load %arg3[%c0_5, %c0_6, %c0_7] : memref<1x256x128xf32, #tpu.memory_space<vmem>>, vector<1x256x128xf32>
    tpu.vector_store %arg3[%c0_5, %c0_6, %c0_7], %10 {strides = array<i32>} : memref<1x256x128xf32, #tpu.memory_space<vmem>>, vector<1x256x128xf32>,
    return
  }
  func.func @transform_0(%arg0: i32) -> (i32, i32, i32) {
    %c0_i32 = arith.constant 0 : i32
    %c0_i32_0 = arith.constant 0 : i32
    %c0_i32_1 = arith.constant 0 : i32
    return %arg0, %c0_i32, %c0_i32_0 : i32, i32, i32
  }
  func.func @transform_1(%arg0: i32) -> (i32, i32) {
    %c0_i32 = arith.constant 0 : i32
    %c0_i32_0 = arith.constant 0 : i32
    %c0_i32_1 = arith.constant 0 : i32
    return %c0_i32, %c0_i32_0 : i32, i32
  }
  func.func @transform_2(%arg0: i32) -> (i32, i32, i32) {
    %c0_i32 = arith.constant 0 : i32
    %c0_i32_0 = arith.constant 0 : i32
    %c0_i32_1 = arith.constant 0 : i32
    return %arg0, %c0_i32, %c0_i32_0 : i32, i32, i32
  }
}

module attributes {stable_mosaic.version = 11 : i64} {
  func.func @_film_main_kernel(%arg0: i32, %arg1: memref<1x16x16x4xf32, #tpu.memory_space<vmem>>, %arg2: memref<2x32xf32, #tpu.memory_space<vmem>>, %arg3: memref<2x128xf32, #tpu.memory_space<vmem>>, %arg4: memref<9x4x128xf32, #tpu.memory_space<vmem>>, %arg5: memref<9x128x128xf32, #tpu.memory_space<vmem>>, %arg6: memref<1x128xf32, #tpu.memory_space<vmem>>, %arg7: memref<32x256xf32, #tpu.memory_space<vmem>>, %arg8: memref<1x256x128xf32, #tpu.memory_space<vmem>>, %arg9: memref<1x2x128xf32, #tpu.memory_space<vmem>>, %arg10: memref<1x18x25x4xf32, #tpu.memory_space<vmem>>, %arg11: memref<1x18x25x128xf32, #tpu.memory_space<vmem>>) attributes {dimension_semantics = [#tpu.dimension_semantics<parallel>], iteration_bounds = array<i64: 2>, scalar_prefetch = 0 : i64, scratch_operands = 2 : i64, tpu.core_type = #tpu.core_type<tc>, window_params = [{transform_indices = @transform_0, window_bounds = array<i64: 1, 16, 16, 4>}, {pipeline_mode = #tpu.pipeline_mode<synchronous>, transform_indices = @transform_1, window_bounds = array<i64: 2, 32>}, {pipeline_mode = #tpu.pipeline_mode<synchronous>, transform_indices = @transform_2, window_bounds = array<i64: 2, 128>}, {pipeline_mode = #tpu.pipeline_mode<synchronous>, transform_indices = @transform_3, window_bounds = array<i64: 9, 4, 128>}, {pipeline_mode = #tpu.pipeline_mode<synchronous>, transform_indices = @transform_4, window_bounds = array<i64: 9, 128, 128>}, {pipeline_mode = #tpu.pipeline_mode<synchronous>, transform_indices = @transform_5, window_bounds = array<i64: 1, 128>}, {pipeline_mode = #tpu.pipeline_mode<synchronous>, transform_indices = @transform_6, window_bounds = array<i64: 32, 256>}, {transform_indices = @transform_7, window_bounds = array<i64: 1, 256, 128>}, {transform_indices = @transform_8, window_bounds = array<i64: 1, 2, 128>}]} {
    %c0 = arith.constant 0 : index
    %c0_0 = arith.constant 0 : index
    %c0_1 = arith.constant 0 : index
    %c0_2 = arith.constant 0 : index
    %0 = vector.load %arg1[%c0, %c0_0, %c0_1, %c0_2] : memref<1x16x16x4xf32, #tpu.memory_space<vmem>>, vector<1x16x16x4xf32>
    %cst = arith.constant 0.000000e+00 : f32
    %1 = vector.broadcast %cst : f32 to vector<1x1x18x4xf32>
    %c0_3 = arith.constant 0 : index
    %c0_4 = arith.constant 0 : index
    %c7 = arith.constant 7 : index
    %c0_5 = arith.constant 0 : index
    %2 = vector.load %arg10[%c0_3, %c0_4, %c7, %c0_5] : memref<1x18x25x4xf32, #tpu.memory_space<vmem>>, vector<1x1x18x4xf32>
    tpu.vector_store %arg10[%c0_3, %c0_4, %c7, %c0_5], %1 {strides = array<i32>} : memref<1x18x25x4xf32, #tpu.memory_space<vmem>>, vector<1x1x18x4xf32>,
    %c0_6 = arith.constant 0 : index
    %c17 = arith.constant 17 : index
    %c7_7 = arith.constant 7 : index
    %c0_8 = arith.constant 0 : index
    %3 = vector.load %arg10[%c0_6, %c17, %c7_7, %c0_8] : memref<1x18x25x4xf32, #tpu.memory_space<vmem>>, vector<1x1x18x4xf32>
    tpu.vector_store %arg10[%c0_6, %c17, %c7_7, %c0_8], %1 {strides = array<i32>} : memref<1x18x25x4xf32, #tpu.memory_space<vmem>>, vector<1x1x18x4xf32>,
    %cst_9 = arith.constant 0.000000e+00 : f32
    %4 = vector.broadcast %cst_9 : f32 to vector<1x16x1x4xf32>
    %c0_10 = arith.constant 0 : index
    %c1 = arith.constant 1 : index
    %c7_11 = arith.constant 7 : index
    %c0_12 = arith.constant 0 : index
    %5 = vector.load %arg10[%c0_10, %c1, %c7_11, %c0_12] : memref<1x18x25x4xf32, #tpu.memory_space<vmem>>, vector<1x16x1x4xf32>
    tpu.vector_store %arg10[%c0_10, %c1, %c7_11, %c0_12], %4 {strides = array<i32>} : memref<1x18x25x4xf32, #tpu.memory_space<vmem>>, vector<1x16x1x4xf32>,
    %c0_13 = arith.constant 0 : index
    %c1_14 = arith.constant 1 : index
    %c24 = arith.constant 24 : index
    %c0_15 = arith.constant 0 : index
    %6 = vector.load %arg10[%c0_13, %c1_14, %c24, %c0_15] : memref<1x18x25x4xf32, #tpu.memory_space<vmem>>, vector<1x16x1x4xf32>
    tpu.vector_store %arg10[%c0_13, %c1_14, %c24, %c0_15], %4 {strides = array<i32>} : memref<1x18x25x4xf32, #tpu.memory_space<vmem>>, vector<1x16x1x4xf32>,
    %c0_16 = arith.constant 0 : index
    %c1_17 = arith.constant 1 : index
    %c8 = arith.constant 8 : index
    %c0_18 = arith.constant 0 : index
    %7 = vector.load %arg10[%c0_16, %c1_17, %c8, %c0_18] : memref<1x18x25x4xf32, #tpu.memory_space<vmem>>, vector<1x16x16x4xf32>
    tpu.vector_store %arg10[%c0_16, %c1_17, %c8, %c0_18], %0 {strides = array<i32>} : memref<1x18x25x4xf32, #tpu.memory_space<vmem>>, vector<1x16x16x4xf32>,
    %c0_19 = arith.constant 0 : index
    %c0_20 = arith.constant 0 : index
    %c7_21 = arith.constant 7 : index
    %c0_22 = arith.constant 0 : index
    %8 = vector.load %arg10[%c0_19, %c0_20, %c7_21, %c0_22] : memref<1x18x25x4xf32, #tpu.memory_space<vmem>>, vector<1x16x16x4xf32>
    %9 = vector.shape_cast %8 : vector<1x16x16x4xf32> to vector<256x4xf32>
    %c0_23 = arith.constant 0 : index
    %c0_24 = arith.constant 0 : index
    %c0_25 = arith.constant 0 : index
    %10 = vector.load %arg4[%c0_23, %c0_24, %c0_25] : memref<9x4x128xf32, #tpu.memory_space<vmem>>, vector<1x4x128xf32>
    %11 = vector.shape_cast %10 : vector<1x4x128xf32> to vector<4x128xf32>
    %cst_26 = arith.constant dense<0.000000e+00> : vector<256x128xf32>
    %12 = tpu.matmul %9, %11, %cst_26 {dimension_numbers = #tpu.dot_dimension_numbers<[1], [0], [0], [1], [0, 0, 1, 1], [], []>} : vector<256x4xf32>, vector<4x128xf32>, vector<256x128xf32> -> vector<256x128xf32>
    %c0_27 = arith.constant 0 : index
    %c0_28 = arith.constant 0 : index
    %c8_29 = arith.constant 8 : index
    %c0_30 = arith.constant 0 : index
    %13 = vector.load %arg10[%c0_27, %c0_28, %c8_29, %c0_30] : memref<1x18x25x4xf32, #tpu.memory_space<vmem>>, vector<1x16x16x4xf32>
    %14 = vector.shape_cast %13 : vector<1x16x16x4xf32> to vector<256x4xf32>
    %c1_31 = arith.constant 1 : index
    %c0_32 = arith.constant 0 : index
    %c0_33 = arith.constant 0 : index
    %15 = vector.load %arg4[%c1_31, %c0_32, %c0_33] : memref<9x4x128xf32, #tpu.memory_space<vmem>>, vector<1x4x128xf32>
    %16 = vector.shape_cast %15 : vector<1x4x128xf32> to vector<4x128xf32>
    %cst_34 = arith.constant dense<0.000000e+00> : vector<256x128xf32>
    %17 = tpu.matmul %14, %16, %cst_34 {dimension_numbers = #tpu.dot_dimension_numbers<[1], [0], [0], [1], [0, 0, 1, 1], [], []>} : vector<256x4xf32>, vector<4x128xf32>, vector<256x128xf32> -> vector<256x128xf32>
    %18 = arith.addf %12, %17 : vector<256x128xf32>
    %c0_35 = arith.constant 0 : index
    %c0_36 = arith.constant 0 : index
    %c9 = arith.constant 9 : index
    %c0_37 = arith.constant 0 : index
    %19 = vector.load %arg10[%c0_35, %c0_36, %c9, %c0_37] : memref<1x18x25x4xf32, #tpu.memory_space<vmem>>, vector<1x16x16x4xf32>
    %20 = vector.shape_cast %19 : vector<1x16x16x4xf32> to vector<256x4xf32>
    %c2 = arith.constant 2 : index
    %c0_38 = arith.constant 0 : index
    %c0_39 = arith.constant 0 : index
    %21 = vector.load %arg4[%c2, %c0_38, %c0_39] : memref<9x4x128xf32, #tpu.memory_space<vmem>>, vector<1x4x128xf32>
    %22 = vector.shape_cast %21 : vector<1x4x128xf32> to vector<4x128xf32>
    %cst_40 = arith.constant dense<0.000000e+00> : vector<256x128xf32>
    %23 = tpu.matmul %20, %22, %cst_40 {dimension_numbers = #tpu.dot_dimension_numbers<[1], [0], [0], [1], [0, 0, 1, 1], [], []>} : vector<256x4xf32>, vector<4x128xf32>, vector<256x128xf32> -> vector<256x128xf32>
    %24 = arith.addf %18, %23 : vector<256x128xf32>
    %c0_41 = arith.constant 0 : index
    %c1_42 = arith.constant 1 : index
    %c7_43 = arith.constant 7 : index
    %c0_44 = arith.constant 0 : index
    %25 = vector.load %arg10[%c0_41, %c1_42, %c7_43, %c0_44] : memref<1x18x25x4xf32, #tpu.memory_space<vmem>>, vector<1x16x16x4xf32>
    %26 = vector.shape_cast %25 : vector<1x16x16x4xf32> to vector<256x4xf32>
    %c3 = arith.constant 3 : index
    %c0_45 = arith.constant 0 : index
    %c0_46 = arith.constant 0 : index
    %27 = vector.load %arg4[%c3, %c0_45, %c0_46] : memref<9x4x128xf32, #tpu.memory_space<vmem>>, vector<1x4x128xf32>
    %28 = vector.shape_cast %27 : vector<1x4x128xf32> to vector<4x128xf32>
    %cst_47 = arith.constant dense<0.000000e+00> : vector<256x128xf32>
    %29 = tpu.matmul %26, %28, %cst_47 {dimension_numbers = #tpu.dot_dimension_numbers<[1], [0], [0], [1], [0, 0, 1, 1], [], []>} : vector<256x4xf32>, vector<4x128xf32>, vector<256x128xf32> -> vector<256x128xf32>
    %30 = arith.addf %24, %29 : vector<256x128xf32>
    %c0_48 = arith.constant 0 : index
    %c1_49 = arith.constant 1 : index
    %c8_50 = arith.constant 8 : index
    %c0_51 = arith.constant 0 : index
    %31 = vector.load %arg10[%c0_48, %c1_49, %c8_50, %c0_51] : memref<1x18x25x4xf32, #tpu.memory_space<vmem>>, vector<1x16x16x4xf32>
    %32 = vector.shape_cast %31 : vector<1x16x16x4xf32> to vector<256x4xf32>
    %c4 = arith.constant 4 : index
    %c0_52 = arith.constant 0 : index
    %c0_53 = arith.constant 0 : index
    %33 = vector.load %arg4[%c4, %c0_52, %c0_53] : memref<9x4x128xf32, #tpu.memory_space<vmem>>, vector<1x4x128xf32>
    %34 = vector.shape_cast %33 : vector<1x4x128xf32> to vector<4x128xf32>
    %cst_54 = arith.constant dense<0.000000e+00> : vector<256x128xf32>
    %35 = tpu.matmul %32, %34, %cst_54 {dimension_numbers = #tpu.dot_dimension_numbers<[1], [0], [0], [1], [0, 0, 1, 1], [], []>} : vector<256x4xf32>, vector<4x128xf32>, vector<256x128xf32> -> vector<256x128xf32>
    %36 = arith.addf %30, %35 : vector<256x128xf32>
    %c0_55 = arith.constant 0 : index
    %c1_56 = arith.constant 1 : index
    %c9_57 = arith.constant 9 : index
    %c0_58 = arith.constant 0 : index
    %37 = vector.load %arg10[%c0_55, %c1_56, %c9_57, %c0_58] : memref<1x18x25x4xf32, #tpu.memory_space<vmem>>, vector<1x16x16x4xf32>
    %38 = vector.shape_cast %37 : vector<1x16x16x4xf32> to vector<256x4xf32>
    %c5 = arith.constant 5 : index
    %c0_59 = arith.constant 0 : index
    %c0_60 = arith.constant 0 : index
    %39 = vector.load %arg4[%c5, %c0_59, %c0_60] : memref<9x4x128xf32, #tpu.memory_space<vmem>>, vector<1x4x128xf32>
    %40 = vector.shape_cast %39 : vector<1x4x128xf32> to vector<4x128xf32>
    %cst_61 = arith.constant dense<0.000000e+00> : vector<256x128xf32>
    %41 = tpu.matmul %38, %40, %cst_61 {dimension_numbers = #tpu.dot_dimension_numbers<[1], [0], [0], [1], [0, 0, 1, 1], [], []>} : vector<256x4xf32>, vector<4x128xf32>, vector<256x128xf32> -> vector<256x128xf32>
    %42 = arith.addf %36, %41 : vector<256x128xf32>
    %c0_62 = arith.constant 0 : index
    %c2_63 = arith.constant 2 : index
    %c7_64 = arith.constant 7 : index
    %c0_65 = arith.constant 0 : index
    %43 = vector.load %arg10[%c0_62, %c2_63, %c7_64, %c0_65] : memref<1x18x25x4xf32, #tpu.memory_space<vmem>>, vector<1x16x16x4xf32>
    %44 = vector.shape_cast %43 : vector<1x16x16x4xf32> to vector<256x4xf32>
    %c6 = arith.constant 6 : index
    %c0_66 = arith.constant 0 : index
    %c0_67 = arith.constant 0 : index
    %45 = vector.load %arg4[%c6, %c0_66, %c0_67] : memref<9x4x128xf32, #tpu.memory_space<vmem>>, vector<1x4x128xf32>
    %46 = vector.shape_cast %45 : vector<1x4x128xf32> to vector<4x128xf32>
    %cst_68 = arith.constant dense<0.000000e+00> : vector<256x128xf32>
    %47 = tpu.matmul %44, %46, %cst_68 {dimension_numbers = #tpu.dot_dimension_numbers<[1], [0], [0], [1], [0, 0, 1, 1], [], []>} : vector<256x4xf32>, vector<4x128xf32>, vector<256x128xf32> -> vector<256x128xf32>
    %48 = arith.addf %42, %47 : vector<256x128xf32>
    %c0_69 = arith.constant 0 : index
    %c2_70 = arith.constant 2 : index
    %c8_71 = arith.constant 8 : index
    %c0_72 = arith.constant 0 : index
    %49 = vector.load %arg10[%c0_69, %c2_70, %c8_71, %c0_72] : memref<1x18x25x4xf32, #tpu.memory_space<vmem>>, vector<1x16x16x4xf32>
    %50 = vector.shape_cast %49 : vector<1x16x16x4xf32> to vector<256x4xf32>
    %c7_73 = arith.constant 7 : index
    %c0_74 = arith.constant 0 : index
    %c0_75 = arith.constant 0 : index
    %51 = vector.load %arg4[%c7_73, %c0_74, %c0_75] : memref<9x4x128xf32, #tpu.memory_space<vmem>>, vector<1x4x128xf32>
    %52 = vector.shape_cast %51 : vector<1x4x128xf32> to vector<4x128xf32>
    %cst_76 = arith.constant dense<0.000000e+00> : vector<256x128xf32>
    %53 = tpu.matmul %50, %52, %cst_76 {dimension_numbers = #tpu.dot_dimension_numbers<[1], [0], [0], [1], [0, 0, 1, 1], [], []>} : vector<256x4xf32>, vector<4x128xf32>, vector<256x128xf32> -> vector<256x128xf32>
    %54 = arith.addf %48, %53 : vector<256x128xf32>
    %c0_77 = arith.constant 0 : index
    %c2_78 = arith.constant 2 : index
    %c9_79 = arith.constant 9 : index
    %c0_80 = arith.constant 0 : index
    %55 = vector.load %arg10[%c0_77, %c2_78, %c9_79, %c0_80] : memref<1x18x25x4xf32, #tpu.memory_space<vmem>>, vector<1x16x16x4xf32>
    %56 = vector.shape_cast %55 : vector<1x16x16x4xf32> to vector<256x4xf32>
    %c8_81 = arith.constant 8 : index
    %c0_82 = arith.constant 0 : index
    %c0_83 = arith.constant 0 : index
    %57 = vector.load %arg4[%c8_81, %c0_82, %c0_83] : memref<9x4x128xf32, #tpu.memory_space<vmem>>, vector<1x4x128xf32>
    %58 = vector.shape_cast %57 : vector<1x4x128xf32> to vector<4x128xf32>
    %cst_84 = arith.constant dense<0.000000e+00> : vector<256x128xf32>
    %59 = tpu.matmul %56, %58, %cst_84 {dimension_numbers = #tpu.dot_dimension_numbers<[1], [0], [0], [1], [0, 0, 1, 1], [], []>} : vector<256x4xf32>, vector<4x128xf32>, vector<256x128xf32> -> vector<256x128xf32>
    %60 = arith.addf %54, %59 : vector<256x128xf32>
    %c0_85 = arith.constant 0 : index
    %c0_86 = arith.constant 0 : index
    %61 = vector.load %arg3[%c0_85, %c0_86] : memref<2x128xf32, #tpu.memory_space<vmem>>, vector<1x128xf32>
    %62 = vector.broadcast %61 : vector<1x128xf32> to vector<256x128xf32>
    %63 = arith.subf %60, %62 : vector<256x128xf32>
    %c1_87 = arith.constant 1 : index
    %c0_88 = arith.constant 0 : index
    %64 = vector.load %arg3[%c1_87, %c0_88] : memref<2x128xf32, #tpu.memory_space<vmem>>, vector<1x128xf32>
    %65 = vector.broadcast %64 : vector<1x128xf32> to vector<256x128xf32>
    %66 = arith.mulf %63, %65 : vector<256x128xf32>
    %cst_89 = arith.constant 0.000000e+00 : f32
    %67 = vector.broadcast %cst_89 : f32 to vector<256x128xf32>
    %68 = arith.maximumf %66, %67 : vector<256x128xf32>
    %69 = vector.shape_cast %68 : vector<256x128xf32> to vector<1x16x16x128xf32>
    %cst_90 = arith.constant 0.000000e+00 : f32
    %70 = vector.broadcast %cst_90 : f32 to vector<1x1x18x128xf32>
    %c0_91 = arith.constant 0 : index
    %c0_92 = arith.constant 0 : index
    %c7_93 = arith.constant 7 : index
    %c0_94 = arith.constant 0 : index
    %71 = vector.load %arg11[%c0_91, %c0_92, %c7_93, %c0_94] : memref<1x18x25x128xf32, #tpu.memory_space<vmem>>, vector<1x1x18x128xf32>
    tpu.vector_store %arg11[%c0_91, %c0_92, %c7_93, %c0_94], %70 {strides = array<i32>} : memref<1x18x25x128xf32, #tpu.memory_space<vmem>>, vector<1x1x18x128xf32>,
    %c0_95 = arith.constant 0 : index
    %c17_96 = arith.constant 17 : index
    %c7_97 = arith.constant 7 : index
    %c0_98 = arith.constant 0 : index
    %72 = vector.load %arg11[%c0_95, %c17_96, %c7_97, %c0_98] : memref<1x18x25x128xf32, #tpu.memory_space<vmem>>, vector<1x1x18x128xf32>
    tpu.vector_store %arg11[%c0_95, %c17_96, %c7_97, %c0_98], %70 {strides = array<i32>} : memref<1x18x25x128xf32, #tpu.memory_space<vmem>>, vector<1x1x18x128xf32>,
    %cst_99 = arith.constant 0.000000e+00 : f32
    %73 = vector.broadcast %cst_99 : f32 to vector<1x16x1x128xf32>
    %c0_100 = arith.constant 0 : index
    %c1_101 = arith.constant 1 : index
    %c7_102 = arith.constant 7 : index
    %c0_103 = arith.constant 0 : index
    %74 = vector.load %arg11[%c0_100, %c1_101, %c7_102, %c0_103] : memref<1x18x25x128xf32, #tpu.memory_space<vmem>>, vector<1x16x1x128xf32>
    tpu.vector_store %arg11[%c0_100, %c1_101, %c7_102, %c0_103], %73 {strides = array<i32>} : memref<1x18x25x128xf32, #tpu.memory_space<vmem>>, vector<1x16x1x128xf32>,
    %c0_104 = arith.constant 0 : index
    %c1_105 = arith.constant 1 : index
    %c24_106 = arith.constant 24 : index
    %c0_107 = arith.constant 0 : index
    %75 = vector.load %arg11[%c0_104, %c1_105, %c24_106, %c0_107] : memref<1x18x25x128xf32, #tpu.memory_space<vmem>>, vector<1x16x1x128xf32>
    tpu.vector_store %arg11[%c0_104, %c1_105, %c24_106, %c0_107], %73 {strides = array<i32>} : memref<1x18x25x128xf32, #tpu.memory_space<vmem>>, vector<1x16x1x128xf32>,
    %c0_108 = arith.constant 0 : index
    %c1_109 = arith.constant 1 : index
    %c8_110 = arith.constant 8 : index
    %c0_111 = arith.constant 0 : index
    %76 = vector.load %arg11[%c0_108, %c1_109, %c8_110, %c0_111] : memref<1x18x25x128xf32, #tpu.memory_space<vmem>>, vector<1x16x16x128xf32>
    tpu.vector_store %arg11[%c0_108, %c1_109, %c8_110, %c0_111], %69 {strides = array<i32>} : memref<1x18x25x128xf32, #tpu.memory_space<vmem>>, vector<1x16x16x128xf32>,
    %c0_112 = arith.constant 0 : index
    %c0_113 = arith.constant 0 : index
    %c7_114 = arith.constant 7 : index
    %c0_115 = arith.constant 0 : index
    %77 = vector.load %arg11[%c0_112, %c0_113, %c7_114, %c0_115] : memref<1x18x25x128xf32, #tpu.memory_space<vmem>>, vector<1x16x16x128xf32>
    %78 = vector.shape_cast %77 : vector<1x16x16x128xf32> to vector<256x128xf32>
    %c0_116 = arith.constant 0 : index
    %c0_117 = arith.constant 0 : index
    %c0_118 = arith.constant 0 : index
    %79 = vector.load %arg5[%c0_116, %c0_117, %c0_118] : memref<9x128x128xf32, #tpu.memory_space<vmem>>, vector<1x128x128xf32>
    %80 = vector.shape_cast %79 : vector<1x128x128xf32> to vector<128x128xf32>
    %cst_119 = arith.constant dense<0.000000e+00> : vector<256x128xf32>
    %81 = tpu.matmul %78, %80, %cst_119 {dimension_numbers = #tpu.dot_dimension_numbers<[1], [0], [0], [1], [0, 0, 1, 1], [], []>} : vector<256x128xf32>, vector<128x128xf32>, vector<256x128xf32> -> vector<256x128xf32>
    %c0_120 = arith.constant 0 : index
    %c0_121 = arith.constant 0 : index
    %c8_122 = arith.constant 8 : index
    %c0_123 = arith.constant 0 : index
    %82 = vector.load %arg11[%c0_120, %c0_121, %c8_122, %c0_123] : memref<1x18x25x128xf32, #tpu.memory_space<vmem>>, vector<1x16x16x128xf32>
    %83 = vector.shape_cast %82 : vector<1x16x16x128xf32> to vector<256x128xf32>
    %c1_124 = arith.constant 1 : index
    %c0_125 = arith.constant 0 : index
    %c0_126 = arith.constant 0 : index
    %84 = vector.load %arg5[%c1_124, %c0_125, %c0_126] : memref<9x128x128xf32, #tpu.memory_space<vmem>>, vector<1x128x128xf32>
    %85 = vector.shape_cast %84 : vector<1x128x128xf32> to vector<128x128xf32>
    %cst_127 = arith.constant dense<0.000000e+00> : vector<256x128xf32>
    %86 = tpu.matmul %83, %85, %cst_127 {dimension_numbers = #tpu.dot_dimension_numbers<[1], [0], [0], [1], [0, 0, 1, 1], [], []>} : vector<256x128xf32>, vector<128x128xf32>, vector<256x128xf32> -> vector<256x128xf32>
    %87 = arith.addf %81, %86 : vector<256x128xf32>
    %c0_128 = arith.constant 0 : index
    %c0_129 = arith.constant 0 : index
    %c9_130 = arith.constant 9 : index
    %c0_131 = arith.constant 0 : index
    %88 = vector.load %arg11[%c0_128, %c0_129, %c9_130, %c0_131] : memref<1x18x25x128xf32, #tpu.memory_space<vmem>>, vector<1x16x16x128xf32>
    %89 = vector.shape_cast %88 : vector<1x16x16x128xf32> to vector<256x128xf32>
    %c2_132 = arith.constant 2 : index
    %c0_133 = arith.constant 0 : index
    %c0_134 = arith.constant 0 : index
    %90 = vector.load %arg5[%c2_132, %c0_133, %c0_134] : memref<9x128x128xf32, #tpu.memory_space<vmem>>, vector<1x128x128xf32>
    %91 = vector.shape_cast %90 : vector<1x128x128xf32> to vector<128x128xf32>
    %cst_135 = arith.constant dense<0.000000e+00> : vector<256x128xf32>
    %92 = tpu.matmul %89, %91, %cst_135 {dimension_numbers = #tpu.dot_dimension_numbers<[1], [0], [0], [1], [0, 0, 1, 1], [], []>} : vector<256x128xf32>, vector<128x128xf32>, vector<256x128xf32> -> vector<256x128xf32>
    %93 = arith.addf %87, %92 : vector<256x128xf32>
    %c0_136 = arith.constant 0 : index
    %c1_137 = arith.constant 1 : index
    %c7_138 = arith.constant 7 : index
    %c0_139 = arith.constant 0 : index
    %94 = vector.load %arg11[%c0_136, %c1_137, %c7_138, %c0_139] : memref<1x18x25x128xf32, #tpu.memory_space<vmem>>, vector<1x16x16x128xf32>
    %95 = vector.shape_cast %94 : vector<1x16x16x128xf32> to vector<256x128xf32>
    %c3_140 = arith.constant 3 : index
    %c0_141 = arith.constant 0 : index
    %c0_142 = arith.constant 0 : index
    %96 = vector.load %arg5[%c3_140, %c0_141, %c0_142] : memref<9x128x128xf32, #tpu.memory_space<vmem>>, vector<1x128x128xf32>
    %97 = vector.shape_cast %96 : vector<1x128x128xf32> to vector<128x128xf32>
    %cst_143 = arith.constant dense<0.000000e+00> : vector<256x128xf32>
    %98 = tpu.matmul %95, %97, %cst_143 {dimension_numbers = #tpu.dot_dimension_numbers<[1], [0], [0], [1], [0, 0, 1, 1], [], []>} : vector<256x128xf32>, vector<128x128xf32>, vector<256x128xf32> -> vector<256x128xf32>
    %99 = arith.addf %93, %98 : vector<256x128xf32>
    %c0_144 = arith.constant 0 : index
    %c1_145 = arith.constant 1 : index
    %c8_146 = arith.constant 8 : index
    %c0_147 = arith.constant 0 : index
    %100 = vector.load %arg11[%c0_144, %c1_145, %c8_146, %c0_147] : memref<1x18x25x128xf32, #tpu.memory_space<vmem>>, vector<1x16x16x128xf32>
    %101 = vector.shape_cast %100 : vector<1x16x16x128xf32> to vector<256x128xf32>
    %c4_148 = arith.constant 4 : index
    %c0_149 = arith.constant 0 : index
    %c0_150 = arith.constant 0 : index
    %102 = vector.load %arg5[%c4_148, %c0_149, %c0_150] : memref<9x128x128xf32, #tpu.memory_space<vmem>>, vector<1x128x128xf32>
    %103 = vector.shape_cast %102 : vector<1x128x128xf32> to vector<128x128xf32>
    %cst_151 = arith.constant dense<0.000000e+00> : vector<256x128xf32>
    %104 = tpu.matmul %101, %103, %cst_151 {dimension_numbers = #tpu.dot_dimension_numbers<[1], [0], [0], [1], [0, 0, 1, 1], [], []>} : vector<256x128xf32>, vector<128x128xf32>, vector<256x128xf32> -> vector<256x128xf32>
    %105 = arith.addf %99, %104 : vector<256x128xf32>
    %c0_152 = arith.constant 0 : index
    %c1_153 = arith.constant 1 : index
    %c9_154 = arith.constant 9 : index
    %c0_155 = arith.constant 0 : index
    %106 = vector.load %arg11[%c0_152, %c1_153, %c9_154, %c0_155] : memref<1x18x25x128xf32, #tpu.memory_space<vmem>>, vector<1x16x16x128xf32>
    %107 = vector.shape_cast %106 : vector<1x16x16x128xf32> to vector<256x128xf32>
    %c5_156 = arith.constant 5 : index
    %c0_157 = arith.constant 0 : index
    %c0_158 = arith.constant 0 : index
    %108 = vector.load %arg5[%c5_156, %c0_157, %c0_158] : memref<9x128x128xf32, #tpu.memory_space<vmem>>, vector<1x128x128xf32>
    %109 = vector.shape_cast %108 : vector<1x128x128xf32> to vector<128x128xf32>
    %cst_159 = arith.constant dense<0.000000e+00> : vector<256x128xf32>
    %110 = tpu.matmul %107, %109, %cst_159 {dimension_numbers = #tpu.dot_dimension_numbers<[1], [0], [0], [1], [0, 0, 1, 1], [], []>} : vector<256x128xf32>, vector<128x128xf32>, vector<256x128xf32> -> vector<256x128xf32>
    %111 = arith.addf %105, %110 : vector<256x128xf32>
    %c0_160 = arith.constant 0 : index
    %c2_161 = arith.constant 2 : index
    %c7_162 = arith.constant 7 : index
    %c0_163 = arith.constant 0 : index
    %112 = vector.load %arg11[%c0_160, %c2_161, %c7_162, %c0_163] : memref<1x18x25x128xf32, #tpu.memory_space<vmem>>, vector<1x16x16x128xf32>
    %113 = vector.shape_cast %112 : vector<1x16x16x128xf32> to vector<256x128xf32>
    %c6_164 = arith.constant 6 : index
    %c0_165 = arith.constant 0 : index
    %c0_166 = arith.constant 0 : index
    %114 = vector.load %arg5[%c6_164, %c0_165, %c0_166] : memref<9x128x128xf32, #tpu.memory_space<vmem>>, vector<1x128x128xf32>
    %115 = vector.shape_cast %114 : vector<1x128x128xf32> to vector<128x128xf32>
    %cst_167 = arith.constant dense<0.000000e+00> : vector<256x128xf32>
    %116 = tpu.matmul %113, %115, %cst_167 {dimension_numbers = #tpu.dot_dimension_numbers<[1], [0], [0], [1], [0, 0, 1, 1], [], []>} : vector<256x128xf32>, vector<128x128xf32>, vector<256x128xf32> -> vector<256x128xf32>
    %117 = arith.addf %111, %116 : vector<256x128xf32>
    %c0_168 = arith.constant 0 : index
    %c2_169 = arith.constant 2 : index
    %c8_170 = arith.constant 8 : index
    %c0_171 = arith.constant 0 : index
    %118 = vector.load %arg11[%c0_168, %c2_169, %c8_170, %c0_171] : memref<1x18x25x128xf32, #tpu.memory_space<vmem>>, vector<1x16x16x128xf32>
    %119 = vector.shape_cast %118 : vector<1x16x16x128xf32> to vector<256x128xf32>
    %c7_172 = arith.constant 7 : index
    %c0_173 = arith.constant 0 : index
    %c0_174 = arith.constant 0 : index
    %120 = vector.load %arg5[%c7_172, %c0_173, %c0_174] : memref<9x128x128xf32, #tpu.memory_space<vmem>>, vector<1x128x128xf32>
    %121 = vector.shape_cast %120 : vector<1x128x128xf32> to vector<128x128xf32>
    %cst_175 = arith.constant dense<0.000000e+00> : vector<256x128xf32>
    %122 = tpu.matmul %119, %121, %cst_175 {dimension_numbers = #tpu.dot_dimension_numbers<[1], [0], [0], [1], [0, 0, 1, 1], [], []>} : vector<256x128xf32>, vector<128x128xf32>, vector<256x128xf32> -> vector<256x128xf32>
    %123 = arith.addf %117, %122 : vector<256x128xf32>
    %c0_176 = arith.constant 0 : index
    %c2_177 = arith.constant 2 : index
    %c9_178 = arith.constant 9 : index
    %c0_179 = arith.constant 0 : index
    %124 = vector.load %arg11[%c0_176, %c2_177, %c9_178, %c0_179] : memref<1x18x25x128xf32, #tpu.memory_space<vmem>>, vector<1x16x16x128xf32>
    %125 = vector.shape_cast %124 : vector<1x16x16x128xf32> to vector<256x128xf32>
    %c8_180 = arith.constant 8 : index
    %c0_181 = arith.constant 0 : index
    %c0_182 = arith.constant 0 : index
    %126 = vector.load %arg5[%c8_180, %c0_181, %c0_182] : memref<9x128x128xf32, #tpu.memory_space<vmem>>, vector<1x128x128xf32>
    %127 = vector.shape_cast %126 : vector<1x128x128xf32> to vector<128x128xf32>
    %cst_183 = arith.constant dense<0.000000e+00> : vector<256x128xf32>
    %128 = tpu.matmul %125, %127, %cst_183 {dimension_numbers = #tpu.dot_dimension_numbers<[1], [0], [0], [1], [0, 0, 1, 1], [], []>} : vector<256x128xf32>, vector<128x128xf32>, vector<256x128xf32> -> vector<256x128xf32>
    %129 = arith.addf %123, %128 : vector<256x128xf32>
    %c0_184 = arith.constant 0 : index
    %c0_185 = arith.constant 0 : index
    %130 = vector.load %arg6[%c0_184, %c0_185] : memref<1x128xf32, #tpu.memory_space<vmem>>, vector<1x128xf32>
    %131 = vector.broadcast %130 : vector<1x128xf32> to vector<256x128xf32>
    %132 = arith.addf %129, %131 : vector<256x128xf32>
    %c1_i32 = arith.constant 1 : i32
    %133 = arith.muli %arg0, %c1_i32 : i32
    %134 = tpu.assume_multiple %133, 1 : i32
    %135 = arith.index_cast %134 : i32 to index
    %c0_186 = arith.constant 0 : index
    %136 = vector.load %arg2[%135, %c0_186] : memref<2x32xf32, #tpu.memory_space<vmem>>, vector<1x32xf32>
    %c0_187 = arith.constant 0 : index
    %c0_188 = arith.constant 0 : index
    %137 = vector.load %arg7[%c0_187, %c0_188] : memref<32x256xf32, #tpu.memory_space<vmem>>, vector<32x256xf32>
    %cst_189 = arith.constant dense<0.000000e+00> : vector<1x256xf32>
    %138 = tpu.matmul %136, %137, %cst_189 {dimension_numbers = #tpu.dot_dimension_numbers<[1], [0], [0], [1], [0, 0, 1, 1], [], []>} : vector<1x32xf32>, vector<32x256xf32>, vector<1x256xf32> -> vector<1x256xf32>
    %139 = vector.shape_cast %132 : vector<256x128xf32> to vector<1x256x128xf32>
    %140 = vector.extract_strided_slice %138 {offsets = [0, 0], sizes = [1, 128], strides = [1, 1]} : vector<1x256xf32> to vector<1x128xf32>
    %141 = vector.shape_cast %140 : vector<1x128xf32> to vector<1x1x128xf32>
    %142 = vector.broadcast %141 : vector<1x1x128xf32> to vector<1x256x128xf32>
    %143 = arith.mulf %139, %142 : vector<1x256x128xf32>
    %144 = vector.extract_strided_slice %138 {offsets = [0, 128], sizes = [1, 128], strides = [1, 1]} : vector<1x256xf32> to vector<1x128xf32>
    %145 = vector.shape_cast %144 : vector<1x128xf32> to vector<1x1x128xf32>
    %146 = vector.broadcast %145 : vector<1x1x128xf32> to vector<1x256x128xf32>
    %147 = arith.addf %143, %146 : vector<1x256x128xf32>
    %c0_190 = arith.constant 0 : index
    %c0_191 = arith.constant 0 : index
    %c0_192 = arith.constant 0 : index
    %148 = vector.load %arg8[%c0_190, %c0_191, %c0_192] : memref<1x256x128xf32, #tpu.memory_space<vmem>>, vector<1x256x128xf32>
    tpu.vector_store %arg8[%c0_190, %c0_191, %c0_192], %147 {strides = array<i32>} : memref<1x256x128xf32, #tpu.memory_space<vmem>>, vector<1x256x128xf32>,
    %149 = vector.shape_cast %147 : vector<1x256x128xf32> to vector<256x128xf32>
    %cst_193 = arith.constant dense<0.000000e+00> : vector<128xf32>
    %150 = vector.multi_reduction <add>, %149, %cst_193 [0] : vector<256x128xf32> to vector<128xf32>
    %151 = vector.shape_cast %150 : vector<128xf32> to vector<1x1x128xf32>
    %c0_194 = arith.constant 0 : index
    %c0_195 = arith.constant 0 : index
    %c0_196 = arith.constant 0 : index
    %152 = vector.load %arg9[%c0_194, %c0_195, %c0_196] : memref<1x2x128xf32, #tpu.memory_space<vmem>>, vector<1x1x128xf32>
    tpu.vector_store %arg9[%c0_194, %c0_195, %c0_196], %151 {strides = array<i32>} : memref<1x2x128xf32, #tpu.memory_space<vmem>>, vector<1x1x128xf32>,
    %153 = arith.mulf %149, %149 : vector<256x128xf32>
    %cst_197 = arith.constant dense<0.000000e+00> : vector<128xf32>
    %154 = vector.multi_reduction <add>, %153, %cst_197 [0] : vector<256x128xf32> to vector<128xf32>
    %155 = vector.shape_cast %154 : vector<128xf32> to vector<1x1x128xf32>
    %c0_198 = arith.constant 0 : index
    %c1_199 = arith.constant 1 : index
    %c0_200 = arith.constant 0 : index
    %156 = vector.load %arg9[%c0_198, %c1_199, %c0_200] : memref<1x2x128xf32, #tpu.memory_space<vmem>>, vector<1x1x128xf32>
    tpu.vector_store %arg9[%c0_198, %c1_199, %c0_200], %155 {strides = array<i32>} : memref<1x2x128xf32, #tpu.memory_space<vmem>>, vector<1x1x128xf32>,
    return
  }
  func.func @transform_0(%arg0: i32) -> (i32, i32, i32, i32) {
    %c0_i32 = arith.constant 0 : i32
    %c0_i32_0 = arith.constant 0 : i32
    %c0_i32_1 = arith.constant 0 : i32
    %c0_i32_2 = arith.constant 0 : i32
    return %arg0, %c0_i32, %c0_i32_0, %c0_i32_1 : i32, i32, i32, i32
  }
  func.func @transform_1(%arg0: i32) -> (i32, i32) {
    %c0_i32 = arith.constant 0 : i32
    %c0_i32_0 = arith.constant 0 : i32
    %c0_i32_1 = arith.constant 0 : i32
    return %c0_i32, %c0_i32_0 : i32, i32
  }
  func.func @transform_2(%arg0: i32) -> (i32, i32) {
    %c0_i32 = arith.constant 0 : i32
    %c0_i32_0 = arith.constant 0 : i32
    %c0_i32_1 = arith.constant 0 : i32
    return %c0_i32, %c0_i32_0 : i32, i32
  }
  func.func @transform_3(%arg0: i32) -> (i32, i32, i32) {
    %c0_i32 = arith.constant 0 : i32
    %c0_i32_0 = arith.constant 0 : i32
    %c0_i32_1 = arith.constant 0 : i32
    %c0_i32_2 = arith.constant 0 : i32
    return %c0_i32, %c0_i32_0, %c0_i32_1 : i32, i32, i32
  }
  func.func @transform_4(%arg0: i32) -> (i32, i32, i32) {
    %c0_i32 = arith.constant 0 : i32
    %c0_i32_0 = arith.constant 0 : i32
    %c0_i32_1 = arith.constant 0 : i32
    %c0_i32_2 = arith.constant 0 : i32
    return %c0_i32, %c0_i32_0, %c0_i32_1 : i32, i32, i32
  }
  func.func @transform_5(%arg0: i32) -> (i32, i32) {
    %c0_i32 = arith.constant 0 : i32
    %c0_i32_0 = arith.constant 0 : i32
    %c0_i32_1 = arith.constant 0 : i32
    return %c0_i32, %c0_i32_0 : i32, i32
  }
  func.func @transform_6(%arg0: i32) -> (i32, i32) {
    %c0_i32 = arith.constant 0 : i32
    %c0_i32_0 = arith.constant 0 : i32
    %c0_i32_1 = arith.constant 0 : i32
    return %c0_i32, %c0_i32_0 : i32, i32
  }
  func.func @transform_7(%arg0: i32) -> (i32, i32, i32) {
    %c0_i32 = arith.constant 0 : i32
    %c0_i32_0 = arith.constant 0 : i32
    %c0_i32_1 = arith.constant 0 : i32
    return %arg0, %c0_i32, %c0_i32_0 : i32, i32, i32
  }
  func.func @transform_8(%arg0: i32) -> (i32, i32, i32) {
    %c0_i32 = arith.constant 0 : i32
    %c0_i32_0 = arith.constant 0 : i32
    %c0_i32_1 = arith.constant 0 : i32
    return %arg0, %c0_i32, %c0_i32_0 : i32, i32, i32
  }
}

</mosaic_0001>

<bundles_post_ra>
// kernel: expert_controller_film.5
= control target key start
LH: loop header
LB: loop body
LE: loop exit
PB: predicated region body
PF: predicated region fallthrough
CT: control target
= control target key end

     0   :  { %s415_s9 = smov 0   ;;  %s574_s0 = inlined_call_operand.vmem [shape: f32[2,256,128], index: 0, kind: input, shape index: {}]   ;;  %s575_s1 = inlined_call_operand.vmem [shape: f32[2,128], index: 1, kind: input, shape index: {}]   ;;  %s576_s2 = inlined_call_operand.vmem [shape: f32[2,256,128], index: 2, kind: output, shape index: {}]  }
   0x1 LB: > { %s369_s10 = sadd.s32 4294967295, %s398_s9   ;;  %p373_p0 = scmp.ge.s32.totalorder %s398_s9, 1  ;;  %s398_s9 = sphi %s415_s9, %s12_s9  }
   0x2   : > { %p112_p1 = scmp.lt.s32.totalorder %s398_s9, 3 }
   0x4   : > { %p113_p2 = pnand %p373_p0, %p112_p1 }
   0x5   : > { %p134_p3 = scmp.lt.s32.totalorder (!%p113_p2), %s369_s10, 1  ;;  %v426_v0 = vld [vmem:[%s575_s1] ss:$0 sm:$0xff] (!%p113_p2)  ;;  %v436_v1 = vld [vmem:[%s575_s1 + $0x1] ss:$0 sm:$0xff] (!%p113_p2) }
   0x6   : > { %116 = sbr.rel (%p113_p2) target bundleno = 46 (0x2e), region = 28 }
   0xd   : > { %s578_s10 = smov (!%p134_p3, %s369_s10), 1 }
   0xe   : > { %s382_s11 = sshll.u32 %s578_s10, 8 }
   0xf   : > { %s431_s16 = scalar_lea.vmem %s574_s0, %s382_s11  ;;  %s459_s21 = scalar_lea.vmem %s576_s2, %s382_s11 }
  0x10   : > { %v146_v2 = vld [vmem:[%s431_s16] sm:$0xff]  ;;  %v147_v3 = vld [vmem:[%s431_s16 + $0x8] sm:$0xff]  ;;  %v148_v4 = vld [vmem:[%s431_s16 + $0x10] sm:$0xff] }
  0x11   : > { %v182_v5 = vsub.f32 %v146_v2, %v426_v0  ;;  %v183_v6 = vsub.f32 %v147_v3, %v426_v0  ;;  %v184_v7 = vsub.f32 %v148_v4, %v426_v0  ;;  %v149_v8 = vld [vmem:[%s431_s16 + $0x18] sm:$0xff]  ;;  %v150_v9 = vld [vmem:[%s431_s16 + $0x20] sm:$0xff]  ;;  %v151_v10 = vld [vmem:[%s431_s16 + $0x28] sm:$0xff] }
  0x12   : > { %v185_v11 = vsub.f32 %v149_v8, %v426_v0  ;;  %v186_v12 = vsub.f32 %v150_v9, %v426_v0  ;;  %v187_v13 = vsub.f32 %v151_v10, %v426_v0  ;;  %v152_v14 = vld [vmem:[%s431_s16 + $0x30] sm:$0xff]  ;;  %v153_v15 = vld [vmem:[%s431_s16 + $0x38] sm:$0xff]  ;;  %v154_v24 = vld [vmem:[%s431_s16 + $0x40] sm:$0xff] }
  0x13   : > { %v218_v16 = vmul.f32 %v436_v1, %v182_v5  ;;  %v219_v17 = vmul.f32 %v436_v1, %v183_v6  ;;  %v220_v18 = vmul.f32 %v436_v1, %v184_v7  ;;  %v188_v19 = vsub.f32 %v152_v14, %v426_v0  ;;  %v155_v25 = vld [vmem:[%s431_s16 + $0x48] sm:$0xff]  ;;  %v156_v26 = vld [vmem:[%s431_s16 + $0x50] sm:$0xff]  ;;  %v157_v31 = vld [vmem:[%s431_s16 + $0x58] sm:$0xff] }
  0x14   : > { %v221_v20 = vmul.f32 %v436_v1, %v185_v11  ;;  %v222_v21 = vmul.f32 %v436_v1, %v186_v12  ;;  %v223_v22 = vmul.f32 %v436_v1, %v187_v13  ;;  %v189_v23 = vsub.f32 %v153_v15, %v426_v0  ;;  %v158_v32 = vld [vmem:[%s431_s16 + $0x60] sm:$0xff]  ;;  %v159_v33 = vld [vmem:[%s431_s16 + $0x68] sm:$0xff]  ;;  %v160_v38 = vld [vmem:[%s431_s16 + $0x70] sm:$0xff] }
  0x15   : > { %v250_v27 = vmax.f32 %v218_v16, 0.0  ;;  %v251_v28 = vmax.f32 %v219_v17, 0.0  ;;  %v252_v29 = vmax.f32 %v220_v18, 0.0  ;;  %v224_v30 = vmul.f32 %v436_v1, %v188_v19  ;;  %v161_v43 = vld [vmem:[%s431_s16 + $0x78] sm:$0xff]  ;;  %v162_v56 = vld [vmem:[%s431_s16 + $0x80] sm:$0xff]  ;;  %v163_v57 = vld [vmem:[%s431_s16 + $0x88] sm:$0xff] }
  0x16   : > { %v253_v34 = vmax.f32 %v221_v20, 0.0  ;;  %v254_v35 = vmax.f32 %v222_v21, 0.0  ;;  %v255_v36 = vmax.f32 %v223_v22, 0.0  ;;  %v225_v37 = vmul.f32 %v436_v1, %v189_v23  ;;  %v164_v58 = vld [vmem:[%s431_s16 + $0x90] sm:$0xff]  ;;  %v165_v63 = vld [vmem:[%s431_s16 + $0x98] sm:$0xff]  ;;  %v166_v2 = vld [vmem:[%s431_s16 + $0xa0] sm:$0xff] }
  0x17   : > { %282 = vst [vmem:[%s459_s21] sm:$0xff] %v250_v27  ;;  %283 = vst [vmem:[%s459_s21 + $0x8] sm:$0xff] %v251_v28  ;;  %v256_v39 = vmax.f32 %v224_v30, 0.0  ;;  %v190_v40 = vsub.f32 %v154_v24, %v426_v0  ;;  %v191_v41 = vsub.f32 %v155_v25, %v426_v0  ;;  %v192_v42 = vsub.f32 %v156_v26, %v426_v0  ;;  %v167_v3 = vld [vmem:[%s431_s16 + $0xa8] sm:$0xff]  ;;  %v168_v8 = vld [vmem:[%s431_s16 + $0xb0] sm:$0xff] }
  0x18   : > { %284 = vst [vmem:[%s459_s21 + $0x10] sm:$0xff] %v252_v29  ;;  %285 = vst [vmem:[%s459_s21 + $0x18] sm:$0xff] %v253_v34  ;;  %v257_v44 = vmax.f32 %v225_v37, 0.0  ;;  %v193_v45 = vsub.f32 %v157_v31, %v426_v0  ;;  %v194_v46 = vsub.f32 %v158_v32, %v426_v0  ;;  %v195_v47 = vsub.f32 %v159_v33, %v426_v0  ;;  %v169_v13 = vld [vmem:[%s431_s16 + $0xb8] sm:$0xff]  ;;  %v170_v26 = vld [vmem:[%s431_s16 + $0xc0] sm:$0xff] }
  0x19   : > { %286 = vst [vmem:[%s459_s21 + $0x20] sm:$0xff] %v254_v35  ;;  %287 = vst [vmem:[%s459_s21 + $0x28] sm:$0xff] %v255_v36  ;;  %v226_v48 = vmul.f32 %v436_v1, %v190_v40  ;;  %v227_v49 = vmul.f32 %v436_v1, %v191_v41  ;;  %v228_v50 = vmul.f32 %v436_v1, %v192_v42  ;;  %v171_v27 = vld [vmem:[%s431_s16 + $0xc8] sm:$0xff]  ;;  %v172_v28 = vld [vmem:[%s431_s16 + $0xd0] sm:$0xff] }
  0x1a   : > { %288 = vst [vmem:[%s459_s21 + $0x30] sm:$0xff] %v256_v39  ;;  %v196_v51 = vsub.f32 %v160_v38, %v426_v0  ;;  %289 = vst [vmem:[%s459_s21 + $0x38] sm:$0xff] %v257_v44  ;;  %v229_v52 = vmul.f32 %v436_v1, %v193_v45  ;;  %v230_v53 = vmul.f32 %v436_v1, %v194_v46  ;;  %v173_v33 = vld [vmem:[%s431_s16 + $0xd8] sm:$0xff]  ;;  %v174_v34 = vld [vmem:[%s431_s16 + $0xe0] sm:$0xff] }
  0x1b   : > { %v231_v54 = vmul.f32 %v436_v1, %v195_v47  ;;  %v197_v55 = vsub.f32 %v161_v43, %v426_v0  ;;  %v258_v59 = vmax.f32 %v226_v48, 0.0  ;;  %v259_v60 = vmax.f32 %v227_v49, 0.0  ;;  %v175_v35 = vld [vmem:[%s431_s16 + $0xe8] sm:$0xff]  ;;  %v176_v40 = vld [vmem:[%s431_s16 + $0xf0] sm:$0xff]  ;;  %v177_v45 = vld [vmem:[%s431_s16 + $0xf8] sm:$0xff] }
  0x1c   : > { %v260_v61 = vmax.f32 %v228_v50, 0.0  ;;  %v232_v62 = vmul.f32 %v436_v1, %v196_v51  ;;  %v261_v4 = vmax.f32 %v229_v52, 0.0  ;;  %v262_v5 = vmax.f32 %v230_v53, 0.0 }
  0x1d   : > { %v263_v6 = vmax.f32 %v231_v54, 0.0  ;;  %v233_v7 = vmul.f32 %v436_v1, %v197_v55  ;;  %290 = vst [vmem:[%s459_s21 + $0x40] sm:$0xff] %v258_v59  ;;  %291 = vst [vmem:[%s459_s21 + $0x48] sm:$0xff] %v259_v60  ;;  %v198_v10 = vsub.f32 %v162_v56, %v426_v0  ;;  %v199_v11 = vsub.f32 %v163_v57, %v426_v0 }
  0x1e   : > { %292 = vst [vmem:[%s459_s21 + $0x50] sm:$0xff] %v260_v61  ;;  %v264_v9 = vmax.f32 %v232_v62, 0.0  ;;  %v200_v12 = vsub.f32 %v164_v58, %v426_v0  ;;  %293 = vst [vmem:[%s459_s21 + $0x58] sm:$0xff] %v261_v4  ;;  %v201_v15 = vsub.f32 %v165_v63, %v426_v0  ;;  %v202_v16 = vsub.f32 %v166_v2, %v426_v0 }
  0x1f   : > { %294 = vst [vmem:[%s459_s21 + $0x60] sm:$0xff] %v262_v5  ;;  %295 = vst [vmem:[%s459_s21 + $0x68] sm:$0xff] %v263_v6  ;;  %v265_v14 = vmax.f32 %v233_v7, 0.0  ;;  %v203_v17 = vsub.f32 %v167_v3, %v426_v0  ;;  %v234_v18 = vmul.f32 %v436_v1, %v198_v10  ;;  %v235_v19 = vmul.f32 %v436_v1, %v199_v11 }
  0x20   : > { %296 = vst [vmem:[%s459_s21 + $0x70] sm:$0xff] %v264_v9  ;;  %v236_v20 = vmul.f32 %v436_v1, %v200_v12  ;;  %v204_v21 = vsub.f32 %v168_v8, %v426_v0  ;;  %v237_v22 = vmul.f32 %v436_v1, %v201_v15  ;;  %v238_v23 = vmul.f32 %v436_v1, %v202_v16 }
  0x21   : > { %297 = vst [vmem:[%s459_s21 + $0x78] sm:$0xff] %v265_v14  ;;  %v239_v24 = vmul.f32 %v436_v1, %v203_v17  ;;  %v205_v25 = vsub.f32 %v169_v13, %v426_v0  ;;  %v266_v29 = vmax.f32 %v234_v18, 0.0  ;;  %v267_v30 = vmax.f32 %v235_v19, 0.0 }
  0x22   : > { %v268_v31 = vmax.f32 %v236_v20, 0.0  ;;  %v240_v32 = vmul.f32 %v436_v1, %v204_v21  ;;  %v269_v36 = vmax.f32 %v237_v22, 0.0  ;;  %v270_v37 = vmax.f32 %v238_v23, 0.0 }
  0x23   : > { %v271_v38 = vmax.f32 %v239_v24, 0.0  ;;  %v241_v39 = vmul.f32 %v436_v1, %v205_v25  ;;  %298 = vst [vmem:[%s459_s21 + $0x80] sm:$0xff] %v266_v29  ;;  %299 = vst [vmem:[%s459_s21 + $0x88] sm:$0xff] %v267_v30  ;;  %v206_v42 = vsub.f32 %v170_v26, %v426_v0  ;;  %v207_v43 = vsub.f32 %v171_v27, %v426_v0 }
  0x24   : > { %300 = vst [vmem:[%s459_s21 + $0x90] sm:$0xff] %v268_v31  ;;  %v272_v41 = vmax.f32 %v240_v32, 0.0  ;;  %v208_v44 = vsub.f32 %v172_v28, %v426_v0  ;;  %301 = vst [vmem:[%s459_s21 + $0x98] sm:$0xff] %v269_v36  ;;  %v209_v47 = vsub.f32 %v173_v33, %v426_v0  ;;  %v210_v48 = vsub.f32 %v174_v34, %v426_v0 }
  0x25   : > { %302 = vst [vmem:[%s459_s21 + $0xa0] sm:$0xff] %v270_v37  ;;  %303 = vst [vmem:[%s459_s21 + $0xa8] sm:$0xff] %v271_v38  ;;  %v273_v46 = vmax.f32 %v241_v39, 0.0  ;;  %v211_v49 = vsub.f32 %v175_v35, %v426_v0  ;;  %v242_v50 = vmul.f32 %v436_v1, %v206_v42  ;;  %v243_v51 = vmul.f32 %v436_v1, %v207_v43 }
  0x26   : > { %304 = vst [vmem:[%s459_s21 + $0xb0] sm:$0xff] %v272_v41  ;;  %v244_v52 = vmul.f32 %v436_v1, %v208_v44  ;;  %v212_v53 = vsub.f32 %v176_v40, %v426_v0  ;;  %v245_v54 = vmul.f32 %v436_v1, %v209_v47  ;;  %v246_v55 = vmul.f32 %v436_v1, %v210_v48 }
  0x27   : > { %305 = vst [vmem:[%s459_s21 + $0xb8] sm:$0xff] %v273_v46  ;;  %v247_v56 = vmul.f32 %v436_v1, %v211_v49  ;;  %v213_v57 = vsub.f32 %v177_v45, %v426_v0  ;;  %v274_v58 = vmax.f32 %v242_v50, 0.0  ;;  %v275_v59 = vmax.f32 %v243_v51, 0.0 }
  0x28   : > { %v276_v60 = vmax.f32 %v244_v52, 0.0  ;;  %v248_v61 = vmul.f32 %v436_v1, %v212_v53  ;;  %v277_v62 = vmax.f32 %v245_v54, 0.0  ;;  %v278_v63 = vmax.f32 %v246_v55, 0.0 }
  0x29   : > { %v279_v2 = vmax.f32 %v247_v56, 0.0  ;;  %v249_v3 = vmul.f32 %v436_v1, %v213_v57  ;;  %306 = vst [vmem:[%s459_s21 + $0xc0] sm:$0xff] %v274_v58  ;;  %307 = vst [vmem:[%s459_s21 + $0xc8] sm:$0xff] %v275_v59 }
  0x2a   : > { %308 = vst [vmem:[%s459_s21 + $0xd0] sm:$0xff] %v276_v60  ;;  %v280_v4 = vmax.f32 %v248_v61, 0.0  ;;  %309 = vst [vmem:[%s459_s21 + $0xd8] sm:$0xff] %v277_v62 }
  0x2b   : > { %310 = vst [vmem:[%s459_s21 + $0xe0] sm:$0xff] %v278_v63  ;;  %311 = vst [vmem:[%s459_s21 + $0xe8] sm:$0xff] %v279_v2  ;;  %v281_v0 = vmax.f32 %v249_v3, 0.0 }
  0x2c   : > { %312 = vst [vmem:[%s459_s21 + $0xf0] sm:$0xff] %v280_v4 }
  0x2d   : > { %313 = vst [vmem:[%s459_s21 + $0xf8] sm:$0xff] %v281_v0 }
  0x2e PF: > { %s12_s9 = sadd.s32 1, %s398_s9  }
  0x2f   : > { %p9_p4 = scmp.ge.s32.totalorder %s12_s9, 4  }
  0x31   :  { %11 = sbr.rel (!%p9_p4) target bundleno = 1 (0x1), region = 58 }

// kernel: expert_controller_film.3
= control target key start
LH: loop header
LB: loop body
LE: loop exit
PB: predicated region body
PF: predicated region fallthrough
CT: control target
= control target key end

     0   :  { %s5211_s9 = smov 0   ;;  %s6177_s0 = inlined_call_operand.vmem [shape: f32[2,16,16,4], index: 0, kind: input, shape index: {}]   ;;  %s6178_s1 = inlined_call_operand.vmem [shape: f32[9,4,128], index: 1, kind: input, shape index: {}]   ;;  %s6179_s2 = inlined_call_operand.vmem [shape: f32[2,2,128], index: 2, kind: output, shape index: {}]  }
   0x1 LB: > { %s3857_s10 = sadd.s32 4294967295, %s5193_s9   ;;  %p3861_p0 = scmp.ge.s32.totalorder %s5193_s9, 1  ;;  %s5193_s9 = sphi %s5211_s9, %s12_s9  }
   0x2   : > { %p112_p1 = scmp.lt.s32.totalorder %s5193_s9, 3 }
   0x4   : > { %p113_p2 = pnand %p3861_p0, %p112_p1 }
   0x6   : > { %116 = sbr.rel (%p113_p2) target bundleno = 560 (0x230), region = 28 }
   0xd   : > { %v3865_v0 = vld [vmem:[%s6178_s1 + $0x4] sm:$0xf]  ;;  %vm412_vm0 = vcmask 1043456   ;;  %vm174_vm1 = vcmask 31744   ;;  %vm177_vm2 = vcmask 25600   ;;  %v5195_v1 = vmov 0.0  }
   0xe   : > { %4470 = vmatprep.subr.msk.mxu1 %vm412_vm0, %v3865_v0  ;;  %175 = vst.msk [vmem:[#allocation2 + $0x7] sm:$0xff] %vm174_vm1, %v5195_v1  ;;  %176 = vst.msk [vmem:[#allocation2 + $0xf] sm:$0xff] %vm174_vm1, %v5195_v1  ;;  %v5230_v2 = vld [vmem:[%s6178_s1 + $0x10] sm:$0xf]  ;;  %p5234_p3 = scmp.lt.s32.totalorder %s3857_s10, 1  ;;  %vm184_vm3 = vcmask 24576  }
   0xf   : > { %180 = vst.msk [vmem:[#allocation2 + $0x227] sm:$0xff] %vm174_vm1, %v5195_v1  ;;  %181 = vst.msk [vmem:[#allocation2 + $0x22f] sm:$0xff] %vm174_vm1, %v5195_v1  ;;  %v5241_v3 = vld [vmem:[%s6178_s1] sm:$0xf]  ;;  %4471 = vmatpush3.msk.msra.mxu1 %vm412_vm0, %v3865_v0  ;;  %4670 = vmatprep.subr.msk.mxu0 %vm412_vm0, %v5230_v2  ;;  %v5249_v4 = vld [vmem:[%s6178_s1 + $0x14] sm:$0xf] }
  0x10   : > { %178 = vst.msk [vmem:[#allocation2 + $0x17] sm:$0x3] %vm177_vm2, %v5195_v1  ;;  %182 = vst.msk [vmem:[#allocation2 + $0x237] sm:$0x3] %vm177_vm2, %v5195_v1  ;;  %4671 = vmatpush3.msk.msra.mxu0 %vm412_vm0, %v5230_v2  ;;  %s6288_s10 = smov (!%p5234_p3, %s3857_s10), 1  ;;  %4520 = vmatprep.subr.msk.mxu1 %vm412_vm0, %v5241_v3 }
  0x11   : > { %201 = vst.msk [vmem:[#allocation2 + $0x38] sm:$0x1] %vm184_vm3, %v5195_v1  ;;  %185 = vst.msk [vmem:[#allocation2 + $0x27] sm:$0x1] %vm184_vm3, %v5195_v1  ;;  %4720 = vmatprep.subr.msk.mxu0 %vm412_vm0, %v5249_v4  ;;  %s4172_s20 = sshll.u32 %s6288_s10, 8  ;;  %s3864_s6 = sshll.u32 %s6288_s10, 1 }
  0x12   : > { %186 = vst.msk [vmem:[#allocation2 + $0x47] sm:$0x1] %vm184_vm3, %v5195_v1  ;;  %187 = vst.msk [vmem:[#allocation2 + $0x67] sm:$0x1] %vm184_vm3, %v5195_v1  ;;  %s5299_s23 = scalar_lea.vmem %s6177_s0, %s4172_s20  ;;  %v5307_v8 = vld [vmem:[%s6178_s1 + $0x8] sm:$0xf]  ;;  %s141_s11 = scalar_lea.vmem %s6179_s2, %s3864_s6 }
  0x13   : > { %188 = vst.msk [vmem:[#allocation2 + $0x87] sm:$0x1] %vm184_vm3, %v5195_v1  ;;  %189 = vst.msk [vmem:[#allocation2 + $0xa7] sm:$0x1] %vm184_vm3, %v5195_v1  ;;  %v142_v5 = vld [vmem:[%s5299_s23] sm:$0xff]  ;;  %v143_v6 = vld [vmem:[%s5299_s23 + $0x8] sm:$0xff] }
  0x14   : > { %190 = vst.msk [vmem:[#allocation2 + $0xc7] sm:$0x1] %vm184_vm3, %v5195_v1  ;;  %191 = vst.msk [vmem:[#allocation2 + $0xe7] sm:$0x1] %vm184_vm3, %v5195_v1  ;;  %v144_v7 = vld [vmem:[%s5299_s23 + $0x10] sm:$0xff]  ;;  %v145_v11 = vld [vmem:[%s5299_s23 + $0x18] sm:$0xff] }
  0x15   : > { %192 = vst.msk [vmem:[#allocation2 + $0x107] sm:$0x1] %vm184_vm3, %v5195_v1  ;;  %193 = vst.msk [vmem:[#allocation2 + $0x127] sm:$0x1] %vm184_vm3, %v5195_v1  ;;  %v282_v9 = vld [vmem:[#allocation2 + $0x8] sm:$0xff]  ;;  %v146_v12 = vld [vmem:[%s5299_s23 + $0x20] sm:$0xff] }
  0x16   : > { %194 = vst.msk [vmem:[#allocation2 + $0x147] sm:$0x1] %vm184_vm3, %v5195_v1  ;;  %195 = vst.msk [vmem:[#allocation2 + $0x167] sm:$0x1] %vm184_vm3, %v5195_v1  ;;  %4472 = vmatprep.mubr.msk.f32.mxu1 %vm174_vm1, %v282_v9  ;;  %v147_v13 = vld [vmem:[%s5299_s23 + $0x28] sm:$0xff]  ;;  %v148_v14 = vld [vmem:[%s5299_s23 + $0x30] sm:$0xff] }
  0x17   : > { %196 = vst.msk [vmem:[#allocation2 + $0x187] sm:$0x1] %vm184_vm3, %v5195_v1  ;;  %197 = vst.msk [vmem:[#allocation2 + $0x1a7] sm:$0x1] %vm184_vm3, %v5195_v1  ;;  %v283_v10 = vld [vmem:[#allocation2 + $0x10] sm:$0xff]  ;;  %v149_v15 = vld [vmem:[%s5299_s23 + $0x38] sm:$0xff] }
  0x18   : > { %198 = vst.msk [vmem:[#allocation2 + $0x1c7] sm:$0x1] %vm184_vm3, %v5195_v1  ;;  %199 = vst.msk [vmem:[#allocation2 + $0x1e7] sm:$0x1] %vm184_vm3, %v5195_v1  ;;  %4473 = vmatmul.mubr.msk.f32.vlgmr.msra.gmra.mrb[0].mxu1 %vm174_vm1, %v283_v10  ;;  %v150_v16 = vld [vmem:[%s5299_s23 + $0x40] sm:$0xff]  ;;  %v151_v17 = vld [vmem:[%s5299_s23 + $0x48] sm:$0xff] }
  0x19   : > { %200 = vst.msk [vmem:[#allocation2 + $0x207] sm:$0x1] %vm184_vm3, %v5195_v1  ;;  %202 = vst.msk [vmem:[#allocation2 + $0x58] sm:$0x1] %vm184_vm3, %v5195_v1  ;;  %4521 = vmatpush3.msk.msra.mxu1 %vm412_vm0, %v5241_v3  ;;  %v152_v18 = vld [vmem:[%s5299_s23 + $0x50] sm:$0xff]  ;;  %v153_v19 = vld [vmem:[%s5299_s23 + $0x58] sm:$0xff] }
  0x1a   : > { %203 = vst.msk [vmem:[#allocation2 + $0x78] sm:$0x1] %vm184_vm3, %v5195_v1  ;;  %204 = vst.msk [vmem:[#allocation2 + $0x98] sm:$0x1] %vm184_vm3, %v5195_v1  ;;  %v154_v20 = vld [vmem:[%s5299_s23 + $0x60] sm:$0xff]  ;;  %v155_v21 = vld [vmem:[%s5299_s23 + $0x68] sm:$0xff]  ;;  %4570 = vmatprep.subr.msk.mxu1 %vm412_vm0, %v5307_v8 }
  0x1b   : > { %205 = vst.msk [vmem:[#allocation2 + $0xb8] sm:$0x1] %vm184_vm3, %v5195_v1  ;;  %206 = vst.msk [vmem:[#allocation2 + $0xd8] sm:$0x1] %vm184_vm3, %v5195_v1  ;;  %v156_v22 = vld [vmem:[%s5299_s23 + $0x70] sm:$0xff]  ;;  %v157_v23 = vld [vmem:[%s5299_s23 + $0x78] sm:$0xff] }
  0x1c   : > { %207 = vst.msk [vmem:[#allocation2 + $0xf8] sm:$0x1] %vm184_vm3, %v5195_v1  ;;  %208 = vst.msk [vmem:[#allocation2 + $0x118] sm:$0x1] %vm184_vm3, %v5195_v1  ;;  %v158_v24 = vld [vmem:[%s5299_s23 + $0x80] sm:$0xff]  ;;  %v159_v25 = vld [vmem:[%s5299_s23 + $0x88] sm:$0xff] }
  0x1d   : > { %209 = vst.msk [vmem:[#allocation2 + $0x138] sm:$0x1] %vm184_vm3, %v5195_v1  ;;  %210 = vst.msk [vmem:[#allocation2 + $0x158] sm:$0x1] %vm184_vm3, %v5195_v1  ;;  %v160_v26 = vld [vmem:[%s5299_s23 + $0x90] sm:$0xff]  ;;  %v161_v27 = vld [vmem:[%s5299_s23 + $0x98] sm:$0xff] }
  0x1e   : > { %211 = vst.msk [vmem:[#allocation2 + $0x178] sm:$0x1] %vm184_vm3, %v5195_v1  ;;  %212 = vst.msk [vmem:[#allocation2 + $0x198] sm:$0x1] %vm184_vm3, %v5195_v1  ;;  %v162_v28 = vld [vmem:[%s5299_s23 + $0xa0] sm:$0xff]  ;;  %v163_v29 = vld [vmem:[%s5299_s23 + $0xa8] sm:$0xff] }
  0x1f   : > { %213 = vst.msk [vmem:[#allocation2 + $0x1b8] sm:$0x1] %vm184_vm3, %v5195_v1  ;;  %214 = vst.msk [vmem:[#allocation2 + $0x1d8] sm:$0x1] %vm184_vm3, %v5195_v1  ;;  %v5363_v33 = vld [vmem:[%s6178_s1 + $0x18] sm:$0xf] }
  0x20   : > { %215 = vst.msk [vmem:[#allocation2 + $0x1f8] sm:$0x1] %vm184_vm3, %v5195_v1  ;;  %216 = vst.msk [vmem:[#allocation2 + $0x218] sm:$0x1] %vm184_vm3, %v5195_v1  ;;  %v164_v38 = vld [vmem:[%s5299_s23 + $0xb0] sm:$0xff]  ;;  %v165_v39 = vld [vmem:[%s5299_s23 + $0xb8] sm:$0xff] }
  0x21   : > { %217 = vst.msk [vmem:[#allocation2 + $0x28] sm:$0xff] %vm174_vm1, %v142_v5  ;;  %218 = vst.msk [vmem:[#allocation2 + $0x30] sm:$0xff] %vm174_vm1, %v143_v6  ;;  %v166_v40 = vld [vmem:[%s5299_s23 + $0xc0] sm:$0xff]  ;;  %v167_v42 = vld [vmem:[%s5299_s23 + $0xc8] sm:$0xff] }
  0x22   : > { %219 = vst.msk [vmem:[#allocation2 + $0x48] sm:$0xff] %vm174_vm1, %v144_v7  ;;  %220 = vst.msk [vmem:[#allocation2 + $0x50] sm:$0xff] %vm174_vm1, %v145_v11  ;;  %v168_v44 = vld [vmem:[%s5299_s23 + $0xd0] sm:$0xff]  ;;  %v169_v45 = vld [vmem:[%s5299_s23 + $0xd8] sm:$0xff] }
  0x23   : > { %221 = vst.msk [vmem:[#allocation2 + $0x68] sm:$0xff] %vm174_vm1, %v146_v12  ;;  %222 = vst.msk [vmem:[#allocation2 + $0x70] sm:$0xff] %vm174_vm1, %v147_v13  ;;  %v170_v46 = vld [vmem:[%s5299_s23 + $0xe0] sm:$0xff]  ;;  %v171_v47 = vld [vmem:[%s5299_s23 + $0xe8] sm:$0xff] }
  0x24   : > { %223 = vst.msk [vmem:[#allocation2 + $0x88] sm:$0xff] %vm174_vm1, %v148_v14  ;;  %224 = vst.msk [vmem:[#allocation2 + $0x90] sm:$0xff] %vm174_vm1, %v149_v15  ;;  %v172_v57 = vld [vmem:[%s5299_s23 + $0xf0] sm:$0xff]  ;;  %v173_v58 = vld [vmem:[%s5299_s23 + $0xf8] sm:$0xff] }
  0x25   : > { %225 = vst.msk [vmem:[#allocation2 + $0xa8] sm:$0xff] %vm174_vm1, %v150_v16  ;;  %226 = vst.msk [vmem:[#allocation2 + $0xb0] sm:$0xff] %vm174_vm1, %v151_v17  ;;  %v5492_v63 = vld [vmem:[%s6178_s1 + $0x1c] sm:$0xf] }
  0x26   : > { %227 = vst.msk [vmem:[#allocation2 + $0xc8] sm:$0xff] %vm174_vm1, %v152_v18  ;;  %228 = vst.msk [vmem:[#allocation2 + $0xd0] sm:$0xff] %vm174_vm1, %v153_v19 }
  0x27   : > { %229 = vst.msk [vmem:[#allocation2 + $0xe8] sm:$0xff] %vm174_vm1, %v154_v20  ;;  %230 = vst.msk [vmem:[#allocation2 + $0xf0] sm:$0xff] %vm174_vm1, %v155_v21 }
  0x28   : > { %231 = vst.msk [vmem:[#allocation2 + $0x108] sm:$0xff] %vm174_vm1, %v156_v22  ;;  %232 = vst.msk [vmem:[#allocation2 + $0x110] sm:$0xff] %vm174_vm1, %v157_v23  ;;  %v284_v30 = vld [vmem:[#allocation2 + $0x28] sm:$0xff]  ;;  %v285_v31 = vld [vmem:[#allocation2 + $0x30] sm:$0xff] }
  0x29   : > { %233 = vst.msk [vmem:[#allocation2 + $0x128] sm:$0xff] %vm174_vm1, %v158_v24  ;;  %234 = vst.msk [vmem:[#allocation2 + $0x130] sm:$0xff] %vm174_vm1, %v159_v25  ;;  %v5353_v32 = vld [vmem:[#allocation2 + $0x48] sm:$0xff]  ;;  %4475 = vmatprep.mubr.msk.f32.mxu1 %vm174_vm1, %v284_v30  ;;  %4672 = vmatprep.mubr.msk.f32.mxu0 %vm174_vm1, %v284_v30  ;;  %v5371_v34 = vld [vmem:[#allocation2 + $0x50] sm:$0xff] }
  0x2a   : > { %235 = vst.msk [vmem:[#allocation2 + $0x148] sm:$0xff] %vm174_vm1, %v160_v26  ;;  %236 = vst.msk [vmem:[#allocation2 + $0x150] sm:$0xff] %vm174_vm1, %v161_v27  ;;  %4476 = vmatmul.mubr.msk.f32.gmra.mrb[2].mxu1 %vm174_vm1, %v285_v31  ;;  %4673 = vmatmul.mubr.msk.f32.vlgmr.msra.gmra.mrb[0].mxu0 %vm174_vm1, %v285_v31  ;;  %v5375_v35 = vld [vmem:[#allocation2 + $0x68] sm:$0xff]  ;;  %v5387_v36 = vld [vmem:[#allocation2 + $0x70] sm:$0xff] }
  0x2b   : > { %237 = vst.msk [vmem:[#allocation2 + $0x168] sm:$0xff] %vm174_vm1, %v162_v28  ;;  %238 = vst.msk [vmem:[#allocation2 + $0x170] sm:$0xff] %vm174_vm1, %v163_v29  ;;  %4721 = vmatpush3.msk.msra.mxu0 %vm412_vm0, %v5249_v4  ;;  %4478 = vmatprep.mubr.msk.f32.mxu1 %vm174_vm1, %v5353_v32  ;;  %v5389_v37 = vld [vmem:[#allocation2 + $0x88] sm:$0xff]  ;;  %v5403_v41 = vld [vmem:[#allocation2 + $0x90] sm:$0xff] }
  0x2c   : > { %4675 = vmatprep.mubr.msk.f32.mxu0 %vm174_vm1, %v5353_v32  ;;  %4770 = vmatprep.subr.msk.mxu0 %vm412_vm0, %v5363_v33  ;;  %239 = vst.msk [vmem:[#allocation2 + $0x188] sm:$0xff] %vm174_vm1, %v164_v38  ;;  %240 = vst.msk [vmem:[#allocation2 + $0x190] sm:$0xff] %vm174_vm1, %v165_v39  ;;  %v5408_v43 = vld [vmem:[#allocation2 + $0xa8] sm:$0xff]  ;;  %v5426_v48 = vld [vmem:[#allocation2 + $0xb0] sm:$0xff] }
  0x2d   : > { %241 = vst.msk [vmem:[#allocation2 + $0x1a8] sm:$0xff] %vm174_vm1, %v166_v40  ;;  %242 = vst.msk [vmem:[#allocation2 + $0x1b0] sm:$0xff] %vm174_vm1, %v167_v42  ;;  %v5429_v49 = vld [vmem:[#allocation2 + $0xc8] sm:$0xff]  ;;  %v5439_v50 = vld [vmem:[#allocation2 + $0xd0] sm:$0xff] }
  0x2e   : > { %4479 = vmatmul.mubr.msk.f32.gmra.mrb[4].mxu1 %vm174_vm1, %v5371_v34  ;;  %4676 = vmatmul.mubr.msk.f32.gmra.mrb[2].mxu0 %vm174_vm1, %v5371_v34  ;;  %243 = vst.msk [vmem:[#allocation2 + $0x1c8] sm:$0xff] %vm174_vm1, %v168_v44  ;;  %244 = vst.msk [vmem:[#allocation2 + $0x1d0] sm:$0xff] %vm174_vm1, %v169_v45  ;;  %v5441_v51 = vld [vmem:[#allocation2 + $0xe8] sm:$0xff]  ;;  %v5451_v52 = vld [vmem:[#allocation2 + $0xf0] sm:$0xff] }
  0x2f   : > { %4481 = vmatprep.mubr.msk.f32.mxu1 %vm174_vm1, %v5375_v35  ;;  %4678 = vmatprep.mubr.msk.f32.mxu0 %vm174_vm1, %v5375_v35  ;;  %245 = vst.msk [vmem:[#allocation2 + $0x1e8] sm:$0xff] %vm174_vm1, %v170_v46  ;;  %246 = vst.msk [vmem:[#allocation2 + $0x1f0] sm:$0xff] %vm174_vm1, %v171_v47  ;;  %v5453_v53 = vld [vmem:[#allocation2 + $0x108] sm:$0xff]  ;;  %v5463_v54 = vld [vmem:[#allocation2 + $0x110] sm:$0xff] }
  0x30   : > { %6225 = vst [vmem:[#allocation3_spill] sm:$0xff] %v5463_v54  ;;  %v5465_v55 = vld [vmem:[#allocation2 + $0x29] sm:$0xff]  ;;  %247 = vst.msk [vmem:[#allocation2 + $0x208] sm:$0xff] %vm174_vm1, %v172_v57  ;;  %v5483_v60 = vld [vmem:[#allocation2 + $0x31] sm:$0xff] }
  0x31   : > { %v5467_v56 = vld [vmem:[#allocation2 + $0x128] sm:$0xff]  ;;  %248 = vst.msk [vmem:[#allocation2 + $0x210] sm:$0xff] %vm174_vm1, %v173_v58  ;;  %v5481_v59 = vld [vmem:[#allocation2 + $0x130] sm:$0xff] }
  0x32   : > { %4482 = vmatmul.mubr.msk.f32.gmra.mrb[6].mxu1 %vm174_vm1, %v5387_v36  ;;  %4679 = vmatmul.mubr.msk.f32.gmra.mrb[4].mxu0 %vm174_vm1, %v5387_v36  ;;  %6226 = vst [vmem:[#allocation4_spill] sm:$0xff] %v5467_v56  ;;  %6227 = vst [vmem:[#allocation5_spill] sm:$0xff] %v5481_v59  ;;  %v5485_v61 = vld [vmem:[#allocation2 + $0x148] sm:$0xff]  ;;  %v5502_v0 = vld [vmem:[#allocation2 + $0x150] sm:$0xff] }
  0x33   : > { %4484 = vmatprep.mubr.msk.f32.mxu1 %vm174_vm1, %v5389_v37  ;;  %4681 = vmatprep.mubr.msk.f32.mxu0 %vm174_vm1, %v5389_v37  ;;  %6228 = vst [vmem:[#allocation6_spill] sm:$0xff] %v5485_v61  ;;  %v5487_v62 = vld [vmem:[#allocation2 + $0x49] sm:$0xff]  ;;  %6229 = vst [vmem:[#allocation7_spill] sm:$0xff] %v5502_v0  ;;  %v5504_v1 = vld [vmem:[#allocation2 + $0x51] sm:$0xff] }
  0x34   : > { %v5508_v3 = vld [vmem:[#allocation2 + $0x168] sm:$0xff]  ;;  %v5522_v5 = vld [vmem:[#allocation2 + $0x170] sm:$0xff] }
  0x35   : > { %6230 = vst [vmem:[#allocation8_spill] sm:$0xff] %v5508_v3  ;;  %v5510_v4 = vld [vmem:[#allocation2 + $0x69] sm:$0xff]  ;;  %6231 = vst [vmem:[#allocation9_spill] sm:$0xff] %v5522_v5  ;;  %v5524_v6 = vld [vmem:[#allocation2 + $0x71] sm:$0xff] }
  0x36   : > { %4485 = vmatmul.mubr.msk.f32.gmra.mrb[8].mxu1 %vm174_vm1, %v5403_v41  ;;  %4682 = vmatmul.mubr.msk.f32.gmra.mrb[6].mxu0 %vm174_vm1, %v5403_v41  ;;  %v5526_v7 = vld [vmem:[#allocation2 + $0x188] sm:$0xff]  ;;  %v5538_v10 = vld [vmem:[#allocation2 + $0x190] sm:$0xff] }
  0x37   : > { %4487 = vmatprep.mubr.msk.f32.mxu1 %vm174_vm1, %v5408_v43  ;;  %4684 = vmatprep.mubr.msk.f32.mxu0 %vm174_vm1, %v5408_v43  ;;  %6232 = vst [vmem:[#allocation10_spill] sm:$0xff] %v5526_v7  ;;  %v5528_v9 = vld [vmem:[#allocation2 + $0x89] sm:$0xff]  ;;  %6233 = vst [vmem:[#allocation11_spill] sm:$0xff] %v5538_v10  ;;  %v5540_v11 = vld [vmem:[#allocation2 + $0x91] sm:$0xff] }
  0x38   : > { %v5542_v12 = vld [vmem:[#allocation2 + $0x1a8] sm:$0xff]  ;;  %v5554_v14 = vld [vmem:[#allocation2 + $0x1b0] sm:$0xff] }
  0x39   : > { %6234 = vst [vmem:[#allocation12_spill] sm:$0xff] %v5542_v12  ;;  %v5544_v13 = vld [vmem:[#allocation2 + $0xa9] sm:$0xff]  ;;  %6235 = vst [vmem:[#allocation13_spill] sm:$0xff] %v5554_v14  ;;  %v5556_v15 = vld [vmem:[#allocation2 + $0xb1] sm:$0xff] }
  0x3a   : > { %4488 = vmatmul.mubr.msk.f32.gmra.mrb[10].mxu1 %vm174_vm1, %v5426_v48  ;;  %4685 = vmatmul.mubr.msk.f32.gmra.mrb[8].mxu0 %vm174_vm1, %v5426_v48  ;;  %v5558_v16 = vld [vmem:[#allocation2 + $0x1c8] sm:$0xff]  ;;  %v5570_v18 = vld [vmem:[#allocation2 + $0x1d0] sm:$0xff] }
  0x3b   : > { %4490 = vmatprep.mubr.msk.f32.mxu1 %vm174_vm1, %v5429_v49  ;;  %4687 = vmatprep.mubr.msk.f32.mxu0 %vm174_vm1, %v5429_v49  ;;  %6236 = vst [vmem:[#allocation14_spill] sm:$0xff] %v5558_v16  ;;  %v5560_v17 = vld [vmem:[#allocation2 + $0xc9] sm:$0xff]  ;;  %6237 = vst [vmem:[#allocation15_spill] sm:$0xff] %v5570_v18  ;;  %v5572_v19 = vld [vmem:[#allocation2 + $0xd1] sm:$0xff] }
  0x3c   : > { %v5574_v20 = vld [vmem:[#allocation2 + $0x1e8] sm:$0xff]  ;;  %v5586_v22 = vld [vmem:[#allocation2 + $0x1f0] sm:$0xff] }
  0x3d   : > { %6238 = vst [vmem:[#allocation16_spill] sm:$0xff] %v5574_v20  ;;  %v5576_v21 = vld [vmem:[#allocation2 + $0xe9] sm:$0xff]  ;;  %6239 = vst [vmem:[#allocation17_spill] sm:$0xff] %v5586_v22  ;;  %v5588_v23 = vld [vmem:[#allocation2 + $0xf1] sm:$0xff] }
  0x3e   : > { %4491 = vmatmul.mubr.msk.f32.gmra.mrb[12].mxu1 %vm174_vm1, %v5439_v50  ;;  %4688 = vmatmul.mubr.msk.f32.gmra.mrb[10].mxu0 %vm174_vm1, %v5439_v50  ;;  %v249_v24 = vld [vmem:[#allocation2 + $0x7] sm:$0xff]  ;;  %v250_v26 = vld [vmem:[#allocation2 + $0xf] sm:$0xff] }
  0x3f   : > { %4493 = vmatprep.mubr.msk.f32.mxu1 %vm174_vm1, %v5441_v51  ;;  %4690 = vmatprep.mubr.msk.f32.mxu0 %vm174_vm1, %v5441_v51  ;;  %v5590_v25 = vld [vmem:[#allocation2 + $0x109] sm:$0xff]  ;;  %v5599_v27 = vld [vmem:[#allocation2 + $0x111] sm:$0xff] }
  0x40   : > { %v5601_v28 = vld [vmem:[#allocation2 + $0x27] sm:$0xff]  ;;  %v5617_v31 = vld [vmem:[#allocation2 + $0x2f] sm:$0xff] }
  0x41   : > { %6240 = vst [vmem:[#allocation18_spill] sm:$0xff] %v5601_v28  ;;  %v5603_v29 = vld [vmem:[#allocation2 + $0x129] sm:$0xff]  ;;  %6241 = vst [vmem:[#allocation19_spill] sm:$0xff] %v5617_v31  ;;  %v5639_v40 = vld [vmem:[#allocation2 + $0x151] sm:$0xff] }
  0x42   : > { %4494 = vmatmul.mubr.msk.f32.gmra.mrb[14].mxu1 %vm174_vm1, %v5451_v52  ;;  %4691 = vmatmul.mubr.msk.f32.gmra.mrb[12].mxu0 %vm174_vm1, %v5451_v52  ;;  %v5611_v30 = vld [vmem:[%s6178_s1 + $0xc] sm:$0xf]  ;;  %v5655_v46 = vld [vmem:[#allocation2 + $0x171] sm:$0xff] }
  0x43   : > { %4496 = vmatprep.mubr.msk.f32.mxu1 %vm174_vm1, %v5453_v53  ;;  %4693 = vmatprep.mubr.msk.f32.mxu0 %vm174_vm1, %v5453_v53  ;;  %v5623_v38 = vld [vmem:[#allocation2 + $0x47] sm:$0xff]  ;;  %v5653_v45 = vld [vmem:[#allocation2 + $0x6f] sm:$0xff] }
  0x44   : > { %6242 = vst [vmem:[#allocation20_spill] sm:$0xff] %v5623_v38  ;;  %v5625_v39 = vld [vmem:[#allocation2 + $0x149] sm:$0xff]  ;;  %6245 = vst [vmem:[#allocation23_spill] sm:$0xff] %v5653_v45 }
  0x45   : > { %v5641_v42 = vld [vmem:[#allocation2 + $0x67] sm:$0xff]  ;;  %v5669_v58 = vld [vmem:[#allocation2 + $0x8f] sm:$0xff] }
  0x46   : > { %4497 = vmatmul.mubr.msk.f32.gmra.mrb[16].mxu1 %vm174_vm1, %v5463_v54  ;;  %4694 = vmatmul.mubr.msk.f32.gmra.mrb[14].mxu0 %vm174_vm1, %v5463_v54  ;;  %6244 = vst [vmem:[#allocation22_spill] sm:$0xff] %v5641_v42  ;;  %v5643_v44 = vld [vmem:[#allocation2 + $0x169] sm:$0xff]  ;;  %6247 = vst [vmem:[#allocation25_spill] sm:$0xff] %v5669_v58 }
  0x47   : > { %4499 = vmatprep.mubr.msk.f32.mxu1 %vm174_vm1, %v5467_v56  ;;  %4722 = vmatprep.mubr.msk.f32.mxu0 %vm174_vm1, %v5465_v55  ;;  %v5657_v47 = vld [vmem:[#allocation2 + $0x87] sm:$0xff]  ;;  %v5735_v56 = vld [vmem:[#allocation2 + $0x211] sm:$0xff] }
  0x48   : > { %6246 = vst [vmem:[#allocation24_spill] sm:$0xff] %v5657_v47  ;;  %v5659_v57 = vld [vmem:[#allocation2 + $0x189] sm:$0xff]  ;;  %6255 = vst [vmem:[#allocation33_spill] sm:$0xff] %v5735_v56 }
  0x49   : > { %v5747_v54 = vld [vmem:[#allocation2 + $0x12f] sm:$0xff] }
  0x4a   : > { %4500 = vmatmul.mubr.msk.f32.gmra.mrb[18].mxu1 %vm174_vm1, %v5481_v59  ;;  %4723 = vmatmul.mubr.msk.f32.vlgmr.msra.gmra.mrb[0].mxu0 %vm174_vm1, %v5483_v60  ;;  %v5723_v59 = vld [vmem:[#allocation2 + $0x209] sm:$0xff] }
  0x4b   : > { %4771 = vmatpush3.msk.msra.mxu0 %vm412_vm0, %v5363_v33  ;;  %4502 = vmatprep.mubr.msk.f32.mxu1 %vm174_vm1, %v5485_v61  ;;  %v5619_v33 = vld [vmem:[#allocation2 + $0x131] sm:$0xff]  ;;  %v5721_v61 = vld [vmem:[#allocation2 + $0x107] sm:$0xff]  ;;  %6254 = vst [vmem:[#allocation32_spill] sm:$0xff] %v5723_v59 }
  0x4c   : > { %4725 = vmatprep.mubr.msk.f32.mxu0 %vm174_vm1, %v5487_v62  ;;  %4820 = vmatprep.subr.msk.mxu0 %vm412_vm0, %v5492_v63 }
  0x4e   : > { %4503 = vmatmul.mubr.msk.f32.gmra.mrb[20].mxu1 %vm174_vm1, %v5502_v0  ;;  %4726 = vmatmul.mubr.msk.f32.gmra.mrb[2].mxu0 %vm174_vm1, %v5504_v1  ;;  %v5719_v0 = vld [vmem:[#allocation2 + $0x1f1] sm:$0xff] }
  0x4f   : > { %4505 = vmatprep.mubr.msk.f32.mxu1 %vm174_vm1, %v5508_v3  ;;  %4728 = vmatprep.mubr.msk.f32.mxu0 %vm174_vm1, %v5510_v4  ;;  %v5717_v3 = vld [vmem:[#allocation2 + $0xef] sm:$0xff]  ;;  %6253 = vst [vmem:[#allocation31_spill] sm:$0xff] %v5719_v0 }
  0x50   : > { %6252 = vst [vmem:[#allocation30_spill] sm:$0xff] %v5717_v3 }
  0x52   : > { %4506 = vmatmul.mubr.msk.f32.gmra.mrb[22].mxu1 %vm174_vm1, %v5522_v5  ;;  %4729 = vmatmul.mubr.msk.f32.gmra.mrb[4].mxu0 %vm174_vm1, %v5524_v6  ;;  %v5707_v5 = vld [vmem:[#allocation2 + $0x1e9] sm:$0xff] }
  0x53   : > { %4508 = vmatprep.mubr.msk.f32.mxu1 %vm174_vm1, %v5526_v7  ;;  %4731 = vmatprep.mubr.msk.f32.mxu0 %vm174_vm1, %v5528_v9  ;;  %v5705_v7 = vld [vmem:[#allocation2 + $0xe7] sm:$0xff] }
  0x56   : > { %4509 = vmatmul.mubr.msk.f32.gmra.mrb[24].mxu1 %vm174_vm1, %v5538_v10  ;;  %4732 = vmatmul.mubr.msk.f32.gmra.mrb[6].mxu0 %vm174_vm1, %v5540_v11  ;;  %v5703_v10 = vld [vmem:[#allocation2 + $0x1d1] sm:$0xff] }
  0x57   : > { %4511 = vmatprep.mubr.msk.f32.mxu1 %vm174_vm1, %v5542_v12  ;;  %4734 = vmatprep.mubr.msk.f32.mxu0 %vm174_vm1, %v5544_v13  ;;  %v5701_v12 = vld [vmem:[#allocation2 + $0xcf] sm:$0xff] }
  0x58   : > { %6251 = vst [vmem:[#allocation29_spill] sm:$0xff] %v5701_v12 }
  0x5a   : > { %4512 = vmatmul.mubr.msk.f32.gmra.mrb[26].mxu1 %vm174_vm1, %v5554_v14  ;;  %4735 = vmatmul.mubr.msk.f32.gmra.mrb[8].mxu0 %vm174_vm1, %v5556_v15  ;;  %v5691_v14 = vld [vmem:[#allocation2 + $0x1c9] sm:$0xff] }
  0x5b   : > { %4514 = vmatprep.mubr.msk.f32.mxu1 %vm174_vm1, %v5558_v16  ;;  %4737 = vmatprep.mubr.msk.f32.mxu0 %vm174_vm1, %v5560_v17  ;;  %v5689_v16 = vld [vmem:[#allocation2 + $0xc7] sm:$0xff] }
  0x5c   : > { %6250 = vst [vmem:[#allocation28_spill] sm:$0xff] %v5689_v16 }
  0x5e   : > { %4515 = vmatmul.mubr.msk.f32.gmra.mrb[28].mxu1 %vm174_vm1, %v5570_v18  ;;  %4738 = vmatmul.mubr.msk.f32.gmra.mrb[10].mxu0 %vm174_vm1, %v5572_v19  ;;  %v5687_v18 = vld [vmem:[#allocation2 + $0x1b1] sm:$0xff] }
  0x5f   : > { %4517 = vmatprep.mubr.msk.f32.mxu1 %vm174_vm1, %v5574_v20  ;;  %4740 = vmatprep.mubr.msk.f32.mxu0 %vm174_vm1, %v5576_v21  ;;  %v5685_v20 = vld [vmem:[#allocation2 + $0xaf] sm:$0xff] }
  0x60   : > { %6249 = vst [vmem:[#allocation27_spill] sm:$0xff] %v5685_v20 }
  0x62   : > { %4518 = vmatmul.mubr.msk.f32.gmra.mrb[30].mxu1 %vm174_vm1, %v5586_v22  ;;  %4741 = vmatmul.mubr.msk.f32.gmra.mrb[12].mxu0 %vm174_vm1, %v5588_v23  ;;  %v5675_v22 = vld [vmem:[#allocation2 + $0x1a9] sm:$0xff] }
  0x63   : > { %4522 = vmatprep.mubr.msk.f32.mxu1 %vm174_vm1, %v249_v24  ;;  %4743 = vmatprep.mubr.msk.f32.mxu0 %vm174_vm1, %v5590_v25  ;;  %v5671_v24 = vld [vmem:[#allocation2 + $0x191] sm:$0xff] }
  0x66   : > { %4523 = vmatmul.mubr.msk.f32.vlgmr.msra.gmra.mrb[0].mxu1 %vm174_vm1, %v250_v26  ;;  %4744 = vmatmul.mubr.msk.f32.gmra.mrb[14].mxu0 %vm174_vm1, %v5599_v27  ;;  %v5673_v26 = vld [vmem:[#allocation2 + $0xa7] sm:$0xff] }
  0x67   : > { %4525 = vmatprep.mubr.msk.f32.mxu1 %vm174_vm1, %v5601_v28  ;;  %4746 = vmatprep.mubr.msk.f32.mxu0 %vm174_vm1, %v5603_v29  ;;  %6248 = vst [vmem:[#allocation26_spill] sm:$0xff] %v5673_v26  ;;  %v5737_v28 = vld [vmem:[#allocation2 + $0x127] sm:$0xff] }
  0x68   : > { %4571 = vmatpush3.msk.msra.mxu1 %vm412_vm0, %v5307_v8  ;;  %v5637_v8 = vld [vmem:[#allocation2 + $0x4f] sm:$0xff] }
  0x69   : > { %4620 = vmatprep.subr.msk.mxu1 %vm412_vm0, %v5611_v30  ;;  %6243 = vst [vmem:[#allocation21_spill] sm:$0xff] %v5637_v8 }
  0x6a   : > { %4526 = vmatmul.mubr.msk.f32.gmra.mrb[2].mxu1 %vm174_vm1, %v5617_v31  ;;  %4747 = vmatmul.mubr.msk.f32.gmra.mrb[16].mxu0 %vm174_vm1, %v5619_v33  ;;  %v5733_v31 = vld [vmem:[#allocation2 + $0x10f] sm:$0xff] }
  0x6b   : > { %4528 = vmatprep.mubr.msk.f32.mxu1 %vm174_vm1, %v5623_v38  ;;  %4749 = vmatprep.mubr.msk.f32.mxu0 %vm174_vm1, %v5625_v39 }
  0x6e   : > { %4529 = vmatmul.mubr.msk.f32.gmra.mrb[4].mxu1 %vm174_vm1, %v5637_v8  ;;  %4750 = vmatmul.mubr.msk.f32.gmra.mrb[18].mxu0 %vm174_vm1, %v5639_v40 }
  0x6f   : > { %4531 = vmatprep.mubr.msk.f32.mxu1 %vm174_vm1, %v5641_v42  ;;  %4752 = vmatprep.mubr.msk.f32.mxu0 %vm174_vm1, %v5643_v44 }
  0x72   : > { %4532 = vmatmul.mubr.msk.f32.gmra.mrb[6].mxu1 %vm174_vm1, %v5653_v45  ;;  %4753 = vmatmul.mubr.msk.f32.gmra.mrb[20].mxu0 %vm174_vm1, %v5655_v46 }
  0x73   : > { %4534 = vmatprep.mubr.msk.f32.mxu1 %vm174_vm1, %v5657_v47  ;;  %4755 = vmatprep.mubr.msk.f32.mxu0 %vm174_vm1, %v5659_v57 }
  0x76   : > { %4535 = vmatmul.mubr.msk.f32.gmra.mrb[8].mxu1 %vm174_vm1, %v5669_v58  ;;  %4756 = vmatmul.mubr.msk.f32.gmra.mrb[22].mxu0 %vm174_vm1, %v5671_v24 }
  0x77   : > { %4537 = vmatprep.mubr.msk.f32.mxu1 %vm174_vm1, %v5673_v26  ;;  %4758 = vmatprep.mubr.msk.f32.mxu0 %vm174_vm1, %v5675_v22 }
  0x7a   : > { %4538 = vmatmul.mubr.msk.f32.gmra.mrb[10].mxu1 %vm174_vm1, %v5685_v20  ;;  %4759 = vmatmul.mubr.msk.f32.gmra.mrb[24].mxu0 %vm174_vm1, %v5687_v18 }
  0x7b   : > { %4540 = vmatprep.mubr.msk.f32.mxu1 %vm174_vm1, %v5689_v16  ;;  %4761 = vmatprep.mubr.msk.f32.mxu0 %vm174_vm1, %v5691_v14 }
  0x7e   : > { %4541 = vmatmul.mubr.msk.f32.gmra.mrb[12].mxu1 %vm174_vm1, %v5701_v12  ;;  %4762 = vmatmul.mubr.msk.f32.gmra.mrb[26].mxu0 %vm174_vm1, %v5703_v10 }
  0x7f   : > { %4543 = vmatprep.mubr.msk.f32.mxu1 %vm174_vm1, %v5705_v7  ;;  %4764 = vmatprep.mubr.msk.f32.mxu0 %vm174_vm1, %v5707_v5 }
  0x82   : > { %4544 = vmatmul.mubr.msk.f32.gmra.mrb[14].mxu1 %vm174_vm1, %v5717_v3  ;;  %4765 = vmatmul.mubr.msk.f32.gmra.mrb[28].mxu0 %vm174_vm1, %v5719_v0  ;;  %v5754_v0 = vld [vmem:[%s6178_s1 + $0x20] sm:$0xf] }
  0x83   : > { %4546 = vmatprep.mubr.msk.f32.mxu1 %vm174_vm1, %v5721_v61  ;;  %4767 = vmatprep.mubr.msk.f32.mxu0 %vm174_vm1, %v5723_v59  ;;  %v5749_v59 = vld [vmem:[#allocation2 + $0x147] sm:$0xff] }
  0x86   : > { %4547 = vmatmul.mubr.msk.f32.gmra.mrb[16].mxu1 %vm174_vm1, %v5733_v31  ;;  %4768 = vmatmul.mubr.msk.f32.gmra.mrb[30].mxu0 %vm174_vm1, %v5735_v56  ;;  %v5764_v56 = vld [vmem:[#allocation2 + $0x14f] sm:$0xff] }
  0x87   : > { %4549 = vmatprep.mubr.msk.f32.mxu1 %vm174_vm1, %v5737_v28  ;;  %4772 = vmatprep.mubr.msk.f32.mxu0 %vm174_vm1, %v5623_v38  ;;  %v5768_v38 = vld [vmem:[#allocation2 + $0x167] sm:$0xff] }
  0x8a   : > { %4550 = vmatmul.mubr.msk.f32.gmra.mrb[18].mxu1 %vm174_vm1, %v5747_v54  ;;  %4773 = vmatmul.mubr.msk.f32.vlgmr.msra.gmra.mrb[0].mxu0 %vm174_vm1, %v5637_v8  ;;  %v5794_v8 = vld [vmem:[#allocation2 + $0x1a7] sm:$0xff] }
  0x8b   : > { %4821 = vmatpush3.msk.msra.mxu0 %vm412_vm0, %v5492_v63  ;;  %4552 = vmatprep.mubr.msk.f32.mxu1 %vm174_vm1, %v5749_v59  ;;  %v5780_v63 = vld [vmem:[#allocation2 + $0x16f] sm:$0xff] }
  0x8c   : > { %4775 = vmatprep.mubr.msk.f32.mxu0 %vm174_vm1, %v5641_v42  ;;  %4870 = vmatprep.subr.msk.mxu0 %vm412_vm0, %v5754_v0  ;;  %v5782_v42 = vld [vmem:[#allocation2 + $0x187] sm:$0xff] }
  0x8e   : > { %4553 = vmatmul.mubr.msk.f32.gmra.mrb[20].mxu1 %vm174_vm1, %v5764_v56  ;;  %4776 = vmatmul.mubr.msk.f32.gmra.mrb[2].mxu0 %vm174_vm1, %v5653_v45  ;;  %v5792_v45 = vld [vmem:[#allocation2 + $0x18f] sm:$0xff] }
  0x8f   : > { %4555 = vmatprep.mubr.msk.f32.mxu1 %vm174_vm1, %v5768_v38  ;;  %4778 = vmatprep.mubr.msk.f32.mxu0 %vm174_vm1, %v5657_v47  ;;  %v5806_v47 = vld [vmem:[#allocation2 + $0x1c7] sm:$0xff] }
  0x92   : > { %4556 = vmatmul.mubr.msk.f32.gmra.mrb[22].mxu1 %vm174_vm1, %v5780_v63  ;;  %4779 = vmatmul.mubr.msk.f32.gmra.mrb[4].mxu0 %vm174_vm1, %v5669_v58  ;;  %v5804_v58 = vld [vmem:[#allocation2 + $0x1af] sm:$0xff] }
  0x93   : > { %4558 = vmatprep.mubr.msk.f32.mxu1 %vm174_vm1, %v5782_v42  ;;  %4781 = vmatprep.mubr.msk.f32.mxu0 %vm174_vm1, %v5673_v26  ;;  %v5818_v26 = vld [vmem:[#allocation2 + $0x1e7] sm:$0xff] }
  0x96   : > { %4559 = vmatmul.mubr.msk.f32.gmra.mrb[24].mxu1 %vm174_vm1, %v5792_v45  ;;  %4782 = vmatmul.mubr.msk.f32.gmra.mrb[6].mxu0 %vm174_vm1, %v5685_v20  ;;  %v5816_v20 = vld [vmem:[#allocation2 + $0x1cf] sm:$0xff] }
  0x97   : > { %4561 = vmatprep.mubr.msk.f32.mxu1 %vm174_vm1, %v5794_v8  ;;  %4784 = vmatprep.mubr.msk.f32.mxu0 %vm174_vm1, %v5689_v16  ;;  %v965_v16 = vld [vmem:[#allocation2 + $0x9] sm:$0xff] }
  0x9a   : > { %4562 = vmatmul.mubr.msk.f32.gmra.mrb[26].mxu1 %vm174_vm1, %v5804_v58  ;;  %4785 = vmatmul.mubr.msk.f32.gmra.mrb[8].mxu0 %vm174_vm1, %v5701_v12  ;;  %v5828_v12 = vld [vmem:[#allocation2 + $0x1ef] sm:$0xff] }
  0x9b   : > { %4564 = vmatprep.mubr.msk.f32.mxu1 %vm174_vm1, %v5806_v47  ;;  %4787 = vmatprep.mubr.msk.f32.mxu0 %vm174_vm1, %v5705_v7 }
  0x9e   : > { %4565 = vmatmul.mubr.msk.f32.gmra.mrb[28].mxu1 %vm174_vm1, %v5816_v20  ;;  %4788 = vmatmul.mubr.msk.f32.gmra.mrb[10].mxu0 %vm174_vm1, %v5717_v3  ;;  %v966_v3 = vld [vmem:[#allocation2 + $0x11] sm:$0xff] }
  0x9f   : > { %4567 = vmatprep.mubr.msk.f32.mxu1 %vm174_vm1, %v5818_v26  ;;  %4790 = vmatprep.mubr.msk.f32.mxu0 %vm174_vm1, %v5721_v61 }
  0xa2   : > { %4568 = vmatmul.mubr.msk.f32.gmra.mrb[30].mxu1 %vm174_vm1, %v5828_v12  ;;  %4791 = vmatmul.mubr.msk.f32.gmra.mrb[12].mxu0 %vm174_vm1, %v5733_v31 }
  0xa3   : > { %4572 = vmatprep.mubr.msk.f32.mxu1 %vm174_vm1, %v965_v16  ;;  %4793 = vmatprep.mubr.msk.f32.mxu0 %vm174_vm1, %v5737_v28  ;;  %v2557_v16 = vld [vmem:[#allocation2 + $0x22f] sm:$0xff] }
  0xa6   : > { %4573 = vmatmul.mubr.msk.f32.vlgmr.msra.gmra.mrb[0].mxu1 %vm174_vm1, %v966_v3  ;;  %4794 = vmatmul.mubr.msk.f32.gmra.mrb[14].mxu0 %vm174_vm1, %v5747_v54  ;;  %v2556_v3 = vld [vmem:[#allocation2 + $0x227] sm:$0xff] }
  0xa7   : > { %4575 = vmatprep.mubr.msk.f32.mxu1 %vm174_vm1, %v5465_v55  ;;  %4796 = vmatprep.mubr.msk.f32.mxu0 %vm174_vm1, %v5749_v59  ;;  %v5888_v55 = vld [vmem:[#allocation2 + $0x207] sm:$0xff] }
  0xa8   : > { %4621 = vmatpush3.msk.msra.mxu1 %vm412_vm0, %v5611_v30  ;;  %v6270_v30 = vld [vmem:[#allocation24_spill] sm:$0xff] }
  0xa9   : > { %4920 = vmatprep.subr.msk.mxu1 %vm412_vm0, %v5230_v2 }
  0xaa   : > { %4576 = vmatmul.mubr.msk.f32.gmra.mrb[2].mxu1 %vm174_vm1, %v5483_v60  ;;  %4797 = vmatmul.mubr.msk.f32.gmra.mrb[16].mxu0 %vm174_vm1, %v5764_v56  ;;  %v5898_v60 = vld [vmem:[#allocation2 + $0x20f] sm:$0xff] }
  0xab   : > { %4578 = vmatprep.mubr.msk.f32.mxu1 %vm174_vm1, %v5487_v62  ;;  %4799 = vmatprep.mubr.msk.f32.mxu0 %vm174_vm1, %v5768_v38 }
  0xae   : > { %4579 = vmatmul.mubr.msk.f32.gmra.mrb[4].mxu1 %vm174_vm1, %v5504_v1  ;;  %4800 = vmatmul.mubr.msk.f32.gmra.mrb[18].mxu0 %vm174_vm1, %v5780_v63 }
  0xaf   : > { %4581 = vmatprep.mubr.msk.f32.mxu1 %vm174_vm1, %v5510_v4  ;;  %4802 = vmatprep.mubr.msk.f32.mxu0 %vm174_vm1, %v5782_v42 }
  0xb2   : > { %4582 = vmatmul.mubr.msk.f32.gmra.mrb[6].mxu1 %vm174_vm1, %v5524_v6  ;;  %4803 = vmatmul.mubr.msk.f32.gmra.mrb[20].mxu0 %vm174_vm1, %v5792_v45 }
  0xb3   : > { %4584 = vmatprep.mubr.msk.f32.mxu1 %vm174_vm1, %v5528_v9  ;;  %4805 = vmatprep.mubr.msk.f32.mxu0 %vm174_vm1, %v5794_v8 }
  0xb6   : > { %4585 = vmatmul.mubr.msk.f32.gmra.mrb[8].mxu1 %vm174_vm1, %v5540_v11  ;;  %4806 = vmatmul.mubr.msk.f32.gmra.mrb[22].mxu0 %vm174_vm1, %v5804_v58 }
  0xb7   : > { %4587 = vmatprep.mubr.msk.f32.mxu1 %vm174_vm1, %v5544_v13  ;;  %4808 = vmatprep.mubr.msk.f32.mxu0 %vm174_vm1, %v5806_v47 }
  0xba   : > { %4588 = vmatmul.mubr.msk.f32.gmra.mrb[10].mxu1 %vm174_vm1, %v5556_v15  ;;  %4809 = vmatmul.mubr.msk.f32.gmra.mrb[24].mxu0 %vm174_vm1, %v5816_v20 }
  0xbb   : > { %4590 = vmatprep.mubr.msk.f32.mxu1 %vm174_vm1, %v5560_v17  ;;  %4811 = vmatprep.mubr.msk.f32.mxu0 %vm174_vm1, %v5818_v26 }
  0xbe   : > { %4591 = vmatmul.mubr.msk.f32.gmra.mrb[12].mxu1 %vm174_vm1, %v5572_v19  ;;  %4812 = vmatmul.mubr.msk.f32.gmra.mrb[26].mxu0 %vm174_vm1, %v5828_v12 }
  0xbf   : > { %4593 = vmatprep.mubr.msk.f32.mxu1 %vm174_vm1, %v5576_v21  ;;  %4814 = vmatprep.mubr.msk.f32.mxu0 %vm174_vm1, %v5888_v55 }
  0xc2   : > { %4594 = vmatmul.mubr.msk.f32.gmra.mrb[14].mxu1 %vm174_vm1, %v5588_v23  ;;  %4815 = vmatmul.mubr.msk.f32.gmra.mrb[28].mxu0 %vm174_vm1, %v5898_v60 }
  0xc3   : > { %4596 = vmatprep.mubr.msk.f32.mxu1 %vm174_vm1, %v5590_v25  ;;  %4817 = vmatprep.mubr.msk.f32.mxu0 %vm174_vm1, %v2556_v3  ;;  %v6272_v3 = vld [vmem:[#allocation25_spill] sm:$0xff] }
  0xc6   : > { %4597 = vmatmul.mubr.msk.f32.gmra.mrb[16].mxu1 %vm174_vm1, %v5599_v27  ;;  %4818 = vmatmul.mubr.msk.f32.gmra.mrb[30].mxu0 %vm174_vm1, %v2557_v16  ;;  %v6273_v16 = vld [vmem:[#allocation11_spill] sm:$0xff] }
  0xc7   : > { %4599 = vmatprep.mubr.msk.f32.mxu1 %vm174_vm1, %v5603_v29  ;;  %4822 = vmatprep.mubr.msk.f32.mxu0 %vm174_vm1, %v5353_v32  ;;  %v6256_v32 = vld [vmem:[#allocation31_spill] sm:$0xff] }
  0xca   : > { %4600 = vmatmul.mubr.msk.f32.gmra.mrb[18].mxu1 %vm174_vm1, %v5619_v33  ;;  %4823 = vmatmul.mubr.msk.f32.vlgmr.msra.gmra.mrb[0].mxu0 %vm174_vm1, %v5371_v34  ;;  %v6257_v34 = vld [vmem:[#allocation3_spill] sm:$0xff] }
  0xcb   : > { %4871 = vmatpush3.msk.msra.mxu0 %vm412_vm0, %v5754_v0  ;;  %4602 = vmatprep.mubr.msk.f32.mxu1 %vm174_vm1, %v5625_v39  ;;  %v6269_v0 = vld [vmem:[#allocation9_spill] sm:$0xff] }
  0xcc   : > { %4825 = vmatprep.mubr.msk.f32.mxu0 %vm174_vm1, %v5375_v35  ;;  %v6258_v35 = vld [vmem:[#allocation18_spill] sm:$0xff] }
  0xce   : > { %4603 = vmatmul.mubr.msk.f32.gmra.mrb[20].mxu1 %vm174_vm1, %v5639_v40  ;;  %4826 = vmatmul.mubr.msk.f32.gmra.mrb[2].mxu0 %vm174_vm1, %v5387_v36  ;;  %v6259_v36 = vld [vmem:[#allocation4_spill] sm:$0xff] }
  0xcf   : > { %4605 = vmatprep.mubr.msk.f32.mxu1 %vm174_vm1, %v5643_v44  ;;  %4828 = vmatprep.mubr.msk.f32.mxu0 %vm174_vm1, %v5389_v37  ;;  %v6260_v37 = vld [vmem:[#allocation19_spill] sm:$0xff] }
  0xd2   : > { %4606 = vmatmul.mubr.msk.f32.gmra.mrb[22].mxu1 %vm174_vm1, %v5655_v46  ;;  %4829 = vmatmul.mubr.msk.f32.gmra.mrb[4].mxu0 %vm174_vm1, %v5403_v41  ;;  %v6261_v41 = vld [vmem:[#allocation5_spill] sm:$0xff] }
  0xd3   : > { %4608 = vmatprep.mubr.msk.f32.mxu1 %vm174_vm1, %v5659_v57  ;;  %4831 = vmatprep.mubr.msk.f32.mxu0 %vm174_vm1, %v5408_v43  ;;  %v6262_v43 = vld [vmem:[#allocation20_spill] sm:$0xff] }
  0xd6   : > { %4609 = vmatmul.mubr.msk.f32.gmra.mrb[24].mxu1 %vm174_vm1, %v5671_v24  ;;  %4832 = vmatmul.mubr.msk.f32.gmra.mrb[6].mxu0 %vm174_vm1, %v5426_v48  ;;  %v6263_v48 = vld [vmem:[#allocation6_spill] sm:$0xff] }
  0xd7   : > { %4611 = vmatprep.mubr.msk.f32.mxu1 %vm174_vm1, %v5675_v22  ;;  %4834 = vmatprep.mubr.msk.f32.mxu0 %vm174_vm1, %v5429_v49  ;;  %v6264_v49 = vld [vmem:[#allocation21_spill] sm:$0xff] }
  0xda   : > { %4612 = vmatmul.mubr.msk.f32.gmra.mrb[26].mxu1 %vm174_vm1, %v5687_v18  ;;  %4835 = vmatmul.mubr.msk.f32.gmra.mrb[8].mxu0 %vm174_vm1, %v5439_v50  ;;  %v6265_v50 = vld [vmem:[#allocation7_spill] sm:$0xff] }
  0xdb   : > { %4614 = vmatprep.mubr.msk.f32.mxu1 %vm174_vm1, %v5691_v14  ;;  %4837 = vmatprep.mubr.msk.f32.mxu0 %vm174_vm1, %v5441_v51  ;;  %v6266_v51 = vld [vmem:[#allocation22_spill] sm:$0xff] }
  0xde   : > { %4615 = vmatmul.mubr.msk.f32.gmra.mrb[28].mxu1 %vm174_vm1, %v5703_v10  ;;  %4838 = vmatmul.mubr.msk.f32.gmra.mrb[10].mxu0 %vm174_vm1, %v5451_v52  ;;  %v6267_v52 = vld [vmem:[#allocation8_spill] sm:$0xff] }
  0xdf   : > { %4617 = vmatprep.mubr.msk.f32.mxu1 %vm174_vm1, %v5707_v5  ;;  %4840 = vmatprep.mubr.msk.f32.mxu0 %vm174_vm1, %v5453_v53  ;;  %v6268_v53 = vld [vmem:[#allocation23_spill] sm:$0xff] }
  0xe2   : > { %4618 = vmatmul.mubr.msk.f32.gmra.mrb[30].mxu1 %vm174_vm1, %v6256_v32  ;;  %4841 = vmatmul.mubr.msk.f32.gmra.mrb[12].mxu0 %vm174_vm1, %v6257_v34  ;;  %v6274_v34 = vld [vmem:[#allocation26_spill] sm:$0xff] }
  0xe3   : > { %4622 = vmatprep.mubr.msk.f32.mxu1 %vm174_vm1, %v6258_v35  ;;  %4843 = vmatprep.mubr.msk.f32.mxu0 %vm174_vm1, %v6259_v36  ;;  %v6275_v35 = vld [vmem:[#allocation12_spill] sm:$0xff]  ;;  %v6276_v36 = vld [vmem:[#allocation27_spill] sm:$0xff] }
  0xe6   : > { %4623 = vmatmul.mubr.msk.f32.vlgmr.msra.gmra.mrb[0].mxu1 %vm174_vm1, %v6260_v37  ;;  %4844 = vmatmul.mubr.msk.f32.gmra.mrb[14].mxu0 %vm174_vm1, %v6261_v41  ;;  %v6277_v37 = vld [vmem:[#allocation13_spill] sm:$0xff]  ;;  %v6278_v41 = vld [vmem:[#allocation28_spill] sm:$0xff] }
  0xe7   : > { %4625 = vmatprep.mubr.msk.f32.mxu1 %vm174_vm1, %v6262_v43  ;;  %4846 = vmatprep.mubr.msk.f32.mxu0 %vm174_vm1, %v6263_v48  ;;  %v6279_v43 = vld [vmem:[#allocation14_spill] sm:$0xff] }
  0xe8   : > { %4921 = vmatpush3.msk.msra.mxu1 %vm412_vm0, %v5230_v2  ;;  %v6271_v2 = vld [vmem:[#allocation10_spill] sm:$0xff] }
  0xea   : > { %4626 = vmatmul.mubr.msk.f32.gmra.mrb[2].mxu1 %vm174_vm1, %v6264_v49  ;;  %4847 = vmatmul.mubr.msk.f32.gmra.mrb[16].mxu0 %vm174_vm1, %v6265_v50  ;;  %v6280_v49 = vld [vmem:[#allocation29_spill] sm:$0xff] }
  0xeb   : > { %4628 = vmatprep.mubr.msk.f32.mxu1 %vm174_vm1, %v6266_v51  ;;  %4849 = vmatprep.mubr.msk.f32.mxu0 %vm174_vm1, %v6267_v52  ;;  %v6281_v51 = vld [vmem:[#allocation15_spill] sm:$0xff] }
  0xee   : > { %4629 = vmatmul.mubr.msk.f32.gmra.mrb[4].mxu1 %vm174_vm1, %v6268_v53  ;;  %4850 = vmatmul.mubr.msk.f32.gmra.mrb[18].mxu0 %vm174_vm1, %v6269_v0  ;;  %v6282_v53 = vld [vmem:[#allocation16_spill] sm:$0xff] }
  0xef   : > { %4631 = vmatprep.mubr.msk.f32.mxu1 %vm174_vm1, %v6270_v30  ;;  %4852 = vmatprep.mubr.msk.f32.mxu0 %vm174_vm1, %v6271_v2  ;;  %v6022_v30 = vld [vmem:[#allocation2 + $0x208] sm:$0xff] }
  0xf2   : > { %4632 = vmatmul.mubr.msk.f32.gmra.mrb[6].mxu1 %vm174_vm1, %v6272_v3  ;;  %4853 = vmatmul.mubr.msk.f32.gmra.mrb[20].mxu0 %vm174_vm1, %v6273_v16  ;;  %v6283_v3 = vld [vmem:[#allocation30_spill] sm:$0xff] }
  0xf3   : > { %4634 = vmatprep.mubr.msk.f32.mxu1 %vm174_vm1, %v6274_v34  ;;  %4855 = vmatprep.mubr.msk.f32.mxu0 %vm174_vm1, %v6275_v35  ;;  %v6284_v34 = vld [vmem:[#allocation17_spill] sm:$0xff] }
  0xf6   : > { %4635 = vmatmul.mubr.msk.f32.gmra.mrb[8].mxu1 %vm174_vm1, %v6276_v36  ;;  %4856 = vmatmul.mubr.msk.f32.gmra.mrb[22].mxu0 %vm174_vm1, %v6277_v37  ;;  %v6032_v36 = vld [vmem:[#allocation2 + $0x210] sm:$0xff] }
  0xf7   : > { %4637 = vmatprep.mubr.msk.f32.mxu1 %vm174_vm1, %v6278_v41  ;;  %4858 = vmatprep.mubr.msk.f32.mxu0 %vm174_vm1, %v6279_v43  ;;  %v2947_v41 = vld [vmem:[#allocation2 + $0x230] sm:$0xff] }
  0xfa   : > { %4638 = vmatmul.mubr.msk.f32.gmra.mrb[10].mxu1 %vm174_vm1, %v6280_v49  ;;  %4859 = vmatmul.mubr.msk.f32.gmra.mrb[24].mxu0 %vm174_vm1, %v6281_v51 }
  0xfb   : > { %4640 = vmatprep.mubr.msk.f32.mxu1 %vm174_vm1, %v5705_v7  ;;  %4861 = vmatprep.mubr.msk.f32.mxu0 %vm174_vm1, %v6282_v53  ;;  %v2946_v7 = vld [vmem:[#allocation2 + $0x228] sm:$0xff] }
  0xfe   : > { %4641 = vmatmul.mubr.msk.f32.gmra.mrb[12].mxu1 %vm174_vm1, %v6283_v3  ;;  %4862 = vmatmul.mubr.msk.f32.gmra.mrb[26].mxu0 %vm174_vm1, %v6284_v34 }
  0xff   : > { %4643 = vmatprep.mubr.msk.f32.mxu1 %vm174_vm1, %v5721_v61  ;;  %4864 = vmatprep.mubr.msk.f32.mxu0 %vm174_vm1, %v6022_v30  ;;  %v3336_v61 = vld [vmem:[#allocation2 + $0x229] sm:$0xff] }
 0x102   : > { %4644 = vmatmul.mubr.msk.f32.gmra.mrb[14].mxu1 %vm174_vm1, %v5733_v31  ;;  %4865 = vmatmul.mubr.msk.f32.gmra.mrb[28].mxu0 %vm174_vm1, %v6032_v36 }
 0x103   : > { %4646 = vmatprep.mubr.msk.f32.mxu1 %vm174_vm1, %v5737_v28  ;;  %4867 = vmatprep.mubr.msk.f32.mxu0 %vm174_vm1, %v2946_v7 }
 0x106   : > { %4647 = vmatmul.mubr.msk.f32.gmra.mrb[16].mxu1 %vm174_vm1, %v5747_v54  ;;  %4868 = vmatmul.mubr.msk.f32.gmra.mrb[30].mxu0 %vm174_vm1, %v2947_v41  ;;  %v1761_v54 = vld [vmem:[#allocation2 + $0x128] sm:$0xff] }
 0x107   : > { %4649 = vmatprep.mubr.msk.f32.mxu1 %vm174_vm1, %v5749_v59  ;;  %4872 = vmatprep.mubr.msk.f32.mxu0 %vm174_vm1, %v5487_v62  ;;  %v6285_v59 = vld [vmem:[#allocation32_spill] sm:$0xff]  ;;  %v6286_v62 = vld [vmem:[#allocation33_spill] sm:$0xff] }
 0x10a   : > { %4650 = vmatmul.mubr.msk.f32.gmra.mrb[18].mxu1 %vm174_vm1, %v5764_v56  ;;  %4873 = vmatmul.mubr.msk.f32.vlgmr.msra.gmra.mrb[0].mxu0 %vm174_vm1, %v5504_v1  ;;  %v1762_v56 = vld [vmem:[#allocation2 + $0x130] sm:$0xff] }
 0x10b   : > { %4652 = vmatprep.mubr.msk.f32.mxu1 %vm174_vm1, %v5768_v38  ;;  %4875 = vmatprep.mubr.msk.f32.mxu0 %vm174_vm1, %v5510_v4  ;;  %v3337_v1 = vld [vmem:[#allocation2 + $0x231] sm:$0xff] }
 0x10e   : > { %4653 = vmatmul.mubr.msk.f32.gmra.mrb[20].mxu1 %vm174_vm1, %v5780_v63  ;;  %4876 = vmatmul.mubr.msk.f32.gmra.mrb[2].mxu0 %vm174_vm1, %v5524_v6 }
 0x10f   : > { %4655 = vmatprep.mubr.msk.f32.mxu1 %vm174_vm1, %v5782_v42  ;;  %4878 = vmatprep.mubr.msk.f32.mxu0 %vm174_vm1, %v5528_v9 }
 0x112   : > { %4656 = vmatmul.mubr.msk.f32.gmra.mrb[22].mxu1 %vm174_vm1, %v5792_v45  ;;  %4879 = vmatmul.mubr.msk.f32.gmra.mrb[4].mxu0 %vm174_vm1, %v5540_v11 }
 0x113   : > { %4658 = vmatprep.mubr.msk.f32.mxu1 %vm174_vm1, %v5794_v8  ;;  %4881 = vmatprep.mubr.msk.f32.mxu0 %vm174_vm1, %v5544_v13 }
 0x116   : > { %4659 = vmatmul.mubr.msk.f32.gmra.mrb[24].mxu1 %vm174_vm1, %v5804_v58  ;;  %4882 = vmatmul.mubr.msk.f32.gmra.mrb[6].mxu0 %vm174_vm1, %v5556_v15 }
 0x117   : > { %4661 = vmatprep.mubr.msk.f32.mxu1 %vm174_vm1, %v5806_v47  ;;  %4884 = vmatprep.mubr.msk.f32.mxu0 %vm174_vm1, %v5560_v17 }
 0x11a   : > { %4662 = vmatmul.mubr.msk.f32.gmra.mrb[26].mxu1 %vm174_vm1, %v5816_v20  ;;  %4885 = vmatmul.mubr.msk.f32.gmra.mrb[8].mxu0 %vm174_vm1, %v5572_v19 }
 0x11b   : > { %4664 = vmatprep.mubr.msk.f32.mxu1 %vm174_vm1, %v5818_v26  ;;  %4887 = vmatprep.mubr.msk.f32.mxu0 %vm174_vm1, %v5576_v21 }
 0x11e   : > { %4665 = vmatmul.mubr.msk.f32.gmra.mrb[28].mxu1 %vm174_vm1, %v5828_v12  ;;  %4888 = vmatmul.mubr.msk.f32.gmra.mrb[10].mxu0 %vm174_vm1, %v5588_v23 }
 0x11f   : > { %4667 = vmatprep.mubr.msk.f32.mxu1 %vm174_vm1, %v5888_v55  ;;  %4890 = vmatprep.mubr.msk.f32.mxu0 %vm174_vm1, %v5590_v25 }
 0x122   : > { %4668 = vmatmul.mubr.msk.f32.gmra.mrb[30].mxu1 %vm174_vm1, %v5898_v60  ;;  %4891 = vmatmul.mubr.msk.f32.gmra.mrb[12].mxu0 %vm174_vm1, %v5599_v27 }
 0x123   : > { %4696 = vmatprep.mubr.msk.f32.mxu1 %vm174_vm1, %v1761_v54  ;;  %4893 = vmatprep.mubr.msk.f32.mxu0 %vm174_vm1, %v5603_v29 }
 0x126   : > { %4697 = vmatmul.mubr.msk.f32.vlgmr.msra.gmra.mrb[16].mxu1 %vm174_vm1, %v1762_v56  ;;  %4894 = vmatmul.mubr.msk.f32.gmra.mrb[14].mxu0 %vm174_vm1, %v5619_v33 }
 0x127   : > { %4699 = vmatprep.mubr.msk.f32.mxu1 %vm174_vm1, %v6263_v48  ;;  %4896 = vmatprep.mubr.msk.f32.mxu0 %vm174_vm1, %v5625_v39 }
 0x12a   : > { %4700 = vmatmul.mubr.msk.f32.gmra.mrb[18].mxu1 %vm174_vm1, %v6265_v50  ;;  %4897 = vmatmul.mubr.msk.f32.gmra.mrb[16].mxu0 %vm174_vm1, %v5639_v40 }
 0x12b   : > { %4702 = vmatprep.mubr.msk.f32.mxu1 %vm174_vm1, %v6267_v52  ;;  %4899 = vmatprep.mubr.msk.f32.mxu0 %vm174_vm1, %v5643_v44 }
 0x12e   : > { %4703 = vmatmul.mubr.msk.f32.gmra.mrb[20].mxu1 %vm174_vm1, %v6269_v0  ;;  %4900 = vmatmul.mubr.msk.f32.gmra.mrb[18].mxu0 %vm174_vm1, %v5655_v46 }
 0x12f   : > { %4705 = vmatprep.mubr.msk.f32.mxu1 %vm174_vm1, %v6271_v2  ;;  %4902 = vmatprep.mubr.msk.f32.mxu0 %vm174_vm1, %v5659_v57 }
 0x132   : > { %4706 = vmatmul.mubr.msk.f32.gmra.mrb[22].mxu1 %vm174_vm1, %v6273_v16  ;;  %4903 = vmatmul.mubr.msk.f32.gmra.mrb[20].mxu0 %vm174_vm1, %v5671_v24 }
 0x133   : > { %4708 = vmatprep.mubr.msk.f32.mxu1 %vm174_vm1, %v6275_v35  ;;  %4905 = vmatprep.mubr.msk.f32.mxu0 %vm174_vm1, %v5675_v22 }
 0x136   : > { %4709 = vmatmul.mubr.msk.f32.gmra.mrb[24].mxu1 %vm174_vm1, %v6277_v37  ;;  %4906 = vmatmul.mubr.msk.f32.gmra.mrb[22].mxu0 %vm174_vm1, %v5687_v18 }
 0x137   : > { %4711 = vmatprep.mubr.msk.f32.mxu1 %vm174_vm1, %v6279_v43  ;;  %4908 = vmatprep.mubr.msk.f32.mxu0 %vm174_vm1, %v5691_v14 }
 0x13a   : > { %4712 = vmatmul.mubr.msk.f32.gmra.mrb[26].mxu1 %vm174_vm1, %v6281_v51  ;;  %4909 = vmatmul.mubr.msk.f32.gmra.mrb[24].mxu0 %vm174_vm1, %v5703_v10 }
 0x13b   : > { %4714 = vmatprep.mubr.msk.f32.mxu1 %vm174_vm1, %v6282_v53  ;;  %4911 = vmatprep.mubr.msk.f32.mxu0 %vm174_vm1, %v5707_v5 }
 0x13e   : > { %4715 = vmatmul.mubr.msk.f32.gmra.mrb[28].mxu1 %vm174_vm1, %v6284_v34  ;;  %4912 = vmatmul.mubr.msk.f32.gmra.mrb[26].mxu0 %vm174_vm1, %v6256_v32 }
 0x13f   : > { %4717 = vmatprep.mubr.msk.f32.mxu1 %vm174_vm1, %v6022_v30  ;;  %4914 = vmatprep.mubr.msk.f32.mxu0 %vm174_vm1, %v6285_v59 }
 0x142   : > { %4718 = vmatmul.mubr.msk.f32.gmra.mrb[30].mxu1 %vm174_vm1, %v6032_v36  ;;  %4915 = vmatmul.mubr.msk.f32.gmra.mrb[28].mxu0 %vm174_vm1, %v6286_v62 }
 0x143   : > { %4917 = vmatprep.mubr.msk.f32.mxu0 %vm174_vm1, %v3336_v61 }
 0x146   : > { %4918 = vmatmul.mubr.msk.f32.gmra.mrb[30].mxu0 %vm174_vm1, %v3337_v1 }
 0x1b9   : > { %v4624_v4 = vpop.f32.mrb[0].mxu1 }
 0x1ba   : > { %v1554_v5 = vpop.f32.mrb[1].mxu1 }
 0x1bd   : > { %v4627_v6 = vpop.f32.mrb[2].mxu1 }
 0x1be   : > { %v1564_v9 = vpop.f32.mrb[3].mxu1 }
 0x1c1   : > { %v4630_v10 = vpop.f32.mrb[4].mxu1 }
 0x1c2   : > { %v1574_v11 = vpop.f32.mrb[5].mxu1 }
 0x1c5   : > { %v4633_v12 = vpop.f32.mrb[6].mxu1 }
 0x1c6   : > { %v1584_v13 = vpop.f32.mrb[7].mxu1 }
 0x1c9   : > { %v4636_v14 = vpop.f32.mrb[8].mxu1 }
 0x1ca   : > { %v1594_v15 = vpop.f32.mrb[9].mxu1 }
 0x1cd   : > { %v4639_v17 = vpop.f32.mrb[10].mxu1 }
 0x1ce   : > { %v1604_v18 = vpop.f32.mrb[11].mxu1 }
 0x1d1   : > { %v4642_v19 = vpop.f32.mrb[12].mxu1 }
 0x1d2   : > { %v1614_v20 = vpop.f32.mrb[13].mxu1 }
 0x1d5   : > { %v6164_v21 = vpop.f32.mrb[14].mxu1 }
 0x1d6   : > { %v6166_v22 = vpop.f32.mrb[15].mxu1 }
 0x1dd   : > { %v4874_v23 = vpop.f32.mrb[0].mxu0 }
 0x1de   : > { %v4922_v25 = vadd.f32 %v4874_v23, %v4624_v4  ;;  %v3505_v27 = vpop.f32.mrb[1].mxu0 }
 0x1df   : > { %v4923_v28 = vadd.f32 %v3505_v27, %v1554_v5 }
 0x1e0   : > { %v3735_v29 = vmul.f32 %v4922_v25, %v4922_v25 }
 0x1e1   : > { %v3696_v31 = vadd.f32 %v4923_v28, %v4922_v25  ;;  %v3734_v33 = vmul.f32 %v4923_v28, %v4923_v28  ;;  %v4877_v38 = vpop.f32.mrb[2].mxu0 }
 0x1e2   : > { %v4924_v39 = vadd.f32 %v4877_v38, %v4627_v6  ;;  %v3515_v8 = vpop.f32.mrb[3].mxu0 }
 0x1e3   : > { %v3766_v40 = vadd.f32 %v3735_v29, %v3734_v33  ;;  %v4925_v42 = vadd.f32 %v3515_v8, %v1564_v9 }
 0x1e4   : > { %v3737_v58 = vmul.f32 %v4924_v39, %v4924_v39 }
 0x1e5   : > { %v3697_v44 = vadd.f32 %v4925_v42, %v3696_v31  ;;  %v3736_v45 = vmul.f32 %v4925_v42, %v4925_v42  ;;  %v4880_v46 = vpop.f32.mrb[4].mxu0 }
 0x1e6   : > { %v4926_v47 = vadd.f32 %v4880_v46, %v4630_v10  ;;  %v3525_v57 = vpop.f32.mrb[5].mxu0 }
 0x1e7   : > { %v3767_v24 = vadd.f32 %v3766_v40, %v3736_v45  ;;  %v4927_v26 = vadd.f32 %v3525_v57, %v1574_v11  ;;  %v3698_v63 = vadd.f32 %v4924_v39, %v3697_v44 }
 0x1e8   : > { %v3739_v0 = vmul.f32 %v4926_v47, %v4926_v47 }
 0x1e9   : > { %v3699_v55 = vadd.f32 %v4927_v26, %v3698_v63  ;;  %v3738_v60 = vmul.f32 %v4927_v26, %v4927_v26  ;;  %v3768_v32 = vadd.f32 %v3767_v24, %v3737_v58  ;;  %v4883_v48 = vpop.f32.mrb[6].mxu0 }
 0x1ea   : > { %v4928_v50 = vadd.f32 %v4883_v48, %v4633_v12  ;;  %v3535_v52 = vpop.f32.mrb[7].mxu0 }
 0x1eb   : > { %v3769_v2 = vadd.f32 %v3768_v32, %v3738_v60  ;;  %v4929_v16 = vadd.f32 %v3535_v52, %v1584_v13  ;;  %v3700_v35 = vadd.f32 %v4926_v47, %v3699_v55 }
 0x1ec   : > { %v3741_v3 = vmul.f32 %v4928_v50, %v4928_v50 }
 0x1ed   : > { %v3701_v37 = vadd.f32 %v4929_v16, %v3700_v35  ;;  %v3740_v43 = vmul.f32 %v4929_v16, %v4929_v16  ;;  %v3770_v49 = vadd.f32 %v3769_v2, %v3739_v0  ;;  %v4886_v51 = vpop.f32.mrb[8].mxu0 }
 0x1ee   : > { %v4930_v53 = vadd.f32 %v4886_v51, %v4636_v14  ;;  %v3545_v30 = vpop.f32.mrb[9].mxu0 }
 0x1ef   : > { %v3771_v34 = vadd.f32 %v3770_v49, %v3740_v43  ;;  %v4931_v36 = vadd.f32 %v3545_v30, %v1594_v15  ;;  %v3702_v7 = vadd.f32 %v4928_v50, %v3701_v37 }
 0x1f0   : > { %v3743_v1 = vmul.f32 %v4930_v53, %v4930_v53 }
 0x1f1   : > { %v3703_v41 = vadd.f32 %v4931_v36, %v3702_v7  ;;  %v3742_v54 = vmul.f32 %v4931_v36, %v4931_v36  ;;  %v3772_v56 = vadd.f32 %v3771_v34, %v3741_v3  ;;  %v4889_v59 = vpop.f32.mrb[10].mxu0 }
 0x1f2   : > { %v4932_v61 = vadd.f32 %v4889_v59, %v4639_v17  ;;  %v3555_v62 = vpop.f32.mrb[11].mxu0 }
 0x1f3   : > { %v3773_v4 = vadd.f32 %v3772_v56, %v3742_v54  ;;  %v4933_v5 = vadd.f32 %v3555_v62, %v1604_v18  ;;  %v3704_v6 = vadd.f32 %v4930_v53, %v3703_v41 }
 0x1f4   : > { %v3745_v23 = vmul.f32 %v4932_v61, %v4932_v61 }
 0x1f5   : > { %v3705_v9 = vadd.f32 %v4933_v5, %v3704_v6  ;;  %v3744_v10 = vmul.f32 %v4933_v5, %v4933_v5  ;;  %v3774_v11 = vadd.f32 %v3773_v4, %v3743_v1  ;;  %v4892_v12 = vpop.f32.mrb[12].mxu0 }
 0x1f6   : > { %v4934_v13 = vadd.f32 %v4892_v12, %v4642_v19  ;;  %v3565_v14 = vpop.f32.mrb[13].mxu0 }
 0x1f7   : > { %v3775_v25 = vadd.f32 %v3774_v11, %v3744_v10  ;;  %v4935_v15 = vadd.f32 %v3565_v14, %v1614_v20  ;;  %v3706_v27 = vadd.f32 %v4932_v61, %v3705_v9 }
 0x1f8   : > { %v3747_v8 = vmul.f32 %v4934_v13, %v4934_v13 }
 0x1f9   : > { %v3707_v28 = vadd.f32 %v4935_v15, %v3706_v27  ;;  %v3746_v29 = vmul.f32 %v4935_v15, %v4935_v15  ;;  %v3776_v31 = vadd.f32 %v3775_v25, %v3745_v23  ;;  %v4698_v33 = vpop.f32.mrb[16].mxu1  ;;  %v4895_v17 = vpop.f32.mrb[14].mxu0 }
 0x1fa   : > { %v4936_v38 = vadd.f32 %v4895_v17, %v6164_v21  ;;  %v2024_v39 = vpop.f32.mrb[17].mxu1  ;;  %v3575_v18 = vpop.f32.mrb[15].mxu0 }
 0x1fb   : > { %v3777_v40 = vadd.f32 %v3776_v31, %v3746_v29  ;;  %v4937_v42 = vadd.f32 %v3575_v18, %v6166_v22  ;;  %v3708_v44 = vadd.f32 %v4934_v13, %v3707_v28 }
 0x1fc   : > { %v3749_v26 = vmul.f32 %v4936_v38, %v4936_v38 }
 0x1fd   : > { %v3709_v19 = vadd.f32 %v4937_v42, %v3708_v44  ;;  %v3748_v45 = vmul.f32 %v4937_v42, %v4937_v42  ;;  %v3778_v46 = vadd.f32 %v3777_v40, %v3747_v8  ;;  %v4701_v47 = vpop.f32.mrb[18].mxu1  ;;  %v4898_v20 = vpop.f32.mrb[16].mxu0 }
 0x1fe   : > { %v4938_v57 = vadd.f32 %v4898_v20, %v4698_v33  ;;  %v2034_v58 = vpop.f32.mrb[19].mxu1  ;;  %v3585_v24 = vpop.f32.mrb[17].mxu0 }
 0x1ff   : > { %v3779_v63 = vadd.f32 %v3778_v46, %v3748_v45  ;;  %v4939_v55 = vadd.f32 %v3585_v24, %v2024_v39  ;;  %v3710_v60 = vadd.f32 %v4936_v38, %v3709_v19 }
 0x200   : > { %v3751_v16 = vmul.f32 %v4938_v57, %v4938_v57 }
 0x201   : > { %v3711_v21 = vadd.f32 %v4939_v55, %v3710_v60  ;;  %v3750_v32 = vmul.f32 %v4939_v55, %v4939_v55  ;;  %v3780_v48 = vadd.f32 %v3779_v63, %v3749_v26  ;;  %v4704_v50 = vpop.f32.mrb[20].mxu1  ;;  %v4901_v52 = vpop.f32.mrb[18].mxu0 }
 0x202   : > { %v4940_v0 = vadd.f32 %v4901_v52, %v4701_v47  ;;  %v2044_v22 = vpop.f32.mrb[21].mxu1  ;;  %v3595_v2 = vpop.f32.mrb[19].mxu0 }
 0x203   : > { %v3781_v35 = vadd.f32 %v3780_v48, %v3750_v32  ;;  %v4941_v37 = vadd.f32 %v3595_v2, %v2034_v58  ;;  %v3712_v43 = vadd.f32 %v4938_v57, %v3711_v21 }
 0x204   : > { %v3753_v41 = vmul.f32 %v4940_v0, %v4940_v0 }
 0x205   : > { %v3713_v49 = vadd.f32 %v4941_v37, %v3712_v43  ;;  %v3752_v51 = vmul.f32 %v4941_v37, %v4941_v37  ;;  %v3782_v53 = vadd.f32 %v3781_v35, %v3751_v16  ;;  %v4707_v30 = vpop.f32.mrb[22].mxu1  ;;  %v4904_v3 = vpop.f32.mrb[20].mxu0 }
 0x206   : > { %v4942_v34 = vadd.f32 %v4904_v3, %v4704_v50  ;;  %v2054_v36 = vpop.f32.mrb[23].mxu1  ;;  %v3605_v7 = vpop.f32.mrb[21].mxu0 }
 0x207   : > { %v3783_v54 = vadd.f32 %v3782_v53, %v3752_v51  ;;  %v4943_v56 = vadd.f32 %v3605_v7, %v2044_v22  ;;  %v3714_v59 = vadd.f32 %v4940_v0, %v3713_v49 }
 0x208   : > { %v3755_v11 = vmul.f32 %v4942_v34, %v4942_v34 }
 0x209   : > { %v3715_v61 = vadd.f32 %v4943_v56, %v3714_v59  ;;  %v3754_v62 = vmul.f32 %v4943_v56, %v4943_v56  ;;  %v3784_v1 = vadd.f32 %v3783_v54, %v3753_v41  ;;  %v4710_v4 = vpop.f32.mrb[24].mxu1  ;;  %v4907_v5 = vpop.f32.mrb[22].mxu0 }
 0x20a   : > { %v4944_v6 = vadd.f32 %v4907_v5, %v4707_v30  ;;  %v2064_v9 = vpop.f32.mrb[25].mxu1  ;;  %v3615_v10 = vpop.f32.mrb[23].mxu0 }
 0x20b   : > { %v3785_v12 = vadd.f32 %v3784_v1, %v3754_v62  ;;  %v4945_v13 = vadd.f32 %v3615_v10, %v2054_v36  ;;  %v3716_v14 = vadd.f32 %v4942_v34, %v3715_v61 }
 0x20c   : > { %v3757_v17 = vmul.f32 %v4944_v6, %v4944_v6 }
 0x20d   : > { %v3717_v23 = vadd.f32 %v4945_v13, %v3716_v14  ;;  %v3756_v25 = vmul.f32 %v4945_v13, %v4945_v13  ;;  %v3786_v15 = vadd.f32 %v3785_v12, %v3755_v11  ;;  %v4713_v27 = vpop.f32.mrb[26].mxu1  ;;  %v4910_v28 = vpop.f32.mrb[24].mxu0 }
 0x20e   : > { %v4946_v29 = vadd.f32 %v4910_v28, %v4710_v4  ;;  %v2074_v31 = vpop.f32.mrb[27].mxu1  ;;  %v3625_v33 = vpop.f32.mrb[25].mxu0 }
 0x20f   : > { %v3787_v38 = vadd.f32 %v3786_v15, %v3756_v25  ;;  %v4947_v39 = vadd.f32 %v3625_v33, %v2064_v9  ;;  %v3718_v18 = vadd.f32 %v4944_v6, %v3717_v23 }
 0x210   : > { %v3759_v20 = vmul.f32 %v4946_v29, %v4946_v29 }
 0x211   : > { %v3719_v8 = vadd.f32 %v4947_v39, %v3718_v18  ;;  %v3758_v40 = vmul.f32 %v4947_v39, %v4947_v39  ;;  %v3788_v42 = vadd.f32 %v3787_v38, %v3757_v17  ;;  %v4716_v44 = vpop.f32.mrb[28].mxu1  ;;  %v4913_v19 = vpop.f32.mrb[26].mxu0 }
 0x212   : > { %v4948_v45 = vadd.f32 %v4913_v19, %v4713_v27  ;;  %v2084_v46 = vpop.f32.mrb[29].mxu1  ;;  %v3635_v47 = vpop.f32.mrb[27].mxu0 }
 0x213   : > { %v3789_v57 = vadd.f32 %v3788_v42, %v3758_v40  ;;  %v4949_v58 = vadd.f32 %v3635_v47, %v2074_v31  ;;  %v3720_v24 = vadd.f32 %v4946_v29, %v3719_v8 }
 0x214   : > { %v3761_v52 = vmul.f32 %v4948_v45, %v4948_v45 }
 0x215   : > { %v3721_v26 = vadd.f32 %v4949_v58, %v3720_v24  ;;  %v3760_v63 = vmul.f32 %v4949_v58, %v4949_v58  ;;  %v3790_v55 = vadd.f32 %v3789_v57, %v3759_v20  ;;  %v4719_v60 = vpop.f32.mrb[30].mxu1  ;;  %v4916_v21 = vpop.f32.mrb[28].mxu0 }
 0x216   : > { %v4950_v32 = vadd.f32 %v4916_v21, %v4716_v44  ;;  %v2094_v48 = vpop.f32.mrb[31].mxu1  ;;  %v3645_v50 = vpop.f32.mrb[29].mxu0 }
 0x217   : > { %v3791_v0 = vadd.f32 %v3790_v55, %v3760_v63  ;;  %v4951_v22 = vadd.f32 %v3645_v50, %v2084_v46  ;;  %v3722_v2 = vadd.f32 %v4948_v45, %v3721_v26 }
 0x218   : > { %v3763_v53 = vmul.f32 %v4950_v32, %v4950_v32 }
 0x219   : > { %v3723_v16 = vadd.f32 %v4951_v22, %v3722_v2  ;;  %v3762_v35 = vmul.f32 %v4951_v22, %v4951_v22  ;;  %v3792_v37 = vadd.f32 %v3791_v0, %v3761_v52  ;;  %v4919_v43 = vpop.f32.mrb[30].mxu0 }
 0x21a   : > { %v4952_v49 = vadd.f32 %v4919_v43, %v4719_v60  ;;  %v3655_v51 = vpop.f32.mrb[31].mxu0 }
 0x21b   : > { %v3793_v30 = vadd.f32 %v3792_v37, %v3762_v35  ;;  %v4953_v3 = vadd.f32 %v3655_v51, %v2094_v48  ;;  %v3724_v34 = vadd.f32 %v4950_v32, %v3723_v16 }
 0x21c   : > { %v3765_v54 = vmul.f32 %v4952_v49, %v4952_v49 }
 0x21d   : > { %v3725_v36 = vadd.f32 %v4953_v3, %v3724_v34  ;;  %v3764_v7 = vmul.f32 %v4953_v3, %v4953_v3  ;;  %v3794_v41 = vadd.f32 %v3793_v30, %v3763_v53 }
 0x21f   : > { %v3726_v56 = vadd.f32 %v4952_v49, %v3725_v36  ;;  %v3795_v59 = vadd.f32 %v3794_v41, %v3764_v7 }
 0x221   : > { %v3727_v61 = vrot.slane %v3726_v56, 4  ;;  %v3796_v62 = vadd.f32 %v3795_v59, %v3765_v54 }
 0x223   : > { %v3728_v1 = vadd.f32 %v3727_v61, %v3726_v56  ;;  %v3797_v4 = vrot.slane %v3796_v62, 4 }
 0x225   : > { %v3729_v5 = vrot.slane %v3728_v1, 2  ;;  %v3798_v6 = vadd.f32 %v3797_v4, %v3796_v62 }
 0x227   : > { %v3730_v9 = vadd.f32 %v3729_v5, %v3728_v1  ;;  %v3799_v10 = vrot.slane %v3798_v6, 2 }
 0x229   : > { %v3731_v11 = vrot.slane %v3730_v9, 1  ;;  %v3800_v12 = vadd.f32 %v3799_v10, %v3798_v6 }
 0x22b   : > { %v3732_v13 = vadd.f32 %v3731_v11, %v3730_v9  ;;  %v3801_v14 = vrot.slane %v3800_v12, 1 }
 0x22d   : > { %3733 = vst [vmem:[%s141_s11] sm:$0x1] %v3732_v13  ;;  %v3802_v23 = vadd.f32 %v3801_v14, %v3800_v12 }
 0x22f   : > { %3803 = vst [vmem:[%s141_s11 + $0x1] sm:$0x1] %v3802_v23 }
 0x230 PF: > { %s12_s9 = sadd.s32 1, %s5193_s9  }
 0x231   : > { %p9_p4 = scmp.ge.s32.totalorder %s12_s9, 4  }
 0x233   :  { %11 = sbr.rel (!%p9_p4) target bundleno = 1 (0x1), region = 69 }

// kernel: expert_controller_film.4
= control target key start
LH: loop header
LB: loop body
LE: loop exit
PB: predicated region body
PF: predicated region fallthrough
CT: control target
= control target key end

     0   :  { %s10401_s27 = smov 0   ;;  %s12529_s0 = inlined_call_operand.vmem [shape: f32[2,16,16,4], index: 0, kind: input, shape index: {}]   ;;  %s12530_s1 = inlined_call_operand.vmem [shape: f32[2,32], index: 1, kind: input, shape index: {}]   ;;  %s12531_s2 = inlined_call_operand.vmem [shape: f32[2,128], index: 2, kind: input, shape index: {}]   ;;  %s12532_s3 = inlined_call_operand.vmem [shape: f32[9,4,128], index: 3, kind: input, shape index: {}]   ;;  %s12533_s4 = inlined_call_operand.vmem [shape: f32[9,128,128], index: 4, kind: input, shape index: {}]   ;;  %s12534_s5 = inlined_call_operand.vmem [shape: f32[1,128], index: 5, kind: input, shape index: {}]   ;;  %s12535_s6 = inlined_call_operand.vmem [shape: f32[32,256], index: 6, kind: input, shape index: {}]   ;;  %s12536_s7 = inlined_call_operand.vmem [shape: f32[2,256,128], index: 7, kind: output, shape index: {0}]   ;;  %s12537_s8 = inlined_call_operand.vmem [shape: f32[2,2,128], index: 8, kind: output, shape index: {1}]  }
   0x1 LB: > { %s10407_s28 = sadd.s32 4294967295, %s10353_s27   ;;  %p7166_p0 = scmp.ge.s32.totalorder %s10353_s27, 1  ;;  %s10353_s27 = sphi %s10401_s27, %s19_s27  }
   0x2   : > { %p265_p1 = scmp.lt.s32.totalorder %s10353_s27, 3 }
   0x4   : > { %p266_p2 = pnand %p7166_p0, %p265_p1 }
   0x6   : > { %269 = sbr.rel (%p266_p2) target bundleno = 1597 (0x63d), region = 48 }
   0xd   : > { %v7172_v0 = vld [vmem:[%s12532_s3 + $0x4] sm:$0xf]  ;;  %vm587_vm0 = vcmask 1043456   ;;  %vm349_vm1 = vcmask 31744   ;;  %vm352_vm2 = vcmask 25600   ;;  %v10355_v1 = vmov 0.0   ;;  %s6778_s18 = scalar_lea.vmem %s12530_s1, %s10407_s28 }
   0xe   : > { %8342 = vmatprep.subr.msk.mxu0 %vm587_vm0, %v7172_v0  ;;  %350 = vst.msk [vmem:[#allocation2 + $0x7] sm:$0xff] %vm349_vm1, %v10355_v1  ;;  %351 = vst.msk [vmem:[#allocation2 + $0xf] sm:$0xff] %vm349_vm1, %v10355_v1  ;;  %v10464_v2 = vld [vmem:[%s12532_s3] sm:$0xf]  ;;  %p303_p3 = scmp.lt.s32.totalorder %s10407_s28, 1  ;;  %vm359_vm3 = vcmask 24576  }
   0xf   : > { %355 = vst.msk [vmem:[#allocation2 + $0x227] sm:$0xff] %vm349_vm1, %v10355_v1  ;;  %356 = vst.msk [vmem:[#allocation2 + $0x22f] sm:$0xff] %vm349_vm1, %v10355_v1  ;;  %8343 = vmatpush3.msk.msra.mxu0 %vm587_vm0, %v7172_v0  ;;  %v10557_v6 = vld [vmem:[%s12532_s3 + $0x8] sm:$0xf]  ;;  %vm6788_vm4 = vcmask 261120  }
  0x10   : > { %3977 = vst [vmem:[#allocation3 + $0x7] sm:$0xff] %v10355_v1  ;;  %3978 = vst [vmem:[#allocation3 + $0xf] sm:$0xff] %v10355_v1  ;;  %8392 = vmatprep.subr.msk.mxu0 %vm587_vm0, %v10464_v2  ;;  %s10541_s11 = scalar_select %p303_p3, %s10407_s28, 1 }
  0x11   : > { %3979 = vst [vmem:[#allocation3 + $0x17] sm:$0x3] %v10355_v1  ;;  %3981 = vst [vmem:[#allocation3 + $0x227] sm:$0xff] %v10355_v1 }
  0x12   : > { %3982 = vst [vmem:[#allocation3 + $0x22f] sm:$0xff] %v10355_v1  ;;  %3983 = vst [vmem:[#allocation3 + $0x237] sm:$0x3] %v10355_v1  ;;  %s7611_s12 = sshll.u32 %s10541_s11, 8 }
  0x13   : > { %3985 = vst [vmem:[#allocation3 + $0x27] sm:$0x1] %v10355_v1  ;;  %3986 = vst [vmem:[#allocation3 + $0x47] sm:$0x1] %v10355_v1  ;;  %s10549_s15 = scalar_lea.vmem %s12529_s0, %s7611_s12 }
  0x14   : > { %3987 = vst [vmem:[#allocation3 + $0x67] sm:$0x1] %v10355_v1  ;;  %3988 = vst [vmem:[#allocation3 + $0x87] sm:$0x1] %v10355_v1  ;;  %v317_v3 = vld [vmem:[%s10549_s15] sm:$0xff]  ;;  %v318_v4 = vld [vmem:[%s10549_s15 + $0x8] sm:$0xff] }
  0x15   : > { %3989 = vst [vmem:[#allocation3 + $0xa7] sm:$0x1] %v10355_v1  ;;  %3990 = vst [vmem:[#allocation3 + $0xc7] sm:$0x1] %v10355_v1  ;;  %v319_v5 = vld [vmem:[%s10549_s15 + $0x10] sm:$0xff]  ;;  %v457_v7 = vld [vmem:[#allocation2 + $0x8] sm:$0xff] }
  0x16   : > { %3991 = vst [vmem:[#allocation3 + $0xe7] sm:$0x1] %v10355_v1  ;;  %3992 = vst [vmem:[#allocation3 + $0x107] sm:$0x1] %v10355_v1  ;;  %v320_v9 = vld [vmem:[%s10549_s15 + $0x18] sm:$0xff]  ;;  %8344 = vmatprep.mubr.msk.f32.mxu0 %vm349_vm1, %v457_v7  ;;  %v321_v10 = vld [vmem:[%s10549_s15 + $0x20] sm:$0xff] }
  0x17   : > { %3993 = vst [vmem:[#allocation3 + $0x127] sm:$0x1] %v10355_v1  ;;  %3994 = vst [vmem:[#allocation3 + $0x147] sm:$0x1] %v10355_v1  ;;  %v322_v11 = vld [vmem:[%s10549_s15 + $0x28] sm:$0xff]  ;;  %v323_v12 = vld [vmem:[%s10549_s15 + $0x30] sm:$0xff] }
  0x18   : > { %3995 = vst [vmem:[#allocation3 + $0x167] sm:$0x1] %v10355_v1  ;;  %3996 = vst [vmem:[#allocation3 + $0x187] sm:$0x1] %v10355_v1  ;;  %v324_v13 = vld [vmem:[%s10549_s15 + $0x38] sm:$0xff]  ;;  %v325_v14 = vld [vmem:[%s10549_s15 + $0x40] sm:$0xff] }
  0x19   : > { %3997 = vst [vmem:[#allocation3 + $0x1a7] sm:$0x1] %v10355_v1  ;;  %3998 = vst [vmem:[#allocation3 + $0x1c7] sm:$0x1] %v10355_v1  ;;  %v326_v15 = vld [vmem:[%s10549_s15 + $0x48] sm:$0xff]  ;;  %v327_v16 = vld [vmem:[%s10549_s15 + $0x50] sm:$0xff] }
  0x1a   : > { %3999 = vst [vmem:[#allocation3 + $0x1e7] sm:$0x1] %v10355_v1  ;;  %4000 = vst [vmem:[#allocation3 + $0x207] sm:$0x1] %v10355_v1  ;;  %v328_v17 = vld [vmem:[%s10549_s15 + $0x58] sm:$0xff]  ;;  %v329_v18 = vld [vmem:[%s10549_s15 + $0x60] sm:$0xff] }
  0x1b   : > { %4001 = vst [vmem:[#allocation3 + $0x38] sm:$0x1] %v10355_v1  ;;  %4002 = vst [vmem:[#allocation3 + $0x58] sm:$0x1] %v10355_v1  ;;  %v330_v19 = vld [vmem:[%s10549_s15 + $0x68] sm:$0xff]  ;;  %v331_v20 = vld [vmem:[%s10549_s15 + $0x70] sm:$0xff] }
  0x1c   : > { %4003 = vst [vmem:[#allocation3 + $0x78] sm:$0x1] %v10355_v1  ;;  %4004 = vst [vmem:[#allocation3 + $0x98] sm:$0x1] %v10355_v1  ;;  %v332_v21 = vld [vmem:[%s10549_s15 + $0x78] sm:$0xff]  ;;  %v333_v22 = vld [vmem:[%s10549_s15 + $0x80] sm:$0xff] }
  0x1d   : > { %4005 = vst [vmem:[#allocation3 + $0xb8] sm:$0x1] %v10355_v1  ;;  %4006 = vst [vmem:[#allocation3 + $0xd8] sm:$0x1] %v10355_v1  ;;  %v334_v23 = vld [vmem:[%s10549_s15 + $0x88] sm:$0xff]  ;;  %v335_v24 = vld [vmem:[%s10549_s15 + $0x90] sm:$0xff] }
  0x1e   : > { %4007 = vst [vmem:[#allocation3 + $0xf8] sm:$0x1] %v10355_v1  ;;  %4008 = vst [vmem:[#allocation3 + $0x118] sm:$0x1] %v10355_v1  ;;  %v336_v25 = vld [vmem:[%s10549_s15 + $0x98] sm:$0xff]  ;;  %v337_v26 = vld [vmem:[%s10549_s15 + $0xa0] sm:$0xff] }
  0x1f   : > { %4009 = vst [vmem:[#allocation3 + $0x138] sm:$0x1] %v10355_v1  ;;  %4010 = vst [vmem:[#allocation3 + $0x158] sm:$0x1] %v10355_v1  ;;  %v338_v27 = vld [vmem:[%s10549_s15 + $0xa8] sm:$0xff]  ;;  %v339_v31 = vld [vmem:[%s10549_s15 + $0xb0] sm:$0xff] }
  0x20   : > { %4011 = vst [vmem:[#allocation3 + $0x178] sm:$0x1] %v10355_v1  ;;  %4012 = vst [vmem:[#allocation3 + $0x198] sm:$0x1] %v10355_v1  ;;  %v340_v32 = vld [vmem:[%s10549_s15 + $0xb8] sm:$0xff]  ;;  %v341_v37 = vld [vmem:[%s10549_s15 + $0xc0] sm:$0xff] }
  0x21   : > { %4013 = vst [vmem:[#allocation3 + $0x1b8] sm:$0x1] %v10355_v1  ;;  %4014 = vst [vmem:[#allocation3 + $0x1d8] sm:$0x1] %v10355_v1  ;;  %v342_v38 = vld [vmem:[%s10549_s15 + $0xc8] sm:$0xff]  ;;  %v343_v39 = vld [vmem:[%s10549_s15 + $0xd0] sm:$0xff] }
  0x22   : > { %4015 = vst [vmem:[#allocation3 + $0x1f8] sm:$0x1] %v10355_v1  ;;  %4016 = vst [vmem:[#allocation3 + $0x218] sm:$0x1] %v10355_v1  ;;  %v344_v40 = vld [vmem:[%s10549_s15 + $0xd8] sm:$0xff]  ;;  %v345_v41 = vld [vmem:[%s10549_s15 + $0xe0] sm:$0xff] }
  0x23   : > { %353 = vst.msk [vmem:[#allocation2 + $0x17] sm:$0x3] %vm352_vm2, %v10355_v1  ;;  %357 = vst.msk [vmem:[#allocation2 + $0x237] sm:$0x3] %vm352_vm2, %v10355_v1  ;;  %v346_v42 = vld [vmem:[%s10549_s15 + $0xe8] sm:$0xff] }
  0x24   : > { %360 = vst.msk [vmem:[#allocation2 + $0x27] sm:$0x1] %vm359_vm3, %v10355_v1  ;;  %361 = vst.msk [vmem:[#allocation2 + $0x47] sm:$0x1] %vm359_vm3, %v10355_v1 }
  0x25   : > { %362 = vst.msk [vmem:[#allocation2 + $0x67] sm:$0x1] %vm359_vm3, %v10355_v1  ;;  %363 = vst.msk [vmem:[#allocation2 + $0x87] sm:$0x1] %vm359_vm3, %v10355_v1 }
  0x26   : > { %364 = vst.msk [vmem:[#allocation2 + $0xa7] sm:$0x1] %vm359_vm3, %v10355_v1  ;;  %365 = vst.msk [vmem:[#allocation2 + $0xc7] sm:$0x1] %vm359_vm3, %v10355_v1 }
  0x27   : > { %366 = vst.msk [vmem:[#allocation2 + $0xe7] sm:$0x1] %vm359_vm3, %v10355_v1  ;;  %367 = vst.msk [vmem:[#allocation2 + $0x107] sm:$0x1] %vm359_vm3, %v10355_v1 }
  0x28   : > { %368 = vst.msk [vmem:[#allocation2 + $0x127] sm:$0x1] %vm359_vm3, %v10355_v1  ;;  %369 = vst.msk [vmem:[#allocation2 + $0x147] sm:$0x1] %vm359_vm3, %v10355_v1 }
  0x29   : > { %370 = vst.msk [vmem:[#allocation2 + $0x167] sm:$0x1] %vm359_vm3, %v10355_v1  ;;  %371 = vst.msk [vmem:[#allocation2 + $0x187] sm:$0x1] %vm359_vm3, %v10355_v1 }
  0x2a   : > { %372 = vst.msk [vmem:[#allocation2 + $0x1a7] sm:$0x1] %vm359_vm3, %v10355_v1  ;;  %373 = vst.msk [vmem:[#allocation2 + $0x1c7] sm:$0x1] %vm359_vm3, %v10355_v1  ;;  %v458_v8 = vld [vmem:[#allocation2 + $0x10] sm:$0xff] }
  0x2b   : > { %374 = vst.msk [vmem:[#allocation2 + $0x1e7] sm:$0x1] %vm359_vm3, %v10355_v1  ;;  %375 = vst.msk [vmem:[#allocation2 + $0x207] sm:$0x1] %vm359_vm3, %v10355_v1  ;;  %8345 = vmatmul.mubr.msk.f32.vlgmr.msra.gmra.mrb[0].mxu0 %vm349_vm1, %v458_v8 }
  0x2c   : > { %376 = vst.msk [vmem:[#allocation2 + $0x38] sm:$0x1] %vm359_vm3, %v10355_v1  ;;  %377 = vst.msk [vmem:[#allocation2 + $0x58] sm:$0x1] %vm359_vm3, %v10355_v1  ;;  %8393 = vmatpush3.msk.msra.mxu0 %vm587_vm0, %v10464_v2  ;;  %v424_v2 = vld [vmem:[#allocation2 + $0x7] sm:$0xff] }
  0x2d   : > { %378 = vst.msk [vmem:[#allocation2 + $0x78] sm:$0x1] %vm359_vm3, %v10355_v1  ;;  %379 = vst.msk [vmem:[#allocation2 + $0x98] sm:$0x1] %vm359_vm3, %v10355_v1  ;;  %8442 = vmatprep.subr.msk.mxu0 %vm587_vm0, %v10557_v6 }
  0x2e   : > { %380 = vst.msk [vmem:[#allocation2 + $0xb8] sm:$0x1] %vm359_vm3, %v10355_v1  ;;  %381 = vst.msk [vmem:[#allocation2 + $0xd8] sm:$0x1] %vm359_vm3, %v10355_v1 }
  0x2f   : > { %382 = vst.msk [vmem:[#allocation2 + $0xf8] sm:$0x1] %vm359_vm3, %v10355_v1  ;;  %383 = vst.msk [vmem:[#allocation2 + $0x118] sm:$0x1] %vm359_vm3, %v10355_v1 }
  0x30   : > { %384 = vst.msk [vmem:[#allocation2 + $0x138] sm:$0x1] %vm359_vm3, %v10355_v1  ;;  %385 = vst.msk [vmem:[#allocation2 + $0x158] sm:$0x1] %vm359_vm3, %v10355_v1 }
  0x31   : > { %386 = vst.msk [vmem:[#allocation2 + $0x178] sm:$0x1] %vm359_vm3, %v10355_v1  ;;  %387 = vst.msk [vmem:[#allocation2 + $0x198] sm:$0x1] %vm359_vm3, %v10355_v1 }
  0x32   : > { %388 = vst.msk [vmem:[#allocation2 + $0x1b8] sm:$0x1] %vm359_vm3, %v10355_v1  ;;  %389 = vst.msk [vmem:[#allocation2 + $0x1d8] sm:$0x1] %vm359_vm3, %v10355_v1 }
  0x33   : > { %390 = vst.msk [vmem:[#allocation2 + $0x1f8] sm:$0x1] %vm359_vm3, %v10355_v1  ;;  %391 = vst.msk [vmem:[#allocation2 + $0x218] sm:$0x1] %vm359_vm3, %v10355_v1 }
  0x34   : > { %392 = vst.msk [vmem:[#allocation2 + $0x28] sm:$0xff] %vm349_vm1, %v317_v3  ;;  %393 = vst.msk [vmem:[#allocation2 + $0x30] sm:$0xff] %vm349_vm1, %v318_v4  ;;  %v425_v3 = vld [vmem:[#allocation2 + $0xf] sm:$0xff] }
  0x35   : > { %394 = vst.msk [vmem:[#allocation2 + $0x48] sm:$0xff] %vm349_vm1, %v319_v5  ;;  %395 = vst.msk [vmem:[#allocation2 + $0x50] sm:$0xff] %vm349_vm1, %v320_v9  ;;  %v10748_v5 = vld [vmem:[%s12532_s3 + $0xc] sm:$0xf] }
  0x36   : > { %396 = vst.msk [vmem:[#allocation2 + $0x68] sm:$0xff] %vm349_vm1, %v321_v10  ;;  %397 = vst.msk [vmem:[#allocation2 + $0x70] sm:$0xff] %vm349_vm1, %v322_v11 }
  0x37   : > { %398 = vst.msk [vmem:[#allocation2 + $0x88] sm:$0xff] %vm349_vm1, %v323_v12  ;;  %399 = vst.msk [vmem:[#allocation2 + $0x90] sm:$0xff] %vm349_vm1, %v324_v13 }
  0x38   : > { %400 = vst.msk [vmem:[#allocation2 + $0xa8] sm:$0xff] %vm349_vm1, %v325_v14  ;;  %401 = vst.msk [vmem:[#allocation2 + $0xb0] sm:$0xff] %vm349_vm1, %v326_v15 }
  0x39   : > { %402 = vst.msk [vmem:[#allocation2 + $0xc8] sm:$0xff] %vm349_vm1, %v327_v16  ;;  %403 = vst.msk [vmem:[#allocation2 + $0xd0] sm:$0xff] %vm349_vm1, %v328_v17 }
  0x3a   : > { %404 = vst.msk [vmem:[#allocation2 + $0xe8] sm:$0xff] %vm349_vm1, %v329_v18  ;;  %405 = vst.msk [vmem:[#allocation2 + $0xf0] sm:$0xff] %vm349_vm1, %v330_v19 }
  0x3b   : > { %406 = vst.msk [vmem:[#allocation2 + $0x108] sm:$0xff] %vm349_vm1, %v331_v20  ;;  %407 = vst.msk [vmem:[#allocation2 + $0x110] sm:$0xff] %vm349_vm1, %v332_v21  ;;  %v10603_v28 = vld [vmem:[#allocation2 + $0x28] sm:$0xff]  ;;  %v10605_v29 = vld [vmem:[#allocation2 + $0x30] sm:$0xff] }
  0x3c   : > { %408 = vst.msk [vmem:[#allocation2 + $0x128] sm:$0xff] %vm349_vm1, %v333_v22  ;;  %409 = vst.msk [vmem:[#allocation2 + $0x130] sm:$0xff] %vm349_vm1, %v334_v23  ;;  %v10607_v30 = vld [vmem:[#allocation2 + $0x48] sm:$0xff]  ;;  %8347 = vmatprep.mubr.msk.f32.mxu0 %vm349_vm1, %v10603_v28  ;;  %v10622_v33 = vld [vmem:[#allocation2 + $0x50] sm:$0xff] }
  0x3d   : > { %410 = vst.msk [vmem:[#allocation2 + $0x148] sm:$0xff] %vm349_vm1, %v335_v24  ;;  %411 = vst.msk [vmem:[#allocation2 + $0x150] sm:$0xff] %vm349_vm1, %v336_v25  ;;  %8348 = vmatmul.mubr.msk.f32.gmra.mrb[2].mxu0 %vm349_vm1, %v10605_v29  ;;  %v10624_v34 = vld [vmem:[#allocation2 + $0x68] sm:$0xff]  ;;  %v10630_v35 = vld [vmem:[#allocation2 + $0x70] sm:$0xff] }
  0x3e   : > { %412 = vst.msk [vmem:[#allocation2 + $0x168] sm:$0xff] %vm349_vm1, %v337_v26  ;;  %413 = vst.msk [vmem:[#allocation2 + $0x170] sm:$0xff] %vm349_vm1, %v338_v27  ;;  %8350 = vmatprep.mubr.msk.f32.mxu0 %vm349_vm1, %v10607_v30  ;;  %v10632_v36 = vld [vmem:[#allocation2 + $0x88] sm:$0xff]  ;;  %v10648_v43 = vld [vmem:[#allocation2 + $0x90] sm:$0xff] }
  0x3f   : > { %414 = vst.msk [vmem:[#allocation2 + $0x188] sm:$0xff] %vm349_vm1, %v339_v31  ;;  %415 = vst.msk [vmem:[#allocation2 + $0x190] sm:$0xff] %vm349_vm1, %v340_v32  ;;  %v10652_v44 = vld [vmem:[#allocation2 + $0xa8] sm:$0xff]  ;;  %v10658_v45 = vld [vmem:[#allocation2 + $0xb0] sm:$0xff] }
  0x40   : > { %416 = vst.msk [vmem:[#allocation2 + $0x1a8] sm:$0xff] %vm349_vm1, %v341_v37  ;;  %417 = vst.msk [vmem:[#allocation2 + $0x1b0] sm:$0xff] %vm349_vm1, %v342_v38  ;;  %v10660_v46 = vld [vmem:[#allocation2 + $0xc8] sm:$0xff]  ;;  %v10666_v47 = vld [vmem:[#allocation2 + $0xd0] sm:$0xff] }
  0x41   : > { %8351 = vmatmul.mubr.msk.f32.gmra.mrb[4].mxu0 %vm349_vm1, %v10622_v33  ;;  %418 = vst.msk [vmem:[#allocation2 + $0x1c8] sm:$0xff] %vm349_vm1, %v343_v39  ;;  %419 = vst.msk [vmem:[#allocation2 + $0x1d0] sm:$0xff] %vm349_vm1, %v344_v40  ;;  %v10668_v48 = vld [vmem:[#allocation2 + $0xe8] sm:$0xff]  ;;  %v10674_v49 = vld [vmem:[#allocation2 + $0xf0] sm:$0xff] }
  0x42   : > { %8353 = vmatprep.mubr.msk.f32.mxu0 %vm349_vm1, %v10624_v34  ;;  %420 = vst.msk [vmem:[#allocation2 + $0x1e8] sm:$0xff] %vm349_vm1, %v345_v41  ;;  %421 = vst.msk [vmem:[#allocation2 + $0x1f0] sm:$0xff] %vm349_vm1, %v346_v42  ;;  %v10676_v50 = vld [vmem:[#allocation2 + $0x108] sm:$0xff]  ;;  %v10682_v51 = vld [vmem:[#allocation2 + $0x110] sm:$0xff] }
  0x43   : > { %v10684_v52 = vld [vmem:[#allocation2 + $0x128] sm:$0xff]  ;;  %v10690_v53 = vld [vmem:[#allocation2 + $0x130] sm:$0xff]  ;;  %v348_v40 = vld [vmem:[%s10549_s15 + $0xf8] sm:$0xff] }
  0x44   : > { %v10692_v54 = vld [vmem:[#allocation2 + $0x148] sm:$0xff]  ;;  %v10698_v55 = vld [vmem:[#allocation2 + $0x150] sm:$0xff]  ;;  %423 = vst.msk [vmem:[#allocation2 + $0x210] sm:$0xff] %vm349_vm1, %v348_v40 }
  0x45   : > { %8354 = vmatmul.mubr.msk.f32.gmra.mrb[6].mxu0 %vm349_vm1, %v10630_v35  ;;  %v10700_v56 = vld [vmem:[#allocation2 + $0x168] sm:$0xff]  ;;  %v10706_v57 = vld [vmem:[#allocation2 + $0x170] sm:$0xff] }
  0x46   : > { %8356 = vmatprep.mubr.msk.f32.mxu0 %vm349_vm1, %v10632_v36  ;;  %v10708_v58 = vld [vmem:[#allocation2 + $0x188] sm:$0xff]  ;;  %v10714_v59 = vld [vmem:[#allocation2 + $0x190] sm:$0xff] }
  0x47   : > { %v10716_v60 = vld [vmem:[#allocation2 + $0x1a8] sm:$0xff]  ;;  %v10722_v61 = vld [vmem:[#allocation2 + $0x1b0] sm:$0xff] }
  0x48   : > { %v10724_v62 = vld [vmem:[#allocation2 + $0x1c8] sm:$0xff]  ;;  %v10730_v63 = vld [vmem:[#allocation2 + $0x1d0] sm:$0xff] }
  0x49   : > { %8357 = vmatmul.mubr.msk.f32.gmra.mrb[8].mxu0 %vm349_vm1, %v10648_v43  ;;  %12611 = vst [vmem:[#allocation4_spill] sm:$0xff] %v10730_v63  ;;  %v10732_v0 = vld [vmem:[#allocation2 + $0x1e8] sm:$0xff]  ;;  %v10738_v1 = vld [vmem:[#allocation2 + $0x1f0] sm:$0xff] }
  0x4a   : > { %8359 = vmatprep.mubr.msk.f32.mxu0 %vm349_vm1, %v10652_v44  ;;  %12612 = vst [vmem:[#allocation5_spill] sm:$0xff] %v10732_v0  ;;  %12613 = vst [vmem:[#allocation6_spill] sm:$0xff] %v10738_v1  ;;  %v10743_v4 = vld [vmem:[#allocation2 + $0x27] sm:$0xff]  ;;  %v10755_v7 = vld [vmem:[#allocation2 + $0x2f] sm:$0xff] }
  0x4b   : > { %v10757_v8 = vld [vmem:[#allocation2 + $0x47] sm:$0xff]  ;;  %v10765_v9 = vld [vmem:[#allocation2 + $0x4f] sm:$0xff] }
  0x4c   : > { %v10767_v10 = vld [vmem:[#allocation2 + $0x67] sm:$0xff]  ;;  %v10781_v12 = vld [vmem:[#allocation2 + $0x8f] sm:$0xff] }
  0x4d   : > { %8360 = vmatmul.mubr.msk.f32.gmra.mrb[10].mxu0 %vm349_vm1, %v10658_v45  ;;  %v10775_v11 = vld [vmem:[#allocation2 + $0x87] sm:$0xff]  ;;  %v10789_v14 = vld [vmem:[#allocation2 + $0xaf] sm:$0xff] }
  0x4e   : > { %8362 = vmatprep.mubr.msk.f32.mxu0 %vm349_vm1, %v10660_v46  ;;  %v10783_v13 = vld [vmem:[#allocation2 + $0xa7] sm:$0xff]  ;;  %v10797_v16 = vld [vmem:[#allocation2 + $0xcf] sm:$0xff] }
  0x4f   : > { %v10791_v15 = vld [vmem:[#allocation2 + $0xc7] sm:$0xff]  ;;  %v10805_v18 = vld [vmem:[#allocation2 + $0xef] sm:$0xff] }
  0x50   : > { %v10799_v17 = vld [vmem:[#allocation2 + $0xe7] sm:$0xff]  ;;  %v10813_v20 = vld [vmem:[#allocation2 + $0x10f] sm:$0xff] }
  0x51   : > { %8363 = vmatmul.mubr.msk.f32.gmra.mrb[12].mxu0 %vm349_vm1, %v10666_v47  ;;  %v10807_v19 = vld [vmem:[#allocation2 + $0x107] sm:$0xff]  ;;  %v10821_v22 = vld [vmem:[#allocation2 + $0x12f] sm:$0xff] }
  0x52   : > { %8365 = vmatprep.mubr.msk.f32.mxu0 %vm349_vm1, %v10668_v48  ;;  %v10815_v21 = vld [vmem:[#allocation2 + $0x127] sm:$0xff]  ;;  %v10829_v24 = vld [vmem:[#allocation2 + $0x14f] sm:$0xff] }
  0x53   : > { %v10823_v23 = vld [vmem:[#allocation2 + $0x147] sm:$0xff]  ;;  %v10837_v26 = vld [vmem:[#allocation2 + $0x16f] sm:$0xff] }
  0x54   : > { %v10831_v25 = vld [vmem:[#allocation2 + $0x167] sm:$0xff]  ;;  %v10845_v31 = vld [vmem:[#allocation2 + $0x18f] sm:$0xff] }
  0x55   : > { %8366 = vmatmul.mubr.msk.f32.gmra.mrb[14].mxu0 %vm349_vm1, %v10674_v49  ;;  %v10839_v27 = vld [vmem:[#allocation2 + $0x187] sm:$0xff]  ;;  %v10853_v37 = vld [vmem:[#allocation2 + $0x1af] sm:$0xff] }
  0x56   : > { %8368 = vmatprep.mubr.msk.f32.mxu0 %vm349_vm1, %v10676_v50  ;;  %v10847_v32 = vld [vmem:[#allocation2 + $0x1a7] sm:$0xff]  ;;  %v347_v39 = vld [vmem:[%s10549_s15 + $0xf0] sm:$0xff] }
  0x57   : > { %v10855_v38 = vld [vmem:[#allocation2 + $0x1c7] sm:$0xff]  ;;  %422 = vst.msk [vmem:[#allocation2 + $0x208] sm:$0xff] %vm349_vm1, %v347_v39  ;;  %v10865_v41 = vld [vmem:[#allocation2 + $0x1cf] sm:$0xff] }
  0x58   : > { %v10867_v42 = vld [vmem:[#allocation2 + $0x1e7] sm:$0xff]  ;;  %v1141_v39 = vld [vmem:[#allocation2 + $0x11] sm:$0xff] }
  0x59   : > { %8369 = vmatmul.mubr.msk.f32.gmra.mrb[16].mxu0 %vm349_vm1, %v10682_v51  ;;  %v10878_v40 = vld [vmem:[#allocation2 + $0x29] sm:$0xff] }
  0x5a   : > { %8371 = vmatprep.mubr.msk.f32.mxu0 %vm349_vm1, %v10684_v52  ;;  %12614 = vst [vmem:[#allocation7_spill] sm:$0xff] %v10878_v40 }
  0x5d   : > { %8372 = vmatmul.mubr.msk.f32.gmra.mrb[18].mxu0 %vm349_vm1, %v10690_v53 }
  0x5e   : > { %8374 = vmatprep.mubr.msk.f32.mxu0 %vm349_vm1, %v10692_v54 }
  0x61   : > { %8375 = vmatmul.mubr.msk.f32.gmra.mrb[20].mxu0 %vm349_vm1, %v10698_v55 }
  0x62   : > { %8377 = vmatprep.mubr.msk.f32.mxu0 %vm349_vm1, %v10700_v56 }
  0x65   : > { %8378 = vmatmul.mubr.msk.f32.gmra.mrb[22].mxu0 %vm349_vm1, %v10706_v57 }
  0x66   : > { %8380 = vmatprep.mubr.msk.f32.mxu0 %vm349_vm1, %v10708_v58 }
  0x69   : > { %8381 = vmatmul.mubr.msk.f32.gmra.mrb[24].mxu0 %vm349_vm1, %v10714_v59 }
  0x6a   : > { %8383 = vmatprep.mubr.msk.f32.mxu0 %vm349_vm1, %v10716_v60 }
  0x6d   : > { %8384 = vmatmul.mubr.msk.f32.gmra.mrb[26].mxu0 %vm349_vm1, %v10722_v61 }
  0x6e   : > { %8386 = vmatprep.mubr.msk.f32.mxu0 %vm349_vm1, %v10724_v62 }
  0x71   : > { %8387 = vmatmul.mubr.msk.f32.gmra.mrb[28].mxu0 %vm349_vm1, %v10730_v63  ;;  %v10892_v63 = vld [vmem:[#allocation2 + $0x49] sm:$0xff] }
  0x72   : > { %8389 = vmatprep.mubr.msk.f32.mxu0 %vm349_vm1, %v10732_v0  ;;  %v10890_v0 = vld [vmem:[#allocation2 + $0x31] sm:$0xff]  ;;  %12616 = vst [vmem:[#allocation9_spill] sm:$0xff] %v10892_v63 }
  0x73   : > { %12615 = vst [vmem:[#allocation8_spill] sm:$0xff] %v10890_v0 }
  0x75   : > { %8390 = vmatmul.mubr.msk.f32.gmra.mrb[30].mxu0 %vm349_vm1, %v10738_v1  ;;  %v10883_v1 = vld [vmem:[%s12532_s3 + $0x10] sm:$0xf] }
  0x76   : > { %8394 = vmatprep.mubr.msk.f32.mxu0 %vm349_vm1, %v424_v2  ;;  %v10873_v2 = vld [vmem:[#allocation2 + $0x1ef] sm:$0xff] }
  0x79   : > { %8395 = vmatmul.mubr.msk.f32.vlgmr.msra.gmra.mrb[0].mxu0 %vm349_vm1, %v425_v3  ;;  %v1140_v3 = vld [vmem:[#allocation2 + $0x9] sm:$0xff] }
  0x7a   : > { %8443 = vmatpush3.msk.msra.mxu0 %vm587_vm0, %v10557_v6  ;;  %8397 = vmatprep.mubr.msk.f32.mxu0 %vm349_vm1, %v10743_v4  ;;  %v10773_v6 = vld [vmem:[#allocation2 + $0x6f] sm:$0xff] }
  0x7b   : > { %8492 = vmatprep.subr.msk.mxu0 %vm587_vm0, %v10748_v5 }
  0x7d   : > { %8398 = vmatmul.mubr.msk.f32.gmra.mrb[2].mxu0 %vm349_vm1, %v10755_v7 }
  0x7e   : > { %8400 = vmatprep.mubr.msk.f32.mxu0 %vm349_vm1, %v10757_v8 }
  0x81   : > { %8401 = vmatmul.mubr.msk.f32.gmra.mrb[4].mxu0 %vm349_vm1, %v10765_v9 }
  0x82   : > { %8403 = vmatprep.mubr.msk.f32.mxu0 %vm349_vm1, %v10767_v10 }
  0x85   : > { %8404 = vmatmul.mubr.msk.f32.gmra.mrb[6].mxu0 %vm349_vm1, %v10773_v6 }
  0x86   : > { %8406 = vmatprep.mubr.msk.f32.mxu0 %vm349_vm1, %v10775_v11 }
  0x89   : > { %8407 = vmatmul.mubr.msk.f32.gmra.mrb[8].mxu0 %vm349_vm1, %v10781_v12 }
  0x8a   : > { %8409 = vmatprep.mubr.msk.f32.mxu0 %vm349_vm1, %v10783_v13 }
  0x8d   : > { %8410 = vmatmul.mubr.msk.f32.gmra.mrb[10].mxu0 %vm349_vm1, %v10789_v14 }
  0x8e   : > { %8412 = vmatprep.mubr.msk.f32.mxu0 %vm349_vm1, %v10791_v15 }
  0x91   : > { %8413 = vmatmul.mubr.msk.f32.gmra.mrb[12].mxu0 %vm349_vm1, %v10797_v16 }
  0x92   : > { %8415 = vmatprep.mubr.msk.f32.mxu0 %vm349_vm1, %v10799_v17 }
  0x95   : > { %8416 = vmatmul.mubr.msk.f32.gmra.mrb[14].mxu0 %vm349_vm1, %v10805_v18 }
  0x96   : > { %8418 = vmatprep.mubr.msk.f32.mxu0 %vm349_vm1, %v10807_v19 }
  0x99   : > { %8419 = vmatmul.mubr.msk.f32.gmra.mrb[16].mxu0 %vm349_vm1, %v10813_v20 }
  0x9a   : > { %8421 = vmatprep.mubr.msk.f32.mxu0 %vm349_vm1, %v10815_v21 }
  0x9d   : > { %8422 = vmatmul.mubr.msk.f32.gmra.mrb[18].mxu0 %vm349_vm1, %v10821_v22 }
  0x9e   : > { %8424 = vmatprep.mubr.msk.f32.mxu0 %vm349_vm1, %v10823_v23 }
  0xa1   : > { %8425 = vmatmul.mubr.msk.f32.gmra.mrb[20].mxu0 %vm349_vm1, %v10829_v24 }
  0xa2   : > { %8427 = vmatprep.mubr.msk.f32.mxu0 %vm349_vm1, %v10831_v25 }
  0xa5   : > { %8428 = vmatmul.mubr.msk.f32.gmra.mrb[22].mxu0 %vm349_vm1, %v10837_v26 }
  0xa6   : > { %8430 = vmatprep.mubr.msk.f32.mxu0 %vm349_vm1, %v10839_v27 }
  0xa9   : > { %8431 = vmatmul.mubr.msk.f32.gmra.mrb[24].mxu0 %vm349_vm1, %v10845_v31 }
  0xaa   : > { %8433 = vmatprep.mubr.msk.f32.mxu0 %vm349_vm1, %v10847_v32 }
  0xad   : > { %8434 = vmatmul.mubr.msk.f32.gmra.mrb[26].mxu0 %vm349_vm1, %v10853_v37 }
  0xae   : > { %8436 = vmatprep.mubr.msk.f32.mxu0 %vm349_vm1, %v10855_v38 }
  0xb1   : > { %8437 = vmatmul.mubr.msk.f32.gmra.mrb[28].mxu0 %vm349_vm1, %v10865_v41 }
  0xb2   : > { %8439 = vmatprep.mubr.msk.f32.mxu0 %vm349_vm1, %v10867_v42 }
  0xb5   : > { %8440 = vmatmul.mubr.msk.f32.gmra.mrb[30].mxu0 %vm349_vm1, %v10873_v2 }
  0xb6   : > { %8444 = vmatprep.mubr.msk.f32.mxu0 %vm349_vm1, %v1140_v3  ;;  %v10900_v3 = vld [vmem:[#allocation2 + $0x51] sm:$0xff] }
  0xb7   : > { %12617 = vst [vmem:[#allocation10_spill] sm:$0xff] %v10900_v3 }
  0xb9   : > { %8445 = vmatmul.mubr.msk.f32.vlgmr.msra.gmra.mrb[0].mxu0 %vm349_vm1, %v1141_v39  ;;  %v10902_v39 = vld [vmem:[#allocation2 + $0x69] sm:$0xff] }
  0xba   : > { %8493 = vmatpush3.msk.msra.mxu0 %vm587_vm0, %v10748_v5  ;;  %8447 = vmatprep.mubr.msk.f32.mxu0 %vm349_vm1, %v10878_v40  ;;  %12618 = vst [vmem:[#allocation11_spill] sm:$0xff] %v10902_v39  ;;  %v10908_v5 = vld [vmem:[#allocation2 + $0x71] sm:$0xff]  ;;  %v10910_v40 = vld [vmem:[#allocation2 + $0x89] sm:$0xff] }
  0xbb   : > { %8542 = vmatprep.subr.msk.mxu0 %vm587_vm0, %v10883_v1  ;;  %12619 = vst [vmem:[#allocation12_spill] sm:$0xff] %v10908_v5  ;;  %12620 = vst [vmem:[#allocation13_spill] sm:$0xff] %v10910_v40 }
  0xbd   : > { %8448 = vmatmul.mubr.msk.f32.gmra.mrb[2].mxu0 %vm349_vm1, %v10890_v0  ;;  %v10918_v0 = vld [vmem:[#allocation2 + $0xa9] sm:$0xff] }
  0xbe   : > { %8450 = vmatprep.mubr.msk.f32.mxu0 %vm349_vm1, %v10892_v63  ;;  %v10916_v63 = vld [vmem:[#allocation2 + $0x91] sm:$0xff]  ;;  %12622 = vst [vmem:[#allocation15_spill] sm:$0xff] %v10918_v0 }
  0xbf   : > { %12621 = vst [vmem:[#allocation14_spill] sm:$0xff] %v10916_v63 }
  0xc1   : > { %8451 = vmatmul.mubr.msk.f32.gmra.mrb[4].mxu0 %vm349_vm1, %v10900_v3  ;;  %v10926_v3 = vld [vmem:[#allocation2 + $0xc9] sm:$0xff] }
  0xc2   : > { %8453 = vmatprep.mubr.msk.f32.mxu0 %vm349_vm1, %v10902_v39  ;;  %v10924_v39 = vld [vmem:[#allocation2 + $0xb1] sm:$0xff]  ;;  %12624 = vst [vmem:[#allocation17_spill] sm:$0xff] %v10926_v3 }
  0xc3   : > { %12623 = vst [vmem:[#allocation16_spill] sm:$0xff] %v10924_v39 }
  0xc5   : > { %8454 = vmatmul.mubr.msk.f32.gmra.mrb[6].mxu0 %vm349_vm1, %v10908_v5  ;;  %v10934_v5 = vld [vmem:[#allocation2 + $0xe9] sm:$0xff] }
  0xc6   : > { %8456 = vmatprep.mubr.msk.f32.mxu0 %vm349_vm1, %v10910_v40  ;;  %v10932_v40 = vld [vmem:[#allocation2 + $0xd1] sm:$0xff]  ;;  %12626 = vst [vmem:[#allocation19_spill] sm:$0xff] %v10934_v5 }
  0xc7   : > { %12625 = vst [vmem:[#allocation18_spill] sm:$0xff] %v10932_v40 }
  0xc9   : > { %8457 = vmatmul.mubr.msk.f32.gmra.mrb[8].mxu0 %vm349_vm1, %v10916_v63  ;;  %v10942_v63 = vld [vmem:[#allocation2 + $0x109] sm:$0xff] }
  0xca   : > { %8459 = vmatprep.mubr.msk.f32.mxu0 %vm349_vm1, %v10918_v0  ;;  %v10940_v0 = vld [vmem:[#allocation2 + $0xf1] sm:$0xff]  ;;  %12628 = vst [vmem:[#allocation21_spill] sm:$0xff] %v10942_v63 }
  0xcb   : > { %12627 = vst [vmem:[#allocation20_spill] sm:$0xff] %v10940_v0 }
  0xcd   : > { %8460 = vmatmul.mubr.msk.f32.gmra.mrb[10].mxu0 %vm349_vm1, %v10924_v39  ;;  %v10950_v39 = vld [vmem:[#allocation2 + $0x129] sm:$0xff] }
  0xce   : > { %8462 = vmatprep.mubr.msk.f32.mxu0 %vm349_vm1, %v10926_v3  ;;  %v10948_v3 = vld [vmem:[#allocation2 + $0x111] sm:$0xff]  ;;  %12630 = vst [vmem:[#allocation23_spill] sm:$0xff] %v10950_v39 }
  0xcf   : > { %12629 = vst [vmem:[#allocation22_spill] sm:$0xff] %v10948_v3 }
  0xd1   : > { %8463 = vmatmul.mubr.msk.f32.gmra.mrb[12].mxu0 %vm349_vm1, %v10932_v40  ;;  %v10958_v40 = vld [vmem:[#allocation2 + $0x149] sm:$0xff] }
  0xd2   : > { %8465 = vmatprep.mubr.msk.f32.mxu0 %vm349_vm1, %v10934_v5  ;;  %v10956_v5 = vld [vmem:[#allocation2 + $0x131] sm:$0xff]  ;;  %12632 = vst [vmem:[#allocation25_spill] sm:$0xff] %v10958_v40 }
  0xd3   : > { %12631 = vst [vmem:[#allocation24_spill] sm:$0xff] %v10956_v5 }
  0xd5   : > { %8466 = vmatmul.mubr.msk.f32.gmra.mrb[14].mxu0 %vm349_vm1, %v10940_v0  ;;  %v10966_v0 = vld [vmem:[#allocation2 + $0x169] sm:$0xff] }
  0xd6   : > { %8468 = vmatprep.mubr.msk.f32.mxu0 %vm349_vm1, %v10942_v63  ;;  %v10964_v63 = vld [vmem:[#allocation2 + $0x151] sm:$0xff]  ;;  %12634 = vst [vmem:[#allocation27_spill] sm:$0xff] %v10966_v0 }
  0xd7   : > { %12633 = vst [vmem:[#allocation26_spill] sm:$0xff] %v10964_v63 }
  0xd9   : > { %8469 = vmatmul.mubr.msk.f32.gmra.mrb[16].mxu0 %vm349_vm1, %v10948_v3  ;;  %v10974_v3 = vld [vmem:[#allocation2 + $0x189] sm:$0xff] }
  0xda   : > { %8471 = vmatprep.mubr.msk.f32.mxu0 %vm349_vm1, %v10950_v39  ;;  %v10972_v39 = vld [vmem:[#allocation2 + $0x171] sm:$0xff]  ;;  %12636 = vst [vmem:[#allocation29_spill] sm:$0xff] %v10974_v3 }
  0xdb   : > { %12635 = vst [vmem:[#allocation28_spill] sm:$0xff] %v10972_v39 }
  0xdd   : > { %8472 = vmatmul.mubr.msk.f32.gmra.mrb[18].mxu0 %vm349_vm1, %v10956_v5  ;;  %v10982_v5 = vld [vmem:[#allocation2 + $0x1a9] sm:$0xff] }
  0xde   : > { %8474 = vmatprep.mubr.msk.f32.mxu0 %vm349_vm1, %v10958_v40  ;;  %v10980_v40 = vld [vmem:[#allocation2 + $0x191] sm:$0xff]  ;;  %12637 = vst [vmem:[#allocation30_spill] sm:$0xff] %v10982_v5 }
  0xe1   : > { %8475 = vmatmul.mubr.msk.f32.gmra.mrb[20].mxu0 %vm349_vm1, %v10964_v63  ;;  %v10990_v63 = vld [vmem:[#allocation2 + $0x1c9] sm:$0xff] }
  0xe2   : > { %8477 = vmatprep.mubr.msk.f32.mxu0 %vm349_vm1, %v10966_v0  ;;  %v10988_v0 = vld [vmem:[#allocation2 + $0x1b1] sm:$0xff]  ;;  %12638 = vst [vmem:[#allocation31_spill] sm:$0xff] %v10990_v63 }
  0xe5   : > { %8478 = vmatmul.mubr.msk.f32.gmra.mrb[22].mxu0 %vm349_vm1, %v10972_v39  ;;  %v10998_v39 = vld [vmem:[#allocation2 + $0x1e9] sm:$0xff] }
  0xe6   : > { %8480 = vmatprep.mubr.msk.f32.mxu0 %vm349_vm1, %v10974_v3  ;;  %v10996_v3 = vld [vmem:[#allocation2 + $0x1d1] sm:$0xff]  ;;  %12639 = vst [vmem:[#allocation32_spill] sm:$0xff] %v10998_v39 }
  0xe9   : > { %8481 = vmatmul.mubr.msk.f32.gmra.mrb[24].mxu0 %vm349_vm1, %v10980_v40 }
  0xea   : > { %8483 = vmatprep.mubr.msk.f32.mxu0 %vm349_vm1, %v10982_v5  ;;  %v11004_v5 = vld [vmem:[#allocation2 + $0x1f1] sm:$0xff] }
  0xed   : > { %8484 = vmatmul.mubr.msk.f32.gmra.mrb[26].mxu0 %vm349_vm1, %v10988_v0 }
  0xee   : > { %8486 = vmatprep.mubr.msk.f32.mxu0 %vm349_vm1, %v10990_v63  ;;  %v7341_v63 = vld [vmem:[%s12532_s3 + $0x14] sm:$0xf] }
  0xf1   : > { %8487 = vmatmul.mubr.msk.f32.gmra.mrb[28].mxu0 %vm349_vm1, %v10996_v3 }
  0xf2   : > { %8489 = vmatprep.mubr.msk.f32.mxu0 %vm349_vm1, %v10998_v39 }
  0xf5   : > { %8490 = vmatmul.mubr.msk.f32.gmra.mrb[30].mxu0 %vm349_vm1, %v11004_v5 }
  0xf6   : > { %8494 = vmatprep.mubr.msk.f32.mxu0 %vm349_vm1, %v10743_v4  ;;  %v11078_v4 = vld [vmem:[#allocation2 + $0x20f] sm:$0xff] }
  0xf9   : > { %8495 = vmatmul.mubr.msk.f32.vlgmr.msra.gmra.mrb[0].mxu0 %vm349_vm1, %v10755_v7  ;;  %v7375_v7 = vld [vmem:[%s12532_s3 + $0x18] sm:$0xf] }
  0xfa   : > { %8543 = vmatpush3.msk.msra.mxu0 %vm587_vm0, %v10883_v1  ;;  %8497 = vmatprep.mubr.msk.f32.mxu0 %vm349_vm1, %v10757_v8  ;;  %v11072_v1 = vld [vmem:[#allocation2 + $0x207] sm:$0xff] }
  0xfb   : > { %8592 = vmatprep.subr.msk.mxu0 %vm587_vm0, %v7341_v63 }
  0xfd   : > { %8498 = vmatmul.mubr.msk.f32.gmra.mrb[2].mxu0 %vm349_vm1, %v10765_v9 }
  0xfe   : > { %8500 = vmatprep.mubr.msk.f32.mxu0 %vm349_vm1, %v10767_v10 }
 0x101   : > { %8501 = vmatmul.mubr.msk.f32.gmra.mrb[4].mxu0 %vm349_vm1, %v10773_v6 }
 0x102   : > { %8503 = vmatprep.mubr.msk.f32.mxu0 %vm349_vm1, %v10775_v11 }
 0x105   : > { %8504 = vmatmul.mubr.msk.f32.gmra.mrb[6].mxu0 %vm349_vm1, %v10781_v12 }
 0x106   : > { %8506 = vmatprep.mubr.msk.f32.mxu0 %vm349_vm1, %v10783_v13 }
 0x109   : > { %8507 = vmatmul.mubr.msk.f32.gmra.mrb[8].mxu0 %vm349_vm1, %v10789_v14 }
 0x10a   : > { %8509 = vmatprep.mubr.msk.f32.mxu0 %vm349_vm1, %v10791_v15 }
 0x10d   : > { %8510 = vmatmul.mubr.msk.f32.gmra.mrb[10].mxu0 %vm349_vm1, %v10797_v16 }
 0x10e   : > { %8512 = vmatprep.mubr.msk.f32.mxu0 %vm349_vm1, %v10799_v17 }
 0x111   : > { %8513 = vmatmul.mubr.msk.f32.gmra.mrb[12].mxu0 %vm349_vm1, %v10805_v18 }
 0x112   : > { %8515 = vmatprep.mubr.msk.f32.mxu0 %vm349_vm1, %v10807_v19 }
 0x115   : > { %8516 = vmatmul.mubr.msk.f32.gmra.mrb[14].mxu0 %vm349_vm1, %v10813_v20 }
 0x116   : > { %8518 = vmatprep.mubr.msk.f32.mxu0 %vm349_vm1, %v10815_v21 }
 0x119   : > { %8519 = vmatmul.mubr.msk.f32.gmra.mrb[16].mxu0 %vm349_vm1, %v10821_v22 }
 0x11a   : > { %8521 = vmatprep.mubr.msk.f32.mxu0 %vm349_vm1, %v10823_v23 }
 0x11d   : > { %8522 = vmatmul.mubr.msk.f32.gmra.mrb[18].mxu0 %vm349_vm1, %v10829_v24 }
 0x11e   : > { %8524 = vmatprep.mubr.msk.f32.mxu0 %vm349_vm1, %v10831_v25 }
 0x121   : > { %8525 = vmatmul.mubr.msk.f32.gmra.mrb[20].mxu0 %vm349_vm1, %v10837_v26 }
 0x122   : > { %8527 = vmatprep.mubr.msk.f32.mxu0 %vm349_vm1, %v10839_v27 }
 0x125   : > { %8528 = vmatmul.mubr.msk.f32.gmra.mrb[22].mxu0 %vm349_vm1, %v10845_v31 }
 0x126   : > { %8530 = vmatprep.mubr.msk.f32.mxu0 %vm349_vm1, %v10847_v32 }
 0x129   : > { %8531 = vmatmul.mubr.msk.f32.gmra.mrb[24].mxu0 %vm349_vm1, %v10853_v37 }
 0x12a   : > { %8533 = vmatprep.mubr.msk.f32.mxu0 %vm349_vm1, %v10855_v38 }
 0x12d   : > { %8534 = vmatmul.mubr.msk.f32.gmra.mrb[26].mxu0 %vm349_vm1, %v10865_v41 }
 0x12e   : > { %8536 = vmatprep.mubr.msk.f32.mxu0 %vm349_vm1, %v10867_v42 }
 0x131   : > { %8537 = vmatmul.mubr.msk.f32.gmra.mrb[28].mxu0 %vm349_vm1, %v10873_v2 }
 0x132   : > { %8539 = vmatprep.mubr.msk.f32.mxu0 %vm349_vm1, %v11072_v1 }
 0x135   : > { %8540 = vmatmul.mubr.msk.f32.gmra.mrb[30].mxu0 %vm349_vm1, %v11078_v4 }
 0x136   : > { %8544 = vmatprep.mubr.msk.f32.mxu0 %vm349_vm1, %v10603_v28  ;;  %v12640_v28 = vld [vmem:[#allocation4_spill] sm:$0xff] }
 0x139   : > { %8545 = vmatmul.mubr.msk.f32.vlgmr.msra.gmra.mrb[0].mxu0 %vm349_vm1, %v10605_v29  ;;  %v12641_v29 = vld [vmem:[#allocation5_spill] sm:$0xff] }
 0x13a   : > { %8593 = vmatpush3.msk.msra.mxu0 %vm587_vm0, %v7341_v63  ;;  %8547 = vmatprep.mubr.msk.f32.mxu0 %vm349_vm1, %v10607_v30  ;;  %v11145_v30 = vld [vmem:[#allocation2 + $0x208] sm:$0xff]  ;;  %v12659_v63 = vld [vmem:[#allocation23_spill] sm:$0xff] }
 0x13b   : > { %8642 = vmatprep.subr.msk.mxu0 %vm587_vm0, %v7375_v7 }
 0x13d   : > { %8548 = vmatmul.mubr.msk.f32.gmra.mrb[2].mxu0 %vm349_vm1, %v10622_v33  ;;  %v12642_v33 = vld [vmem:[#allocation6_spill] sm:$0xff] }
 0x13e   : > { %8550 = vmatprep.mubr.msk.f32.mxu0 %vm349_vm1, %v10624_v34  ;;  %v11151_v34 = vld [vmem:[#allocation2 + $0x210] sm:$0xff] }
 0x141   : > { %8551 = vmatmul.mubr.msk.f32.gmra.mrb[4].mxu0 %vm349_vm1, %v10630_v35  ;;  %v12643_v35 = vld [vmem:[#allocation7_spill] sm:$0xff] }
 0x142   : > { %8553 = vmatprep.mubr.msk.f32.mxu0 %vm349_vm1, %v10632_v36  ;;  %v7409_v36 = vld [vmem:[%s12532_s3 + $0x1c] sm:$0xf] }
 0x145   : > { %8554 = vmatmul.mubr.msk.f32.gmra.mrb[6].mxu0 %vm349_vm1, %v10648_v43  ;;  %v12644_v43 = vld [vmem:[#allocation8_spill] sm:$0xff] }
 0x146   : > { %8556 = vmatprep.mubr.msk.f32.mxu0 %vm349_vm1, %v10652_v44  ;;  %v12645_v44 = vld [vmem:[#allocation9_spill] sm:$0xff] }
 0x149   : > { %8557 = vmatmul.mubr.msk.f32.gmra.mrb[8].mxu0 %vm349_vm1, %v10658_v45  ;;  %v12646_v45 = vld [vmem:[#allocation10_spill] sm:$0xff] }
 0x14a   : > { %8559 = vmatprep.mubr.msk.f32.mxu0 %vm349_vm1, %v10660_v46  ;;  %v12647_v46 = vld [vmem:[#allocation11_spill] sm:$0xff] }
 0x14d   : > { %8560 = vmatmul.mubr.msk.f32.gmra.mrb[10].mxu0 %vm349_vm1, %v10666_v47  ;;  %v12648_v47 = vld [vmem:[#allocation12_spill] sm:$0xff] }
 0x14e   : > { %8562 = vmatprep.mubr.msk.f32.mxu0 %vm349_vm1, %v10668_v48  ;;  %v12649_v48 = vld [vmem:[#allocation13_spill] sm:$0xff] }
 0x151   : > { %8563 = vmatmul.mubr.msk.f32.gmra.mrb[12].mxu0 %vm349_vm1, %v10674_v49  ;;  %v12650_v49 = vld [vmem:[#allocation14_spill] sm:$0xff] }
 0x152   : > { %8565 = vmatprep.mubr.msk.f32.mxu0 %vm349_vm1, %v10676_v50  ;;  %v12651_v50 = vld [vmem:[#allocation15_spill] sm:$0xff] }
 0x155   : > { %8566 = vmatmul.mubr.msk.f32.gmra.mrb[14].mxu0 %vm349_vm1, %v10682_v51  ;;  %v12652_v51 = vld [vmem:[#allocation16_spill] sm:$0xff] }
 0x156   : > { %8568 = vmatprep.mubr.msk.f32.mxu0 %vm349_vm1, %v10684_v52  ;;  %v12653_v52 = vld [vmem:[#allocation17_spill] sm:$0xff] }
 0x159   : > { %8569 = vmatmul.mubr.msk.f32.gmra.mrb[16].mxu0 %vm349_vm1, %v10690_v53  ;;  %v12654_v53 = vld [vmem:[#allocation18_spill] sm:$0xff] }
 0x15a   : > { %8571 = vmatprep.mubr.msk.f32.mxu0 %vm349_vm1, %v10692_v54  ;;  %v12655_v54 = vld [vmem:[#allocation19_spill] sm:$0xff] }
 0x15d   : > { %8572 = vmatmul.mubr.msk.f32.gmra.mrb[18].mxu0 %vm349_vm1, %v10698_v55  ;;  %v12656_v55 = vld [vmem:[#allocation20_spill] sm:$0xff] }
 0x15e   : > { %8574 = vmatprep.mubr.msk.f32.mxu0 %vm349_vm1, %v10700_v56  ;;  %v12657_v56 = vld [vmem:[#allocation21_spill] sm:$0xff] }
 0x161   : > { %8575 = vmatmul.mubr.msk.f32.gmra.mrb[20].mxu0 %vm349_vm1, %v10706_v57  ;;  %v12658_v57 = vld [vmem:[#allocation22_spill] sm:$0xff] }
 0x162   : > { %8577 = vmatprep.mubr.msk.f32.mxu0 %vm349_vm1, %v10708_v58 }
 0x165   : > { %8578 = vmatmul.mubr.msk.f32.gmra.mrb[22].mxu0 %vm349_vm1, %v10714_v59 }
 0x166   : > { %8580 = vmatprep.mubr.msk.f32.mxu0 %vm349_vm1, %v10716_v60 }
 0x169   : > { %8581 = vmatmul.mubr.msk.f32.gmra.mrb[24].mxu0 %vm349_vm1, %v10722_v61 }
 0x16a   : > { %8583 = vmatprep.mubr.msk.f32.mxu0 %vm349_vm1, %v10724_v62 }
 0x16d   : > { %8584 = vmatmul.mubr.msk.f32.gmra.mrb[26].mxu0 %vm349_vm1, %v12640_v28 }
 0x16e   : > { %8586 = vmatprep.mubr.msk.f32.mxu0 %vm349_vm1, %v12641_v29 }
 0x171   : > { %8587 = vmatmul.mubr.msk.f32.gmra.mrb[28].mxu0 %vm349_vm1, %v12642_v33 }
 0x172   : > { %8589 = vmatprep.mubr.msk.f32.mxu0 %vm349_vm1, %v11145_v30 }
 0x175   : > { %8590 = vmatmul.mubr.msk.f32.gmra.mrb[30].mxu0 %vm349_vm1, %v11151_v34 }
 0x176   : > { %8594 = vmatprep.mubr.msk.f32.mxu0 %vm349_vm1, %v12643_v35  ;;  %v12661_v35 = vld [vmem:[#allocation25_spill] sm:$0xff] }
 0x179   : > { %8595 = vmatmul.mubr.msk.f32.vlgmr.msra.gmra.mrb[0].mxu0 %vm349_vm1, %v12644_v43  ;;  %v12662_v43 = vld [vmem:[#allocation26_spill] sm:$0xff] }
 0x17a   : > { %8643 = vmatpush3.msk.msra.mxu0 %vm587_vm0, %v7375_v7  ;;  %8597 = vmatprep.mubr.msk.f32.mxu0 %vm349_vm1, %v12645_v44  ;;  %v12660_v7 = vld [vmem:[#allocation24_spill] sm:$0xff] }
 0x17b   : > { %8692 = vmatprep.subr.msk.mxu0 %vm587_vm0, %v7409_v36 }
 0x17d   : > { %8598 = vmatmul.mubr.msk.f32.gmra.mrb[2].mxu0 %vm349_vm1, %v12646_v45 }
 0x17e   : > { %8600 = vmatprep.mubr.msk.f32.mxu0 %vm349_vm1, %v12647_v46 }
 0x181   : > { %8601 = vmatmul.mubr.msk.f32.gmra.mrb[4].mxu0 %vm349_vm1, %v12648_v47 }
 0x182   : > { %8603 = vmatprep.mubr.msk.f32.mxu0 %vm349_vm1, %v12649_v48 }
 0x185   : > { %8604 = vmatmul.mubr.msk.f32.gmra.mrb[6].mxu0 %vm349_vm1, %v12650_v49 }
 0x186   : > { %8606 = vmatprep.mubr.msk.f32.mxu0 %vm349_vm1, %v12651_v50 }
 0x189   : > { %8607 = vmatmul.mubr.msk.f32.gmra.mrb[8].mxu0 %vm349_vm1, %v12652_v51 }
 0x18a   : > { %8609 = vmatprep.mubr.msk.f32.mxu0 %vm349_vm1, %v12653_v52 }
 0x18d   : > { %8610 = vmatmul.mubr.msk.f32.gmra.mrb[10].mxu0 %vm349_vm1, %v12654_v53 }
 0x18e   : > { %8612 = vmatprep.mubr.msk.f32.mxu0 %vm349_vm1, %v12655_v54  ;;  %v12663_v54 = vld [vmem:[#allocation27_spill] sm:$0xff] }
 0x191   : > { %8613 = vmatmul.mubr.msk.f32.gmra.mrb[12].mxu0 %vm349_vm1, %v12656_v55  ;;  %v12664_v55 = vld [vmem:[#allocation28_spill] sm:$0xff] }
 0x192   : > { %8615 = vmatprep.mubr.msk.f32.mxu0 %vm349_vm1, %v12657_v56  ;;  %v12665_v56 = vld [vmem:[#allocation29_spill] sm:$0xff] }
 0x195   : > { %8616 = vmatmul.mubr.msk.f32.gmra.mrb[14].mxu0 %vm349_vm1, %v12658_v57 }
 0x196   : > { %8618 = vmatprep.mubr.msk.f32.mxu0 %vm349_vm1, %v12659_v63  ;;  %v12666_v63 = vld [vmem:[#allocation30_spill] sm:$0xff] }
 0x199   : > { %8619 = vmatmul.mubr.msk.f32.gmra.mrb[16].mxu0 %vm349_vm1, %v12660_v7 }
 0x19a   : > { %8621 = vmatprep.mubr.msk.f32.mxu0 %vm349_vm1, %v12661_v35  ;;  %v12667_v35 = vld [vmem:[#allocation31_spill] sm:$0xff] }
 0x19d   : > { %8622 = vmatmul.mubr.msk.f32.gmra.mrb[18].mxu0 %vm349_vm1, %v12662_v43 }
 0x19e   : > { %8624 = vmatprep.mubr.msk.f32.mxu0 %vm349_vm1, %v12663_v54 }
 0x1a1   : > { %8625 = vmatmul.mubr.msk.f32.gmra.mrb[20].mxu0 %vm349_vm1, %v12664_v55  ;;  %v11218_v55 = vld [vmem:[#allocation2 + $0x209] sm:$0xff] }
 0x1a2   : > { %8627 = vmatprep.mubr.msk.f32.mxu0 %vm349_vm1, %v12665_v56 }
 0x1a5   : > { %8628 = vmatmul.mubr.msk.f32.gmra.mrb[22].mxu0 %vm349_vm1, %v10980_v40 }
 0x1a6   : > { %8630 = vmatprep.mubr.msk.f32.mxu0 %vm349_vm1, %v12666_v63  ;;  %v11224_v63 = vld [vmem:[#allocation2 + $0x211] sm:$0xff] }
 0x1a9   : > { %8631 = vmatmul.mubr.msk.f32.gmra.mrb[24].mxu0 %vm349_vm1, %v10988_v0 }
 0x1aa   : > { %8633 = vmatprep.mubr.msk.f32.mxu0 %vm349_vm1, %v12667_v35 }
 0x1ad   : > { %8634 = vmatmul.mubr.msk.f32.gmra.mrb[26].mxu0 %vm349_vm1, %v10996_v3 }
 0x1ae   : > { %8636 = vmatprep.mubr.msk.f32.mxu0 %vm349_vm1, %v10998_v39  ;;  %v7443_v39 = vld [vmem:[%s12532_s3 + $0x20] sm:$0xf] }
 0x1b1   : > { %8637 = vmatmul.mubr.msk.f32.gmra.mrb[28].mxu0 %vm349_vm1, %v11004_v5 }
 0x1b2   : > { %8639 = vmatprep.mubr.msk.f32.mxu0 %vm349_vm1, %v11218_v55 }
 0x1b5   : > { %8640 = vmatmul.mubr.msk.f32.gmra.mrb[30].mxu0 %vm349_vm1, %v11224_v63 }
 0x1b6   : > { %8644 = vmatprep.mubr.msk.f32.mxu0 %vm349_vm1, %v10757_v8  ;;  %v2731_v8 = vld [vmem:[#allocation2 + $0x227] sm:$0xff] }
 0x1b9   : > { %8645 = vmatmul.mubr.msk.f32.vlgmr.msra.gmra.mrb[0].mxu0 %vm349_vm1, %v10765_v9  ;;  %v2732_v9 = vld [vmem:[#allocation2 + $0x22f] sm:$0xff] }
 0x1ba   : > { %8693 = vmatpush3.msk.msra.mxu0 %vm587_vm0, %v7409_v36  ;;  %8647 = vmatprep.mubr.msk.f32.mxu0 %vm349_vm1, %v10767_v10  ;;  %v3091_v10 = vld [vmem:[#allocation2 + $0x48] sm:$0xff] }
 0x1bb   : > { %8742 = vmatprep.subr.msk.mxu0 %vm587_vm0, %v7443_v39  ;;  %v3105_v36 = vld [vmem:[#allocation2 + $0x128] sm:$0xff] }
 0x1bd   : > { %8648 = vmatmul.mubr.msk.f32.gmra.mrb[2].mxu0 %vm349_vm1, %v10773_v6  ;;  %v7479_v6 = vld [vmem:[%s12533_s4 + $0x80] sm:$0xff] }
 0x1be   : > { %8650 = vmatprep.mubr.msk.f32.mxu0 %vm349_vm1, %v10775_v11  ;;  %v7480_v11 = vld [vmem:[%s12533_s4 + $0x88] sm:$0xff] }
 0x1c1   : > { %8651 = vmatmul.mubr.msk.f32.gmra.mrb[4].mxu0 %vm349_vm1, %v10781_v12  ;;  %v3092_v12 = vld [vmem:[#allocation2 + $0x50] sm:$0xff] }
 0x1c2   : > { %8653 = vmatprep.mubr.msk.f32.mxu0 %vm349_vm1, %v10783_v13  ;;  %v11302_v13 = vpack.c.bf16 %v7480_v11, %v7479_v6  ;;  %v3109_v6 = vld [vmem:[#allocation2 + $0x168] sm:$0xff]  ;;  %v3110_v11 = vld [vmem:[#allocation2 + $0x170] sm:$0xff] }
 0x1c4   : > { %9808 = vmatprep.subr.bf16.mxu1 %v11302_v13 }
 0x1c5   : > { %8654 = vmatmul.mubr.msk.f32.gmra.mrb[6].mxu0 %vm349_vm1, %v10789_v14  ;;  %v7481_v14 = vld [vmem:[%s12533_s4 + $0x90] sm:$0xff]  ;;  %9816 = vmatpush3.bf16.msra.mxu1 %v11302_v13 }
 0x1c6   : > { %8656 = vmatprep.mubr.msk.f32.mxu0 %vm349_vm1, %v10791_v15  ;;  %v7482_v15 = vld [vmem:[%s12533_s4 + $0x98] sm:$0xff] }
 0x1c9   : > { %8657 = vmatmul.mubr.msk.f32.gmra.mrb[8].mxu0 %vm349_vm1, %v10797_v16  ;;  %v3093_v16 = vld [vmem:[#allocation2 + $0x68] sm:$0xff] }
 0x1ca   : > { %8659 = vmatprep.mubr.msk.f32.mxu0 %vm349_vm1, %v10799_v17  ;;  %v11312_v17 = vpack.c.bf16 %v7482_v15, %v7481_v14 }
 0x1cc   : > { %9809 = vmatprep.subr.bf16.mxu1 %v11312_v17 }
 0x1cd   : > { %8660 = vmatmul.mubr.msk.f32.gmra.mrb[10].mxu0 %vm349_vm1, %v10805_v18  ;;  %v7483_v18 = vld [vmem:[%s12533_s4 + $0xa0] sm:$0xff]  ;;  %9817 = vmatpush3.bf16.msra.mxu1 %v11312_v17 }
 0x1ce   : > { %8662 = vmatprep.mubr.msk.f32.mxu0 %vm349_vm1, %v10807_v19  ;;  %v7484_v19 = vld [vmem:[%s12533_s4 + $0xa8] sm:$0xff] }
 0x1d1   : > { %8663 = vmatmul.mubr.msk.f32.gmra.mrb[12].mxu0 %vm349_vm1, %v10813_v20  ;;  %v3094_v20 = vld [vmem:[#allocation2 + $0x70] sm:$0xff] }
 0x1d2   : > { %8665 = vmatprep.mubr.msk.f32.mxu0 %vm349_vm1, %v10815_v21  ;;  %v3095_v21 = vld [vmem:[#allocation2 + $0x88] sm:$0xff] }
 0x1d5   : > { %8666 = vmatmul.mubr.msk.f32.gmra.mrb[14].mxu0 %vm349_vm1, %v10821_v22  ;;  %v11325_v22 = vpack.c.bf16 %v7484_v19, %v7483_v18 }
 0x1d6   : > { %8668 = vmatprep.mubr.msk.f32.mxu0 %vm349_vm1, %v10823_v23  ;;  %v7485_v23 = vld [vmem:[%s12533_s4 + $0xb0] sm:$0xff] }
 0x1d7   : > { %9810 = vmatprep.subr.bf16.mxu1 %v11325_v22 }
 0x1d8   : > { %9818 = vmatpush3.bf16.msra.mxu1 %v11325_v22 }
 0x1d9   : > { %8669 = vmatmul.mubr.msk.f32.gmra.mrb[16].mxu0 %vm349_vm1, %v10829_v24  ;;  %v7486_v24 = vld [vmem:[%s12533_s4 + $0xb8] sm:$0xff] }
 0x1da   : > { %8671 = vmatprep.mubr.msk.f32.mxu0 %vm349_vm1, %v10831_v25  ;;  %v3096_v25 = vld [vmem:[#allocation2 + $0x90] sm:$0xff] }
 0x1dd   : > { %8672 = vmatmul.mubr.msk.f32.gmra.mrb[18].mxu0 %vm349_vm1, %v10837_v26  ;;  %v3097_v26 = vld [vmem:[#allocation2 + $0xa8] sm:$0xff] }
 0x1de   : > { %8674 = vmatprep.mubr.msk.f32.mxu0 %vm349_vm1, %v10839_v27  ;;  %v11337_v27 = vpack.c.bf16 %v7486_v24, %v7485_v23 }
 0x1e0   : > { %9811 = vmatprep.subr.bf16.mxu1 %v11337_v27 }
 0x1e1   : > { %8675 = vmatmul.mubr.msk.f32.gmra.mrb[20].mxu0 %vm349_vm1, %v10845_v31  ;;  %v7487_v31 = vld [vmem:[%s12533_s4 + $0xc0] sm:$0xff]  ;;  %9819 = vmatpush3.bf16.msra.mxu1 %v11337_v27 }
 0x1e2   : > { %8677 = vmatprep.mubr.msk.f32.mxu0 %vm349_vm1, %v10847_v32  ;;  %v7488_v32 = vld [vmem:[%s12533_s4 + $0xc8] sm:$0xff] }
 0x1e5   : > { %8678 = vmatmul.mubr.msk.f32.gmra.mrb[22].mxu0 %vm349_vm1, %v10853_v37  ;;  %v3098_v37 = vld [vmem:[#allocation2 + $0xb0] sm:$0xff] }
 0x1e6   : > { %8680 = vmatprep.mubr.msk.f32.mxu0 %vm349_vm1, %v10855_v38  ;;  %v3099_v38 = vld [vmem:[#allocation2 + $0xc8] sm:$0xff] }
 0x1e9   : > { %8681 = vmatmul.mubr.msk.f32.gmra.mrb[24].mxu0 %vm349_vm1, %v10865_v41  ;;  %v9528_v41 = vpack.c.bf16 %v7488_v32, %v7487_v31 }
 0x1ea   : > { %8683 = vmatprep.mubr.msk.f32.mxu0 %vm349_vm1, %v10867_v42  ;;  %v3100_v42 = vld [vmem:[#allocation2 + $0xd0] sm:$0xff] }
 0x1eb   : > { %9812 = vmatprep.subr.bf16.mxu1 %v9528_v41 }
 0x1ec   : > { %9820 = vmatpush3.bf16.msra.mxu1 %v9528_v41 }
 0x1ed   : > { %8684 = vmatmul.mubr.msk.f32.gmra.mrb[26].mxu0 %vm349_vm1, %v10873_v2  ;;  %v3101_v2 = vld [vmem:[#allocation2 + $0xe8] sm:$0xff] }
 0x1ee   : > { %8686 = vmatprep.mubr.msk.f32.mxu0 %vm349_vm1, %v11072_v1  ;;  %v3103_v1 = vld [vmem:[#allocation2 + $0x108] sm:$0xff] }
 0x1f1   : > { %8687 = vmatmul.mubr.msk.f32.gmra.mrb[28].mxu0 %vm349_vm1, %v11078_v4  ;;  %v3104_v4 = vld [vmem:[#allocation2 + $0x110] sm:$0xff] }
 0x1f2   : > { %8689 = vmatprep.mubr.msk.f32.mxu0 %vm349_vm1, %v2731_v8  ;;  %v3106_v8 = vld [vmem:[#allocation2 + $0x130] sm:$0xff] }
 0x1f5   : > { %8690 = vmatmul.mubr.msk.f32.gmra.mrb[30].mxu0 %vm349_vm1, %v2732_v9  ;;  %v3107_v9 = vld [vmem:[#allocation2 + $0x148] sm:$0xff] }
 0x1f6   : > { %8694 = vmatprep.mubr.msk.f32.mxu0 %vm349_vm1, %v3091_v10  ;;  %v3108_v10 = vld [vmem:[#allocation2 + $0x150] sm:$0xff] }
 0x1f9   : > { %8695 = vmatmul.mubr.msk.f32.vlgmr.msra.gmra.mrb[0].mxu0 %vm349_vm1, %v3092_v12 }
 0x1fa   : > { %8743 = vmatpush3.msk.msra.mxu0 %vm587_vm0, %v7443_v39  ;;  %8697 = vmatprep.mubr.msk.f32.mxu0 %vm349_vm1, %v3093_v16  ;;  %v3102_v39 = vld [vmem:[#allocation2 + $0xf0] sm:$0xff] }
 0x1fb   : > { %9513 = vmatprep.subr.bf16.mxu0 %v11302_v13 }
 0x1fd   : > { %8698 = vmatmul.mubr.msk.f32.gmra.mrb[2].mxu0 %vm349_vm1, %v3094_v20 }
 0x1fe   : > { %8700 = vmatprep.mubr.msk.f32.mxu0 %vm349_vm1, %v3095_v21 }
 0x201   : > { %8701 = vmatmul.mubr.msk.f32.gmra.mrb[4].mxu0 %vm349_vm1, %v3096_v25 }
 0x202   : > { %8703 = vmatprep.mubr.msk.f32.mxu0 %vm349_vm1, %v3097_v26 }
 0x205   : > { %8704 = vmatmul.mubr.msk.f32.gmra.mrb[6].mxu0 %vm349_vm1, %v3098_v37 }
 0x206   : > { %8706 = vmatprep.mubr.msk.f32.mxu0 %vm349_vm1, %v3099_v38  ;;  %v4083_v38 = vld [vmem:[%s12533_s4 + $0x10] sm:$0xff] }
 0x209   : > { %8707 = vmatmul.mubr.msk.f32.gmra.mrb[8].mxu0 %vm349_vm1, %v3100_v42 }
 0x20a   : > { %8709 = vmatprep.mubr.msk.f32.mxu0 %vm349_vm1, %v3101_v2 }
 0x20d   : > { %8710 = vmatmul.mubr.msk.f32.gmra.mrb[10].mxu0 %vm349_vm1, %v3102_v39 }
 0x20e   : > { %8712 = vmatprep.mubr.msk.f32.mxu0 %vm349_vm1, %v3103_v1 }
 0x211   : > { %8713 = vmatmul.mubr.msk.f32.gmra.mrb[12].mxu0 %vm349_vm1, %v3104_v4 }
 0x212   : > { %8715 = vmatprep.mubr.msk.f32.mxu0 %vm349_vm1, %v3105_v36  ;;  %v11508_v36 = vld [vmem:[#allocation3 + $0x7] sm:$0xff] }
 0x215   : > { %8716 = vmatmul.mubr.msk.f32.gmra.mrb[14].mxu0 %vm349_vm1, %v3106_v8 }
 0x216   : > { %8718 = vmatprep.mubr.msk.f32.mxu0 %vm349_vm1, %v3107_v9 }
 0x219   : > { %8719 = vmatmul.mubr.msk.f32.gmra.mrb[16].mxu0 %vm349_vm1, %v3108_v10 }
 0x21a   : > { %8721 = vmatprep.mubr.msk.f32.mxu0 %vm349_vm1, %v3109_v6 }
 0x21d   : > { %8722 = vmatmul.mubr.msk.f32.gmra.mrb[18].mxu0 %vm349_vm1, %v3110_v11  ;;  %v4085_v11 = vld [vmem:[%s12533_s4 + $0x20] sm:$0xff] }
 0x21e   : > { %8724 = vmatprep.mubr.msk.f32.mxu0 %vm349_vm1, %v10708_v58  ;;  %v3121_v58 = vld [vmem:[#allocation2 + $0x228] sm:$0xff] }
 0x221   : > { %8725 = vmatmul.mubr.msk.f32.gmra.mrb[20].mxu0 %vm349_vm1, %v10714_v59  ;;  %v3122_v59 = vld [vmem:[#allocation2 + $0x230] sm:$0xff] }
 0x222   : > { %8727 = vmatprep.mubr.msk.f32.mxu0 %vm349_vm1, %v10716_v60  ;;  %v12668_v60 = vld [vmem:[#allocation19_spill] sm:$0xff] }
 0x225   : > { %8728 = vmatmul.mubr.msk.f32.gmra.mrb[22].mxu0 %vm349_vm1, %v10722_v61  ;;  %v12669_v61 = vld [vmem:[#allocation20_spill] sm:$0xff] }
 0x226   : > { %8730 = vmatprep.mubr.msk.f32.mxu0 %vm349_vm1, %v10724_v62  ;;  %v12670_v62 = vld [vmem:[#allocation21_spill] sm:$0xff] }
 0x229   : > { %8731 = vmatmul.mubr.msk.f32.gmra.mrb[24].mxu0 %vm349_vm1, %v12640_v28  ;;  %v12671_v28 = vld [vmem:[#allocation23_spill] sm:$0xff] }
 0x22a   : > { %8733 = vmatprep.mubr.msk.f32.mxu0 %vm349_vm1, %v12641_v29  ;;  %v12672_v29 = vld [vmem:[#allocation25_spill] sm:$0xff] }
 0x22d   : > { %8734 = vmatmul.mubr.msk.f32.gmra.mrb[26].mxu0 %vm349_vm1, %v12642_v33  ;;  %v12674_v33 = vld [vmem:[#allocation30_spill] sm:$0xff] }
 0x22e   : > { %8736 = vmatprep.mubr.msk.f32.mxu0 %vm349_vm1, %v11145_v30  ;;  %v12673_v30 = vld [vmem:[#allocation28_spill] sm:$0xff] }
 0x231   : > { %8737 = vmatmul.mubr.msk.f32.gmra.mrb[28].mxu0 %vm349_vm1, %v11151_v34  ;;  %v12675_v34 = vld [vmem:[#allocation32_spill] sm:$0xff] }
 0x232   : > { %8739 = vmatprep.mubr.msk.f32.mxu0 %vm349_vm1, %v3121_v58  ;;  %v4086_v58 = vld [vmem:[%s12533_s4 + $0x28] sm:$0xff] }
 0x235   : > { %8740 = vmatmul.mubr.msk.f32.gmra.mrb[30].mxu0 %vm349_vm1, %v3122_v59 }
 0x236   : > { %8744 = vmatprep.mubr.msk.f32.mxu0 %vm349_vm1, %v12645_v44 }
 0x239   : > { %8745 = vmatmul.mubr.msk.f32.vlgmr.msra.gmra.mrb[0].mxu0 %vm349_vm1, %v12646_v45  ;;  %v7491_v45 = vld [vmem:[%s12533_s4 + $0xe0] sm:$0xff] }
 0x23a   : > { %8747 = vmatprep.mubr.msk.f32.mxu0 %vm349_vm1, %v12647_v46  ;;  %9515 = vmatpush3.bf16.msra.mxu0 %v11302_v13  ;;  %v7492_v46 = vld [vmem:[%s12533_s4 + $0xe8] sm:$0xff] }
 0x23b   : > { %9517 = vmatprep.subr.bf16.mxu0 %v11312_v17 }
 0x23d   : > { %8748 = vmatmul.mubr.msk.f32.gmra.mrb[2].mxu0 %vm349_vm1, %v12648_v47  ;;  %v9536_v47 = vpack.c.bf16 %v7492_v46, %v7491_v45 }
 0x23e   : > { %8750 = vmatprep.mubr.msk.f32.mxu0 %vm349_vm1, %v12649_v48  ;;  %9519 = vmatpush3.bf16.msra.mxu0 %v11312_v17  ;;  %v7493_v48 = vld [vmem:[%s12533_s4 + $0xf0] sm:$0xff] }
 0x23f   : > { %9521 = vmatprep.subr.bf16.mxu0 %v11325_v22 }
 0x241   : > { %8751 = vmatmul.mubr.msk.f32.gmra.mrb[4].mxu0 %vm349_vm1, %v12650_v49  ;;  %v7494_v49 = vld [vmem:[%s12533_s4 + $0xf8] sm:$0xff] }
 0x242   : > { %8753 = vmatprep.mubr.msk.f32.mxu0 %vm349_vm1, %v12651_v50  ;;  %9523 = vmatpush3.bf16.msra.mxu0 %v11325_v22  ;;  %v9540_v50 = vpack.c.bf16 %v7494_v49, %v7493_v48 }
 0x243   : > { %9525 = vmatprep.subr.bf16.mxu0 %v11337_v27 }
 0x245   : > { %8754 = vmatmul.mubr.msk.f32.gmra.mrb[6].mxu0 %vm349_vm1, %v12652_v51  ;;  %v4097_v51 = vld [vmem:[#allocation3 + $0x8] sm:$0xff] }
 0x246   : > { %8756 = vmatprep.mubr.msk.f32.mxu0 %vm349_vm1, %v12653_v52  ;;  %9527 = vmatpush3.bf16.msra.mxu0 %v11337_v27  ;;  %v4098_v52 = vld [vmem:[#allocation3 + $0x10] sm:$0xff] }
 0x247   : > { %9529 = vmatprep.subr.bf16.mxu0 %v9528_v41 }
 0x249   : > { %8757 = vmatmul.mubr.msk.f32.gmra.mrb[8].mxu0 %vm349_vm1, %v12654_v53  ;;  %v4081_v53 = vld [vmem:[%s12533_s4] sm:$0xff] }
 0x24a   : > { %8759 = vmatprep.mubr.msk.f32.mxu0 %vm349_vm1, %v12668_v60  ;;  %9531 = vmatpush3.bf16.msra.mxu0 %v9528_v41  ;;  %v4084_v41 = vld [vmem:[%s12533_s4 + $0x18] sm:$0xff] }
 0x24b   : > { %v9548_v9 = vpack.c.bf16 %v4084_v41, %v4083_v38 }
 0x24d   : > { %8760 = vmatmul.mubr.msk.f32.gmra.mrb[10].mxu0 %vm349_vm1, %v12669_v61 }
 0x24e   : > { %8762 = vmatprep.mubr.msk.f32.mxu0 %vm349_vm1, %v12670_v62 }
 0x251   : > { %8763 = vmatmul.mubr.msk.f32.gmra.mrb[12].mxu0 %vm349_vm1, %v12658_v57 }
 0x252   : > { %8765 = vmatprep.mubr.msk.f32.mxu0 %vm349_vm1, %v12671_v28 }
 0x255   : > { %8766 = vmatmul.mubr.msk.f32.gmra.mrb[14].mxu0 %vm349_vm1, %v12660_v7 }
 0x256   : > { %8768 = vmatprep.mubr.msk.f32.mxu0 %vm349_vm1, %v12672_v29 }
 0x259   : > { %8769 = vmatmul.mubr.msk.f32.gmra.mrb[16].mxu0 %vm349_vm1, %v12662_v43 }
 0x25a   : > { %8771 = vmatprep.mubr.msk.f32.mxu0 %vm349_vm1, %v12663_v54  ;;  %v4082_v54 = vld [vmem:[%s12533_s4 + $0x8] sm:$0xff] }
 0x25d   : > { %8772 = vmatmul.mubr.msk.f32.gmra.mrb[18].mxu0 %vm349_vm1, %v12673_v30  ;;  %v9552_v30 = vpack.c.bf16 %v4086_v58, %v4085_v11 }
 0x25e   : > { %8774 = vmatprep.mubr.msk.f32.mxu0 %vm349_vm1, %v12665_v56  ;;  %v11481_v56 = vld [vmem:[%s12531_s2] ss:$0 sm:$0xff] }
 0x261   : > { %8775 = vmatmul.mubr.msk.f32.gmra.mrb[20].mxu0 %vm349_vm1, %v10980_v40  ;;  %v3511_v40 = vld [vmem:[#allocation2 + $0x229] sm:$0xff] }
 0x262   : > { %8777 = vmatprep.mubr.msk.f32.mxu0 %vm349_vm1, %v12674_v33 }
 0x265   : > { %8778 = vmatmul.mubr.msk.f32.gmra.mrb[22].mxu0 %vm349_vm1, %v10988_v0  ;;  %v3512_v0 = vld [vmem:[#allocation2 + $0x231] sm:$0xff] }
 0x266   : > { %8780 = vmatprep.mubr.msk.f32.mxu0 %vm349_vm1, %v12667_v35 }
 0x269   : > { %8781 = vmatmul.mubr.msk.f32.gmra.mrb[24].mxu0 %vm349_vm1, %v10996_v3  ;;  %v7489_v3 = vld [vmem:[%s12533_s4 + $0xd0] sm:$0xff] }
 0x26a   : > { %8783 = vmatprep.mubr.msk.f32.mxu0 %vm349_vm1, %v12675_v34 }
 0x26d   : > { %8784 = vmatmul.mubr.msk.f32.gmra.mrb[26].mxu0 %vm349_vm1, %v11004_v5  ;;  %v7490_v5 = vld [vmem:[%s12533_s4 + $0xd8] sm:$0xff] }
 0x26e   : > { %8786 = vmatprep.mubr.msk.f32.mxu0 %vm349_vm1, %v11218_v55  ;;  %v9532_v44 = vpack.c.bf16 %v7490_v5, %v7489_v3  ;;  %v9544_v55 = vpack.c.bf16 %v4082_v54, %v4081_v53 }
 0x270   : > { %9533 = vmatprep.subr.bf16.mxu0 %v9532_v44  ;;  %9813 = vmatprep.subr.bf16.mxu1 %v9532_v44 }
 0x271   : > { %8787 = vmatmul.mubr.msk.f32.gmra.mrb[28].mxu0 %vm349_vm1, %v11224_v63  ;;  %9821 = vmatpush3.bf16.msra.mxu1 %v9532_v44  ;;  %v11486_v63 = vld [vmem:[%s12531_s2 + $0x1] ss:$0 sm:$0xff] }
 0x272   : > { %8789 = vmatprep.mubr.msk.f32.mxu0 %vm349_vm1, %v3511_v40  ;;  %9535 = vmatpush3.bf16.msra.mxu0 %v9532_v44  ;;  %v4087_v40 = vld [vmem:[%s12533_s4 + $0x30] sm:$0xff] }
 0x273   : > { %9537 = vmatprep.subr.bf16.mxu0 %v9536_v47  ;;  %9814 = vmatprep.subr.bf16.mxu1 %v9536_v47 }
 0x275   : > { %8790 = vmatmul.mubr.msk.f32.gmra.mrb[30].mxu0 %vm349_vm1, %v3512_v0  ;;  %9822 = vmatpush3.bf16.msra.mxu1 %v9536_v47  ;;  %v4088_v0 = vld [vmem:[%s12533_s4 + $0x38] sm:$0xff] }
 0x276   : > { %9539 = vmatpush3.bf16.msra.mxu0 %v9536_v47  ;;  %9815 = vmatprep.subr.bf16.mxu1 %v9540_v50  ;;  %v9556_v48 = vpack.c.bf16 %v4088_v0, %v4087_v40 }
 0x277   : > { %9541 = vmatprep.subr.bf16.mxu0 %v9540_v50  ;;  %8824 = vmatprep.mubr.f32.mxu0 %v4097_v51  ;;  %v4089_v51 = vld [vmem:[%s12533_s4 + $0x40] sm:$0xff] }
 0x279   : > { %9823 = vmatpush3.bf16.msra.mxu1 %v9540_v50 }
 0x27a   : > { %9543 = vmatpush3.bf16.msra.mxu0 %v9540_v50  ;;  %9545 = vmatprep.subr.bf16.mxu1 %v9544_v55 }
 0x27d   : > { %8825 = vmatmul.mubr.f32.vlgmr.msra.gmra.mrb[32].mxu0 %v4098_v52  ;;  %v4090_v52 = vld [vmem:[%s12533_s4 + $0x48] sm:$0xff] }
 0x30c   : > { %v8746_v57 = vpop.f32.mrb[0].mxu0 }
 0x30d   : > { %v3877_v7 = vsub.f32 %v8746_v57, %v11481_v56  ;;  %v3680_v35 = vpop.f32.mrb[1].mxu0 }
 0x30e   : > { %v3876_v43 = vsub.f32 %v3680_v35, %v11481_v56 }
 0x30f   : > { %v3914_v12 = vmul.f32 %v11486_v63, %v3877_v7 }
 0x310   : > { %v3913_v13 = vmul.f32 %v11486_v63, %v3876_v43  ;;  %v8749_v14 = vpop.f32.mrb[2].mxu0  ;;  %v9560_v43 = vpack.c.bf16 %v4090_v52, %v4089_v51 }
 0x311   : > { %v3946_v15 = vmax.f32 %v3914_v12, 0.0  ;;  %v3879_v16 = vsub.f32 %v8749_v14, %v11481_v56  ;;  %v3690_v17 = vpop.f32.mrb[3].mxu0  ;;  %v4091_v14 = vld [vmem:[%s12533_s4 + $0x50] sm:$0xff] }
 0x312   : > { %v3945_v18 = vmax.f32 %v3913_v13, 0.0  ;;  %v3878_v19 = vsub.f32 %v3690_v17, %v11481_v56 }
 0x313   : > { %4018 = vst [vmem:[#allocation3 + $0x30] sm:$0xff] %v3946_v15  ;;  %v3916_v20 = vmul.f32 %v11486_v63, %v3879_v16 }
 0x314   : > { %4017 = vst [vmem:[#allocation3 + $0x28] sm:$0xff] %v3945_v18  ;;  %v3915_v21 = vmul.f32 %v11486_v63, %v3878_v19  ;;  %v8752_v22 = vpop.f32.mrb[4].mxu0  ;;  %8827 = vmatprep.mubr.f32.mxu0 %v3945_v18 }
 0x315   : > { %v3948_v23 = vmax.f32 %v3916_v20, 0.0  ;;  %v3881_v24 = vsub.f32 %v8752_v22, %v11481_v56  ;;  %v3700_v25 = vpop.f32.mrb[5].mxu0  ;;  %8828 = vmatmul.mubr.f32.gmra.mrb[34].mxu0 %v3946_v15  ;;  %v4092_v15 = vld [vmem:[%s12533_s4 + $0x58] sm:$0xff] }
 0x316   : > { %v3947_v26 = vmax.f32 %v3915_v21, 0.0  ;;  %v3880_v27 = vsub.f32 %v3700_v25, %v11481_v56  ;;  %v9564_v22 = vpack.c.bf16 %v4092_v15, %v4091_v14  ;;  %v4093_v25 = vld [vmem:[%s12533_s4 + $0x60] sm:$0xff] }
 0x317   : > { %4020 = vst [vmem:[#allocation3 + $0x50] sm:$0xff] %v3948_v23  ;;  %v3918_v31 = vmul.f32 %v11486_v63, %v3881_v24 }
 0x318   : > { %4019 = vst [vmem:[#allocation3 + $0x48] sm:$0xff] %v3947_v26  ;;  %v3917_v32 = vmul.f32 %v11486_v63, %v3880_v27  ;;  %v8755_v37 = vpop.f32.mrb[6].mxu0  ;;  %8830 = vmatprep.mubr.f32.mxu0 %v3947_v26  ;;  %v4094_v26 = vld [vmem:[%s12533_s4 + $0x68] sm:$0xff] }
 0x319   : > { %v3950_v42 = vmax.f32 %v3918_v31, 0.0  ;;  %v3883_v2 = vsub.f32 %v8755_v37, %v11481_v56  ;;  %v3710_v39 = vpop.f32.mrb[7].mxu0  ;;  %8831 = vmatmul.mubr.f32.gmra.mrb[36].mxu0 %v3948_v23 }
 0x31a   : > { %v3949_v1 = vmax.f32 %v3917_v32, 0.0  ;;  %v3882_v4 = vsub.f32 %v3710_v39, %v11481_v56  ;;  %6856 = vmatprep.mubr.f32.mxu0 %v11508_v36 }
 0x31b   : > { %4022 = vst [vmem:[#allocation3 + $0x70] sm:$0xff] %v3950_v42  ;;  %v3920_v8 = vmul.f32 %v11486_v63, %v3883_v2 }
 0x31c   : > { %4021 = vst [vmem:[#allocation3 + $0x68] sm:$0xff] %v3949_v1  ;;  %v3919_v10 = vmul.f32 %v11486_v63, %v3882_v4  ;;  %v8758_v6 = vpop.f32.mrb[8].mxu0  ;;  %8833 = vmatprep.mubr.f32.mxu1 %v3949_v1  ;;  %v4095_v1 = vld [vmem:[%s12533_s4 + $0x70] sm:$0xff]  ;;  %v4096_v4 = vld [vmem:[%s12533_s4 + $0x78] sm:$0xff] }
 0x31d   : > { %v3952_v59 = vmax.f32 %v3920_v8, 0.0  ;;  %v3885_v60 = vsub.f32 %v8758_v6, %v11481_v56  ;;  %v3720_v61 = vpop.f32.mrb[9].mxu0  ;;  %8834 = vmatmul.mubr.f32.vlgmr.msra.gmra.mrb[0].mxu1 %v3950_v42  ;;  %v9568_v42 = vpack.c.bf16 %v4094_v26, %v4093_v25 }
 0x31e   : > { %v3951_v62 = vmax.f32 %v3919_v10, 0.0  ;;  %v3884_v28 = vsub.f32 %v3720_v61, %v11481_v56  ;;  %9547 = vmatpush3.bf16.msra.mxu1 %v9544_v55 }
 0x31f   : > { %4024 = vst [vmem:[#allocation3 + $0x90] sm:$0xff] %v3952_v59  ;;  %v3922_v29 = vmul.f32 %v11486_v63, %v3885_v60  ;;  %9549 = vmatprep.subr.bf16.mxu1 %v9548_v9 }
 0x320   : > { %4023 = vst [vmem:[#allocation3 + $0x88] sm:$0xff] %v3951_v62  ;;  %v3921_v33 = vmul.f32 %v11486_v63, %v3884_v28  ;;  %v8761_v34 = vpop.f32.mrb[10].mxu0  ;;  %8836 = vmatprep.mubr.f32.mxu1 %v3951_v62  ;;  %v7495_v62 = vld [vmem:[%s12533_s4 + $0x100] sm:$0xff]  ;;  %v7496_v28 = vld [vmem:[%s12533_s4 + $0x108] sm:$0xff] }
 0x321   : > { %v3954_v3 = vmax.f32 %v3922_v29, 0.0  ;;  %v3887_v5 = vsub.f32 %v8761_v34, %v11481_v56  ;;  %v3730_v44 = vpop.f32.mrb[11].mxu0  ;;  %8837 = vmatmul.mubr.f32.gmra.mrb[2].mxu1 %v3952_v59  ;;  %v9572_v59 = vpack.c.bf16 %v4096_v4, %v4095_v1  ;;  %v7497_v1 = vld [vmem:[%s12533_s4 + $0x110] sm:$0xff] }
 0x322   : > { %v3953_v45 = vmax.f32 %v3921_v33, 0.0  ;;  %v3886_v46 = vsub.f32 %v3730_v44, %v11481_v56  ;;  %9551 = vmatpush3.bf16.msra.mxu1 %v9548_v9 }
 0x323   : > { %4026 = vst [vmem:[#allocation3 + $0xb0] sm:$0xff] %v3954_v3  ;;  %v3924_v47 = vmul.f32 %v11486_v63, %v3887_v5  ;;  %9553 = vmatprep.subr.bf16.mxu1 %v9552_v30 }
 0x324   : > { %4025 = vst [vmem:[#allocation3 + $0xa8] sm:$0xff] %v3953_v45  ;;  %v3923_v49 = vmul.f32 %v11486_v63, %v3886_v46  ;;  %v8764_v50 = vpop.f32.mrb[12].mxu0  ;;  %8839 = vmatprep.mubr.f32.mxu1 %v3953_v45 }
 0x325   : > { %v3956_v53 = vmax.f32 %v3924_v47, 0.0  ;;  %v3889_v54 = vsub.f32 %v8764_v50, %v11481_v56  ;;  %v3740_v55 = vpop.f32.mrb[13].mxu0  ;;  %8840 = vmatmul.mubr.f32.gmra.mrb[4].mxu1 %v3954_v3  ;;  %v11584_v3 = vpack.c.bf16 %v7496_v28, %v7495_v62  ;;  %v11690_v62 = vld [vmem:[#allocation3 + $0x4f] sm:$0xff]  ;;  %v7503_v28 = vld [vmem:[%s12533_s4 + $0x140] sm:$0xff] }
 0x326   : > { %v3955_v57 = vmax.f32 %v3923_v49, 0.0  ;;  %v3888_v7 = vsub.f32 %v3740_v55, %v11481_v56  ;;  %9555 = vmatpush3.bf16.msra.mxu1 %v9552_v30 }
 0x327   : > { %4028 = vst [vmem:[#allocation3 + $0xd0] sm:$0xff] %v3956_v53  ;;  %v3926_v35 = vmul.f32 %v11486_v63, %v3889_v54  ;;  %9557 = vmatprep.subr.bf16.mxu1 %v9556_v48 }
 0x328   : > { %4027 = vst [vmem:[#allocation3 + $0xc8] sm:$0xff] %v3955_v57  ;;  %v3925_v12 = vmul.f32 %v11486_v63, %v3888_v7  ;;  %v8767_v13 = vpop.f32.mrb[14].mxu0  ;;  %8842 = vmatprep.mubr.f32.mxu1 %v3955_v57 }
 0x329   : > { %v3958_v16 = vmax.f32 %v3926_v35, 0.0  ;;  %v3891_v17 = vsub.f32 %v8767_v13, %v11481_v56  ;;  %v3750_v18 = vpop.f32.mrb[15].mxu0  ;;  %8843 = vmatmul.mubr.f32.gmra.mrb[6].mxu1 %v3956_v53 }
 0x32a   : > { %v3957_v19 = vmax.f32 %v3925_v12, 0.0  ;;  %v3890_v20 = vsub.f32 %v3750_v18, %v11481_v56  ;;  %9559 = vmatpush3.bf16.msra.mxu1 %v9556_v48 }
 0x32b   : > { %4030 = vst [vmem:[#allocation3 + $0xf0] sm:$0xff] %v3958_v16  ;;  %v3928_v21 = vmul.f32 %v11486_v63, %v3891_v17  ;;  %9561 = vmatprep.subr.bf16.mxu1 %v9560_v43 }
 0x32c   : > { %4029 = vst [vmem:[#allocation3 + $0xe8] sm:$0xff] %v3957_v19  ;;  %v3927_v23 = vmul.f32 %v11486_v63, %v3890_v20  ;;  %v8770_v24 = vpop.f32.mrb[16].mxu0  ;;  %8845 = vmatprep.mubr.f32.mxu1 %v3957_v19 }
 0x32d   : > { %v3960_v27 = vmax.f32 %v3928_v21, 0.0  ;;  %v3893_v31 = vsub.f32 %v8770_v24, %v11481_v56  ;;  %v3760_v32 = vpop.f32.mrb[17].mxu0  ;;  %8846 = vmatmul.mubr.f32.gmra.mrb[8].mxu1 %v3958_v16 }
 0x32e   : > { %v3959_v37 = vmax.f32 %v3927_v23, 0.0  ;;  %v3892_v38 = vsub.f32 %v3760_v32, %v11481_v56  ;;  %9563 = vmatpush3.bf16.msra.mxu1 %v9560_v43 }
 0x32f   : > { %4032 = vst [vmem:[#allocation3 + $0x110] sm:$0xff] %v3960_v27  ;;  %v3930_v41 = vmul.f32 %v11486_v63, %v3893_v31  ;;  %9565 = vmatprep.subr.bf16.mxu1 %v9564_v22 }
 0x330   : > { %4031 = vst [vmem:[#allocation3 + $0x108] sm:$0xff] %v3959_v37  ;;  %v3929_v2 = vmul.f32 %v11486_v63, %v3892_v38  ;;  %v8773_v39 = vpop.f32.mrb[18].mxu0  ;;  %8848 = vmatprep.mubr.f32.mxu1 %v3959_v37 }
 0x331   : > { %v3962_v8 = vmax.f32 %v3930_v41, 0.0  ;;  %v3895_v9 = vsub.f32 %v8773_v39, %v11481_v56  ;;  %v3770_v10 = vpop.f32.mrb[19].mxu0  ;;  %8849 = vmatmul.mubr.f32.gmra.mrb[10].mxu1 %v3960_v27 }
 0x332   : > { %v3961_v6 = vmax.f32 %v3929_v2, 0.0  ;;  %v3894_v11 = vsub.f32 %v3770_v10, %v11481_v56  ;;  %9567 = vmatpush3.bf16.msra.mxu1 %v9564_v22  ;;  %v7500_v10 = vld [vmem:[%s12533_s4 + $0x128] sm:$0xff] }
 0x333   : > { %4034 = vst [vmem:[#allocation3 + $0x130] sm:$0xff] %v3962_v8  ;;  %v3932_v58 = vmul.f32 %v11486_v63, %v3895_v9  ;;  %9569 = vmatprep.subr.bf16.mxu1 %v9568_v42  ;;  %v7499_v9 = vld [vmem:[%s12533_s4 + $0x120] sm:$0xff] }
 0x334   : > { %4033 = vst [vmem:[#allocation3 + $0x128] sm:$0xff] %v3961_v6  ;;  %v3931_v60 = vmul.f32 %v11486_v63, %v3894_v11  ;;  %v8776_v61 = vpop.f32.mrb[20].mxu0  ;;  %8851 = vmatprep.mubr.f32.mxu1 %v3961_v6  ;;  %v11674_v6 = vld [vmem:[#allocation3 + $0x27] sm:$0xff]  ;;  %v9584_v11 = vpack.c.bf16 %v7500_v10, %v7499_v9 }
 0x335   : > { %v3964_v29 = vmax.f32 %v3932_v58, 0.0  ;;  %v3897_v30 = vsub.f32 %v8776_v61, %v11481_v56  ;;  %v3780_v33 = vpop.f32.mrb[21].mxu0  ;;  %8852 = vmatmul.mubr.f32.gmra.mrb[12].mxu1 %v3962_v8  ;;  %v11678_v58 = vld [vmem:[#allocation3 + $0x2f] sm:$0xff] }
 0x336   : > { %v11580_v34 = vmax.f32 %v3931_v60, 0.0  ;;  %v3896_v40 = vsub.f32 %v3780_v33, %v11481_v56  ;;  %9571 = vmatpush3.bf16.msra.mxu1 %v9568_v42  ;;  %v7502_v60 = vld [vmem:[%s12533_s4 + $0x138] sm:$0xff] }
 0x337   : > { %4036 = vst [vmem:[#allocation3 + $0x150] sm:$0xff] %v3964_v29  ;;  %v3934_v0 = vmul.f32 %v11486_v63, %v3897_v30  ;;  %9573 = vmatprep.subr.bf16.mxu1 %v9572_v59  ;;  %v11699_v30 = vld [vmem:[#allocation3 + $0x67] sm:$0xff] }
 0x338   : > { %4035 = vst [vmem:[#allocation3 + $0x148] sm:$0xff] %v11580_v34  ;;  %v3933_v5 = vmul.f32 %v11486_v63, %v3896_v40  ;;  %v8779_v44 = vpop.f32.mrb[22].mxu0  ;;  %8854 = vmatprep.mubr.f32.mxu1 %v11580_v34  ;;  %v11702_v40 = vld [vmem:[#allocation3 + $0x6f] sm:$0xff] }
 0x339   : > { %v11589_v45 = vmax.f32 %v3934_v0, 0.0  ;;  %v3899_v46 = vsub.f32 %v8779_v44, %v11481_v56  ;;  %v3790_v47 = vpop.f32.mrb[23].mxu0  ;;  %8855 = vmatmul.mubr.f32.gmra.mrb[14].mxu1 %v3964_v29  ;;  %v7504_v29 = vld [vmem:[%s12533_s4 + $0x148] sm:$0xff]  ;;  %v7505_v0 = vld [vmem:[%s12533_s4 + $0x150] sm:$0xff] }
 0x33a   : > { %v11592_v48 = vmax.f32 %v3933_v5, 0.0  ;;  %v3898_v49 = vsub.f32 %v3790_v47, %v11481_v56  ;;  %9575 = vmatpush3.bf16.msra.mxu1 %v9572_v59  ;;  %v7501_v59 = vld [vmem:[%s12533_s4 + $0x130] sm:$0xff]  ;;  %v9592_v33 = vpack.c.bf16 %v7504_v29, %v7503_v28  ;;  %v11711_v5 = vld [vmem:[#allocation3 + $0x87] sm:$0xff]  ;;  %v7514_v28 = vld [vmem:[%s12533_s4 + $0x198] sm:$0xff] }
 0x33b   : > { %4038 = vst [vmem:[#allocation3 + $0x170] sm:$0xff] %v11589_v45  ;;  %v3936_v50 = vmul.f32 %v11486_v63, %v3899_v46  ;;  %9577 = vmatprep.subr.bf16.mxu1 %v11584_v3  ;;  %v9588_v61 = vpack.c.bf16 %v7502_v60, %v7501_v59  ;;  %v11714_v46 = vld [vmem:[#allocation3 + $0x8f] sm:$0xff]  ;;  %v7507_v47 = vld [vmem:[%s12533_s4 + $0x160] sm:$0xff] }
 0x33c   : > { %4037 = vst [vmem:[#allocation3 + $0x168] sm:$0xff] %v11592_v48  ;;  %v3935_v51 = vmul.f32 %v11486_v63, %v3898_v49  ;;  %v8782_v52 = vpop.f32.mrb[24].mxu0  ;;  %8857 = vmatprep.mubr.f32.mxu1 %v11592_v48  ;;  %v7508_v49 = vld [vmem:[%s12533_s4 + $0x168] sm:$0xff]  ;;  %v4597_v29 = vld [vmem:[#allocation3 + $0x11] sm:$0xff] }
 0x33d   : > { %v11601_v53 = vmax.f32 %v3936_v50, 0.0  ;;  %v3901_v54 = vsub.f32 %v8782_v52, %v11481_v56  ;;  %v3800_v55 = vpop.f32.mrb[25].mxu0  ;;  %8858 = vmatmul.mubr.f32.gmra.mrb[16].mxu1 %v11589_v45  ;;  %v11723_v50 = vld [vmem:[#allocation3 + $0xa7] sm:$0xff]  ;;  %v11726_v52 = vld [vmem:[#allocation3 + $0xaf] sm:$0xff] }
 0x33e   : > { %v11605_v57 = vmax.f32 %v3935_v51, 0.0  ;;  %v3900_v7 = vsub.f32 %v3800_v55, %v11481_v56  ;;  %v9600_v51 = vpack.c.bf16 %v7508_v49, %v7507_v47  ;;  %v7510_v55 = vld [vmem:[%s12533_s4 + $0x178] sm:$0xff]  ;;  %v4596_v59 = vld [vmem:[#allocation3 + $0x9] sm:$0xff] }
 0x33f   : > { %4040 = vst [vmem:[#allocation3 + $0x190] sm:$0xff] %v11601_v53  ;;  %v3938_v35 = vmul.f32 %v11486_v63, %v3901_v54  ;;  %v7509_v54 = vld [vmem:[%s12533_s4 + $0x170] sm:$0xff] }
 0x340   : > { %4039 = vst [vmem:[#allocation3 + $0x188] sm:$0xff] %v11605_v57  ;;  %v3937_v43 = vmul.f32 %v11486_v63, %v3900_v7  ;;  %v8785_v12 = vpop.f32.mrb[26].mxu0  ;;  %8860 = vmatprep.mubr.f32.mxu1 %v11605_v57  ;;  %v11735_v7 = vld [vmem:[#allocation3 + $0xc7] sm:$0xff]  ;;  %v11820_v49 = vld [vmem:[#allocation3 + $0x31] sm:$0xff] }
 0x341   : > { %v11613_v13 = vmax.f32 %v3938_v35, 0.0  ;;  %v3903_v14 = vsub.f32 %v8785_v12, %v11481_v56  ;;  %v3810_v15 = vpop.f32.mrb[27].mxu0  ;;  %8861 = vmatmul.mubr.f32.gmra.mrb[18].mxu1 %v11601_v53  ;;  %v9604_v12 = vpack.c.bf16 %v7510_v55, %v7509_v54  ;;  %v7518_v54 = vld [vmem:[%s12533_s4 + $0x1b8] sm:$0xff]  ;;  %v11829_v55 = vld [vmem:[#allocation3 + $0x49] sm:$0xff] }
 0x342   : > { %v11617_v16 = vmax.f32 %v3937_v43, 0.0  ;;  %v3902_v17 = vsub.f32 %v3810_v15, %v11481_v56  ;;  %v7511_v15 = vld [vmem:[%s12533_s4 + $0x180] sm:$0xff] }
 0x343   : > { %4042 = vst [vmem:[#allocation3 + $0x1b0] sm:$0xff] %v11613_v13  ;;  %v3940_v18 = vmul.f32 %v11486_v63, %v3903_v14  ;;  %v11742_v14 = vld [vmem:[#allocation3 + $0xcf] sm:$0xff] }
 0x344   : > { %4041 = vst [vmem:[#allocation3 + $0x1a8] sm:$0xff] %v11617_v16  ;;  %v3939_v19 = vmul.f32 %v11486_v63, %v3902_v17  ;;  %v8788_v20 = vpop.f32.mrb[28].mxu0  ;;  %8863 = vmatprep.mubr.f32.mxu1 %v11617_v16  ;;  %v7512_v17 = vld [vmem:[%s12533_s4 + $0x188] sm:$0xff] }
 0x345   : > { %v11625_v21 = vmax.f32 %v3940_v18, 0.0  ;;  %v3905_v22 = vsub.f32 %v8788_v20, %v11481_v56  ;;  %v3820_v23 = vpop.f32.mrb[29].mxu0  ;;  %8864 = vmatmul.mubr.f32.gmra.mrb[20].mxu1 %v11613_v13  ;;  %v11751_v18 = vld [vmem:[#allocation3 + $0xe7] sm:$0xff]  ;;  %v11754_v20 = vld [vmem:[#allocation3 + $0xef] sm:$0xff] }
 0x346   : > { %v11629_v24 = vmax.f32 %v3939_v19, 0.0  ;;  %v3904_v25 = vsub.f32 %v3820_v23, %v11481_v56  ;;  %v9608_v19 = vpack.c.bf16 %v7512_v17, %v7511_v15  ;;  %v11760_v23 = vld [vmem:[#allocation3 + $0x10f] sm:$0xff]  ;;  %v7519_v17 = vld [vmem:[%s12533_s4 + $0x1c0] sm:$0xff] }
 0x347   : > { %4044 = vst [vmem:[#allocation3 + $0x1d0] sm:$0xff] %v11625_v21  ;;  %v3942_v26 = vmul.f32 %v11486_v63, %v3905_v22  ;;  %v11757_v22 = vld [vmem:[#allocation3 + $0x107] sm:$0xff]  ;;  %v11832_v15 = vld [vmem:[#allocation3 + $0x51] sm:$0xff] }
 0x348   : > { %4043 = vst [vmem:[#allocation3 + $0x1c8] sm:$0xff] %v11629_v24  ;;  %v3941_v27 = vmul.f32 %v11486_v63, %v3904_v25  ;;  %v8791_v31 = vpop.f32.mrb[30].mxu0  ;;  %8866 = vmatprep.mubr.f32.mxu1 %v11629_v24  ;;  %v11763_v25 = vld [vmem:[#allocation3 + $0x127] sm:$0xff] }
 0x349   : > { %v11637_v32 = vmax.f32 %v3942_v26, 0.0  ;;  %v3907_v37 = vsub.f32 %v8791_v31, %v11481_v56  ;;  %v3830_v38 = vpop.f32.mrb[31].mxu0  ;;  %8867 = vmatmul.mubr.f32.gmra.mrb[22].mxu1 %v11625_v21  ;;  %v11766_v26 = vld [vmem:[#allocation3 + $0x12f] sm:$0xff] }
 0x34a   : > { %v11641_v41 = vmax.f32 %v3941_v27, 0.0  ;;  %v3906_v42 = vsub.f32 %v3830_v38, %v11481_v56  ;;  %v7498_v56 = vld [vmem:[%s12533_s4 + $0x118] sm:$0xff]  ;;  %v11769_v27 = vld [vmem:[#allocation3 + $0x147] sm:$0xff]  ;;  %v11772_v31 = vld [vmem:[#allocation3 + $0x14f] sm:$0xff] }
 0x34b   : > { %4046 = vst [vmem:[#allocation3 + $0x1f0] sm:$0xff] %v11637_v32  ;;  %v11646_v2 = vmul.f32 %v11486_v63, %v3907_v37  ;;  %v11775_v37 = vld [vmem:[#allocation3 + $0x167] sm:$0xff]  ;;  %v11778_v38 = vld [vmem:[#allocation3 + $0x16f] sm:$0xff] }
 0x34c   : > { %4045 = vst [vmem:[#allocation3 + $0x1e8] sm:$0xff] %v11641_v41  ;;  %v11650_v39 = vmul.f32 %v11486_v63, %v3906_v42  ;;  %8869 = vmatprep.mubr.f32.mxu1 %v11641_v41  ;;  %v9580_v63 = vpack.c.bf16 %v7498_v56, %v7497_v1  ;;  %v11781_v42 = vld [vmem:[#allocation3 + $0x187] sm:$0xff]  ;;  %v11784_v1 = vld [vmem:[#allocation3 + $0x18f] sm:$0xff] }
 0x34d   : > { %v12593_v4 = vmax.f32 %v11646_v2, 0.0  ;;  %8870 = vmatmul.mubr.f32.gmra.mrb[24].mxu1 %v11637_v32  ;;  %v11787_v56 = vld [vmem:[#allocation3 + $0x1a7] sm:$0xff] }
 0x34e   : > { %v12594_v8 = vmax.f32 %v11650_v39, 0.0  ;;  %8904 = vmatprep.mubr.f32.mxu1 %v11508_v36 }
 0x34f   : > { %4048 = vst [vmem:[#allocation3 + $0x210] sm:$0xff] %v12593_v4  ;;  %v11793_v9 = vld [vmem:[#allocation3 + $0x1c7] sm:$0xff]  ;;  %v11796_v10 = vld [vmem:[#allocation3 + $0x1cf] sm:$0xff] }
 0x350   : > { %4047 = vst [vmem:[#allocation3 + $0x208] sm:$0xff] %v12594_v8  ;;  %v11737_v35 = vpop.f32.mrb[32].mxu0  ;;  %v11877_v4 = vld [vmem:[#allocation3 + $0xc9] sm:$0xff] }
 0x351   : > { %8905 = vmatmul.mubr.f32.vlgmr.msra.gmra.mrb[26].mxu1 %v11508_v36  ;;  %v11687_v36 = vld [vmem:[#allocation3 + $0x47] sm:$0xff]  ;;  %12676 = vst [vmem:[#allocation4_spill] sm:$0xff] %v11737_v35  ;;  %v11740_v43 = vpop.f32.mrb[33].mxu0  ;;  %v11898_v35 = vld [vmem:[#allocation3 + $0x111] sm:$0xff] }
 0x352   : > { %9579 = vmatpush3.bf16.msra.mxu1 %v11584_v3  ;;  %8907 = vmatprep.mubr.f32.mxu1 %v11674_v6  ;;  %v7506_v3 = vld [vmem:[%s12533_s4 + $0x158] sm:$0xff]  ;;  %12677 = vst [vmem:[#allocation5_spill] sm:$0xff] %v11740_v43  ;;  %v7528_v8 = vld [vmem:[%s12533_s4 + $0x208] sm:$0xff]  ;;  %12680 = vst [vmem:[#allocation8_spill] sm:$0xff] %v11898_v35 }
 0x353   : > { %9581 = vmatprep.subr.bf16.mxu1 %v9580_v63  ;;  %v9596_v44 = vpack.c.bf16 %v7506_v3, %v7505_v0  ;;  %v11802_v60 = vld [vmem:[#allocation3 + $0x1ef] sm:$0xff]  ;;  %v7515_v0 = vld [vmem:[%s12533_s4 + $0x1a0] sm:$0xff] }
 0x354   : > { %v7516_v3 = vld [vmem:[%s12533_s4 + $0x1a8] sm:$0xff] }
 0x355   : > { %8908 = vmatmul.mubr.f32.gmra.mrb[28].mxu1 %v11678_v58  ;;  %v9616_v47 = vpack.c.bf16 %v7516_v3, %v7515_v0  ;;  %v11853_v0 = vld [vmem:[#allocation3 + $0x89] sm:$0xff] }
 0x356   : > { %8910 = vmatprep.mubr.f32.mxu1 %v11687_v36  ;;  %9583 = vmatpush3.bf16.msra.mxu1 %v9580_v63  ;;  %v11790_v63 = vld [vmem:[#allocation3 + $0x1af] sm:$0xff] }
 0x357   : > { %9585 = vmatprep.subr.bf16.mxu1 %v9584_v11  ;;  %v11889_v43 = vld [vmem:[#allocation3 + $0xe9] sm:$0xff] }
 0x359   : > { %8911 = vmatmul.mubr.f32.gmra.mrb[30].mxu1 %v11690_v62 }
 0x35a   : > { %8913 = vmatprep.mubr.f32.mxu1 %v11699_v30  ;;  %9587 = vmatpush3.bf16.msra.mxu1 %v9584_v11  ;;  %v11799_v11 = vld [vmem:[#allocation3 + $0x1e7] sm:$0xff] }
 0x35b   : > { %9589 = vmatprep.subr.bf16.mxu1 %v9588_v61 }
 0x35d   : > { %8914 = vmatmul.mubr.f32.gmra.mrb[0].mxu1 %v11702_v40 }
 0x35e   : > { %8916 = vmatprep.mubr.f32.mxu1 %v11711_v5  ;;  %9591 = vmatpush3.bf16.msra.mxu1 %v9588_v61  ;;  %v7513_v61 = vld [vmem:[%s12533_s4 + $0x190] sm:$0xff] }
 0x35f   : > { %9593 = vmatprep.subr.bf16.mxu1 %v9592_v33 }
 0x361   : > { %8917 = vmatmul.mubr.f32.gmra.mrb[2].mxu1 %v11714_v46 }
 0x362   : > { %8919 = vmatprep.mubr.f32.mxu1 %v11723_v50  ;;  %9595 = vmatpush3.bf16.msra.mxu1 %v9592_v33  ;;  %v9612_v33 = vpack.c.bf16 %v7514_v28, %v7513_v61  ;;  %v11844_v28 = vld [vmem:[#allocation3 + $0x71] sm:$0xff] }
 0x363   : > { %9597 = vmatprep.subr.bf16.mxu1 %v9596_v44 }
 0x365   : > { %8920 = vmatmul.mubr.f32.gmra.mrb[4].mxu1 %v11726_v52 }
 0x366   : > { %8922 = vmatprep.mubr.f32.mxu1 %v11735_v7  ;;  %9599 = vmatpush3.bf16.msra.mxu1 %v9596_v44  ;;  %v11817_v44 = vld [vmem:[#allocation3 + $0x29] sm:$0xff] }
 0x367   : > { %9601 = vmatprep.subr.bf16.mxu1 %v9600_v51 }
 0x369   : > { %8923 = vmatmul.mubr.f32.gmra.mrb[6].mxu1 %v11742_v14 }
 0x36a   : > { %8925 = vmatprep.mubr.f32.mxu1 %v11751_v18  ;;  %9603 = vmatpush3.bf16.msra.mxu1 %v9600_v51  ;;  %v7517_v51 = vld [vmem:[%s12533_s4 + $0x1b0] sm:$0xff] }
 0x36b   : > { %9605 = vmatprep.subr.bf16.mxu1 %v9604_v12 }
 0x36d   : > { %8926 = vmatmul.mubr.f32.gmra.mrb[8].mxu1 %v11754_v20 }
 0x36e   : > { %8928 = vmatprep.mubr.f32.mxu1 %v11757_v22  ;;  %9607 = vmatpush3.bf16.msra.mxu1 %v9604_v12  ;;  %v9620_v12 = vpack.c.bf16 %v7518_v54, %v7517_v51  ;;  %v7523_v51 = vld [vmem:[%s12533_s4 + $0x1e0] sm:$0xff]  ;;  %v7524_v54 = vld [vmem:[%s12533_s4 + $0x1e8] sm:$0xff] }
 0x36f   : > { %9609 = vmatprep.subr.bf16.mxu1 %v9608_v19 }
 0x371   : > { %8929 = vmatmul.mubr.f32.gmra.mrb[10].mxu1 %v11760_v23 }
 0x372   : > { %8931 = vmatprep.mubr.f32.mxu1 %v11763_v25 }
 0x375   : > { %8932 = vmatmul.mubr.f32.gmra.mrb[12].mxu1 %v11766_v26 }
 0x376   : > { %8934 = vmatprep.mubr.f32.mxu1 %v11769_v27 }
 0x379   : > { %8935 = vmatmul.mubr.f32.gmra.mrb[14].mxu1 %v11772_v31 }
 0x37a   : > { %8937 = vmatprep.mubr.f32.mxu1 %v11775_v37 }
 0x37d   : > { %8938 = vmatmul.mubr.f32.gmra.mrb[16].mxu1 %v11778_v38 }
 0x37e   : > { %8940 = vmatprep.mubr.f32.mxu1 %v11781_v42 }
 0x381   : > { %8941 = vmatmul.mubr.f32.gmra.mrb[18].mxu1 %v11784_v1 }
 0x382   : > { %8943 = vmatprep.mubr.f32.mxu1 %v11787_v56 }
 0x385   : > { %8944 = vmatmul.mubr.f32.gmra.mrb[20].mxu1 %v11790_v63 }
 0x386   : > { %8946 = vmatprep.mubr.f32.mxu1 %v11793_v9 }
 0x389   : > { %8947 = vmatmul.mubr.f32.gmra.mrb[22].mxu1 %v11796_v10 }
 0x38a   : > { %8949 = vmatprep.mubr.f32.mxu1 %v11799_v11 }
 0x38d   : > { %8950 = vmatmul.mubr.f32.gmra.mrb[24].mxu1 %v11802_v60 }
 0x38e   : > { %8984 = vmatprep.mubr.f32.mxu1 %v4596_v59  ;;  %v11841_v59 = vld [vmem:[#allocation3 + $0x69] sm:$0xff] }
 0x391   : > { %8985 = vmatmul.mubr.f32.vlgmr.msra.gmra.mrb[26].mxu1 %v4597_v29  ;;  %v7521_v29 = vld [vmem:[%s12533_s4 + $0x1d0] sm:$0xff] }
 0x392   : > { %9611 = vmatpush3.bf16.msra.mxu1 %v9608_v19  ;;  %8987 = vmatprep.mubr.f32.mxu1 %v11817_v44  ;;  %v7520_v19 = vld [vmem:[%s12533_s4 + $0x1c8] sm:$0xff] }
 0x393   : > { %9613 = vmatprep.subr.bf16.mxu1 %v9612_v33  ;;  %v9624_v61 = vpack.c.bf16 %v7520_v19, %v7519_v17  ;;  %v11865_v17 = vld [vmem:[#allocation3 + $0xa9] sm:$0xff]  ;;  %v11868_v19 = vld [vmem:[#allocation3 + $0xb1] sm:$0xff] }
 0x395   : > { %8988 = vmatmul.mubr.f32.gmra.mrb[28].mxu1 %v11820_v49 }
 0x396   : > { %8990 = vmatprep.mubr.f32.mxu1 %v11829_v55  ;;  %9615 = vmatpush3.bf16.msra.mxu1 %v9612_v33  ;;  %v7522_v33 = vld [vmem:[%s12533_s4 + $0x1d8] sm:$0xff] }
 0x397   : > { %9617 = vmatprep.subr.bf16.mxu1 %v9616_v47  ;;  %v9628_v3 = vpack.c.bf16 %v7522_v33, %v7521_v29  ;;  %v7525_v29 = vld [vmem:[%s12533_s4 + $0x1f0] sm:$0xff]  ;;  %v7526_v33 = vld [vmem:[%s12533_s4 + $0x1f8] sm:$0xff] }
 0x399   : > { %8991 = vmatmul.mubr.f32.gmra.mrb[30].mxu1 %v11832_v15 }
 0x39a   : > { %8993 = vmatprep.mubr.f32.mxu1 %v11841_v59  ;;  %9619 = vmatpush3.bf16.msra.mxu1 %v9616_v47  ;;  %v11856_v47 = vld [vmem:[#allocation3 + $0x91] sm:$0xff] }
 0x39b   : > { %9621 = vmatprep.subr.bf16.mxu1 %v9620_v12 }
 0x39d   : > { %8994 = vmatmul.mubr.f32.gmra.mrb[0].mxu1 %v11844_v28 }
 0x39e   : > { %8996 = vmatprep.mubr.f32.mxu1 %v11853_v0  ;;  %9623 = vmatpush3.bf16.msra.mxu1 %v9620_v12  ;;  %v9632_v12 = vpack.c.bf16 %v7524_v54, %v7523_v51  ;;  %v11880_v51 = vld [vmem:[#allocation3 + $0xd1] sm:$0xff]  ;;  %v7527_v54 = vld [vmem:[%s12533_s4 + $0x200] sm:$0xff] }
 0x39f   : > { %9625 = vmatprep.subr.bf16.mxu1 %v9624_v61  ;;  %12678 = vst [vmem:[#allocation6_spill] sm:$0xff] %v11880_v51 }
 0x3a1   : > { %8997 = vmatmul.mubr.f32.gmra.mrb[2].mxu1 %v11856_v47 }
 0x3a2   : > { %8999 = vmatprep.mubr.f32.mxu1 %v11865_v17  ;;  %9627 = vmatpush3.bf16.msra.mxu1 %v9624_v61  ;;  %v9636_v61 = vpack.c.bf16 %v7526_v33, %v7525_v29  ;;  %v11892_v29 = vld [vmem:[#allocation3 + $0xf1] sm:$0xff]  ;;  %v11895_v33 = vld [vmem:[#allocation3 + $0x109] sm:$0xff] }
 0x3a3   : > { %9629 = vmatprep.subr.bf16.mxu1 %v9628_v3  ;;  %12679 = vst [vmem:[#allocation7_spill] sm:$0xff] %v11895_v33 }
 0x3a5   : > { %9000 = vmatmul.mubr.f32.gmra.mrb[4].mxu1 %v11868_v19 }
 0x3a6   : > { %9002 = vmatprep.mubr.f32.mxu1 %v11877_v4  ;;  %9631 = vmatpush3.bf16.msra.mxu1 %v9628_v3  ;;  %v9640_v3 = vpack.c.bf16 %v7528_v8, %v7527_v54  ;;  %v11907_v8 = vld [vmem:[#allocation3 + $0x149] sm:$0xff]  ;;  %v11910_v54 = vld [vmem:[#allocation3 + $0x151] sm:$0xff] }
 0x3a7   : > { %9633 = vmatprep.subr.bf16.mxu1 %v9632_v12  ;;  %12683 = vst [vmem:[#allocation11_spill] sm:$0xff] %v11907_v8  ;;  %12684 = vst [vmem:[#allocation12_spill] sm:$0xff] %v11910_v54 }
 0x3a9   : > { %9003 = vmatmul.mubr.f32.gmra.mrb[6].mxu1 %v11880_v51  ;;  %v11901_v51 = vld [vmem:[#allocation3 + $0x129] sm:$0xff] }
 0x3aa   : > { %9005 = vmatprep.mubr.f32.mxu1 %v11889_v43  ;;  %9635 = vmatpush3.bf16.msra.mxu1 %v9632_v12  ;;  %12681 = vst [vmem:[#allocation9_spill] sm:$0xff] %v11901_v51  ;;  %v11904_v12 = vld [vmem:[#allocation3 + $0x131] sm:$0xff] }
 0x3ab   : > { %9637 = vmatprep.subr.bf16.mxu1 %v9636_v61  ;;  %12682 = vst [vmem:[#allocation10_spill] sm:$0xff] %v11904_v12 }
 0x3ad   : > { %9006 = vmatmul.mubr.f32.gmra.mrb[8].mxu1 %v11892_v29 }
 0x3ae   : > { %9008 = vmatprep.mubr.f32.mxu1 %v11895_v33  ;;  %9639 = vmatpush3.bf16.msra.mxu1 %v9636_v61  ;;  %v11913_v61 = vld [vmem:[#allocation3 + $0x169] sm:$0xff] }
 0x3af   : > { %9641 = vmatprep.subr.bf16.mxu1 %v9640_v3  ;;  %12685 = vst [vmem:[#allocation13_spill] sm:$0xff] %v11913_v61 }
 0x3b1   : > { %9009 = vmatmul.mubr.f32.gmra.mrb[10].mxu1 %v11898_v35  ;;  %v11916_v35 = vld [vmem:[#allocation3 + $0x171] sm:$0xff] }
 0x3b2   : > { %9011 = vmatprep.mubr.f32.mxu1 %v11901_v51  ;;  %12686 = vst [vmem:[#allocation14_spill] sm:$0xff] %v11916_v35  ;;  %v11919_v51 = vld [vmem:[#allocation3 + $0x189] sm:$0xff] }
 0x3b3   : > { %12687 = vst [vmem:[#allocation15_spill] sm:$0xff] %v11919_v51 }
 0x3b5   : > { %9012 = vmatmul.mubr.f32.gmra.mrb[12].mxu1 %v11904_v12  ;;  %v11922_v12 = vld [vmem:[#allocation3 + $0x191] sm:$0xff] }
 0x3b6   : > { %9014 = vmatprep.mubr.f32.mxu1 %v11907_v8  ;;  %12688 = vst [vmem:[#allocation16_spill] sm:$0xff] %v11922_v12  ;;  %v11925_v8 = vld [vmem:[#allocation3 + $0x1a9] sm:$0xff] }
 0x3b7   : > { %12689 = vst [vmem:[#allocation17_spill] sm:$0xff] %v11925_v8 }
 0x3b9   : > { %9015 = vmatmul.mubr.f32.gmra.mrb[14].mxu1 %v11910_v54  ;;  %v11928_v54 = vld [vmem:[#allocation3 + $0x1b1] sm:$0xff] }
 0x3ba   : > { %9017 = vmatprep.mubr.f32.mxu1 %v11913_v61  ;;  %12690 = vst [vmem:[#allocation18_spill] sm:$0xff] %v11928_v54  ;;  %v11931_v61 = vld [vmem:[#allocation3 + $0x1c9] sm:$0xff] }
 0x3bb   : > { %12691 = vst [vmem:[#allocation22_spill] sm:$0xff] %v11931_v61 }
 0x3bd   : > { %9018 = vmatmul.mubr.f32.gmra.mrb[16].mxu1 %v11916_v35  ;;  %v11934_v35 = vld [vmem:[#allocation3 + $0x1d1] sm:$0xff] }
 0x3be   : > { %9020 = vmatprep.mubr.f32.mxu1 %v11919_v51  ;;  %12692 = vst [vmem:[#allocation24_spill] sm:$0xff] %v11934_v35  ;;  %v11937_v51 = vld [vmem:[#allocation3 + $0x1e9] sm:$0xff] }
 0x3bf   : > { %12693 = vst [vmem:[#allocation26_spill] sm:$0xff] %v11937_v51 }
 0x3c1   : > { %9021 = vmatmul.mubr.f32.gmra.mrb[18].mxu1 %v11922_v12  ;;  %v11940_v12 = vld [vmem:[#allocation3 + $0x1f1] sm:$0xff] }
 0x3c2   : > { %9023 = vmatprep.mubr.f32.mxu1 %v11925_v8  ;;  %v7529_v8 = vld [vmem:[%s12533_s4 + $0x210] sm:$0xff] }
 0x3c5   : > { %9024 = vmatmul.mubr.f32.gmra.mrb[20].mxu1 %v11928_v54  ;;  %v7530_v54 = vld [vmem:[%s12533_s4 + $0x218] sm:$0xff] }
 0x3c6   : > { %9026 = vmatprep.mubr.f32.mxu1 %v11931_v61  ;;  %v9644_v61 = vpack.c.bf16 %v7530_v54, %v7529_v8  ;;  %v7534_v8 = vld [vmem:[%s12533_s4 + $0x238] sm:$0xff] }
 0x3c9   : > { %9027 = vmatmul.mubr.f32.gmra.mrb[22].mxu1 %v11934_v35  ;;  %v7531_v35 = vld [vmem:[%s12533_s4 + $0x220] sm:$0xff] }
 0x3ca   : > { %9029 = vmatprep.mubr.f32.mxu1 %v11937_v51  ;;  %v7532_v51 = vld [vmem:[%s12533_s4 + $0x228] sm:$0xff] }
 0x3cb   : > { %v9648_v33 = vpack.c.bf16 %v7532_v51, %v7531_v35  ;;  %v7536_v35 = vld [vmem:[%s12533_s4 + $0x248] sm:$0xff]  ;;  %v7538_v51 = vld [vmem:[%s12533_s4 + $0x258] sm:$0xff] }
 0x3cd   : > { %9030 = vmatmul.mubr.f32.gmra.mrb[24].mxu1 %v11940_v12 }
 0x3ce   : > { %9064 = vmatprep.mubr.f32.mxu1 %v11674_v6  ;;  %v7533_v6 = vld [vmem:[%s12533_s4 + $0x230] sm:$0xff] }
 0x3d1   : > { %9065 = vmatmul.mubr.f32.vlgmr.msra.gmra.mrb[26].mxu1 %v11678_v58  ;;  %v9652_v58 = vpack.c.bf16 %v7534_v8, %v7533_v6 }
 0x3d2   : > { %9643 = vmatpush3.bf16.msra.mxu1 %v9640_v3  ;;  %9067 = vmatprep.mubr.f32.mxu1 %v11687_v36  ;;  %v7535_v36 = vld [vmem:[%s12533_s4 + $0x240] sm:$0xff]  ;;  %v7540_v3 = vld [vmem:[%s12533_s4 + $0x268] sm:$0xff] }
 0x3d3   : > { %9645 = vmatprep.subr.bf16.mxu1 %v9644_v61 }
 0x3d5   : > { %9068 = vmatmul.mubr.f32.gmra.mrb[28].mxu1 %v11690_v62  ;;  %v9656_v62 = vpack.c.bf16 %v7536_v35, %v7535_v36  ;;  %v7552_v36 = vld [vmem:[%s12533_s4 + $0x2c8] sm:$0xff] }
 0x3d6   : > { %9070 = vmatprep.mubr.f32.mxu1 %v11699_v30  ;;  %9647 = vmatpush3.bf16.msra.mxu1 %v9644_v61  ;;  %v7537_v30 = vld [vmem:[%s12533_s4 + $0x250] sm:$0xff]  ;;  %v7544_v61 = vld [vmem:[%s12533_s4 + $0x288] sm:$0xff] }
 0x3d7   : > { %9649 = vmatprep.subr.bf16.mxu1 %v9648_v33  ;;  %v12071_v35 = vld [vmem:[#allocation3 + $0x88] sm:$0xff] }
 0x3d9   : > { %9071 = vmatmul.mubr.f32.gmra.mrb[30].mxu1 %v11702_v40  ;;  %v9660_v40 = vpack.c.bf16 %v7538_v51, %v7537_v30  ;;  %v12074_v30 = vld [vmem:[#allocation3 + $0x90] sm:$0xff] }
 0x3da   : > { %9073 = vmatprep.mubr.f32.mxu1 %v11711_v5  ;;  %9651 = vmatpush3.bf16.msra.mxu1 %v9648_v33  ;;  %v7539_v5 = vld [vmem:[%s12533_s4 + $0x260] sm:$0xff]  ;;  %v7542_v33 = vld [vmem:[%s12533_s4 + $0x278] sm:$0xff]  ;;  %v7553_v51 = vld [vmem:[%s12533_s4 + $0x2d0] sm:$0xff] }
 0x3db   : > { %9653 = vmatprep.subr.bf16.mxu1 %v9652_v58 }
 0x3dd   : > { %9074 = vmatmul.mubr.f32.gmra.mrb[0].mxu1 %v11714_v46  ;;  %v9664_v46 = vpack.c.bf16 %v7540_v3, %v7539_v5  ;;  %v12083_v5 = vld [vmem:[#allocation3 + $0xa8] sm:$0xff] }
 0x3de   : > { %9076 = vmatprep.mubr.f32.mxu1 %v11723_v50  ;;  %9655 = vmatpush3.bf16.msra.mxu1 %v9652_v58  ;;  %v7541_v50 = vld [vmem:[%s12533_s4 + $0x270] sm:$0xff]  ;;  %v7551_v58 = vld [vmem:[%s12533_s4 + $0x2c0] sm:$0xff] }
 0x3df   : > { %9657 = vmatprep.subr.bf16.mxu1 %v9656_v62 }
 0x3e1   : > { %9077 = vmatmul.mubr.f32.gmra.mrb[2].mxu1 %v11726_v52  ;;  %v9668_v52 = vpack.c.bf16 %v7542_v33, %v7541_v50  ;;  %v7555_v50 = vld [vmem:[%s12533_s4 + $0x2e0] sm:$0xff]  ;;  %v7556_v33 = vld [vmem:[%s12533_s4 + $0x2e8] sm:$0xff] }
 0x3e2   : > { %9079 = vmatprep.mubr.f32.mxu1 %v11735_v7  ;;  %9659 = vmatpush3.bf16.msra.mxu1 %v9656_v62  ;;  %v7543_v7 = vld [vmem:[%s12533_s4 + $0x280] sm:$0xff]  ;;  %v9688_v62 = vpack.c.bf16 %v7552_v36, %v7551_v58  ;;  %v12132_v58 = vld [vmem:[#allocation3 + $0x150] sm:$0xff] }
 0x3e3   : > { %9661 = vmatprep.subr.bf16.mxu1 %v9660_v40  ;;  %v12696_v36 = vld [vmem:[#allocation6_spill] sm:$0xff] }
 0x3e5   : > { %9080 = vmatmul.mubr.f32.gmra.mrb[4].mxu1 %v11742_v14  ;;  %v9672_v14 = vpack.c.bf16 %v7544_v61, %v7543_v7  ;;  %v9696_v7 = vpack.c.bf16 %v7556_v33, %v7555_v50  ;;  %v12098_v61 = vld [vmem:[#allocation3 + $0xd0] sm:$0xff]  ;;  %v12701_v33 = vld [vmem:[#allocation11_spill] sm:$0xff] }
 0x3e6   : > { %9082 = vmatprep.mubr.f32.mxu1 %v11751_v18  ;;  %9663 = vmatpush3.bf16.msra.mxu1 %v9660_v40  ;;  %v7554_v40 = vld [vmem:[%s12533_s4 + $0x2d8] sm:$0xff]  ;;  %v12700_v50 = vld [vmem:[#allocation10_spill] sm:$0xff] }
 0x3e7   : > { %9665 = vmatprep.subr.bf16.mxu1 %v9664_v46  ;;  %v9692_v3 = vpack.c.bf16 %v7554_v40, %v7553_v51  ;;  %v12697_v51 = vld [vmem:[#allocation7_spill] sm:$0xff] }
 0x3e8   : > { %v11998_v54 = vpop.f32.mrb[34].mxu0 }
 0x3e9   : > { %v12006_v6 = vpop.f32.mrb[35].mxu0  ;;  %9083 = vmatmul.mubr.f32.gmra.mrb[6].mxu1 %v11754_v20  ;;  %v12029_v20 = vld [vmem:[#allocation3 + $0x207] sm:$0xff] }
 0x3ea   : > { %9085 = vmatprep.mubr.f32.mxu1 %v11757_v22  ;;  %9667 = vmatpush3.bf16.msra.mxu1 %v9664_v46  ;;  %v12032_v22 = vld [vmem:[#allocation3 + $0x20f] sm:$0xff] }
 0x3eb   : > { %9669 = vmatprep.subr.bf16.mxu1 %v9668_v52  ;;  %v12086_v46 = vld [vmem:[#allocation3 + $0xb0] sm:$0xff] }
 0x3ec   : > { %v12010_v18 = vpop.f32.mrb[36].mxu0 }
 0x3ed   : > { %v12012_v8 = vpop.f32.mrb[37].mxu0  ;;  %9086 = vmatmul.mubr.f32.gmra.mrb[8].mxu1 %v11760_v23  ;;  %v7545_v23 = vld [vmem:[%s12533_s4 + $0x290] sm:$0xff] }
 0x3ee   : > { %9088 = vmatprep.mubr.f32.mxu1 %v11763_v25  ;;  %9671 = vmatpush3.bf16.msra.mxu1 %v9668_v52  ;;  %v7546_v25 = vld [vmem:[%s12533_s4 + $0x298] sm:$0xff]  ;;  %v12095_v52 = vld [vmem:[#allocation3 + $0xc8] sm:$0xff] }
 0x3ef   : > { %9673 = vmatprep.subr.bf16.mxu1 %v9672_v14 }
 0x3f1   : > { %9089 = vmatmul.mubr.f32.gmra.mrb[10].mxu1 %v11766_v26  ;;  %v5208_v26 = vld [vmem:[#allocation3 + $0x28] sm:$0xff] }
 0x3f2   : > { %9091 = vmatprep.mubr.f32.mxu1 %v11769_v27  ;;  %v9676_v27 = vpack.c.bf16 %v7546_v25, %v7545_v23  ;;  %v7558_v23 = vld [vmem:[%s12533_s4 + $0x2f8] sm:$0xff]  ;;  %v12107_v25 = vld [vmem:[#allocation3 + $0xe8] sm:$0xff] }
 0x3f5   : > { %9092 = vmatmul.mubr.f32.gmra.mrb[12].mxu1 %v11772_v31  ;;  %v5209_v31 = vld [vmem:[#allocation3 + $0x30] sm:$0xff] }
 0x3f6   : > { %9094 = vmatprep.mubr.f32.mxu1 %v11775_v37  ;;  %v7547_v37 = vld [vmem:[%s12533_s4 + $0x2a0] sm:$0xff] }
 0x3f9   : > { %9095 = vmatmul.mubr.f32.gmra.mrb[14].mxu1 %v11778_v38  ;;  %v7548_v38 = vld [vmem:[%s12533_s4 + $0x2a8] sm:$0xff] }
 0x3fa   : > { %9097 = vmatprep.mubr.f32.mxu1 %v11781_v42  ;;  %v12047_v42 = vld [vmem:[#allocation3 + $0x48] sm:$0xff] }
 0x3fd   : > { %9098 = vmatmul.mubr.f32.gmra.mrb[16].mxu1 %v11784_v1  ;;  %v9680_v1 = vpack.c.bf16 %v7548_v38, %v7547_v37  ;;  %v7560_v37 = vld [vmem:[%s12533_s4 + $0x308] sm:$0xff] }
 0x3fe   : > { %9100 = vmatprep.mubr.f32.mxu1 %v11787_v56  ;;  %v12050_v56 = vld [vmem:[#allocation3 + $0x50] sm:$0xff]  ;;  %v12119_v38 = vld [vmem:[#allocation3 + $0x108] sm:$0xff] }
 0x401   : > { %9101 = vmatmul.mubr.f32.gmra.mrb[18].mxu1 %v11790_v63  ;;  %v7549_v63 = vld [vmem:[%s12533_s4 + $0x2b0] sm:$0xff] }
 0x402   : > { %9103 = vmatprep.mubr.f32.mxu1 %v11793_v9  ;;  %v7550_v9 = vld [vmem:[%s12533_s4 + $0x2b8] sm:$0xff] }
 0x405   : > { %9104 = vmatmul.mubr.f32.gmra.mrb[20].mxu1 %v11796_v10  ;;  %v12059_v10 = vld [vmem:[#allocation3 + $0x68] sm:$0xff] }
 0x406   : > { %9106 = vmatprep.mubr.f32.mxu1 %v11799_v11  ;;  %v9684_v11 = vpack.c.bf16 %v7550_v9, %v7549_v63  ;;  %v12122_v63 = vld [vmem:[#allocation3 + $0x110] sm:$0xff]  ;;  %v12125_v9 = vld [vmem:[#allocation3 + $0x128] sm:$0xff] }
 0x409   : > { %9107 = vmatmul.mubr.f32.gmra.mrb[22].mxu1 %v11802_v60  ;;  %v12062_v60 = vld [vmem:[#allocation3 + $0x70] sm:$0xff] }
 0x40a   : > { %9109 = vmatprep.mubr.f32.mxu1 %v12029_v20 }
 0x40d   : > { %9110 = vmatmul.mubr.f32.gmra.mrb[24].mxu1 %v12032_v22 }
 0x40e   : > { %9144 = vmatprep.mubr.f32.mxu1 %v5208_v26 }
 0x411   : > { %9145 = vmatmul.mubr.f32.vlgmr.msra.gmra.mrb[26].mxu1 %v5209_v31  ;;  %v7559_v31 = vld [vmem:[%s12533_s4 + $0x300] sm:$0xff] }
 0x412   : > { %9675 = vmatpush3.bf16.msra.mxu1 %v9672_v14  ;;  %9147 = vmatprep.mubr.f32.mxu1 %v12047_v42  ;;  %v7557_v14 = vld [vmem:[%s12533_s4 + $0x2f0] sm:$0xff] }
 0x413   : > { %9677 = vmatprep.subr.bf16.mxu1 %v9676_v27  ;;  %v9700_v26 = vpack.c.bf16 %v7558_v23, %v7557_v14  ;;  %v12703_v14 = vld [vmem:[#allocation13_spill] sm:$0xff]  ;;  %v12705_v23 = vld [vmem:[#allocation15_spill] sm:$0xff] }
 0x415   : > { %9148 = vmatmul.mubr.f32.gmra.mrb[28].mxu1 %v12050_v56 }
 0x416   : > { %9150 = vmatprep.mubr.f32.mxu1 %v12059_v10  ;;  %9679 = vmatpush3.bf16.msra.mxu1 %v9676_v27  ;;  %v12110_v27 = vld [vmem:[#allocation3 + $0xf0] sm:$0xff] }
 0x417   : > { %9681 = vmatprep.subr.bf16.mxu1 %v9680_v1 }
 0x419   : > { %9151 = vmatmul.mubr.f32.gmra.mrb[30].mxu1 %v12062_v60 }
 0x41a   : > { %9153 = vmatprep.mubr.f32.mxu1 %v12071_v35  ;;  %9683 = vmatpush3.bf16.msra.mxu1 %v9680_v1  ;;  %v9704_v1 = vpack.c.bf16 %v7560_v37, %v7559_v31  ;;  %v12707_v31 = vld [vmem:[#allocation17_spill] sm:$0xff]  ;;  %v12708_v37 = vld [vmem:[#allocation18_spill] sm:$0xff] }
 0x41b   : > { %9685 = vmatprep.subr.bf16.mxu1 %v9684_v11 }
 0x41d   : > { %9154 = vmatmul.mubr.f32.gmra.mrb[0].mxu1 %v12074_v30 }
 0x41e   : > { %9156 = vmatprep.mubr.f32.mxu1 %v12083_v5  ;;  %9687 = vmatpush3.bf16.msra.mxu1 %v9684_v11  ;;  %v12128_v11 = vld [vmem:[#allocation3 + $0x130] sm:$0xff] }
 0x41f   : > { %9689 = vmatprep.subr.bf16.mxu1 %v9688_v62 }
 0x421   : > { %9157 = vmatmul.mubr.f32.gmra.mrb[2].mxu1 %v12086_v46 }
 0x422   : > { %9159 = vmatprep.mubr.f32.mxu1 %v12095_v52  ;;  %9691 = vmatpush3.bf16.msra.mxu1 %v9688_v62  ;;  %v7576_v62 = vld [vmem:[%s12533_s4 + $0x388] sm:$0xff] }
 0x423   : > { %9693 = vmatprep.subr.bf16.mxu1 %v9692_v3 }
 0x425   : > { %9160 = vmatmul.mubr.f32.gmra.mrb[4].mxu1 %v12098_v61 }
 0x426   : > { %9162 = vmatprep.mubr.f32.mxu1 %v12107_v25  ;;  %9695 = vmatpush3.bf16.msra.mxu1 %v9692_v3  ;;  %v12698_v3 = vld [vmem:[#allocation8_spill] sm:$0xff] }
 0x427   : > { %9697 = vmatprep.subr.bf16.mxu1 %v9696_v7 }
 0x429   : > { %9163 = vmatmul.mubr.f32.gmra.mrb[6].mxu1 %v12110_v27 }
 0x42a   : > { %9165 = vmatprep.mubr.f32.mxu1 %v12119_v38  ;;  %9699 = vmatpush3.bf16.msra.mxu1 %v9696_v7  ;;  %v12702_v7 = vld [vmem:[#allocation12_spill] sm:$0xff] }
 0x42b   : > { %9701 = vmatprep.subr.bf16.mxu1 %v9700_v26 }
 0x42d   : > { %9166 = vmatmul.mubr.f32.gmra.mrb[8].mxu1 %v12122_v63 }
 0x42e   : > { %9168 = vmatprep.mubr.f32.mxu1 %v12125_v9  ;;  %9703 = vmatpush3.bf16.msra.mxu1 %v9700_v26  ;;  %v12706_v26 = vld [vmem:[#allocation16_spill] sm:$0xff] }
 0x42f   : > { %9705 = vmatprep.subr.bf16.mxu1 %v9704_v1 }
 0x431   : > { %9169 = vmatmul.mubr.f32.gmra.mrb[10].mxu1 %v12128_v11 }
 0x432   : > { %9171 = vmatprep.mubr.f32.mxu1 %v11580_v34  ;;  %v12694_v34 = vmax.f32 %v11650_v39, 0.0  ;;  %v7568_v39 = vld [vmem:[%s12533_s4 + $0x348] sm:$0xff] }
 0x435   : > { %9172 = vmatmul.mubr.f32.gmra.mrb[12].mxu1 %v12132_v58 }
 0x436   : > { %9174 = vmatprep.mubr.f32.mxu1 %v11592_v48  ;;  %v7562_v48 = vld [vmem:[%s12533_s4 + $0x318] sm:$0xff] }
 0x439   : > { %9175 = vmatmul.mubr.f32.gmra.mrb[14].mxu1 %v11589_v45  ;;  %v7561_v45 = vld [vmem:[%s12533_s4 + $0x310] sm:$0xff] }
 0x43a   : > { %9177 = vmatprep.mubr.f32.mxu1 %v11605_v57  ;;  %v9708_v57 = vpack.c.bf16 %v7562_v48, %v7561_v45  ;;  %v12711_v45 = vld [vmem:[#allocation26_spill] sm:$0xff] }
 0x43b   : > { %v12226_v48 = vld [vmem:[#allocation3 + $0x209] sm:$0xff] }
 0x43d   : > { %9178 = vmatmul.mubr.f32.gmra.mrb[16].mxu1 %v11601_v53  ;;  %v12695_v53 = vmax.f32 %v11646_v2, 0.0  ;;  %v7567_v2 = vld [vmem:[%s12533_s4 + $0x340] sm:$0xff] }
 0x43e   : > { %9180 = vmatprep.mubr.f32.mxu1 %v11617_v16  ;;  %v7564_v16 = vld [vmem:[%s12533_s4 + $0x328] sm:$0xff] }
 0x441   : > { %9181 = vmatmul.mubr.f32.gmra.mrb[18].mxu1 %v11613_v13  ;;  %v7563_v13 = vld [vmem:[%s12533_s4 + $0x320] sm:$0xff] }
 0x442   : > { %9183 = vmatprep.mubr.f32.mxu1 %v11629_v24  ;;  %v7565_v24 = vld [vmem:[%s12533_s4 + $0x330] sm:$0xff] }
 0x445   : > { %9184 = vmatmul.mubr.f32.gmra.mrb[20].mxu1 %v11625_v21  ;;  %v9712_v21 = vpack.c.bf16 %v7564_v16, %v7563_v13  ;;  %v6780_v13 = vld [vmem:[%s12535_s6] sm:$0xff] }
 0x446   : > { %9186 = vmatprep.mubr.f32.mxu1 %v11641_v41 }
 0x449   : > { %9187 = vmatmul.mubr.f32.gmra.mrb[22].mxu1 %v11637_v32  ;;  %v7566_v32 = vld [vmem:[%s12533_s4 + $0x338] sm:$0xff] }
 0x44a   : > { %9189 = vmatprep.mubr.f32.mxu1 %v12694_v34  ;;  %v9716_v41 = vpack.c.bf16 %v7566_v32, %v7565_v24  ;;  %v12710_v34 = vld [vmem:[#allocation24_spill] sm:$0xff]  ;;  %v12242_v24 = vld [vmem:[#allocation3 + $0x211] sm:$0xff] }
 0x44b   : > { %v7577_v32 = vld [vmem:[%s12533_s4 + $0x390] sm:$0xff] }
 0x44d   : > { %9190 = vmatmul.mubr.f32.gmra.mrb[24].mxu1 %v12695_v53  ;;  %v6781_v53 = vld [vmem:[%s12535_s6 + $0x8] sm:$0xff] }
 0x44e   : > { %9224 = vmatprep.mubr.f32.mxu1 %v11817_v44  ;;  %v9720_v44 = vpack.c.bf16 %v7568_v39, %v7567_v2  ;;  %v5821_v2 = vld [vmem:[#allocation3 + $0x47] sm:$0xff] }
 0x44f   : > { %v6785_v39 = vld [vmem:[%s12535_s6 + $0x28] sm:$0xff] }
 0x451   : > { %9225 = vmatmul.mubr.f32.vlgmr.msra.gmra.mrb[26].mxu1 %v11820_v49  ;;  %v7569_v49 = vld [vmem:[%s12533_s4 + $0x350] sm:$0xff] }
 0x452   : > { %9707 = vmatpush3.bf16.msra.mxu1 %v9704_v1  ;;  %9227 = vmatprep.mubr.f32.mxu1 %v11829_v55  ;;  %v7570_v55 = vld [vmem:[%s12533_s4 + $0x358] sm:$0xff]  ;;  %v12709_v1 = vld [vmem:[#allocation22_spill] sm:$0xff] }
 0x453   : > { %9709 = vmatprep.subr.bf16.mxu1 %v9708_v57 }
 0x455   : > { %9228 = vmatmul.mubr.f32.gmra.mrb[28].mxu1 %v11832_v15  ;;  %v9724_v15 = vpack.c.bf16 %v7570_v55, %v7569_v49  ;;  %v6784_v49 = vld [vmem:[%s12535_s6 + $0x20] sm:$0xff] }
 0x456   : > { %9230 = vmatprep.mubr.f32.mxu1 %v11841_v59  ;;  %9711 = vmatpush3.bf16.msra.mxu1 %v9708_v57  ;;  %v7571_v59 = vld [vmem:[%s12533_s4 + $0x360] sm:$0xff]  ;;  %v6783_v57 = vld [vmem:[%s12535_s6 + $0x18] sm:$0xff] }
 0x457   : > { %9713 = vmatprep.subr.bf16.mxu1 %v9712_v21  ;;  %v9800_v16 = vpack.c.bf16 %v6783_v57, %v6781_v53  ;;  %v7588_v53 = vld [vmem:[%s12533_s4 + $0x3e8] sm:$0xff] }
 0x458   : > { %v5831_v57 = vld [vmem:[#allocation3 + $0xe7] sm:$0xff] }
 0x459   : > { %9231 = vmatmul.mubr.f32.gmra.mrb[30].mxu1 %v11844_v28  ;;  %v7572_v28 = vld [vmem:[%s12533_s4 + $0x368] sm:$0xff]  ;;  %9801 = vmatprep.subr.bf16.mxu0 %v9800_v16 }
 0x45a   : > { %9233 = vmatprep.mubr.f32.mxu1 %v11853_v0  ;;  %9715 = vmatpush3.bf16.msra.mxu1 %v9712_v21  ;;  %v9728_v0 = vpack.c.bf16 %v7572_v28, %v7571_v59  ;;  %v6782_v21 = vld [vmem:[%s12535_s6 + $0x10] sm:$0xff] }
 0x45b   : > { %9717 = vmatprep.subr.bf16.mxu1 %v9716_v41  ;;  %v6786_v59 = vld [vmem:[%s12535_s6 + $0x30] sm:$0xff] }
 0x45c   : > { %v5822_v28 = vld [vmem:[#allocation3 + $0x4f] sm:$0xff] }
 0x45d   : > { %9234 = vmatmul.mubr.f32.gmra.mrb[0].mxu1 %v11856_v47  ;;  %v7573_v47 = vld [vmem:[%s12533_s4 + $0x370] sm:$0xff] }
 0x45e   : > { %9236 = vmatprep.mubr.f32.mxu1 %v11865_v17  ;;  %9719 = vmatpush3.bf16.msra.mxu1 %v9716_v41  ;;  %v7574_v17 = vld [vmem:[%s12533_s4 + $0x378] sm:$0xff]  ;;  %v5832_v16 = vld [vmem:[#allocation3 + $0xef] sm:$0xff] }
 0x45f   : > { %9721 = vmatprep.subr.bf16.mxu1 %v9720_v44  ;;  %v7578_v41 = vld [vmem:[%s12533_s4 + $0x398] sm:$0xff] }
 0x460   : > { %v9740_v55 = vpack.c.bf16 %v7578_v41, %v7577_v32  ;;  %v5833_v32 = vld [vmem:[#allocation3 + $0x107] sm:$0xff] }
 0x461   : > { %9237 = vmatmul.mubr.f32.gmra.mrb[2].mxu1 %v11868_v19  ;;  %v9732_v19 = vpack.c.bf16 %v7574_v17, %v7573_v47  ;;  %v7580_v47 = vld [vmem:[%s12533_s4 + $0x3a8] sm:$0xff]  ;;  %v9806_v17 = vpack.c.bf16 %v6786_v59, %v6784_v49 }
 0x462   : > { %9239 = vmatprep.mubr.f32.mxu1 %v11877_v4  ;;  %9723 = vmatpush3.bf16.msra.mxu1 %v9720_v44  ;;  %v7575_v4 = vld [vmem:[%s12533_s4 + $0x380] sm:$0xff]  ;;  %v6787_v44 = vld [vmem:[%s12535_s6 + $0x38] sm:$0xff] }
 0x463   : > { %9725 = vmatprep.subr.bf16.mxu1 %v9724_v15  ;;  %v9736_v40 = vpack.c.bf16 %v7576_v62, %v7575_v4  ;;  %v7581_v62 = vld [vmem:[%s12533_s4 + $0x3b0] sm:$0xff]  ;;  %v5835_v49 = vld [vmem:[#allocation3 + $0x127] sm:$0xff] }
 0x464   : > { %v5837_v59 = vld [vmem:[#allocation3 + $0x147] sm:$0xff] }
 0x465   : > { %9240 = vmatmul.mubr.f32.gmra.mrb[4].mxu1 %v12696_v36  ;;  %v5823_v36 = vld [vmem:[#allocation3 + $0x67] sm:$0xff] }
 0x466   : > { %9242 = vmatprep.mubr.f32.mxu1 %v11889_v43  ;;  %9727 = vmatpush3.bf16.msra.mxu1 %v9724_v15  ;;  %v12699_v43 = vld [vmem:[#allocation9_spill] sm:$0xff]  ;;  %v9804_v15 = vpack.c.bf16 %v6787_v44, %v6785_v39  ;;  %v7591_v39 = vld [vmem:[%s12533_s4 + $0x400] sm:$0xff] }
 0x467   : > { %9729 = vmatprep.subr.bf16.mxu1 %v9728_v0  ;;  %v7592_v44 = vld [vmem:[%s12533_s4 + $0x408] sm:$0xff] }
 0x469   : > { %9243 = vmatmul.mubr.f32.gmra.mrb[6].mxu1 %v11892_v29  ;;  %v12704_v29 = vld [vmem:[#allocation14_spill] sm:$0xff] }
 0x46a   : > { %9245 = vmatprep.mubr.f32.mxu1 %v12697_v51  ;;  %9731 = vmatpush3.bf16.msra.mxu1 %v9728_v0  ;;  %v7579_v0 = vld [vmem:[%s12533_s4 + $0x3a0] sm:$0xff]  ;;  %v7582_v51 = vld [vmem:[%s12533_s4 + $0x3b8] sm:$0xff] }
 0x46b   : > { %9733 = vmatprep.subr.bf16.mxu1 %v9732_v19  ;;  %v9744_v4 = vpack.c.bf16 %v7580_v47, %v7579_v0  ;;  %v5839_v0 = vld [vmem:[#allocation3 + $0x167] sm:$0xff]  ;;  %v5840_v47 = vld [vmem:[#allocation3 + $0x16f] sm:$0xff] }
 0x46d   : > { %9246 = vmatmul.mubr.f32.gmra.mrb[8].mxu1 %v12698_v3  ;;  %v6779_v3 = vld [vmem:[%s6778_s18] sm:$0x1]  ;;  %s12392_s18 = scalar_lea.vmem %s12536_s7, %s7611_s12  ;;  %s7171_s12 = sshll.u32 %s10541_s11, 1 }
 0x46e   : > { %9248 = vmatprep.mubr.f32.mxu1 %v12699_v43  ;;  %9735 = vmatpush3.bf16.msra.mxu1 %v9732_v19  ;;  %v5824_v19 = vld [vmem:[#allocation3 + $0x6f] sm:$0xff]  ;;  %v9748_v43 = vpack.c.bf16 %v7582_v51, %v7581_v62  ;;  %v5845_v62 = vld [vmem:[#allocation3 + $0x1c7] sm:$0xff]  ;;  %s316_s21 = scalar_lea.vmem %s12537_s8, %s7171_s12 }
 0x46f   : > { %9737 = vmatprep.subr.bf16.mxu1 %v9736_v40  ;;  %v5846_v51 = vld [vmem:[#allocation3 + $0x1cf] sm:$0xff] }
 0x471   : > { %9249 = vmatmul.mubr.f32.gmra.mrb[10].mxu1 %v12700_v50  ;;  %v5826_v50 = vld [vmem:[#allocation3 + $0x8f] sm:$0xff] }
 0x472   : > { %9251 = vmatprep.mubr.f32.mxu1 %v12701_v33  ;;  %v7583_v33 = vld [vmem:[%s12533_s4 + $0x3c0] sm:$0xff] }
 0x475   : > { %9252 = vmatmul.mubr.f32.gmra.mrb[12].mxu1 %v12702_v7  ;;  %v7584_v7 = vld [vmem:[%s12533_s4 + $0x3c8] sm:$0xff] }
 0x476   : > { %9254 = vmatprep.mubr.f32.mxu1 %v12703_v14  ;;  %v5827_v14 = vld [vmem:[#allocation3 + $0xa7] sm:$0xff] }
 0x479   : > { %9255 = vmatmul.mubr.f32.gmra.mrb[14].mxu1 %v12704_v29  ;;  %v9752_v29 = vpack.c.bf16 %v7584_v7, %v7583_v33  ;;  %v7594_v33 = vld [vmem:[%s12533_s4 + $0x418] sm:$0xff] }
 0x47a   : > { %9257 = vmatprep.mubr.f32.mxu1 %v12705_v23  ;;  %v5828_v23 = vld [vmem:[#allocation3 + $0xaf] sm:$0xff] }
 0x47d   : > { %9258 = vmatmul.mubr.f32.gmra.mrb[16].mxu1 %v12706_v26  ;;  %v7585_v26 = vld [vmem:[%s12533_s4 + $0x3d0] sm:$0xff] }
 0x47e   : > { %9260 = vmatprep.mubr.f32.mxu1 %v12707_v31  ;;  %v7586_v31 = vld [vmem:[%s12533_s4 + $0x3d8] sm:$0xff] }
 0x481   : > { %9261 = vmatmul.mubr.f32.gmra.mrb[18].mxu1 %v12708_v37  ;;  %v5829_v37 = vld [vmem:[#allocation3 + $0xc7] sm:$0xff] }
 0x482   : > { %9263 = vmatprep.mubr.f32.mxu1 %v12709_v1  ;;  %v9756_v1 = vpack.c.bf16 %v7586_v31, %v7585_v26  ;;  %v7602_v26 = vld [vmem:[%s12533_s4 + $0x458] sm:$0xff]  ;;  %v7604_v31 = vld [vmem:[%s12533_s4 + $0x468] sm:$0xff] }
 0x485   : > { %9264 = vmatmul.mubr.f32.gmra.mrb[20].mxu1 %v12710_v34  ;;  %v5830_v34 = vld [vmem:[#allocation3 + $0xcf] sm:$0xff] }
 0x486   : > { %9266 = vmatprep.mubr.f32.mxu1 %v12711_v45  ;;  %v7587_v45 = vld [vmem:[%s12533_s4 + $0x3e0] sm:$0xff] }
 0x489   : > { %9267 = vmatmul.mubr.f32.gmra.mrb[22].mxu1 %v11940_v12  ;;  %v9802_v12 = vpack.c.bf16 %v6782_v21, %v6780_v13  ;;  %v9760_v13 = vpack.c.bf16 %v7588_v53, %v7587_v45  ;;  %v7589_v21 = vld [vmem:[%s12533_s4 + $0x3f0] sm:$0xff]  ;;  %v6151_v45 = vld [vmem:[#allocation3 + $0x1c8] sm:$0xff] }
 0x48a   : > { %9269 = vmatprep.mubr.f32.mxu1 %v12226_v48  ;;  %v6153_v53 = vld [vmem:[#allocation3 + $0x1e8] sm:$0xff] }
 0x48b   : > { %9803 = vmatpush1.bf16.msra.mxu0 %v9802_v12  ;;  %v7590_v12 = vld [vmem:[%s12533_s4 + $0x3f8] sm:$0xff] }
 0x48c   : > { %9805 = vmatprep.subr.bf16.mxu0 %v9804_v15  ;;  %v9764_v41 = vpack.c.bf16 %v7590_v12, %v7589_v21  ;;  %v5836_v15 = vld [vmem:[#allocation3 + $0x12f] sm:$0xff] }
 0x48d   : > { %9270 = vmatmul.mubr.f32.gmra.mrb[24].mxu1 %v12242_v24  ;;  %v6158_v21 = vld [vmem:[#allocation3 + $0x230] sm:$0xff] }
 0x48e   : > { %9304 = vmatprep.mubr.f32.mxu1 %v5821_v2  ;;  %v5834_v2 = vld [vmem:[#allocation3 + $0x10f] sm:$0xff] }
 0x48f   : > { %9807 = vmatpush1.bf16.msra.mxu0 %v9806_v17  ;;  %v5841_v17 = vld [vmem:[#allocation3 + $0x187] sm:$0xff] }
 0x490   : > { %v6433_v12 = vld [vmem:[#allocation3 + $0x49] sm:$0xff] }
 0x491   : > { %9305 = vmatmul.mubr.f32.vlgmr.msra.gmra.mrb[26].mxu1 %v5822_v28  ;;  %v5838_v28 = vld [vmem:[#allocation3 + $0x14f] sm:$0xff] }
 0x492   : > { %9739 = vmatpush3.bf16.msra.mxu1 %v9736_v40  ;;  %9307 = vmatprep.mubr.f32.mxu1 %v5823_v36  ;;  %v5825_v40 = vld [vmem:[#allocation3 + $0x87] sm:$0xff]  ;;  %v5842_v36 = vld [vmem:[#allocation3 + $0x18f] sm:$0xff] }
 0x493   : > { %9741 = vmatprep.subr.bf16.mxu1 %v9740_v55  ;;  %7608 = vmatmul.mubr.msk.f32.vlgmr.msra.gmra.mrb[38].mxu0 %vm6788_vm4, %v6779_v3  ;;  %v5847_v3 = vld [vmem:[#allocation3 + $0x1e7] sm:$0xff] }
 0x495   : > { %9308 = vmatmul.mubr.f32.gmra.mrb[28].mxu1 %v5824_v19  ;;  %v5843_v19 = vld [vmem:[#allocation3 + $0x1a7] sm:$0xff] }
 0x496   : > { %9310 = vmatprep.mubr.f32.mxu1 %v5825_v40  ;;  %9743 = vmatpush3.bf16.msra.mxu1 %v9740_v55  ;;  %v9768_v55 = vpack.c.bf16 %v7592_v44, %v7591_v39  ;;  %v5848_v40 = vld [vmem:[#allocation3 + $0x1ef] sm:$0xff] }
 0x497   : > { %9745 = vmatprep.subr.bf16.mxu1 %v9744_v4  ;;  %v6437_v39 = vld [vmem:[#allocation3 + $0x89] sm:$0xff]  ;;  %v6438_v44 = vld [vmem:[#allocation3 + $0x91] sm:$0xff] }
 0x499   : > { %9311 = vmatmul.mubr.f32.gmra.mrb[30].mxu1 %v5826_v50  ;;  %v7593_v50 = vld [vmem:[%s12533_s4 + $0x410] sm:$0xff] }
 0x49a   : > { %9313 = vmatprep.mubr.f32.mxu1 %v5827_v14  ;;  %9747 = vmatpush3.bf16.msra.mxu1 %v9744_v4  ;;  %v5844_v4 = vld [vmem:[#allocation3 + $0x1af] sm:$0xff]  ;;  %v9772_v7 = vpack.c.bf16 %v7594_v33, %v7593_v50 }
 0x49b   : > { %9749 = vmatprep.subr.bf16.mxu1 %v9748_v43  ;;  %v6455_v50 = vld [vmem:[#allocation3 + $0x1a9] sm:$0xff]  ;;  %v6456_v33 = vld [vmem:[#allocation3 + $0x1b1] sm:$0xff] }
 0x49d   : > { %9314 = vmatmul.mubr.f32.gmra.mrb[0].mxu1 %v5828_v23  ;;  %v7600_v23 = vld [vmem:[%s12533_s4 + $0x448] sm:$0xff] }
 0x49e   : > { %9316 = vmatprep.mubr.f32.mxu1 %v5829_v37  ;;  %9751 = vmatpush3.bf16.msra.mxu1 %v9748_v43  ;;  %v10346_v43 = vld [vmem:[#allocation3 + $0x7] sm:$0xff]  ;;  %v7606_v37 = vld [vmem:[%s12533_s4 + $0x478] sm:$0xff] }
 0x49f   : > { %9753 = vmatprep.subr.bf16.mxu1 %v9752_v29 }
 0x4a1   : > { %9317 = vmatmul.mubr.f32.gmra.mrb[2].mxu1 %v5830_v34  ;;  %v6148_v34 = vld [vmem:[#allocation3 + $0x190] sm:$0xff] }
 0x4a2   : > { %9319 = vmatprep.mubr.f32.mxu1 %v5831_v57  ;;  %9755 = vmatpush3.bf16.msra.mxu1 %v9752_v29  ;;  %v7598_v29 = vld [vmem:[%s12533_s4 + $0x438] sm:$0xff]  ;;  %v6154_v57 = vld [vmem:[#allocation3 + $0x1f0] sm:$0xff] }
 0x4a3   : > { %9757 = vmatprep.subr.bf16.mxu1 %v9756_v1 }
 0x4a5   : > { %9320 = vmatmul.mubr.f32.gmra.mrb[4].mxu1 %v5832_v16  ;;  %v6156_v16 = vld [vmem:[#allocation3 + $0x210] sm:$0xff] }
 0x4a6   : > { %9322 = vmatprep.mubr.f32.mxu1 %v5833_v32  ;;  %9759 = vmatpush3.bf16.msra.mxu1 %v9756_v1  ;;  %v6145_v1 = vld [vmem:[#allocation3 + $0x168] sm:$0xff]  ;;  %v6434_v32 = vld [vmem:[#allocation3 + $0x51] sm:$0xff] }
 0x4a7   : > { %9761 = vmatprep.subr.bf16.mxu1 %v9760_v13 }
 0x4a9   : > { %9323 = vmatmul.mubr.f32.gmra.mrb[6].mxu1 %v5834_v2  ;;  %v6436_v2 = vld [vmem:[#allocation3 + $0x71] sm:$0xff] }
 0x4aa   : > { %9325 = vmatprep.mubr.f32.mxu1 %v5835_v49  ;;  %9763 = vmatpush3.bf16.msra.mxu1 %v9760_v13  ;;  %v6157_v13 = vld [vmem:[#allocation3 + $0x228] sm:$0xff] }
 0x4ab   : > { %9765 = vmatprep.subr.bf16.mxu1 %v9764_v41  ;;  %v6439_v49 = vld [vmem:[#allocation3 + $0xa9] sm:$0xff] }
 0x4ad   : > { %9326 = vmatmul.mubr.f32.gmra.mrb[8].mxu1 %v5836_v15  ;;  %v6441_v15 = vld [vmem:[#allocation3 + $0xc9] sm:$0xff] }
 0x4ae   : > { %9328 = vmatprep.mubr.f32.mxu1 %v5837_v59  ;;  %9767 = vmatpush3.bf16.msra.mxu1 %v9764_v41  ;;  %v6435_v41 = vld [vmem:[#allocation3 + $0x69] sm:$0xff]  ;;  %v6442_v59 = vld [vmem:[#allocation3 + $0xd1] sm:$0xff] }
 0x4af   : > { %9769 = vmatprep.subr.bf16.mxu1 %v9768_v55 }
 0x4b1   : > { %9329 = vmatmul.mubr.f32.gmra.mrb[10].mxu1 %v5838_v28  ;;  %v6443_v28 = vld [vmem:[#allocation3 + $0xe9] sm:$0xff] }
 0x4b2   : > { %9331 = vmatprep.mubr.f32.mxu1 %v5839_v0  ;;  %v6444_v0 = vld [vmem:[#allocation3 + $0xf1] sm:$0xff] }
 0x4b5   : > { %9332 = vmatmul.mubr.f32.gmra.mrb[12].mxu1 %v5840_v47  ;;  %v6445_v47 = vld [vmem:[#allocation3 + $0x109] sm:$0xff] }
 0x4b6   : > { %9334 = vmatprep.mubr.f32.mxu1 %v5841_v17  ;;  %v6446_v17 = vld [vmem:[#allocation3 + $0x111] sm:$0xff] }
 0x4b9   : > { %9335 = vmatmul.mubr.f32.gmra.mrb[14].mxu1 %v5842_v36  ;;  %v6447_v36 = vld [vmem:[#allocation3 + $0x129] sm:$0xff] }
 0x4ba   : > { %9337 = vmatprep.mubr.f32.mxu1 %v5843_v19  ;;  %v6448_v19 = vld [vmem:[#allocation3 + $0x131] sm:$0xff] }
 0x4bd   : > { %9338 = vmatmul.mubr.f32.gmra.mrb[16].mxu1 %v5844_v4  ;;  %v6449_v4 = vld [vmem:[#allocation3 + $0x149] sm:$0xff] }
 0x4be   : > { %9340 = vmatprep.mubr.f32.mxu1 %v5845_v62  ;;  %v6450_v62 = vld [vmem:[#allocation3 + $0x151] sm:$0xff] }
 0x4c1   : > { %9341 = vmatmul.mubr.f32.gmra.mrb[18].mxu1 %v5846_v51  ;;  %v6451_v51 = vld [vmem:[#allocation3 + $0x169] sm:$0xff] }
 0x4c2   : > { %9343 = vmatprep.mubr.f32.mxu1 %v5847_v3  ;;  %v6452_v3 = vld [vmem:[#allocation3 + $0x171] sm:$0xff] }
 0x4c5   : > { %9344 = vmatmul.mubr.f32.gmra.mrb[20].mxu1 %v5848_v40  ;;  %v6453_v40 = vld [vmem:[#allocation3 + $0x189] sm:$0xff] }
 0x4c6   : > { %9346 = vmatprep.mubr.f32.mxu1 %v12029_v20  ;;  %v7595_v20 = vld [vmem:[%s12533_s4 + $0x420] sm:$0xff] }
 0x4c9   : > { %9347 = vmatmul.mubr.f32.gmra.mrb[22].mxu1 %v12032_v22  ;;  %v7596_v22 = vld [vmem:[%s12533_s4 + $0x428] sm:$0xff] }
 0x4ca   : > { %9349 = vmatprep.mubr.f32.mxu1 %v10346_v43  ;;  %v9776_v14 = vpack.c.bf16 %v7596_v22, %v7595_v20  ;;  %v6458_v20 = vld [vmem:[#allocation3 + $0x1d1] sm:$0xff]  ;;  %v6459_v22 = vld [vmem:[#allocation3 + $0x1e9] sm:$0xff] }
 0x4cd   : > { %9350 = vmatmul.mubr.f32.gmra.mrb[24].mxu1 %v10346_v43  ;;  %v6454_v43 = vld [vmem:[#allocation3 + $0x191] sm:$0xff] }
 0x4ce   : > { %9384 = vmatprep.mubr.f32.mxu1 %v12047_v42  ;;  %v7597_v42 = vld [vmem:[%s12533_s4 + $0x430] sm:$0xff] }
 0x4d1   : > { %9385 = vmatmul.mubr.f32.vlgmr.msra.gmra.mrb[26].mxu1 %v12050_v56  ;;  %v9780_v56 = vpack.c.bf16 %v7598_v29, %v7597_v42  ;;  %v6463_v42 = vld [vmem:[#allocation3 + $0x229] sm:$0xff]  ;;  %v6464_v29 = vld [vmem:[#allocation3 + $0x231] sm:$0xff] }
 0x4d2   : > { %9771 = vmatpush3.bf16.msra.mxu1 %v9768_v55  ;;  %9387 = vmatprep.mubr.f32.mxu1 %v12059_v10  ;;  %v7599_v10 = vld [vmem:[%s12533_s4 + $0x440] sm:$0xff]  ;;  %v6440_v55 = vld [vmem:[#allocation3 + $0xb1] sm:$0xff] }
 0x4d3   : > { %9773 = vmatprep.subr.bf16.mxu1 %v9772_v7 }
 0x4d5   : > { %9388 = vmatmul.mubr.f32.gmra.mrb[28].mxu1 %v12062_v60  ;;  %v9784_v60 = vpack.c.bf16 %v7600_v23, %v7599_v10  ;;  %v6863_v23 = vlaneseq }
 0x4d6   : > { %9390 = vmatprep.mubr.f32.mxu1 %v12071_v35  ;;  %9775 = vmatpush3.bf16.msra.mxu1 %v9772_v7  ;;  %v7601_v35 = vld [vmem:[%s12533_s4 + $0x450] sm:$0xff] }
 0x4d7   : > { %9777 = vmatprep.subr.bf16.mxu1 %v9776_v14  ;;  %v6457_v7 = vld [vmem:[#allocation3 + $0x1c9] sm:$0xff] }
 0x4d9   : > { %9391 = vmatmul.mubr.f32.gmra.mrb[30].mxu1 %v12074_v30  ;;  %v9788_v30 = vpack.c.bf16 %v7602_v26, %v7601_v35 }
 0x4da   : > { %9393 = vmatprep.mubr.f32.mxu1 %v12083_v5  ;;  %9779 = vmatpush3.bf16.msra.mxu1 %v9776_v14  ;;  %v7603_v5 = vld [vmem:[%s12533_s4 + $0x460] sm:$0xff]  ;;  %v6460_v14 = vld [vmem:[#allocation3 + $0x1f1] sm:$0xff] }
 0x4db   : > { %9781 = vmatprep.subr.bf16.mxu1 %v9780_v56 }
 0x4dd   : > { %9394 = vmatmul.mubr.f32.gmra.mrb[0].mxu1 %v12086_v46  ;;  %v9792_v46 = vpack.c.bf16 %v7604_v31, %v7603_v5  ;;  %v12712_v5 = vld [vmem:[#allocation4_spill] sm:$0xff] }
 0x4de   : > { %9396 = vmatprep.mubr.f32.mxu1 %v12095_v52  ;;  %9783 = vmatpush3.bf16.msra.mxu1 %v9780_v56  ;;  %v7605_v52 = vld [vmem:[%s12533_s4 + $0x470] sm:$0xff] }
 0x4df   : > { %9785 = vmatprep.subr.bf16.mxu1 %v9784_v60 }
 0x4e1   : > { %9397 = vmatmul.mubr.f32.gmra.mrb[2].mxu1 %v12098_v61  ;;  %v9796_v61 = vpack.c.bf16 %v7606_v37, %v7605_v52 }
 0x4e2   : > { %9399 = vmatprep.mubr.f32.mxu1 %v12107_v25  ;;  %9787 = vmatpush3.bf16.msra.mxu1 %v9784_v60  ;;  %v6143_v25 = vld [vmem:[#allocation3 + $0x148] sm:$0xff]  ;;  %v6864_v60 = vshrl.u32 %v6863_v23, 7 }
 0x4e3   : > { %9789 = vmatprep.subr.bf16.mxu1 %v9788_v30 }
 0x4e4   : > { %v6865_v35 = vsub.s32 0, %v6864_v60 }
 0x4e5   : > { %9400 = vmatmul.mubr.f32.gmra.mrb[4].mxu1 %v12110_v27  ;;  %v6146_v27 = vld [vmem:[#allocation3 + $0x170] sm:$0xff] }
 0x4e6   : > { %9402 = vmatprep.mubr.f32.mxu1 %v12119_v38  ;;  %9791 = vmatpush3.bf16.msra.mxu1 %v9788_v30  ;;  %v6147_v38 = vld [vmem:[#allocation3 + $0x188] sm:$0xff]  ;;  %v12375_v30 = vld [vmem:[%s12534_s5] ss:$0 sm:$0xff] }
 0x4e7   : > { %9793 = vmatprep.subr.bf16.mxu1 %v9792_v46 }
 0x4e9   : > { %9403 = vmatmul.mubr.f32.gmra.mrb[6].mxu1 %v12122_v63  ;;  %v6149_v63 = vld [vmem:[#allocation3 + $0x1a8] sm:$0xff] }
 0x4ea   : > { %9405 = vmatprep.mubr.f32.mxu1 %v12125_v9  ;;  %9795 = vmatpush3.bf16.msra.mxu1 %v9792_v46  ;;  %v6150_v9 = vld [vmem:[#allocation3 + $0x1b0] sm:$0xff] }
 0x4eb   : > { %9797 = vmatprep.subr.bf16.mxu1 %v9796_v61 }
 0x4ed   : > { %9406 = vmatmul.mubr.f32.gmra.mrb[8].mxu1 %v12128_v11  ;;  %v6152_v11 = vld [vmem:[#allocation3 + $0x1d0] sm:$0xff] }
 0x4ee   : > { %9408 = vmatprep.mubr.f32.mxu1 %v6143_v25  ;;  %9799 = vmatpush3.bf16.msra.mxu1 %v9796_v61 }
 0x4f1   : > { %9409 = vmatmul.mubr.f32.gmra.mrb[10].mxu1 %v12132_v58  ;;  %v6155_v58 = vld [vmem:[#allocation3 + $0x208] sm:$0xff] }
 0x4f2   : > { %9411 = vmatprep.mubr.f32.mxu1 %v6145_v1 }
 0x4f5   : > { %9412 = vmatmul.mubr.f32.gmra.mrb[12].mxu1 %v6146_v27 }
 0x4f6   : > { %9414 = vmatprep.mubr.f32.mxu1 %v6147_v38 }
 0x4f9   : > { %9415 = vmatmul.mubr.f32.gmra.mrb[14].mxu1 %v6148_v34 }
 0x4fa   : > { %9417 = vmatprep.mubr.f32.mxu1 %v6149_v63 }
 0x4fd   : > { %9418 = vmatmul.mubr.f32.gmra.mrb[16].mxu1 %v6150_v9 }
 0x4fe   : > { %9420 = vmatprep.mubr.f32.mxu1 %v6151_v45 }
 0x501   : > { %9421 = vmatmul.mubr.f32.gmra.mrb[18].mxu1 %v6152_v11 }
 0x502   : > { %9423 = vmatprep.mubr.f32.mxu1 %v6153_v53 }
 0x505   : > { %9424 = vmatmul.mubr.f32.gmra.mrb[20].mxu1 %v6154_v57 }
 0x506   : > { %9426 = vmatprep.mubr.f32.mxu1 %v6155_v58 }
 0x509   : > { %9427 = vmatmul.mubr.f32.gmra.mrb[22].mxu1 %v6156_v16 }
 0x50a   : > { %9429 = vmatprep.mubr.f32.mxu1 %v6157_v13 }
 0x50d   : > { %9430 = vmatmul.mubr.f32.gmra.mrb[24].mxu1 %v6158_v21 }
 0x50e   : > { %9464 = vmatprep.mubr.f32.mxu1 %v6433_v12 }
 0x511   : > { %9465 = vmatmul.mubr.f32.vlgmr.msra.gmra.mrb[26].mxu1 %v6434_v32 }
 0x512   : > { %9467 = vmatprep.mubr.f32.mxu1 %v6435_v41 }
 0x515   : > { %9468 = vmatmul.mubr.f32.gmra.mrb[28].mxu1 %v6436_v2 }
 0x516   : > { %9470 = vmatprep.mubr.f32.mxu1 %v6437_v39 }
 0x519   : > { %9471 = vmatmul.mubr.f32.gmra.mrb[30].mxu1 %v6438_v44 }
 0x51a   : > { %9473 = vmatprep.mubr.f32.mxu1 %v6439_v49 }
 0x51d   : > { %9474 = vmatmul.mubr.f32.gmra.mrb[0].mxu1 %v6440_v55 }
 0x51e   : > { %9476 = vmatprep.mubr.f32.mxu1 %v6441_v15 }
 0x521   : > { %9477 = vmatmul.mubr.f32.gmra.mrb[2].mxu1 %v6442_v59 }
 0x522   : > { %9479 = vmatprep.mubr.f32.mxu1 %v6443_v28 }
 0x525   : > { %9480 = vmatmul.mubr.f32.gmra.mrb[4].mxu1 %v6444_v0 }
 0x526   : > { %9482 = vmatprep.mubr.f32.mxu1 %v6445_v47 }
 0x529   : > { %9483 = vmatmul.mubr.f32.gmra.mrb[6].mxu1 %v6446_v17 }
 0x52a   : > { %9485 = vmatprep.mubr.f32.mxu1 %v6447_v36 }
 0x52d   : > { %9486 = vmatmul.mubr.f32.gmra.mrb[8].mxu1 %v6448_v19 }
 0x52e   : > { %9488 = vmatprep.mubr.f32.mxu1 %v6449_v4 }
 0x531   : > { %9489 = vmatmul.mubr.f32.gmra.mrb[10].mxu1 %v6450_v62 }
 0x532   : > { %9491 = vmatprep.mubr.f32.mxu1 %v6451_v51 }
 0x535   : > { %9492 = vmatmul.mubr.f32.gmra.mrb[12].mxu1 %v6452_v3 }
 0x536   : > { %9494 = vmatprep.mubr.f32.mxu1 %v6453_v40 }
 0x539   : > { %9495 = vmatmul.mubr.f32.gmra.mrb[14].mxu1 %v6454_v43 }
 0x53a   : > { %9497 = vmatprep.mubr.f32.mxu1 %v6455_v50 }
 0x53d   : > { %9498 = vmatmul.mubr.f32.gmra.mrb[16].mxu1 %v6456_v33 }
 0x53e   : > { %9500 = vmatprep.mubr.f32.mxu1 %v6457_v7 }
 0x541   : > { %9501 = vmatmul.mubr.f32.gmra.mrb[18].mxu1 %v6458_v20 }
 0x542   : > { %9503 = vmatprep.mubr.f32.mxu1 %v6459_v22 }
 0x545   : > { %9504 = vmatmul.mubr.f32.gmra.mrb[20].mxu1 %v6460_v14 }
 0x546   : > { %9506 = vmatprep.mubr.f32.mxu1 %v12226_v48 }
 0x549   : > { %9507 = vmatmul.mubr.f32.gmra.mrb[22].mxu1 %v12242_v24  ;;  %v12713_v24 = vld [vmem:[#allocation5_spill] sm:$0xff] }
 0x54a   : > { %9509 = vmatprep.mubr.f32.mxu1 %v6463_v42 }
 0x54d   : > { %9510 = vmatmul.mubr.f32.gmra.mrb[24].mxu1 %v6464_v29 }
 0x566   : > { %v6858_v56 = vpop.f32.mrb[38].mxu0 }
 0x567   : > { %v6860_v10 = vpop.f32.mrb[39].mxu0  ;;  %v12378_v46 = vrot.slane %v6858_v56, %v6865_v35 }
 0x568   : > { %v12382_v61 = vrot.slane %v6860_v10, %v6865_v35 }
 0x5e4   : > { %v9466_v26 = vpop.f32.mrb[26].mxu1 }
 0x5e5   : > { %v9824_v48 = vadd.f32 %v9466_v26, %v12712_v5  ;;  %v6548_v31 = vpop.f32.mrb[27].mxu1 }
 0x5e6   : > { %v9825_v52 = vadd.f32 %v6548_v31, %v12713_v24 }
 0x5e7   : > { %v6747_v37 = vadd.f32 %v9824_v48, %v12375_v30 }
 0x5e8   : > { %v6746_v25 = vadd.f32 %v9825_v52, %v12375_v30  ;;  %v9469_v1 = vpop.f32.mrb[28].mxu1 }
 0x5e9   : > { %v9826_v27 = vadd.f32 %v9469_v1, %v11998_v54  ;;  %v6558_v38 = vpop.f32.mrb[29].mxu1  ;;  %v6868_v34 = vmul.f32 %v12378_v46, %v6747_v37 }
 0x5ea   : > { %v9827_v63 = vadd.f32 %v6558_v38, %v12006_v6  ;;  %v6867_v9 = vmul.f32 %v12378_v46, %v6746_v25 }
 0x5eb   : > { %v6749_v45 = vadd.f32 %v9826_v27, %v12375_v30  ;;  %v6904_v11 = vadd.f32 %v12382_v61, %v6868_v34 }
 0x5ec   : > { %v6748_v54 = vadd.f32 %v9827_v63, %v12375_v30  ;;  %v6903_v53 = vadd.f32 %v12382_v61, %v6867_v9  ;;  %v9472_v57 = vpop.f32.mrb[30].mxu1 }
 0x5ed   : > { %v6870_v58 = vmul.f32 %v12378_v46, %v6749_v45  ;;  %6936 = vst [vmem:[%s12392_s18 + $0x8] sm:$0xff] %v6904_v11  ;;  %v7006_v13 = vmul.f32 %v6904_v11, %v6904_v11  ;;  %v9828_v16 = vadd.f32 %v9472_v57, %v12010_v18  ;;  %v6568_v21 = vpop.f32.mrb[31].mxu1 }
 0x5ee   : > { %v6869_v6 = vmul.f32 %v12378_v46, %v6748_v54  ;;  %6935 = vst [vmem:[%s12392_s18] sm:$0xff] %v6903_v53  ;;  %v6967_v12 = vadd.f32 %v6904_v11, %v6903_v53  ;;  %v7005_v32 = vmul.f32 %v6903_v53, %v6903_v53  ;;  %v9829_v41 = vadd.f32 %v6568_v21, %v12012_v8 }
 0x5ef   : > { %v6751_v2 = vadd.f32 %v9828_v16, %v12375_v30  ;;  %v6906_v39 = vadd.f32 %v12382_v61, %v6870_v58 }
 0x5f0   : > { %v6905_v44 = vadd.f32 %v12382_v61, %v6869_v6  ;;  %v7037_v49 = vadd.f32 %v7006_v13, %v7005_v32  ;;  %v6750_v55 = vadd.f32 %v9829_v41, %v12375_v30  ;;  %v9475_v15 = vpop.f32.mrb[0].mxu1 }
 0x5f1   : > { %v6872_v18 = vmul.f32 %v12378_v46, %v6751_v2  ;;  %6938 = vst [vmem:[%s12392_s18 + $0x18] sm:$0xff] %v6906_v39  ;;  %v6753_v59 = vadd.f32 %v9475_v15, %v12375_v30  ;;  %v6578_v28 = vpop.f32.mrb[1].mxu1  ;;  %v7008_v19 = vmul.f32 %v6906_v39, %v6906_v39 }
 0x5f2   : > { %6937 = vst [vmem:[%s12392_s18 + $0x10] sm:$0xff] %v6905_v44  ;;  %v6968_v0 = vadd.f32 %v6967_v12, %v6905_v44  ;;  %v7007_v8 = vmul.f32 %v6905_v44, %v6905_v44  ;;  %v6871_v47 = vmul.f32 %v12378_v46, %v6750_v55  ;;  %v6752_v17 = vadd.f32 %v12375_v30, %v6578_v28 }
 0x5f3   : > { %v6908_v36 = vadd.f32 %v12382_v61, %v6872_v18  ;;  %v6874_v4 = vmul.f32 %v12378_v46, %v6753_v59 }
 0x5f4   : > { %v7038_v62 = vadd.f32 %v7037_v49, %v7007_v8  ;;  %v6907_v51 = vadd.f32 %v12382_v61, %v6871_v47  ;;  %v6969_v3 = vadd.f32 %v6968_v0, %v6906_v39  ;;  %v6873_v40 = vmul.f32 %v12378_v46, %v6752_v17  ;;  %v9478_v43 = vpop.f32.mrb[2].mxu1 }
 0x5f5   : > { %6940 = vst [vmem:[%s12392_s18 + $0x28] sm:$0xff] %v6908_v36  ;;  %v6910_v50 = vadd.f32 %v12382_v61, %v6874_v4  ;;  %v6755_v33 = vadd.f32 %v9478_v43, %v12375_v30  ;;  %v6588_v7 = vpop.f32.mrb[3].mxu1  ;;  %v7010_v10 = vmul.f32 %v6908_v36, %v6908_v36 }
 0x5f6   : > { %6939 = vst [vmem:[%s12392_s18 + $0x20] sm:$0xff] %v6907_v51  ;;  %v6970_v20 = vadd.f32 %v6969_v3, %v6907_v51  ;;  %v7009_v22 = vmul.f32 %v6907_v51, %v6907_v51  ;;  %v7039_v14 = vadd.f32 %v7038_v62, %v7008_v19  ;;  %v6909_v42 = vadd.f32 %v12382_v61, %v6873_v40 }
 0x5f7   : > { %6942 = vst [vmem:[%s12392_s18 + $0x38] sm:$0xff] %v6910_v50  ;;  %v6876_v29 = vmul.f32 %v12378_v46, %v6755_v33  ;;  %v6754_v56 = vadd.f32 %v12375_v30, %v6588_v7  ;;  %v7012_v38 = vmul.f32 %v6910_v50, %v6910_v50 }
 0x5f8   : > { %v7040_v23 = vadd.f32 %v7039_v14, %v7009_v22  ;;  %6941 = vst [vmem:[%s12392_s18 + $0x30] sm:$0xff] %v6909_v42  ;;  %v6971_v60 = vadd.f32 %v6970_v20, %v6908_v36  ;;  %v9481_v35 = vpop.f32.mrb[4].mxu1  ;;  %v7011_v52 = vmul.f32 %v6909_v42, %v6909_v42 }
 0x5f9   : > { %v6912_v26 = vadd.f32 %v12382_v61, %v6876_v29  ;;  %v6875_v5 = vmul.f32 %v12378_v46, %v6754_v56  ;;  %v6757_v48 = vadd.f32 %v9481_v35, %v12375_v30  ;;  %v6598_v31 = vpop.f32.mrb[5].mxu1 }
 0x5fa   : > { %v6972_v24 = vadd.f32 %v6971_v60, %v6909_v42  ;;  %v7041_v37 = vadd.f32 %v7040_v23, %v7010_v10  ;;  %v6756_v25 = vadd.f32 %v12375_v30, %v6598_v31 }
 0x5fb   : > { %6944 = vst [vmem:[%s12392_s18 + $0x48] sm:$0xff] %v6912_v26  ;;  %v6911_v1 = vadd.f32 %v12382_v61, %v6875_v5  ;;  %v6878_v27 = vmul.f32 %v12378_v46, %v6757_v48  ;;  %v7014_v12 = vmul.f32 %v6912_v26, %v6912_v26 }
 0x5fc   : > { %v7042_v34 = vadd.f32 %v7041_v37, %v7011_v52  ;;  %v6973_v63 = vadd.f32 %v6972_v24, %v6910_v50  ;;  %v6877_v9 = vmul.f32 %v12378_v46, %v6756_v25  ;;  %v9484_v45 = vpop.f32.mrb[6].mxu1 }
 0x5fd   : > { %6943 = vst [vmem:[%s12392_s18 + $0x40] sm:$0xff] %v6911_v1  ;;  %v7013_v11 = vmul.f32 %v6911_v1, %v6911_v1  ;;  %v6914_v54 = vadd.f32 %v12382_v61, %v6878_v27  ;;  %v6759_v53 = vadd.f32 %v9484_v45, %v12375_v30  ;;  %v6608_v57 = vpop.f32.mrb[7].mxu1 }
 0x5fe   : > { %v6974_v58 = vadd.f32 %v6973_v63, %v6911_v1  ;;  %v7043_v13 = vadd.f32 %v7042_v34, %v7012_v38  ;;  %v6913_v16 = vadd.f32 %v12382_v61, %v6877_v9  ;;  %v6758_v21 = vadd.f32 %v12375_v30, %v6608_v57 }
 0x5ff   : > { %6946 = vst [vmem:[%s12392_s18 + $0x58] sm:$0xff] %v6914_v54  ;;  %v6880_v6 = vmul.f32 %v12378_v46, %v6759_v53  ;;  %v7016_v47 = vmul.f32 %v6914_v54, %v6914_v54 }
 0x600   : > { %v7044_v32 = vadd.f32 %v7043_v13, %v7013_v11  ;;  %6945 = vst [vmem:[%s12392_s18 + $0x50] sm:$0xff] %v6913_v16  ;;  %v6975_v41 = vadd.f32 %v6974_v58, %v6912_v26  ;;  %v6879_v2 = vmul.f32 %v12378_v46, %v6758_v21  ;;  %v9487_v39 = vpop.f32.mrb[8].mxu1  ;;  %v7015_v44 = vmul.f32 %v6913_v16, %v6913_v16 }
 0x601   : > { %v6916_v49 = vadd.f32 %v12382_v61, %v6880_v6  ;;  %v6761_v55 = vadd.f32 %v9487_v39, %v12375_v30  ;;  %v6618_v15 = vpop.f32.mrb[9].mxu1 }
 0x602   : > { %v6976_v18 = vadd.f32 %v6975_v41, %v6913_v16  ;;  %v7045_v59 = vadd.f32 %v7044_v32, %v7014_v12  ;;  %v6915_v28 = vadd.f32 %v12382_v61, %v6879_v2  ;;  %v6760_v0 = vadd.f32 %v12375_v30, %v6618_v15 }
 0x603   : > { %6948 = vst [vmem:[%s12392_s18 + $0x68] sm:$0xff] %v6916_v49  ;;  %v6882_v8 = vmul.f32 %v12378_v46, %v6761_v55  ;;  %v7018_v22 = vmul.f32 %v6916_v49, %v6916_v49 }
 0x604   : > { %v7046_v17 = vadd.f32 %v7045_v59, %v7015_v44  ;;  %6947 = vst [vmem:[%s12392_s18 + $0x60] sm:$0xff] %v6915_v28  ;;  %v6977_v36 = vadd.f32 %v6976_v18, %v6914_v54  ;;  %v6881_v19 = vmul.f32 %v12378_v46, %v6760_v0  ;;  %v9490_v4 = vpop.f32.mrb[10].mxu1  ;;  %v7017_v62 = vmul.f32 %v6915_v28, %v6915_v28 }
 0x605   : > { %v6918_v51 = vadd.f32 %v12382_v61, %v6882_v8  ;;  %v6763_v3 = vadd.f32 %v9490_v4, %v12375_v30  ;;  %v6628_v40 = vpop.f32.mrb[11].mxu1 }
 0x606   : > { %v6978_v43 = vadd.f32 %v6977_v36, %v6915_v28  ;;  %v7047_v50 = vadd.f32 %v7046_v17, %v7016_v47  ;;  %v6917_v33 = vadd.f32 %v12382_v61, %v6881_v19  ;;  %v6762_v7 = vadd.f32 %v12375_v30, %v6628_v40 }
 0x607   : > { %6950 = vst [vmem:[%s12392_s18 + $0x78] sm:$0xff] %v6918_v51  ;;  %v6884_v20 = vmul.f32 %v12378_v46, %v6763_v3  ;;  %v7020_v52 = vmul.f32 %v6918_v51, %v6918_v51 }
 0x608   : > { %v7048_v14 = vadd.f32 %v7047_v50, %v7017_v62  ;;  %6949 = vst [vmem:[%s12392_s18 + $0x70] sm:$0xff] %v6917_v33  ;;  %v6979_v42 = vadd.f32 %v6978_v43, %v6916_v49  ;;  %v6883_v29 = vmul.f32 %v12378_v46, %v6762_v7  ;;  %v9493_v56 = vpop.f32.mrb[12].mxu1  ;;  %v7019_v10 = vmul.f32 %v6917_v33, %v6917_v33 }
 0x609   : > { %v6920_v23 = vadd.f32 %v12382_v61, %v6884_v20  ;;  %v6765_v60 = vadd.f32 %v9493_v56, %v12375_v30  ;;  %v6638_v35 = vpop.f32.mrb[13].mxu1 }
 0x60a   : > { %v6980_v26 = vadd.f32 %v6979_v42, %v6917_v33  ;;  %v7049_v5 = vadd.f32 %v7048_v14, %v7018_v22  ;;  %v6919_v48 = vadd.f32 %v12382_v61, %v6883_v29  ;;  %v6764_v31 = vadd.f32 %v12375_v30, %v6638_v35 }
 0x60b   : > { %6952 = vst [vmem:[%s12392_s18 + $0x88] sm:$0xff] %v6920_v23  ;;  %v6886_v24 = vmul.f32 %v12378_v46, %v6765_v60  ;;  %v7022_v58 = vmul.f32 %v6920_v23, %v6920_v23 }
 0x60c   : > { %v7050_v37 = vadd.f32 %v7049_v5, %v7019_v10  ;;  %6951 = vst [vmem:[%s12392_s18 + $0x80] sm:$0xff] %v6919_v48  ;;  %v6981_v25 = vadd.f32 %v6980_v26, %v6918_v51  ;;  %v6885_v1 = vmul.f32 %v12378_v46, %v6764_v31  ;;  %v9496_v27 = vpop.f32.mrb[14].mxu1  ;;  %v7021_v38 = vmul.f32 %v6919_v48, %v6919_v48 }
 0x60d   : > { %v6922_v34 = vadd.f32 %v12382_v61, %v6886_v24  ;;  %v6767_v63 = vadd.f32 %v9496_v27, %v12375_v30  ;;  %v6648_v9 = vpop.f32.mrb[15].mxu1 }
 0x60e   : > { %v6982_v45 = vadd.f32 %v6981_v25, %v6919_v48  ;;  %v7051_v11 = vadd.f32 %v7050_v37, %v7020_v52  ;;  %v6921_v54 = vadd.f32 %v12382_v61, %v6885_v1  ;;  %v6766_v53 = vadd.f32 %v12375_v30, %v6648_v9 }
 0x60f   : > { %6954 = vst [vmem:[%s12392_s18 + $0x98] sm:$0xff] %v6922_v34  ;;  %v6888_v57 = vmul.f32 %v12378_v46, %v6767_v63  ;;  %v7024_v18 = vmul.f32 %v6922_v34, %v6922_v34 }
 0x610   : > { %v7052_v13 = vadd.f32 %v7051_v11, %v7021_v38  ;;  %6953 = vst [vmem:[%s12392_s18 + $0x90] sm:$0xff] %v6921_v54  ;;  %v6983_v16 = vadd.f32 %v6982_v45, %v6920_v23  ;;  %v6887_v21 = vmul.f32 %v12378_v46, %v6766_v53  ;;  %v9499_v6 = vpop.f32.mrb[16].mxu1  ;;  %v7023_v12 = vmul.f32 %v6921_v54, %v6921_v54 }
 0x611   : > { %v6924_v32 = vadd.f32 %v12382_v61, %v6888_v57  ;;  %v6769_v41 = vadd.f32 %v9499_v6, %v12375_v30  ;;  %v6658_v2 = vpop.f32.mrb[17].mxu1 }
 0x612   : > { %v6984_v39 = vadd.f32 %v6983_v16, %v6921_v54  ;;  %v7053_v44 = vadd.f32 %v7052_v13, %v7022_v58  ;;  %v6923_v49 = vadd.f32 %v12382_v61, %v6887_v21  ;;  %v6768_v55 = vadd.f32 %v12375_v30, %v6658_v2 }
 0x613   : > { %6956 = vst [vmem:[%s12392_s18 + $0xa8] sm:$0xff] %v6924_v32  ;;  %v6890_v15 = vmul.f32 %v12378_v46, %v6769_v41  ;;  %v7026_v43 = vmul.f32 %v6924_v32, %v6924_v32 }
 0x614   : > { %v7054_v59 = vadd.f32 %v7053_v44, %v7023_v12  ;;  %6955 = vst [vmem:[%s12392_s18 + $0xa0] sm:$0xff] %v6923_v49  ;;  %v6985_v28 = vadd.f32 %v6984_v39, %v6922_v34  ;;  %v6889_v0 = vmul.f32 %v12378_v46, %v6768_v55  ;;  %v9502_v8 = vpop.f32.mrb[18].mxu1  ;;  %v7025_v47 = vmul.f32 %v6923_v49, %v6923_v49 }
 0x615   : > { %v6926_v17 = vadd.f32 %v12382_v61, %v6890_v15  ;;  %v6771_v36 = vadd.f32 %v9502_v8, %v12375_v30  ;;  %v6668_v19 = vpop.f32.mrb[19].mxu1 }
 0x616   : > { %v6986_v4 = vadd.f32 %v6985_v28, %v6923_v49  ;;  %v7055_v62 = vadd.f32 %v7054_v59, %v7024_v18  ;;  %v6925_v51 = vadd.f32 %v12382_v61, %v6889_v0  ;;  %v6770_v3 = vadd.f32 %v12375_v30, %v6668_v19 }
 0x617   : > { %6958 = vst [vmem:[%s12392_s18 + $0xb8] sm:$0xff] %v6926_v17  ;;  %v6892_v40 = vmul.f32 %v12378_v46, %v6771_v36  ;;  %v7028_v26 = vmul.f32 %v6926_v17, %v6926_v17 }
 0x618   : > { %v7056_v50 = vadd.f32 %v7055_v62, %v7025_v47  ;;  %6957 = vst [vmem:[%s12392_s18 + $0xb0] sm:$0xff] %v6925_v51  ;;  %v6987_v33 = vadd.f32 %v6986_v4, %v6924_v32  ;;  %v6891_v7 = vmul.f32 %v12378_v46, %v6770_v3  ;;  %v9505_v20 = vpop.f32.mrb[20].mxu1  ;;  %v7027_v22 = vmul.f32 %v6925_v51, %v6925_v51 }
 0x619   : > { %v6928_v14 = vadd.f32 %v12382_v61, %v6892_v40  ;;  %v6773_v42 = vadd.f32 %v9505_v20, %v12375_v30  ;;  %v6678_v29 = vpop.f32.mrb[21].mxu1 }
 0x61a   : > { %v6988_v56 = vadd.f32 %v6987_v33, %v6925_v51  ;;  %v7057_v10 = vadd.f32 %v7056_v50, %v7026_v43  ;;  %v6927_v23 = vadd.f32 %v12382_v61, %v6891_v7  ;;  %v6772_v60 = vadd.f32 %v12375_v30, %v6678_v29 }
 0x61b   : > { %6960 = vst [vmem:[%s12392_s18 + $0xc8] sm:$0xff] %v6928_v14  ;;  %v6894_v35 = vmul.f32 %v12378_v46, %v6773_v42  ;;  %v7030_v45 = vmul.f32 %v6928_v14, %v6928_v14 }
 0x61c   : > { %v7058_v5 = vadd.f32 %v7057_v10, %v7027_v22  ;;  %6959 = vst [vmem:[%s12392_s18 + $0xc0] sm:$0xff] %v6927_v23  ;;  %v6989_v48 = vadd.f32 %v6988_v56, %v6926_v17  ;;  %v6893_v31 = vmul.f32 %v12378_v46, %v6772_v60  ;;  %v9508_v24 = vpop.f32.mrb[22].mxu1  ;;  %v7029_v52 = vmul.f32 %v6927_v23, %v6927_v23 }
 0x61d   : > { %v6930_v37 = vadd.f32 %v12382_v61, %v6894_v35  ;;  %v6775_v25 = vadd.f32 %v9508_v24, %v12375_v30  ;;  %v6688_v1 = vpop.f32.mrb[23].mxu1 }
 0x61e   : > { %v6990_v27 = vadd.f32 %v6989_v48, %v6927_v23  ;;  %v7059_v38 = vadd.f32 %v7058_v5, %v7028_v26  ;;  %v6929_v34 = vadd.f32 %v12382_v61, %v6893_v31  ;;  %v6774_v63 = vadd.f32 %v12375_v30, %v6688_v1 }
 0x61f   : > { %6962 = vst [vmem:[%s12392_s18 + $0xd8] sm:$0xff] %v6930_v37  ;;  %v6896_v9 = vmul.f32 %v12378_v46, %v6775_v25  ;;  %v7032_v39 = vmul.f32 %v6930_v37, %v6930_v37 }
 0x620   : > { %v7060_v11 = vadd.f32 %v7059_v38, %v7029_v52  ;;  %6961 = vst [vmem:[%s12392_s18 + $0xd0] sm:$0xff] %v6929_v34  ;;  %v6991_v54 = vadd.f32 %v6990_v27, %v6928_v14  ;;  %v6895_v53 = vmul.f32 %v12378_v46, %v6774_v63  ;;  %v9511_v57 = vpop.f32.mrb[24].mxu1  ;;  %v7031_v58 = vmul.f32 %v6929_v34, %v6929_v34 }
 0x621   : > { %v6932_v13 = vadd.f32 %v12382_v61, %v6896_v9  ;;  %v6777_v16 = vadd.f32 %v9511_v57, %v12375_v30  ;;  %v6698_v21 = vpop.f32.mrb[25].mxu1 }
 0x622   : > { %v6992_v6 = vadd.f32 %v6991_v54, %v6929_v34  ;;  %v7061_v12 = vadd.f32 %v7060_v11, %v7030_v45  ;;  %v6931_v32 = vadd.f32 %v12382_v61, %v6895_v53  ;;  %v6776_v41 = vadd.f32 %v12375_v30, %v6698_v21 }
 0x623   : > { %6964 = vst [vmem:[%s12392_s18 + $0xe8] sm:$0xff] %v6932_v13  ;;  %v6898_v2 = vmul.f32 %v12378_v46, %v6777_v16  ;;  %v7034_v8 = vmul.f32 %v6932_v13, %v6932_v13 }
 0x624   : > { %v7062_v44 = vadd.f32 %v7061_v12, %v7031_v58  ;;  %6963 = vst [vmem:[%s12392_s18 + $0xe0] sm:$0xff] %v6931_v32  ;;  %v6993_v49 = vadd.f32 %v6992_v6, %v6930_v37  ;;  %v6897_v55 = vmul.f32 %v12378_v46, %v6776_v41  ;;  %v7033_v59 = vmul.f32 %v6931_v32, %v6931_v32 }
 0x625   : > { %v6934_v15 = vadd.f32 %v12382_v61, %v6898_v2 }
 0x626   : > { %v6994_v18 = vadd.f32 %v6993_v49, %v6931_v32  ;;  %v7063_v28 = vadd.f32 %v7062_v44, %v7032_v39  ;;  %v6933_v0 = vadd.f32 %v12382_v61, %v6897_v55 }
 0x627   : > { %6966 = vst [vmem:[%s12392_s18 + $0xf8] sm:$0xff] %v6934_v15  ;;  %v7036_v4 = vmul.f32 %v6934_v15, %v6934_v15 }
 0x628   : > { %v7064_v30 = vadd.f32 %v7063_v28, %v7033_v59  ;;  %6965 = vst [vmem:[%s12392_s18 + $0xf0] sm:$0xff] %v6933_v0  ;;  %v6995_v47 = vadd.f32 %v6994_v18, %v6932_v13  ;;  %v7035_v36 = vmul.f32 %v6933_v0, %v6933_v0 }
 0x62a   : > { %v6996_v17 = vadd.f32 %v6995_v47, %v6933_v0  ;;  %v7065_v19 = vadd.f32 %v7064_v30, %v7034_v8 }
 0x62c   : > { %v6997_v62 = vadd.f32 %v6996_v17, %v6934_v15  ;;  %v7066_v51 = vadd.f32 %v7065_v19, %v7035_v36 }
 0x62e   : > { %v6998_v46 = vrot.slane %v6997_v62, 4  ;;  %v7067_v3 = vadd.f32 %v7066_v51, %v7036_v4 }
 0x630   : > { %v6999_v40 = vadd.f32 %v6998_v46, %v6997_v62  ;;  %v7068_v43 = vrot.slane %v7067_v3, 4 }
 0x632   : > { %v7000_v50 = vrot.slane %v6999_v40, 2  ;;  %v7069_v33 = vadd.f32 %v7068_v43, %v7067_v3 }
 0x634   : > { %v7001_v61 = vadd.f32 %v7000_v50, %v6999_v40  ;;  %v7070_v7 = vrot.slane %v7069_v33, 2 }
 0x636   : > { %v7002_v20 = vrot.slane %v7001_v61, 1  ;;  %v7071_v22 = vadd.f32 %v7070_v7, %v7069_v33 }
 0x638   : > { %v7003_v14 = vadd.f32 %v7002_v20, %v7001_v61  ;;  %v7072_v42 = vrot.slane %v7071_v22, 1 }
 0x63a   : > { %7004 = vst [vmem:[%s316_s21] sm:$0x1] %v7003_v14  ;;  %v7073_v29 = vadd.f32 %v7072_v42, %v7071_v22 }
 0x63c   : > { %7074 = vst [vmem:[%s316_s21 + $0x1] sm:$0x1] %v7073_v29 }
 0x63d PF: > { %s19_s27 = sadd.s32 1, %s10353_s27  }
 0x63e   : > { %p16_p4 = scmp.ge.s32.totalorder %s19_s27, 4  }
 0x640   :  { %18 = sbr.rel (!%p16_p4) target bundleno = 1 (0x1), region = 113 }

</bundles_post_ra>
